<compile_context>
chip_gen: v7x
topology: tpu7x:2x2x1
jax: 0.10.0
libtpu: 0.0.40
codegen_flags: <defaults>
</compile_context>

<pallas_src>
import functools

import numpy as np

import jax
import jax.numpy as jnp
from jax import lax
from jax.experimental import pallas as pl
from jax.experimental.pallas import tpu as pltpu


_CONV_LAYERS = ("dc1", "dc2", "rf", "uc1", "uc2", "fin")
_BN_LAYERS = ("bn1", "bn2", "bn3", "bn4", "bn5")


# ------------------------- shape-only constants (built in the wrapper) -------------------------

def _tap_masks(h, w, n, k):
    """[k*k, n*h*w]: masks[u*k+v, m] == 1 iff tap (u, v) of output pixel m reads an
    in-bounds source pixel (implements the zero 'same' padding)."""
    pad = k // 2
    i = np.arange(h * w) // w
    j = np.arange(h * w) % w
    rows = []
    for u in range(k):
        for v in range(k):
            ii = i + (u - pad)
            jj = j + (v - pad)
            ok = ((ii >= 0) & (ii < h) & (jj >= 0) & (jj < w)).astype(np.float32)
            rows.append(np.tile(ok, n))
    return np.stack(rows, axis=0)


def _pool_matrix(h, w, n):
    """[n*h*w, n*(h//2)*(w//2)] 0/1 compaction: picks the top-left corner of each
    2x2 window (block-diagonal over the batch)."""
    h2, w2 = h // 2, w // 2
    single = np.zeros((h * w, h2 * w2), np.float32)
    for i in range(h2):
        for j in range(w2):
            single[(2 * i) * w + (2 * j), i * w2 + j] = 1.0
    return np.kron(np.eye(n, dtype=np.float32), single)


def _upsample_matrix(h, w, n):
    """[n*h*w, n*(2h)*(2w)] 0/1 replication for nearest-neighbour 2x upsampling."""
    ho, wo = 2 * h, 2 * w
    single = np.zeros((h * w, ho * wo), np.float32)
    for io in range(ho):
        for jo in range(wo):
            single[(io // 2) * w + (jo // 2), io * wo + jo] = 1.0
    return np.kron(np.eye(n, dtype=np.float32), single)


# ----------------------------------- in-kernel helpers -----------------------------------

def _lane_shift(x, s, size):
    """result[:, m] = x[:, (m + s) % size] for a static shift s (any sign).

    Stays entirely in registers (two static lane slices + concat == jnp.roll(x, -s));
    together with the precomputed tap masks this replaces the zero-margined VMEM staging
    scratch of the previous version.  Positions that would wrap are always masked out by
    the caller, so the circular wrap never contributes.
    """
    sh = s % size
    if sh == 0:
        return x
    return jnp.concatenate([x[:, sh:], x[:, :sh]], axis=1)


def _conv_same(x, masks_ref, wcat_ref, bcat_ref, layer, col_off, cin, cout, hh, ww, n, k):
    """'same' k x k conv with zero padding.  x: [cin, n*hh*ww] -> [cout, n*hh*ww].

    Tap (u, v) of output pixel m reads flat index m + (u-pad)*ww + (v-pad); that read is
    an in-register lane shift, and the per-tap mask zeroes contributions whose source
    pixel falls outside the image (== zero padding).  Accumulation is VPU outer-product
    broadcast FMAs ([cout,1] x [1, M]) per (tap, input channel).
    """
    m_len = n * hh * ww
    pad = k // 2
    w_layer = wcat_ref[0:cout, col_off:col_off + k * k * cin]        # [cout, k*k*cin]
    acc = jnp.zeros((cout, m_len), jnp.float32)
    for u in range(k):
        for v in range(k):
            t = u * k + v
            s = (u - pad) * ww + (v - pad)
            if s == 0:
                xt = x                                               # centre tap: mask == 1
            else:
                xt = _lane_shift(x, s, m_len) * masks_ref[t:t + 1, :]
            base = t * cin
            for ci in range(cin):
                acc = acc + w_layer[:, base + ci:base + ci + 1] * xt[ci:ci + 1, :]
    return acc + bcat_ref[0:cout, layer:layer + 1]                   # bias: [cout, 1]


def _maxpool2(y, ww, pool_ref):
    """2x2 / stride-2 max pool on [C, n*h*w]: max of shifted copies, then ONE 0/1
    compaction matmul (the shifted values only matter at the selected window corners,
    which never wrap)."""
    m_len = y.shape[1]
    a = jnp.maximum(y, _lane_shift(y, 1, m_len))
    a = jnp.maximum(a, _lane_shift(a, ww, m_len))
    return jnp.dot(a, pool_ref[...], preferred_element_type=jnp.float32)


def _upsample2(y, up_ref):
    """Nearest-neighbour 2x upsample via one 0/1 replication matmul."""
    return jnp.dot(y, up_ref[...], preferred_element_type=jnp.float32)


def _bn_relu(y, bn_ref, layer):
    """Training-mode BatchNorm2d (biased batch stats over N*H*W, eps=1e-5) + ReLU.
    The centered activation is computed once and reused for variance + normalization."""
    c = y.shape[0]
    gamma = bn_ref[0:c, 2 * layer:2 * layer + 1]                     # [C, 1]
    beta = bn_ref[0:c, 2 * layer + 1:2 * layer + 2]                  # [C, 1]
    mean = jnp.mean(y, axis=1, keepdims=True)                        # lane reduction
    centered = y - mean
    var = jnp.mean(centered * centered, axis=1, keepdims=True)
    scale = lax.rsqrt(var + 1e-5) * gamma
    return jnp.maximum(centered * scale + beta, 0.0)


# --------------------------------------- fused kernel ---------------------------------------

def _regression_cnn_kernel(x_ref, mf_ref, mh_ref, mq_ref,
                           pool1_ref, pool2_ref, up1_ref, up2_ref,
                           wcat_ref, bcat_ref, bn_ref, o_ref,
                           *, n, h, w, k, nf, col_offs):
    h2, w2 = h // 2, w // 2
    h4, w4 = h // 4, w // 4

    x = x_ref[...]                                                   # [1, N*H*W]

    # downconv1: Conv -> MaxPool(2) -> BN -> ReLU
    y = _conv_same(x, mf_ref, wcat_ref, bcat_ref, 0, col_offs[0], 1, nf, h, w, n, k)
    y = _maxpool2(y, w, pool1_ref)
    y = _bn_relu(y, bn_ref, 0)

    # downconv2: Conv -> MaxPool(2) -> BN -> ReLU
    y = _conv_same(y, mh_ref, wcat_ref, bcat_ref, 1, col_offs[1], nf, 2 * nf, h2, w2, n, k)
    y = _maxpool2(y, w2, pool2_ref)
    y = _bn_relu(y, bn_ref, 1)

    # rfconv: Conv -> BN -> ReLU
    y = _conv_same(y, mq_ref, wcat_ref, bcat_ref, 2, col_offs[2], 2 * nf, 2 * nf, h4, w4, n, k)
    y = _bn_relu(y, bn_ref, 2)

    # upconv1: Conv -> Upsample(2) -> BN -> ReLU
    y = _conv_same(y, mq_ref, wcat_ref, bcat_ref, 3, col_offs[3], 2 * nf, nf, h4, w4, n, k)
    y = _upsample2(y, up1_ref)
    y = _bn_relu(y, bn_ref, 3)

    # upconv2: Conv -> Upsample(2) -> BN -> ReLU
    y = _conv_same(y, mh_ref, wcat_ref, bcat_ref, 4, col_offs[4], nf, 3, h2, w2, n, k)
    y = _upsample2(y, up2_ref)
    y = _bn_relu(y, bn_ref, 4)

    # finalconv: MyConv2d(3, 3, kernel) -- plain 'same' conv, no BN/ReLU
    y = _conv_same(y, mf_ref, wcat_ref, bcat_ref, 5, col_offs[5], 3, 3, h, w, n, k)

    o_ref[...] = y                                                   # [3, N*H*W], lane-dense


# ------------------------------------------ wrapper ------------------------------------------

def _pack_conv_params(params, cmax):
    """All conv weights -> one [cmax, sum_l k*k*cin_l] array whose column (t, ci) holds
    w[:, ci, u, v]; all conv biases -> one [cmax, n_layers] array."""
    w_cols, b_cols, col_offs, cur = [], [], [], 0
    for name in _CONV_LAYERS:
        wgt, bias = params[name]
        cout, cin, kh, kw = wgt.shape
        cols = jnp.transpose(wgt, (0, 2, 3, 1)).reshape(cout, kh * kw * cin)
        w_cols.append(jnp.pad(cols.astype(jnp.float32), ((0, cmax - cout), (0, 0))))
        b_cols.append(jnp.pad(bias.astype(jnp.float32), (0, cmax - cout)).reshape(cmax, 1))
        col_offs.append(cur)
        cur += kh * kw * cin
    return (jnp.concatenate(w_cols, axis=1), jnp.concatenate(b_cols, axis=1),
            tuple(col_offs))


def _pack_bn_params(params, cmax):
    """BN gamma/beta -> one [cmax, 2 * n_bn] array (columns 2l = gamma_l, 2l+1 = beta_l)."""
    cols = []
    for name in _BN_LAYERS:
        gamma, beta = params[name]
        c = gamma.shape[0]
        cols.append(jnp.pad(gamma.astype(jnp.float32), (0, cmax - c)).reshape(cmax, 1))
        cols.append(jnp.pad(beta.astype(jnp.float32), (0, cmax - c)).reshape(cmax, 1))
    return jnp.concatenate(cols, axis=1)


def regression_cnn_forward(x_nchw, params, kernel):
    n, cin, h, w = x_nchw.shape
    assert cin == 1
    assert kernel % 2 == 1
    assert h % 4 == 0 and w % 4 == 0
    nf = params["dc1"][0].shape[0]
    h2, w2, h4, w4 = h // 2, w // 2, h // 4, w // 4
    m, m2, m4 = n * h * w, n * h2 * w2, n * h4 * w4

    # NCHW -> [C=1, N*H*W]  (single boundary layout op; lane index = b*H*W + i*W + j)
    x2d = jnp.transpose(x_nchw, (1, 0, 2, 3)).reshape(1, m).astype(jnp.float32)

    # Shape-only constants, hoisted out of the kernel (review item 1).
    masks_full = jnp.asarray(_tap_masks(h, w, n, kernel))
    masks_half = jnp.asarray(_tap_masks(h2, w2, n, kernel))
    masks_quarter = jnp.asarray(_tap_masks(h4, w4, n, kernel))
    pool1 = jnp.asarray(_pool_matrix(h, w, n))
    pool2 = jnp.asarray(_pool_matrix(h2, w2, n))
    up1 = jnp.asarray(_upsample_matrix(h4, w4, n))
    up2 = jnp.asarray(_upsample_matrix(h2, w2, n))

    # The 23 small parameter tensors collapsed into 3 inputs (review item 7).
    cmax = max(max(params[name][0].shape[0] for name in _CONV_LAYERS),
               max(params[name][0].shape[0] for name in _BN_LAYERS))
    wcat, bcat, col_offs = _pack_conv_params(params, cmax)
    bn_cols = _pack_bn_params(params, cmax)

    # Updated cost hint (review item 11).
    conv_geom = [(1, nf, m), (nf, 2 * nf, m2), (2 * nf, 2 * nf, m4),
                 (2 * nf, nf, m4), (nf, 3, m2), (3, 3, m)]
    flops = sum(2 * ml * co * ci * kernel * kernel for ci, co, ml in conv_geom)
    flops += 2 * nf * m * m2 + 2 * (2 * nf) * m2 * m4          # pool compaction matmuls
    flops += 2 * nf * m4 * m2 + 2 * 3 * m2 * m                 # upsample replication matmuls
    flops += 8 * (nf * m2 + 2 * nf * m4 + 2 * nf * m4 + nf * m2 + 3 * m)   # BN + ReLU

    inputs = (x2d, masks_full, masks_half, masks_quarter, pool1, pool2, up1, up2,
              wcat, bcat, bn_cols)
    bytes_accessed = 4 * (sum(int(a.size) for a in inputs) + 3 * m)

    vmem = pl.BlockSpec(memory_space=pltpu.MemorySpace.VMEM)

    out2d = pl.pallas_call(
        functools.partial(_regression_cnn_kernel, n=n, h=h, w=w, k=kernel, nf=nf,
                          col_offs=col_offs),
        out_shape=jax.ShapeDtypeStruct((3, m), jnp.float32),
        in_specs=[vmem] * len(inputs),
        out_specs=vmem,
        cost_estimate=pl.CostEstimate(flops=int(flops),
                                      transcendentals=int(6 * nf + 3),
                                      bytes_accessed=int(bytes_accessed)),
    )(*inputs)

    # [3, N*H*W] -> NCHW
    return jnp.transpose(out2d.reshape(3, n, h, w), (1, 0, 2, 3))


# ------------------------------------ model parameters ------------------------------------

def init_params(key, kernel, num_filters):
    keys = jax.random.split(key, 12)

    def conv_p(k1, k2, cout, cin):
        w = jax.random.normal(k1, (cout, cin, kernel, kernel), jnp.float32) * 0.1
        b = jax.random.normal(k2, (cout,), jnp.float32) * 0.1
        return w, b

    nf = num_filters
    return {
        "dc1": conv_p(keys[0], keys[1], nf, 1),
        "dc2": conv_p(keys[2], keys[3], nf * 2, nf),
        "rf": conv_p(keys[4], keys[5], nf * 2, nf * 2),
        "uc1": conv_p(keys[6], keys[7], nf, nf * 2),
        "uc2": conv_p(keys[8], keys[9], 3, nf),
        "fin": conv_p(keys[10], keys[11], 3, 3),
        # BatchNorm2d defaults: gamma = 1, beta = 0
        "bn1": (jnp.ones((nf,), jnp.float32), jnp.zeros((nf,), jnp.float32)),
        "bn2": (jnp.ones((nf * 2,), jnp.float32), jnp.zeros((nf * 2,), jnp.float32)),
        "bn3": (jnp.ones((nf * 2,), jnp.float32), jnp.zeros((nf * 2,), jnp.float32)),
        "bn4": (jnp.ones((nf,), jnp.float32), jnp.zeros((nf,), jnp.float32)),
        "bn5": (jnp.ones((3,), jnp.float32), jnp.zeros((3,), jnp.float32)),
    }


# --------------------------------- pure-JAX (XLA) reference ---------------------------------

def _reference_forward(x, params, kernel):
    """Reference mirroring the torch module in train() mode (guards shift/mask/offset
    bookkeeping of the fused kernel)."""
    pad = kernel // 2

    def conv(t, wgt, bias):
        y = lax.conv_general_dilated(
            t, wgt, window_strides=(1, 1), padding=[(pad, pad), (pad, pad)],
            dimension_numbers=("NCHW", "OIHW", "NCHW"),
            precision=lax.Precision.HIGHEST)
        return y + bias.reshape(1, -1, 1, 1)

    def maxpool(t):
        return lax.reduce_window(t, -jnp.inf, lax.max, (1, 1, 2, 2), (1, 1, 2, 2), "VALID")

    def upsample(t):
        return jnp.repeat(jnp.repeat(t, 2, axis=2), 2, axis=3)

    def bn_relu(t, gamma, beta):
        mu = jnp.mean(t, axis=(0, 2, 3), keepdims=True)
        var = jnp.mean(jnp.square(t - mu), axis=(0, 2, 3), keepdims=True)
        t = (t - mu) * lax.rsqrt(var + 1e-5)
        t = t * gamma.reshape(1, -1, 1, 1) + beta.reshape(1, -1, 1, 1)
        return jnp.maximum(t, 0.0)

    y = bn_relu(maxpool(conv(x, *params["dc1"])), *params["bn1"])
    y = bn_relu(maxpool(conv(y, *params["dc2"])), *params["bn2"])
    y = bn_relu(conv(y, *params["rf"]), *params["bn3"])
    y = bn_relu(upsample(conv(y, *params["uc1"])), *params["bn4"])
    y = bn_relu(upsample(conv(y, *params["uc2"])), *params["bn5"])
    return conv(y, *params["fin"])


# --------------------------------------------- main ---------------------------------------------

if __name__ == "__main__":
    kernel = 3
    num_filters = 4

    key = jax.random.PRNGKey(0)
    k_x, k_p = jax.random.split(key)

    # Colour regression operates on greyscale images: N=2, C=1, H=W=16.
    x = jax.random.normal(k_x, (2, 1, 16, 16), jnp.float32)
    params = init_params(k_p, kernel, num_filters)

    fwd = jax.jit(functools.partial(regression_cnn_forward, kernel=kernel))
    out = jax.block_until_ready(fwd(x, params))

    assert out.shape == (2, 3, 16, 16), out.shape
    assert out.dtype == jnp.float32
    assert bool(jnp.all(jnp.isfinite(out)))

    # Numerical check against the plain-XLA reference (tolerance covers MXU f32
    # decomposition in the 0/1 pool/upsample matmuls).
    ref = jax.block_until_ready(
        jax.jit(functools.partial(_reference_forward, kernel=kernel))(x, params))
    max_err = float(jnp.max(jnp.abs(out - ref)))
    assert max_err < 5e-2, f"kernel deviates from reference: max|diff|={max_err}"

    print("KERNEL_OK")
</pallas_src>

<mosaic_0001>
module attributes {stable_mosaic.version = 11 : i64} {
  func.func @_regression_cnn_kernel(%arg0: memref<1x512xf32, #tpu.memory_space<vmem>>, %arg1: memref<9x512xf32, #tpu.memory_space<vmem>>, %arg2: memref<9x128xf32, #tpu.memory_space<vmem>>, %arg3: memref<9x32xf32, #tpu.memory_space<vmem>>, %arg4: memref<512x128xf32, #tpu.memory_space<vmem>>, %arg5: memref<128x32xf32, #tpu.memory_space<vmem>>, %arg6: memref<32x128xf32, #tpu.memory_space<vmem>>, %arg7: memref<128x512xf32, #tpu.memory_space<vmem>>, %arg8: memref<8x252xf32, #tpu.memory_space<vmem>>, %arg9: memref<8x6xf32, #tpu.memory_space<vmem>>, %arg10: memref<8x10xf32, #tpu.memory_space<vmem>>, %arg11: memref<3x512xf32, #tpu.memory_space<vmem>>) attributes {dimension_semantics = [], scalar_prefetch = 0 : i64, scratch_operands = 0 : i64, tpu.core_type = #tpu.core_type<tc>} {
    %c0 = arith.constant 0 : index
    %c0_0 = arith.constant 0 : index
    %0 = vector.load %arg0[%c0, %c0_0] : memref<1x512xf32, #tpu.memory_space<vmem>>, vector<1x512xf32>
    %c0_1 = arith.constant 0 : index
    %c0_2 = arith.constant 0 : index
    %1 = vector.load %arg8[%c0_1, %c0_2] : memref<8x252xf32, #tpu.memory_space<vmem>>, vector<4x9xf32>
    %cst = arith.constant 0.000000e+00 : f32
    %2 = vector.broadcast %cst : f32 to vector<4x512xf32>
    %3 = vector.extract_strided_slice %0 {offsets = [0, 495], sizes = [1, 17], strides = [1, 1]} : vector<1x512xf32> to vector<1x17xf32>
    %4 = vector.extract_strided_slice %0 {offsets = [0, 0], sizes = [1, 495], strides = [1, 1]} : vector<1x512xf32> to vector<1x495xf32>
    %5 = tpu.concatenate %3, %4 in 1 : vector<1x17xf32>, vector<1x495xf32> -> vector<1x512xf32>
    %c0_3 = arith.constant 0 : index
    %c0_4 = arith.constant 0 : index
    %6 = vector.load %arg1[%c0_3, %c0_4] : memref<9x512xf32, #tpu.memory_space<vmem>>, vector<1x512xf32>
    %7 = arith.mulf %5, %6 : vector<1x512xf32>
    %8 = vector.extract_strided_slice %1 {offsets = [0, 0], sizes = [4, 1], strides = [1, 1]} : vector<4x9xf32> to vector<4x1xf32>
    %9 = vector.broadcast %8 : vector<4x1xf32> to vector<4x512xf32>
    %10 = vector.broadcast %7 : vector<1x512xf32> to vector<4x512xf32>
    %11 = arith.mulf %9, %10 : vector<4x512xf32>
    %12 = arith.addf %2, %11 : vector<4x512xf32>
    %13 = vector.extract_strided_slice %0 {offsets = [0, 496], sizes = [1, 16], strides = [1, 1]} : vector<1x512xf32> to vector<1x16xf32>
    %14 = vector.extract_strided_slice %0 {offsets = [0, 0], sizes = [1, 496], strides = [1, 1]} : vector<1x512xf32> to vector<1x496xf32>
    %15 = tpu.concatenate %13, %14 in 1 : vector<1x16xf32>, vector<1x496xf32> -> vector<1x512xf32>
    %c1 = arith.constant 1 : index
    %c0_5 = arith.constant 0 : index
    %16 = vector.load %arg1[%c1, %c0_5] : memref<9x512xf32, #tpu.memory_space<vmem>>, vector<1x512xf32>
    %17 = arith.mulf %15, %16 : vector<1x512xf32>
    %18 = vector.extract_strided_slice %1 {offsets = [0, 1], sizes = [4, 1], strides = [1, 1]} : vector<4x9xf32> to vector<4x1xf32>
    %19 = vector.broadcast %18 : vector<4x1xf32> to vector<4x512xf32>
    %20 = vector.broadcast %17 : vector<1x512xf32> to vector<4x512xf32>
    %21 = arith.mulf %19, %20 : vector<4x512xf32>
    %22 = arith.addf %12, %21 : vector<4x512xf32>
    %23 = vector.extract_strided_slice %0 {offsets = [0, 497], sizes = [1, 15], strides = [1, 1]} : vector<1x512xf32> to vector<1x15xf32>
    %24 = vector.extract_strided_slice %0 {offsets = [0, 0], sizes = [1, 497], strides = [1, 1]} : vector<1x512xf32> to vector<1x497xf32>
    %25 = tpu.concatenate %23, %24 in 1 : vector<1x15xf32>, vector<1x497xf32> -> vector<1x512xf32>
    %c2 = arith.constant 2 : index
    %c0_6 = arith.constant 0 : index
    %26 = vector.load %arg1[%c2, %c0_6] : memref<9x512xf32, #tpu.memory_space<vmem>>, vector<1x512xf32>
    %27 = arith.mulf %25, %26 : vector<1x512xf32>
    %28 = vector.extract_strided_slice %1 {offsets = [0, 2], sizes = [4, 1], strides = [1, 1]} : vector<4x9xf32> to vector<4x1xf32>
    %29 = vector.broadcast %28 : vector<4x1xf32> to vector<4x512xf32>
    %30 = vector.broadcast %27 : vector<1x512xf32> to vector<4x512xf32>
    %31 = arith.mulf %29, %30 : vector<4x512xf32>
    %32 = arith.addf %22, %31 : vector<4x512xf32>
    %33 = vector.extract_strided_slice %0 {offsets = [0, 511], sizes = [1, 1], strides = [1, 1]} : vector<1x512xf32> to vector<1x1xf32>
    %34 = vector.extract_strided_slice %0 {offsets = [0, 0], sizes = [1, 511], strides = [1, 1]} : vector<1x512xf32> to vector<1x511xf32>
    %35 = tpu.concatenate %33, %34 in 1 : vector<1x1xf32>, vector<1x511xf32> -> vector<1x512xf32>
    %c3 = arith.constant 3 : index
    %c0_7 = arith.constant 0 : index
    %36 = vector.load %arg1[%c3, %c0_7] : memref<9x512xf32, #tpu.memory_space<vmem>>, vector<1x512xf32>
    %37 = arith.mulf %35, %36 : vector<1x512xf32>
    %38 = vector.extract_strided_slice %1 {offsets = [0, 3], sizes = [4, 1], strides = [1, 1]} : vector<4x9xf32> to vector<4x1xf32>
    %39 = vector.broadcast %38 : vector<4x1xf32> to vector<4x512xf32>
    %40 = vector.broadcast %37 : vector<1x512xf32> to vector<4x512xf32>
    %41 = arith.mulf %39, %40 : vector<4x512xf32>
    %42 = arith.addf %32, %41 : vector<4x512xf32>
    %43 = vector.extract_strided_slice %1 {offsets = [0, 4], sizes = [4, 1], strides = [1, 1]} : vector<4x9xf32> to vector<4x1xf32>
    %44 = vector.broadcast %43 : vector<4x1xf32> to vector<4x512xf32>
    %45 = vector.broadcast %0 : vector<1x512xf32> to vector<4x512xf32>
    %46 = arith.mulf %44, %45 : vector<4x512xf32>
    %47 = arith.addf %42, %46 : vector<4x512xf32>
    %48 = vector.extract_strided_slice %0 {offsets = [0, 1], sizes = [1, 511], strides = [1, 1]} : vector<1x512xf32> to vector<1x511xf32>
    %49 = vector.extract_strided_slice %0 {offsets = [0, 0], sizes = [1, 1], strides = [1, 1]} : vector<1x512xf32> to vector<1x1xf32>
    %50 = tpu.concatenate %48, %49 in 1 : vector<1x511xf32>, vector<1x1xf32> -> vector<1x512xf32>
    %c5 = arith.constant 5 : index
    %c0_8 = arith.constant 0 : index
    %51 = vector.load %arg1[%c5, %c0_8] : memref<9x512xf32, #tpu.memory_space<vmem>>, vector<1x512xf32>
    %52 = arith.mulf %50, %51 : vector<1x512xf32>
    %53 = vector.extract_strided_slice %1 {offsets = [0, 5], sizes = [4, 1], strides = [1, 1]} : vector<4x9xf32> to vector<4x1xf32>
    %54 = vector.broadcast %53 : vector<4x1xf32> to vector<4x512xf32>
    %55 = vector.broadcast %52 : vector<1x512xf32> to vector<4x512xf32>
    %56 = arith.mulf %54, %55 : vector<4x512xf32>
    %57 = arith.addf %47, %56 : vector<4x512xf32>
    %58 = vector.extract_strided_slice %0 {offsets = [0, 15], sizes = [1, 497], strides = [1, 1]} : vector<1x512xf32> to vector<1x497xf32>
    %59 = vector.extract_strided_slice %0 {offsets = [0, 0], sizes = [1, 15], strides = [1, 1]} : vector<1x512xf32> to vector<1x15xf32>
    %60 = tpu.concatenate %58, %59 in 1 : vector<1x497xf32>, vector<1x15xf32> -> vector<1x512xf32>
    %c6 = arith.constant 6 : index
    %c0_9 = arith.constant 0 : index
    %61 = vector.load %arg1[%c6, %c0_9] : memref<9x512xf32, #tpu.memory_space<vmem>>, vector<1x512xf32>
    %62 = arith.mulf %60, %61 : vector<1x512xf32>
    %63 = vector.extract_strided_slice %1 {offsets = [0, 6], sizes = [4, 1], strides = [1, 1]} : vector<4x9xf32> to vector<4x1xf32>
    %64 = vector.broadcast %63 : vector<4x1xf32> to vector<4x512xf32>
    %65 = vector.broadcast %62 : vector<1x512xf32> to vector<4x512xf32>
    %66 = arith.mulf %64, %65 : vector<4x512xf32>
    %67 = arith.addf %57, %66 : vector<4x512xf32>
    %68 = vector.extract_strided_slice %0 {offsets = [0, 16], sizes = [1, 496], strides = [1, 1]} : vector<1x512xf32> to vector<1x496xf32>
    %69 = vector.extract_strided_slice %0 {offsets = [0, 0], sizes = [1, 16], strides = [1, 1]} : vector<1x512xf32> to vector<1x16xf32>
    %70 = tpu.concatenate %68, %69 in 1 : vector<1x496xf32>, vector<1x16xf32> -> vector<1x512xf32>
    %c7 = arith.constant 7 : index
    %c0_10 = arith.constant 0 : index
    %71 = vector.load %arg1[%c7, %c0_10] : memref<9x512xf32, #tpu.memory_space<vmem>>, vector<1x512xf32>
    %72 = arith.mulf %70, %71 : vector<1x512xf32>
    %73 = vector.extract_strided_slice %1 {offsets = [0, 7], sizes = [4, 1], strides = [1, 1]} : vector<4x9xf32> to vector<4x1xf32>
    %74 = vector.broadcast %73 : vector<4x1xf32> to vector<4x512xf32>
    %75 = vector.broadcast %72 : vector<1x512xf32> to vector<4x512xf32>
    %76 = arith.mulf %74, %75 : vector<4x512xf32>
    %77 = arith.addf %67, %76 : vector<4x512xf32>
    %78 = vector.extract_strided_slice %0 {offsets = [0, 17], sizes = [1, 495], strides = [1, 1]} : vector<1x512xf32> to vector<1x495xf32>
    %79 = vector.extract_strided_slice %0 {offsets = [0, 0], sizes = [1, 17], strides = [1, 1]} : vector<1x512xf32> to vector<1x17xf32>
    %80 = tpu.concatenate %78, %79 in 1 : vector<1x495xf32>, vector<1x17xf32> -> vector<1x512xf32>
    %c8 = arith.constant 8 : index
    %c0_11 = arith.constant 0 : index
    %81 = vector.load %arg1[%c8, %c0_11] : memref<9x512xf32, #tpu.memory_space<vmem>>, vector<1x512xf32>
    %82 = arith.mulf %80, %81 : vector<1x512xf32>
    %83 = vector.extract_strided_slice %1 {offsets = [0, 8], sizes = [4, 1], strides = [1, 1]} : vector<4x9xf32> to vector<4x1xf32>
    %84 = vector.broadcast %83 : vector<4x1xf32> to vector<4x512xf32>
    %85 = vector.broadcast %82 : vector<1x512xf32> to vector<4x512xf32>
    %86 = arith.mulf %84, %85 : vector<4x512xf32>
    %87 = arith.addf %77, %86 : vector<4x512xf32>
    %c0_12 = arith.constant 0 : index
    %c0_13 = arith.constant 0 : index
    %88 = vector.load %arg9[%c0_12, %c0_13] : memref<8x6xf32, #tpu.memory_space<vmem>>, vector<4x1xf32>
    %89 = vector.broadcast %88 : vector<4x1xf32> to vector<4x512xf32>
    %90 = arith.addf %87, %89 : vector<4x512xf32>
    %91 = vector.extract_strided_slice %90 {offsets = [0, 1], sizes = [4, 511], strides = [1, 1]} : vector<4x512xf32> to vector<4x511xf32>
    %92 = vector.extract_strided_slice %90 {offsets = [0, 0], sizes = [4, 1], strides = [1, 1]} : vector<4x512xf32> to vector<4x1xf32>
    %93 = tpu.concatenate %91, %92 in 1 : vector<4x511xf32>, vector<4x1xf32> -> vector<4x512xf32>
    %94 = arith.maximumf %90, %93 : vector<4x512xf32>
    %95 = vector.extract_strided_slice %94 {offsets = [0, 16], sizes = [4, 496], strides = [1, 1]} : vector<4x512xf32> to vector<4x496xf32>
    %96 = vector.extract_strided_slice %94 {offsets = [0, 0], sizes = [4, 16], strides = [1, 1]} : vector<4x512xf32> to vector<4x16xf32>
    %97 = tpu.concatenate %95, %96 in 1 : vector<4x496xf32>, vector<4x16xf32> -> vector<4x512xf32>
    %98 = arith.maximumf %94, %97 : vector<4x512xf32>
    %c0_14 = arith.constant 0 : index
    %c0_15 = arith.constant 0 : index
    %99 = vector.load %arg4[%c0_14, %c0_15] : memref<512x128xf32, #tpu.memory_space<vmem>>, vector<512x128xf32>
    %cst_16 = arith.constant dense<0.000000e+00> : vector<4x128xf32>
    %100 = tpu.matmul %98, %99, %cst_16 {dimension_numbers = #tpu.dot_dimension_numbers<[1], [0], [0], [1], [0, 0, 1, 1], [], []>} : vector<4x512xf32>, vector<512x128xf32>, vector<4x128xf32> -> vector<4x128xf32>
    %c0_17 = arith.constant 0 : index
    %c0_18 = arith.constant 0 : index
    %101 = vector.load %arg10[%c0_17, %c0_18] : memref<8x10xf32, #tpu.memory_space<vmem>>, vector<4x1xf32>
    %c0_19 = arith.constant 0 : index
    %c1_20 = arith.constant 1 : index
    %102 = vector.load %arg10[%c0_19, %c1_20] : memref<8x10xf32, #tpu.memory_space<vmem>>, vector<4x1xf32>
    %cst_21 = arith.constant dense<0.000000e+00> : vector<4xf32>
    %103 = vector.multi_reduction <add>, %100, %cst_21 [1] : vector<4x128xf32> to vector<4xf32>
    %104 = vector.shape_cast %103 : vector<4xf32> to vector<4x1xf32>
    %cst_22 = arith.constant 1.280000e+02 : f32
    %105 = vector.broadcast %cst_22 : f32 to vector<4x1xf32>
    %106 = arith.divf %104, %105 : vector<4x1xf32>
    %107 = vector.broadcast %106 : vector<4x1xf32> to vector<4x128xf32>
    %108 = arith.subf %100, %107 : vector<4x128xf32>
    %109 = arith.mulf %108, %108 : vector<4x128xf32>
    %cst_23 = arith.constant dense<0.000000e+00> : vector<4xf32>
    %110 = vector.multi_reduction <add>, %109, %cst_23 [1] : vector<4x128xf32> to vector<4xf32>
    %111 = vector.shape_cast %110 : vector<4xf32> to vector<4x1xf32>
    %cst_24 = arith.constant 1.280000e+02 : f32
    %112 = vector.broadcast %cst_24 : f32 to vector<4x1xf32>
    %113 = arith.divf %111, %112 : vector<4x1xf32>
    %cst_25 = arith.constant 9.99999974E-6 : f32
    %114 = vector.broadcast %cst_25 : f32 to vector<4x1xf32>
    %115 = arith.addf %113, %114 : vector<4x1xf32>
    %116 = math.rsqrt %115 : vector<4x1xf32>
    %117 = arith.mulf %116, %101 : vector<4x1xf32>
    %118 = vector.broadcast %117 : vector<4x1xf32> to vector<4x128xf32>
    %119 = arith.mulf %108, %118 : vector<4x128xf32>
    %120 = vector.broadcast %102 : vector<4x1xf32> to vector<4x128xf32>
    %121 = arith.addf %119, %120 : vector<4x128xf32>
    %cst_26 = arith.constant 0.000000e+00 : f32
    %122 = vector.broadcast %cst_26 : f32 to vector<4x128xf32>
    %123 = arith.maximumf %121, %122 : vector<4x128xf32>
    %c0_27 = arith.constant 0 : index
    %c9 = arith.constant 9 : index
    %124 = vector.load %arg8[%c0_27, %c9] : memref<8x252xf32, #tpu.memory_space<vmem>>, vector<8x36xf32>
    %cst_28 = arith.constant 0.000000e+00 : f32
    %125 = vector.broadcast %cst_28 : f32 to vector<8x128xf32>
    %126 = vector.extract_strided_slice %123 {offsets = [0, 119], sizes = [4, 9], strides = [1, 1]} : vector<4x128xf32> to vector<4x9xf32>
    %127 = vector.extract_strided_slice %123 {offsets = [0, 0], sizes = [4, 119], strides = [1, 1]} : vector<4x128xf32> to vector<4x119xf32>
    %128 = tpu.concatenate %126, %127 in 1 : vector<4x9xf32>, vector<4x119xf32> -> vector<4x128xf32>
    %c0_29 = arith.constant 0 : index
    %c0_30 = arith.constant 0 : index
    %129 = vector.load %arg2[%c0_29, %c0_30] : memref<9x128xf32, #tpu.memory_space<vmem>>, vector<1x128xf32>
    %130 = vector.broadcast %129 : vector<1x128xf32> to vector<4x128xf32>
    %131 = arith.mulf %128, %130 : vector<4x128xf32>
    %132 = vector.extract_strided_slice %124 {offsets = [0, 0], sizes = [8, 1], strides = [1, 1]} : vector<8x36xf32> to vector<8x1xf32>
    %133 = vector.extract_strided_slice %131 {offsets = [0, 0], sizes = [1, 128], strides = [1, 1]} : vector<4x128xf32> to vector<1x128xf32>
    %134 = vector.broadcast %132 : vector<8x1xf32> to vector<8x128xf32>
    %135 = vector.broadcast %133 : vector<1x128xf32> to vector<8x128xf32>
    %136 = arith.mulf %134, %135 : vector<8x128xf32>
    %137 = arith.addf %125, %136 : vector<8x128xf32>
    %138 = vector.extract_strided_slice %124 {offsets = [0, 1], sizes = [8, 1], strides = [1, 1]} : vector<8x36xf32> to vector<8x1xf32>
    %139 = vector.extract_strided_slice %131 {offsets = [1, 0], sizes = [1, 128], strides = [1, 1]} : vector<4x128xf32> to vector<1x128xf32>
    %140 = vector.broadcast %138 : vector<8x1xf32> to vector<8x128xf32>
    %141 = vector.broadcast %139 : vector<1x128xf32> to vector<8x128xf32>
    %142 = arith.mulf %140, %141 : vector<8x128xf32>
    %143 = arith.addf %137, %142 : vector<8x128xf32>
    %144 = vector.extract_strided_slice %124 {offsets = [0, 2], sizes = [8, 1], strides = [1, 1]} : vector<8x36xf32> to vector<8x1xf32>
    %145 = vector.extract_strided_slice %131 {offsets = [2, 0], sizes = [1, 128], strides = [1, 1]} : vector<4x128xf32> to vector<1x128xf32>
    %146 = vector.broadcast %144 : vector<8x1xf32> to vector<8x128xf32>
    %147 = vector.broadcast %145 : vector<1x128xf32> to vector<8x128xf32>
    %148 = arith.mulf %146, %147 : vector<8x128xf32>
    %149 = arith.addf %143, %148 : vector<8x128xf32>
    %150 = vector.extract_strided_slice %124 {offsets = [0, 3], sizes = [8, 1], strides = [1, 1]} : vector<8x36xf32> to vector<8x1xf32>
    %151 = vector.extract_strided_slice %131 {offsets = [3, 0], sizes = [1, 128], strides = [1, 1]} : vector<4x128xf32> to vector<1x128xf32>
    %152 = vector.broadcast %150 : vector<8x1xf32> to vector<8x128xf32>
    %153 = vector.broadcast %151 : vector<1x128xf32> to vector<8x128xf32>
    %154 = arith.mulf %152, %153 : vector<8x128xf32>
    %155 = arith.addf %149, %154 : vector<8x128xf32>
    %156 = vector.extract_strided_slice %123 {offsets = [0, 120], sizes = [4, 8], strides = [1, 1]} : vector<4x128xf32> to vector<4x8xf32>
    %157 = vector.extract_strided_slice %123 {offsets = [0, 0], sizes = [4, 120], strides = [1, 1]} : vector<4x128xf32> to vector<4x120xf32>
    %158 = tpu.concatenate %156, %157 in 1 : vector<4x8xf32>, vector<4x120xf32> -> vector<4x128xf32>
    %c1_31 = arith.constant 1 : index
    %c0_32 = arith.constant 0 : index
    %159 = vector.load %arg2[%c1_31, %c0_32] : memref<9x128xf32, #tpu.memory_space<vmem>>, vector<1x128xf32>
    %160 = vector.broadcast %159 : vector<1x128xf32> to vector<4x128xf32>
    %161 = arith.mulf %158, %160 : vector<4x128xf32>
    %162 = vector.extract_strided_slice %124 {offsets = [0, 4], sizes = [8, 1], strides = [1, 1]} : vector<8x36xf32> to vector<8x1xf32>
    %163 = vector.extract_strided_slice %161 {offsets = [0, 0], sizes = [1, 128], strides = [1, 1]} : vector<4x128xf32> to vector<1x128xf32>
    %164 = vector.broadcast %162 : vector<8x1xf32> to vector<8x128xf32>
    %165 = vector.broadcast %163 : vector<1x128xf32> to vector<8x128xf32>
    %166 = arith.mulf %164, %165 : vector<8x128xf32>
    %167 = arith.addf %155, %166 : vector<8x128xf32>
    %168 = vector.extract_strided_slice %124 {offsets = [0, 5], sizes = [8, 1], strides = [1, 1]} : vector<8x36xf32> to vector<8x1xf32>
    %169 = vector.extract_strided_slice %161 {offsets = [1, 0], sizes = [1, 128], strides = [1, 1]} : vector<4x128xf32> to vector<1x128xf32>
    %170 = vector.broadcast %168 : vector<8x1xf32> to vector<8x128xf32>
    %171 = vector.broadcast %169 : vector<1x128xf32> to vector<8x128xf32>
    %172 = arith.mulf %170, %171 : vector<8x128xf32>
    %173 = arith.addf %167, %172 : vector<8x128xf32>
    %174 = vector.extract_strided_slice %124 {offsets = [0, 6], sizes = [8, 1], strides = [1, 1]} : vector<8x36xf32> to vector<8x1xf32>
    %175 = vector.extract_strided_slice %161 {offsets = [2, 0], sizes = [1, 128], strides = [1, 1]} : vector<4x128xf32> to vector<1x128xf32>
    %176 = vector.broadcast %174 : vector<8x1xf32> to vector<8x128xf32>
    %177 = vector.broadcast %175 : vector<1x128xf32> to vector<8x128xf32>
    %178 = arith.mulf %176, %177 : vector<8x128xf32>
    %179 = arith.addf %173, %178 : vector<8x128xf32>
    %180 = vector.extract_strided_slice %124 {offsets = [0, 7], sizes = [8, 1], strides = [1, 1]} : vector<8x36xf32> to vector<8x1xf32>
    %181 = vector.extract_strided_slice %161 {offsets = [3, 0], sizes = [1, 128], strides = [1, 1]} : vector<4x128xf32> to vector<1x128xf32>
    %182 = vector.broadcast %180 : vector<8x1xf32> to vector<8x128xf32>
    %183 = vector.broadcast %181 : vector<1x128xf32> to vector<8x128xf32>
    %184 = arith.mulf %182, %183 : vector<8x128xf32>
    %185 = arith.addf %179, %184 : vector<8x128xf32>
    %186 = vector.extract_strided_slice %123 {offsets = [0, 121], sizes = [4, 7], strides = [1, 1]} : vector<4x128xf32> to vector<4x7xf32>
    %187 = vector.extract_strided_slice %123 {offsets = [0, 0], sizes = [4, 121], strides = [1, 1]} : vector<4x128xf32> to vector<4x121xf32>
    %188 = tpu.concatenate %186, %187 in 1 : vector<4x7xf32>, vector<4x121xf32> -> vector<4x128xf32>
    %c2_33 = arith.constant 2 : index
    %c0_34 = arith.constant 0 : index
    %189 = vector.load %arg2[%c2_33, %c0_34] : memref<9x128xf32, #tpu.memory_space<vmem>>, vector<1x128xf32>
    %190 = vector.broadcast %189 : vector<1x128xf32> to vector<4x128xf32>
    %191 = arith.mulf %188, %190 : vector<4x128xf32>
    %192 = vector.extract_strided_slice %124 {offsets = [0, 8], sizes = [8, 1], strides = [1, 1]} : vector<8x36xf32> to vector<8x1xf32>
    %193 = vector.extract_strided_slice %191 {offsets = [0, 0], sizes = [1, 128], strides = [1, 1]} : vector<4x128xf32> to vector<1x128xf32>
    %194 = vector.broadcast %192 : vector<8x1xf32> to vector<8x128xf32>
    %195 = vector.broadcast %193 : vector<1x128xf32> to vector<8x128xf32>
    %196 = arith.mulf %194, %195 : vector<8x128xf32>
    %197 = arith.addf %185, %196 : vector<8x128xf32>
    %198 = vector.extract_strided_slice %124 {offsets = [0, 9], sizes = [8, 1], strides = [1, 1]} : vector<8x36xf32> to vector<8x1xf32>
    %199 = vector.extract_strided_slice %191 {offsets = [1, 0], sizes = [1, 128], strides = [1, 1]} : vector<4x128xf32> to vector<1x128xf32>
    %200 = vector.broadcast %198 : vector<8x1xf32> to vector<8x128xf32>
    %201 = vector.broadcast %199 : vector<1x128xf32> to vector<8x128xf32>
    %202 = arith.mulf %200, %201 : vector<8x128xf32>
    %203 = arith.addf %197, %202 : vector<8x128xf32>
    %204 = vector.extract_strided_slice %124 {offsets = [0, 10], sizes = [8, 1], strides = [1, 1]} : vector<8x36xf32> to vector<8x1xf32>
    %205 = vector.extract_strided_slice %191 {offsets = [2, 0], sizes = [1, 128], strides = [1, 1]} : vector<4x128xf32> to vector<1x128xf32>
    %206 = vector.broadcast %204 : vector<8x1xf32> to vector<8x128xf32>
    %207 = vector.broadcast %205 : vector<1x128xf32> to vector<8x128xf32>
    %208 = arith.mulf %206, %207 : vector<8x128xf32>
    %209 = arith.addf %203, %208 : vector<8x128xf32>
    %210 = vector.extract_strided_slice %124 {offsets = [0, 11], sizes = [8, 1], strides = [1, 1]} : vector<8x36xf32> to vector<8x1xf32>
    %211 = vector.extract_strided_slice %191 {offsets = [3, 0], sizes = [1, 128], strides = [1, 1]} : vector<4x128xf32> to vector<1x128xf32>
    %212 = vector.broadcast %210 : vector<8x1xf32> to vector<8x128xf32>
    %213 = vector.broadcast %211 : vector<1x128xf32> to vector<8x128xf32>
    %214 = arith.mulf %212, %213 : vector<8x128xf32>
    %215 = arith.addf %209, %214 : vector<8x128xf32>
    %216 = vector.extract_strided_slice %123 {offsets = [0, 127], sizes = [4, 1], strides = [1, 1]} : vector<4x128xf32> to vector<4x1xf32>
    %217 = vector.extract_strided_slice %123 {offsets = [0, 0], sizes = [4, 127], strides = [1, 1]} : vector<4x128xf32> to vector<4x127xf32>
    %218 = tpu.concatenate %216, %217 in 1 : vector<4x1xf32>, vector<4x127xf32> -> vector<4x128xf32>
    %c3_35 = arith.constant 3 : index
    %c0_36 = arith.constant 0 : index
    %219 = vector.load %arg2[%c3_35, %c0_36] : memref<9x128xf32, #tpu.memory_space<vmem>>, vector<1x128xf32>
    %220 = vector.broadcast %219 : vector<1x128xf32> to vector<4x128xf32>
    %221 = arith.mulf %218, %220 : vector<4x128xf32>
    %222 = vector.extract_strided_slice %124 {offsets = [0, 12], sizes = [8, 1], strides = [1, 1]} : vector<8x36xf32> to vector<8x1xf32>
    %223 = vector.extract_strided_slice %221 {offsets = [0, 0], sizes = [1, 128], strides = [1, 1]} : vector<4x128xf32> to vector<1x128xf32>
    %224 = vector.broadcast %222 : vector<8x1xf32> to vector<8x128xf32>
    %225 = vector.broadcast %223 : vector<1x128xf32> to vector<8x128xf32>
    %226 = arith.mulf %224, %225 : vector<8x128xf32>
    %227 = arith.addf %215, %226 : vector<8x128xf32>
    %228 = vector.extract_strided_slice %124 {offsets = [0, 13], sizes = [8, 1], strides = [1, 1]} : vector<8x36xf32> to vector<8x1xf32>
    %229 = vector.extract_strided_slice %221 {offsets = [1, 0], sizes = [1, 128], strides = [1, 1]} : vector<4x128xf32> to vector<1x128xf32>
    %230 = vector.broadcast %228 : vector<8x1xf32> to vector<8x128xf32>
    %231 = vector.broadcast %229 : vector<1x128xf32> to vector<8x128xf32>
    %232 = arith.mulf %230, %231 : vector<8x128xf32>
    %233 = arith.addf %227, %232 : vector<8x128xf32>
    %234 = vector.extract_strided_slice %124 {offsets = [0, 14], sizes = [8, 1], strides = [1, 1]} : vector<8x36xf32> to vector<8x1xf32>
    %235 = vector.extract_strided_slice %221 {offsets = [2, 0], sizes = [1, 128], strides = [1, 1]} : vector<4x128xf32> to vector<1x128xf32>
    %236 = vector.broadcast %234 : vector<8x1xf32> to vector<8x128xf32>
    %237 = vector.broadcast %235 : vector<1x128xf32> to vector<8x128xf32>
    %238 = arith.mulf %236, %237 : vector<8x128xf32>
    %239 = arith.addf %233, %238 : vector<8x128xf32>
    %240 = vector.extract_strided_slice %124 {offsets = [0, 15], sizes = [8, 1], strides = [1, 1]} : vector<8x36xf32> to vector<8x1xf32>
    %241 = vector.extract_strided_slice %221 {offsets = [3, 0], sizes = [1, 128], strides = [1, 1]} : vector<4x128xf32> to vector<1x128xf32>
    %242 = vector.broadcast %240 : vector<8x1xf32> to vector<8x128xf32>
    %243 = vector.broadcast %241 : vector<1x128xf32> to vector<8x128xf32>
    %244 = arith.mulf %242, %243 : vector<8x128xf32>
    %245 = arith.addf %239, %244 : vector<8x128xf32>
    %246 = vector.extract_strided_slice %124 {offsets = [0, 16], sizes = [8, 1], strides = [1, 1]} : vector<8x36xf32> to vector<8x1xf32>
    %247 = vector.extract_strided_slice %123 {offsets = [0, 0], sizes = [1, 128], strides = [1, 1]} : vector<4x128xf32> to vector<1x128xf32>
    %248 = vector.broadcast %246 : vector<8x1xf32> to vector<8x128xf32>
    %249 = vector.broadcast %247 : vector<1x128xf32> to vector<8x128xf32>
    %250 = arith.mulf %248, %249 : vector<8x128xf32>
    %251 = arith.addf %245, %250 : vector<8x128xf32>
    %252 = vector.extract_strided_slice %124 {offsets = [0, 17], sizes = [8, 1], strides = [1, 1]} : vector<8x36xf32> to vector<8x1xf32>
    %253 = vector.extract_strided_slice %123 {offsets = [1, 0], sizes = [1, 128], strides = [1, 1]} : vector<4x128xf32> to vector<1x128xf32>
    %254 = vector.broadcast %252 : vector<8x1xf32> to vector<8x128xf32>
    %255 = vector.broadcast %253 : vector<1x128xf32> to vector<8x128xf32>
    %256 = arith.mulf %254, %255 : vector<8x128xf32>
    %257 = arith.addf %251, %256 : vector<8x128xf32>
    %258 = vector.extract_strided_slice %124 {offsets = [0, 18], sizes = [8, 1], strides = [1, 1]} : vector<8x36xf32> to vector<8x1xf32>
    %259 = vector.extract_strided_slice %123 {offsets = [2, 0], sizes = [1, 128], strides = [1, 1]} : vector<4x128xf32> to vector<1x128xf32>
    %260 = vector.broadcast %258 : vector<8x1xf32> to vector<8x128xf32>
    %261 = vector.broadcast %259 : vector<1x128xf32> to vector<8x128xf32>
    %262 = arith.mulf %260, %261 : vector<8x128xf32>
    %263 = arith.addf %257, %262 : vector<8x128xf32>
    %264 = vector.extract_strided_slice %124 {offsets = [0, 19], sizes = [8, 1], strides = [1, 1]} : vector<8x36xf32> to vector<8x1xf32>
    %265 = vector.extract_strided_slice %123 {offsets = [3, 0], sizes = [1, 128], strides = [1, 1]} : vector<4x128xf32> to vector<1x128xf32>
    %266 = vector.broadcast %264 : vector<8x1xf32> to vector<8x128xf32>
    %267 = vector.broadcast %265 : vector<1x128xf32> to vector<8x128xf32>
    %268 = arith.mulf %266, %267 : vector<8x128xf32>
    %269 = arith.addf %263, %268 : vector<8x128xf32>
    %270 = vector.extract_strided_slice %123 {offsets = [0, 1], sizes = [4, 127], strides = [1, 1]} : vector<4x128xf32> to vector<4x127xf32>
    %271 = vector.extract_strided_slice %123 {offsets = [0, 0], sizes = [4, 1], strides = [1, 1]} : vector<4x128xf32> to vector<4x1xf32>
    %272 = tpu.concatenate %270, %271 in 1 : vector<4x127xf32>, vector<4x1xf32> -> vector<4x128xf32>
    %c5_37 = arith.constant 5 : index
    %c0_38 = arith.constant 0 : index
    %273 = vector.load %arg2[%c5_37, %c0_38] : memref<9x128xf32, #tpu.memory_space<vmem>>, vector<1x128xf32>
    %274 = vector.broadcast %273 : vector<1x128xf32> to vector<4x128xf32>
    %275 = arith.mulf %272, %274 : vector<4x128xf32>
    %276 = vector.extract_strided_slice %124 {offsets = [0, 20], sizes = [8, 1], strides = [1, 1]} : vector<8x36xf32> to vector<8x1xf32>
    %277 = vector.extract_strided_slice %275 {offsets = [0, 0], sizes = [1, 128], strides = [1, 1]} : vector<4x128xf32> to vector<1x128xf32>
    %278 = vector.broadcast %276 : vector<8x1xf32> to vector<8x128xf32>
    %279 = vector.broadcast %277 : vector<1x128xf32> to vector<8x128xf32>
    %280 = arith.mulf %278, %279 : vector<8x128xf32>
    %281 = arith.addf %269, %280 : vector<8x128xf32>
    %282 = vector.extract_strided_slice %124 {offsets = [0, 21], sizes = [8, 1], strides = [1, 1]} : vector<8x36xf32> to vector<8x1xf32>
    %283 = vector.extract_strided_slice %275 {offsets = [1, 0], sizes = [1, 128], strides = [1, 1]} : vector<4x128xf32> to vector<1x128xf32>
    %284 = vector.broadcast %282 : vector<8x1xf32> to vector<8x128xf32>
    %285 = vector.broadcast %283 : vector<1x128xf32> to vector<8x128xf32>
    %286 = arith.mulf %284, %285 : vector<8x128xf32>
    %287 = arith.addf %281, %286 : vector<8x128xf32>
    %288 = vector.extract_strided_slice %124 {offsets = [0, 22], sizes = [8, 1], strides = [1, 1]} : vector<8x36xf32> to vector<8x1xf32>
    %289 = vector.extract_strided_slice %275 {offsets = [2, 0], sizes = [1, 128], strides = [1, 1]} : vector<4x128xf32> to vector<1x128xf32>
    %290 = vector.broadcast %288 : vector<8x1xf32> to vector<8x128xf32>
    %291 = vector.broadcast %289 : vector<1x128xf32> to vector<8x128xf32>
    %292 = arith.mulf %290, %291 : vector<8x128xf32>
    %293 = arith.addf %287, %292 : vector<8x128xf32>
    %294 = vector.extract_strided_slice %124 {offsets = [0, 23], sizes = [8, 1], strides = [1, 1]} : vector<8x36xf32> to vector<8x1xf32>
    %295 = vector.extract_strided_slice %275 {offsets = [3, 0], sizes = [1, 128], strides = [1, 1]} : vector<4x128xf32> to vector<1x128xf32>
    %296 = vector.broadcast %294 : vector<8x1xf32> to vector<8x128xf32>
    %297 = vector.broadcast %295 : vector<1x128xf32> to vector<8x128xf32>
    %298 = arith.mulf %296, %297 : vector<8x128xf32>
    %299 = arith.addf %293, %298 : vector<8x128xf32>
    %300 = vector.extract_strided_slice %123 {offsets = [0, 7], sizes = [4, 121], strides = [1, 1]} : vector<4x128xf32> to vector<4x121xf32>
    %301 = vector.extract_strided_slice %123 {offsets = [0, 0], sizes = [4, 7], strides = [1, 1]} : vector<4x128xf32> to vector<4x7xf32>
    %302 = tpu.concatenate %300, %301 in 1 : vector<4x121xf32>, vector<4x7xf32> -> vector<4x128xf32>
    %c6_39 = arith.constant 6 : index
    %c0_40 = arith.constant 0 : index
    %303 = vector.load %arg2[%c6_39, %c0_40] : memref<9x128xf32, #tpu.memory_space<vmem>>, vector<1x128xf32>
    %304 = vector.broadcast %303 : vector<1x128xf32> to vector<4x128xf32>
    %305 = arith.mulf %302, %304 : vector<4x128xf32>
    %306 = vector.extract_strided_slice %124 {offsets = [0, 24], sizes = [8, 1], strides = [1, 1]} : vector<8x36xf32> to vector<8x1xf32>
    %307 = vector.extract_strided_slice %305 {offsets = [0, 0], sizes = [1, 128], strides = [1, 1]} : vector<4x128xf32> to vector<1x128xf32>
    %308 = vector.broadcast %306 : vector<8x1xf32> to vector<8x128xf32>
    %309 = vector.broadcast %307 : vector<1x128xf32> to vector<8x128xf32>
    %310 = arith.mulf %308, %309 : vector<8x128xf32>
    %311 = arith.addf %299, %310 : vector<8x128xf32>
    %312 = vector.extract_strided_slice %124 {offsets = [0, 25], sizes = [8, 1], strides = [1, 1]} : vector<8x36xf32> to vector<8x1xf32>
    %313 = vector.extract_strided_slice %305 {offsets = [1, 0], sizes = [1, 128], strides = [1, 1]} : vector<4x128xf32> to vector<1x128xf32>
    %314 = vector.broadcast %312 : vector<8x1xf32> to vector<8x128xf32>
    %315 = vector.broadcast %313 : vector<1x128xf32> to vector<8x128xf32>
    %316 = arith.mulf %314, %315 : vector<8x128xf32>
    %317 = arith.addf %311, %316 : vector<8x128xf32>
    %318 = vector.extract_strided_slice %124 {offsets = [0, 26], sizes = [8, 1], strides = [1, 1]} : vector<8x36xf32> to vector<8x1xf32>
    %319 = vector.extract_strided_slice %305 {offsets = [2, 0], sizes = [1, 128], strides = [1, 1]} : vector<4x128xf32> to vector<1x128xf32>
    %320 = vector.broadcast %318 : vector<8x1xf32> to vector<8x128xf32>
    %321 = vector.broadcast %319 : vector<1x128xf32> to vector<8x128xf32>
    %322 = arith.mulf %320, %321 : vector<8x128xf32>
    %323 = arith.addf %317, %322 : vector<8x128xf32>
    %324 = vector.extract_strided_slice %124 {offsets = [0, 27], sizes = [8, 1], strides = [1, 1]} : vector<8x36xf32> to vector<8x1xf32>
    %325 = vector.extract_strided_slice %305 {offsets = [3, 0], sizes = [1, 128], strides = [1, 1]} : vector<4x128xf32> to vector<1x128xf32>
    %326 = vector.broadcast %324 : vector<8x1xf32> to vector<8x128xf32>
    %327 = vector.broadcast %325 : vector<1x128xf32> to vector<8x128xf32>
    %328 = arith.mulf %326, %327 : vector<8x128xf32>
    %329 = arith.addf %323, %328 : vector<8x128xf32>
    %330 = vector.extract_strided_slice %123 {offsets = [0, 8], sizes = [4, 120], strides = [1, 1]} : vector<4x128xf32> to vector<4x120xf32>
    %331 = vector.extract_strided_slice %123 {offsets = [0, 0], sizes = [4, 8], strides = [1, 1]} : vector<4x128xf32> to vector<4x8xf32>
    %332 = tpu.concatenate %330, %331 in 1 : vector<4x120xf32>, vector<4x8xf32> -> vector<4x128xf32>
    %c7_41 = arith.constant 7 : index
    %c0_42 = arith.constant 0 : index
    %333 = vector.load %arg2[%c7_41, %c0_42] : memref<9x128xf32, #tpu.memory_space<vmem>>, vector<1x128xf32>
    %334 = vector.broadcast %333 : vector<1x128xf32> to vector<4x128xf32>
    %335 = arith.mulf %332, %334 : vector<4x128xf32>
    %336 = vector.extract_strided_slice %124 {offsets = [0, 28], sizes = [8, 1], strides = [1, 1]} : vector<8x36xf32> to vector<8x1xf32>
    %337 = vector.extract_strided_slice %335 {offsets = [0, 0], sizes = [1, 128], strides = [1, 1]} : vector<4x128xf32> to vector<1x128xf32>
    %338 = vector.broadcast %336 : vector<8x1xf32> to vector<8x128xf32>
    %339 = vector.broadcast %337 : vector<1x128xf32> to vector<8x128xf32>
    %340 = arith.mulf %338, %339 : vector<8x128xf32>
    %341 = arith.addf %329, %340 : vector<8x128xf32>
    %342 = vector.extract_strided_slice %124 {offsets = [0, 29], sizes = [8, 1], strides = [1, 1]} : vector<8x36xf32> to vector<8x1xf32>
    %343 = vector.extract_strided_slice %335 {offsets = [1, 0], sizes = [1, 128], strides = [1, 1]} : vector<4x128xf32> to vector<1x128xf32>
    %344 = vector.broadcast %342 : vector<8x1xf32> to vector<8x128xf32>
    %345 = vector.broadcast %343 : vector<1x128xf32> to vector<8x128xf32>
    %346 = arith.mulf %344, %345 : vector<8x128xf32>
    %347 = arith.addf %341, %346 : vector<8x128xf32>
    %348 = vector.extract_strided_slice %124 {offsets = [0, 30], sizes = [8, 1], strides = [1, 1]} : vector<8x36xf32> to vector<8x1xf32>
    %349 = vector.extract_strided_slice %335 {offsets = [2, 0], sizes = [1, 128], strides = [1, 1]} : vector<4x128xf32> to vector<1x128xf32>
    %350 = vector.broadcast %348 : vector<8x1xf32> to vector<8x128xf32>
    %351 = vector.broadcast %349 : vector<1x128xf32> to vector<8x128xf32>
    %352 = arith.mulf %350, %351 : vector<8x128xf32>
    %353 = arith.addf %347, %352 : vector<8x128xf32>
    %354 = vector.extract_strided_slice %124 {offsets = [0, 31], sizes = [8, 1], strides = [1, 1]} : vector<8x36xf32> to vector<8x1xf32>
    %355 = vector.extract_strided_slice %335 {offsets = [3, 0], sizes = [1, 128], strides = [1, 1]} : vector<4x128xf32> to vector<1x128xf32>
    %356 = vector.broadcast %354 : vector<8x1xf32> to vector<8x128xf32>
    %357 = vector.broadcast %355 : vector<1x128xf32> to vector<8x128xf32>
    %358 = arith.mulf %356, %357 : vector<8x128xf32>
    %359 = arith.addf %353, %358 : vector<8x128xf32>
    %360 = vector.extract_strided_slice %123 {offsets = [0, 9], sizes = [4, 119], strides = [1, 1]} : vector<4x128xf32> to vector<4x119xf32>
    %361 = vector.extract_strided_slice %123 {offsets = [0, 0], sizes = [4, 9], strides = [1, 1]} : vector<4x128xf32> to vector<4x9xf32>
    %362 = tpu.concatenate %360, %361 in 1 : vector<4x119xf32>, vector<4x9xf32> -> vector<4x128xf32>
    %c8_43 = arith.constant 8 : index
    %c0_44 = arith.constant 0 : index
    %363 = vector.load %arg2[%c8_43, %c0_44] : memref<9x128xf32, #tpu.memory_space<vmem>>, vector<1x128xf32>
    %364 = vector.broadcast %363 : vector<1x128xf32> to vector<4x128xf32>
    %365 = arith.mulf %362, %364 : vector<4x128xf32>
    %366 = vector.extract_strided_slice %124 {offsets = [0, 32], sizes = [8, 1], strides = [1, 1]} : vector<8x36xf32> to vector<8x1xf32>
    %367 = vector.extract_strided_slice %365 {offsets = [0, 0], sizes = [1, 128], strides = [1, 1]} : vector<4x128xf32> to vector<1x128xf32>
    %368 = vector.broadcast %366 : vector<8x1xf32> to vector<8x128xf32>
    %369 = vector.broadcast %367 : vector<1x128xf32> to vector<8x128xf32>
    %370 = arith.mulf %368, %369 : vector<8x128xf32>
    %371 = arith.addf %359, %370 : vector<8x128xf32>
    %372 = vector.extract_strided_slice %124 {offsets = [0, 33], sizes = [8, 1], strides = [1, 1]} : vector<8x36xf32> to vector<8x1xf32>
    %373 = vector.extract_strided_slice %365 {offsets = [1, 0], sizes = [1, 128], strides = [1, 1]} : vector<4x128xf32> to vector<1x128xf32>
    %374 = vector.broadcast %372 : vector<8x1xf32> to vector<8x128xf32>
    %375 = vector.broadcast %373 : vector<1x128xf32> to vector<8x128xf32>
    %376 = arith.mulf %374, %375 : vector<8x128xf32>
    %377 = arith.addf %371, %376 : vector<8x128xf32>
    %378 = vector.extract_strided_slice %124 {offsets = [0, 34], sizes = [8, 1], strides = [1, 1]} : vector<8x36xf32> to vector<8x1xf32>
    %379 = vector.extract_strided_slice %365 {offsets = [2, 0], sizes = [1, 128], strides = [1, 1]} : vector<4x128xf32> to vector<1x128xf32>
    %380 = vector.broadcast %378 : vector<8x1xf32> to vector<8x128xf32>
    %381 = vector.broadcast %379 : vector<1x128xf32> to vector<8x128xf32>
    %382 = arith.mulf %380, %381 : vector<8x128xf32>
    %383 = arith.addf %377, %382 : vector<8x128xf32>
    %384 = vector.extract_strided_slice %124 {offsets = [0, 35], sizes = [8, 1], strides = [1, 1]} : vector<8x36xf32> to vector<8x1xf32>
    %385 = vector.extract_strided_slice %365 {offsets = [3, 0], sizes = [1, 128], strides = [1, 1]} : vector<4x128xf32> to vector<1x128xf32>
    %386 = vector.broadcast %384 : vector<8x1xf32> to vector<8x128xf32>
    %387 = vector.broadcast %385 : vector<1x128xf32> to vector<8x128xf32>
    %388 = arith.mulf %386, %387 : vector<8x128xf32>
    %389 = arith.addf %383, %388 : vector<8x128xf32>
    %c0_45 = arith.constant 0 : index
    %c1_46 = arith.constant 1 : index
    %390 = vector.load %arg9[%c0_45, %c1_46] : memref<8x6xf32, #tpu.memory_space<vmem>>, vector<8x1xf32>
    %391 = vector.broadcast %390 : vector<8x1xf32> to vector<8x128xf32>
    %392 = arith.addf %389, %391 : vector<8x128xf32>
    %393 = vector.extract_strided_slice %392 {offsets = [0, 1], sizes = [8, 127], strides = [1, 1]} : vector<8x128xf32> to vector<8x127xf32>
    %394 = vector.extract_strided_slice %392 {offsets = [0, 0], sizes = [8, 1], strides = [1, 1]} : vector<8x128xf32> to vector<8x1xf32>
    %395 = tpu.concatenate %393, %394 in 1 : vector<8x127xf32>, vector<8x1xf32> -> vector<8x128xf32>
    %396 = arith.maximumf %392, %395 : vector<8x128xf32>
    %397 = vector.extract_strided_slice %396 {offsets = [0, 8], sizes = [8, 120], strides = [1, 1]} : vector<8x128xf32> to vector<8x120xf32>
    %398 = vector.extract_strided_slice %396 {offsets = [0, 0], sizes = [8, 8], strides = [1, 1]} : vector<8x128xf32> to vector<8x8xf32>
    %399 = tpu.concatenate %397, %398 in 1 : vector<8x120xf32>, vector<8x8xf32> -> vector<8x128xf32>
    %400 = arith.maximumf %396, %399 : vector<8x128xf32>
    %c0_47 = arith.constant 0 : index
    %c0_48 = arith.constant 0 : index
    %401 = vector.load %arg5[%c0_47, %c0_48] : memref<128x32xf32, #tpu.memory_space<vmem>>, vector<128x32xf32>
    %cst_49 = arith.constant dense<0.000000e+00> : vector<8x32xf32>
    %402 = tpu.matmul %400, %401, %cst_49 {dimension_numbers = #tpu.dot_dimension_numbers<[1], [0], [0], [1], [0, 0, 1, 1], [], []>} : vector<8x128xf32>, vector<128x32xf32>, vector<8x32xf32> -> vector<8x32xf32>
    %c0_50 = arith.constant 0 : index
    %c2_51 = arith.constant 2 : index
    %403 = vector.load %arg10[%c0_50, %c2_51] : memref<8x10xf32, #tpu.memory_space<vmem>>, vector<8x1xf32>
    %c0_52 = arith.constant 0 : index
    %c3_53 = arith.constant 3 : index
    %404 = vector.load %arg10[%c0_52, %c3_53] : memref<8x10xf32, #tpu.memory_space<vmem>>, vector<8x1xf32>
    %cst_54 = arith.constant dense<0.000000e+00> : vector<8xf32>
    %405 = vector.multi_reduction <add>, %402, %cst_54 [1] : vector<8x32xf32> to vector<8xf32>
    %406 = vector.shape_cast %405 : vector<8xf32> to vector<8x1xf32>
    %cst_55 = arith.constant 3.200000e+01 : f32
    %407 = vector.broadcast %cst_55 : f32 to vector<8x1xf32>
    %408 = arith.divf %406, %407 : vector<8x1xf32>
    %409 = vector.broadcast %408 : vector<8x1xf32> to vector<8x32xf32>
    %410 = arith.subf %402, %409 : vector<8x32xf32>
    %411 = arith.mulf %410, %410 : vector<8x32xf32>
    %cst_56 = arith.constant dense<0.000000e+00> : vector<8xf32>
    %412 = vector.multi_reduction <add>, %411, %cst_56 [1] : vector<8x32xf32> to vector<8xf32>
    %413 = vector.shape_cast %412 : vector<8xf32> to vector<8x1xf32>
    %cst_57 = arith.constant 3.200000e+01 : f32
    %414 = vector.broadcast %cst_57 : f32 to vector<8x1xf32>
    %415 = arith.divf %413, %414 : vector<8x1xf32>
    %cst_58 = arith.constant 9.99999974E-6 : f32
    %416 = vector.broadcast %cst_58 : f32 to vector<8x1xf32>
    %417 = arith.addf %415, %416 : vector<8x1xf32>
    %418 = math.rsqrt %417 : vector<8x1xf32>
    %419 = arith.mulf %418, %403 : vector<8x1xf32>
    %420 = vector.broadcast %419 : vector<8x1xf32> to vector<8x32xf32>
    %421 = arith.mulf %410, %420 : vector<8x32xf32>
    %422 = vector.broadcast %404 : vector<8x1xf32> to vector<8x32xf32>
    %423 = arith.addf %421, %422 : vector<8x32xf32>
    %cst_59 = arith.constant 0.000000e+00 : f32
    %424 = vector.broadcast %cst_59 : f32 to vector<8x32xf32>
    %425 = arith.maximumf %423, %424 : vector<8x32xf32>
    %c0_60 = arith.constant 0 : index
    %c45 = arith.constant 45 : index
    %426 = vector.load %arg8[%c0_60, %c45] : memref<8x252xf32, #tpu.memory_space<vmem>>, vector<8x72xf32>
    %cst_61 = arith.constant 0.000000e+00 : f32
    %427 = vector.broadcast %cst_61 : f32 to vector<8x32xf32>
    %428 = vector.extract_strided_slice %425 {offsets = [0, 27], sizes = [8, 5], strides = [1, 1]} : vector<8x32xf32> to vector<8x5xf32>
    %429 = vector.extract_strided_slice %425 {offsets = [0, 0], sizes = [8, 27], strides = [1, 1]} : vector<8x32xf32> to vector<8x27xf32>
    %430 = tpu.concatenate %428, %429 in 1 : vector<8x5xf32>, vector<8x27xf32> -> vector<8x32xf32>
    %c0_62 = arith.constant 0 : index
    %c0_63 = arith.constant 0 : index
    %431 = vector.load %arg3[%c0_62, %c0_63] : memref<9x32xf32, #tpu.memory_space<vmem>>, vector<1x32xf32>
    %432 = vector.broadcast %431 : vector<1x32xf32> to vector<8x32xf32>
    %433 = arith.mulf %430, %432 : vector<8x32xf32>
    %434 = vector.extract_strided_slice %426 {offsets = [0, 0], sizes = [8, 1], strides = [1, 1]} : vector<8x72xf32> to vector<8x1xf32>
    %435 = vector.extract_strided_slice %433 {offsets = [0, 0], sizes = [1, 32], strides = [1, 1]} : vector<8x32xf32> to vector<1x32xf32>
    %436 = vector.broadcast %434 : vector<8x1xf32> to vector<8x32xf32>
    %437 = vector.broadcast %435 : vector<1x32xf32> to vector<8x32xf32>
    %438 = arith.mulf %436, %437 : vector<8x32xf32>
    %439 = arith.addf %427, %438 : vector<8x32xf32>
    %440 = vector.extract_strided_slice %426 {offsets = [0, 1], sizes = [8, 1], strides = [1, 1]} : vector<8x72xf32> to vector<8x1xf32>
    %441 = vector.extract_strided_slice %433 {offsets = [1, 0], sizes = [1, 32], strides = [1, 1]} : vector<8x32xf32> to vector<1x32xf32>
    %442 = vector.broadcast %440 : vector<8x1xf32> to vector<8x32xf32>
    %443 = vector.broadcast %441 : vector<1x32xf32> to vector<8x32xf32>
    %444 = arith.mulf %442, %443 : vector<8x32xf32>
    %445 = arith.addf %439, %444 : vector<8x32xf32>
    %446 = vector.extract_strided_slice %426 {offsets = [0, 2], sizes = [8, 1], strides = [1, 1]} : vector<8x72xf32> to vector<8x1xf32>
    %447 = vector.extract_strided_slice %433 {offsets = [2, 0], sizes = [1, 32], strides = [1, 1]} : vector<8x32xf32> to vector<1x32xf32>
    %448 = vector.broadcast %446 : vector<8x1xf32> to vector<8x32xf32>
    %449 = vector.broadcast %447 : vector<1x32xf32> to vector<8x32xf32>
    %450 = arith.mulf %448, %449 : vector<8x32xf32>
    %451 = arith.addf %445, %450 : vector<8x32xf32>
    %452 = vector.extract_strided_slice %426 {offsets = [0, 3], sizes = [8, 1], strides = [1, 1]} : vector<8x72xf32> to vector<8x1xf32>
    %453 = vector.extract_strided_slice %433 {offsets = [3, 0], sizes = [1, 32], strides = [1, 1]} : vector<8x32xf32> to vector<1x32xf32>
    %454 = vector.broadcast %452 : vector<8x1xf32> to vector<8x32xf32>
    %455 = vector.broadcast %453 : vector<1x32xf32> to vector<8x32xf32>
    %456 = arith.mulf %454, %455 : vector<8x32xf32>
    %457 = arith.addf %451, %456 : vector<8x32xf32>
    %458 = vector.extract_strided_slice %426 {offsets = [0, 4], sizes = [8, 1], strides = [1, 1]} : vector<8x72xf32> to vector<8x1xf32>
    %459 = vector.extract_strided_slice %433 {offsets = [4, 0], sizes = [1, 32], strides = [1, 1]} : vector<8x32xf32> to vector<1x32xf32>
    %460 = vector.broadcast %458 : vector<8x1xf32> to vector<8x32xf32>
    %461 = vector.broadcast %459 : vector<1x32xf32> to vector<8x32xf32>
    %462 = arith.mulf %460, %461 : vector<8x32xf32>
    %463 = arith.addf %457, %462 : vector<8x32xf32>
    %464 = vector.extract_strided_slice %426 {offsets = [0, 5], sizes = [8, 1], strides = [1, 1]} : vector<8x72xf32> to vector<8x1xf32>
    %465 = vector.extract_strided_slice %433 {offsets = [5, 0], sizes = [1, 32], strides = [1, 1]} : vector<8x32xf32> to vector<1x32xf32>
    %466 = vector.broadcast %464 : vector<8x1xf32> to vector<8x32xf32>
    %467 = vector.broadcast %465 : vector<1x32xf32> to vector<8x32xf32>
    %468 = arith.mulf %466, %467 : vector<8x32xf32>
    %469 = arith.addf %463, %468 : vector<8x32xf32>
    %470 = vector.extract_strided_slice %426 {offsets = [0, 6], sizes = [8, 1], strides = [1, 1]} : vector<8x72xf32> to vector<8x1xf32>
    %471 = vector.extract_strided_slice %433 {offsets = [6, 0], sizes = [1, 32], strides = [1, 1]} : vector<8x32xf32> to vector<1x32xf32>
    %472 = vector.broadcast %470 : vector<8x1xf32> to vector<8x32xf32>
    %473 = vector.broadcast %471 : vector<1x32xf32> to vector<8x32xf32>
    %474 = arith.mulf %472, %473 : vector<8x32xf32>
    %475 = arith.addf %469, %474 : vector<8x32xf32>
    %476 = vector.extract_strided_slice %426 {offsets = [0, 7], sizes = [8, 1], strides = [1, 1]} : vector<8x72xf32> to vector<8x1xf32>
    %477 = vector.extract_strided_slice %433 {offsets = [7, 0], sizes = [1, 32], strides = [1, 1]} : vector<8x32xf32> to vector<1x32xf32>
    %478 = vector.broadcast %476 : vector<8x1xf32> to vector<8x32xf32>
    %479 = vector.broadcast %477 : vector<1x32xf32> to vector<8x32xf32>
    %480 = arith.mulf %478, %479 : vector<8x32xf32>
    %481 = arith.addf %475, %480 : vector<8x32xf32>
    %482 = vector.extract_strided_slice %425 {offsets = [0, 28], sizes = [8, 4], strides = [1, 1]} : vector<8x32xf32> to vector<8x4xf32>
    %483 = vector.extract_strided_slice %425 {offsets = [0, 0], sizes = [8, 28], strides = [1, 1]} : vector<8x32xf32> to vector<8x28xf32>
    %484 = tpu.concatenate %482, %483 in 1 : vector<8x4xf32>, vector<8x28xf32> -> vector<8x32xf32>
    %c1_64 = arith.constant 1 : index
    %c0_65 = arith.constant 0 : index
    %485 = vector.load %arg3[%c1_64, %c0_65] : memref<9x32xf32, #tpu.memory_space<vmem>>, vector<1x32xf32>
    %486 = vector.broadcast %485 : vector<1x32xf32> to vector<8x32xf32>
    %487 = arith.mulf %484, %486 : vector<8x32xf32>
    %488 = vector.extract_strided_slice %426 {offsets = [0, 8], sizes = [8, 1], strides = [1, 1]} : vector<8x72xf32> to vector<8x1xf32>
    %489 = vector.extract_strided_slice %487 {offsets = [0, 0], sizes = [1, 32], strides = [1, 1]} : vector<8x32xf32> to vector<1x32xf32>
    %490 = vector.broadcast %488 : vector<8x1xf32> to vector<8x32xf32>
    %491 = vector.broadcast %489 : vector<1x32xf32> to vector<8x32xf32>
    %492 = arith.mulf %490, %491 : vector<8x32xf32>
    %493 = arith.addf %481, %492 : vector<8x32xf32>
    %494 = vector.extract_strided_slice %426 {offsets = [0, 9], sizes = [8, 1], strides = [1, 1]} : vector<8x72xf32> to vector<8x1xf32>
    %495 = vector.extract_strided_slice %487 {offsets = [1, 0], sizes = [1, 32], strides = [1, 1]} : vector<8x32xf32> to vector<1x32xf32>
    %496 = vector.broadcast %494 : vector<8x1xf32> to vector<8x32xf32>
    %497 = vector.broadcast %495 : vector<1x32xf32> to vector<8x32xf32>
    %498 = arith.mulf %496, %497 : vector<8x32xf32>
    %499 = arith.addf %493, %498 : vector<8x32xf32>
    %500 = vector.extract_strided_slice %426 {offsets = [0, 10], sizes = [8, 1], strides = [1, 1]} : vector<8x72xf32> to vector<8x1xf32>
    %501 = vector.extract_strided_slice %487 {offsets = [2, 0], sizes = [1, 32], strides = [1, 1]} : vector<8x32xf32> to vector<1x32xf32>
    %502 = vector.broadcast %500 : vector<8x1xf32> to vector<8x32xf32>
    %503 = vector.broadcast %501 : vector<1x32xf32> to vector<8x32xf32>
    %504 = arith.mulf %502, %503 : vector<8x32xf32>
    %505 = arith.addf %499, %504 : vector<8x32xf32>
    %506 = vector.extract_strided_slice %426 {offsets = [0, 11], sizes = [8, 1], strides = [1, 1]} : vector<8x72xf32> to vector<8x1xf32>
    %507 = vector.extract_strided_slice %487 {offsets = [3, 0], sizes = [1, 32], strides = [1, 1]} : vector<8x32xf32> to vector<1x32xf32>
    %508 = vector.broadcast %506 : vector<8x1xf32> to vector<8x32xf32>
    %509 = vector.broadcast %507 : vector<1x32xf32> to vector<8x32xf32>
    %510 = arith.mulf %508, %509 : vector<8x32xf32>
    %511 = arith.addf %505, %510 : vector<8x32xf32>
    %512 = vector.extract_strided_slice %426 {offsets = [0, 12], sizes = [8, 1], strides = [1, 1]} : vector<8x72xf32> to vector<8x1xf32>
    %513 = vector.extract_strided_slice %487 {offsets = [4, 0], sizes = [1, 32], strides = [1, 1]} : vector<8x32xf32> to vector<1x32xf32>
    %514 = vector.broadcast %512 : vector<8x1xf32> to vector<8x32xf32>
    %515 = vector.broadcast %513 : vector<1x32xf32> to vector<8x32xf32>
    %516 = arith.mulf %514, %515 : vector<8x32xf32>
    %517 = arith.addf %511, %516 : vector<8x32xf32>
    %518 = vector.extract_strided_slice %426 {offsets = [0, 13], sizes = [8, 1], strides = [1, 1]} : vector<8x72xf32> to vector<8x1xf32>
    %519 = vector.extract_strided_slice %487 {offsets = [5, 0], sizes = [1, 32], strides = [1, 1]} : vector<8x32xf32> to vector<1x32xf32>
    %520 = vector.broadcast %518 : vector<8x1xf32> to vector<8x32xf32>
    %521 = vector.broadcast %519 : vector<1x32xf32> to vector<8x32xf32>
    %522 = arith.mulf %520, %521 : vector<8x32xf32>
    %523 = arith.addf %517, %522 : vector<8x32xf32>
    %524 = vector.extract_strided_slice %426 {offsets = [0, 14], sizes = [8, 1], strides = [1, 1]} : vector<8x72xf32> to vector<8x1xf32>
    %525 = vector.extract_strided_slice %487 {offsets = [6, 0], sizes = [1, 32], strides = [1, 1]} : vector<8x32xf32> to vector<1x32xf32>
    %526 = vector.broadcast %524 : vector<8x1xf32> to vector<8x32xf32>
    %527 = vector.broadcast %525 : vector<1x32xf32> to vector<8x32xf32>
    %528 = arith.mulf %526, %527 : vector<8x32xf32>
    %529 = arith.addf %523, %528 : vector<8x32xf32>
    %530 = vector.extract_strided_slice %426 {offsets = [0, 15], sizes = [8, 1], strides = [1, 1]} : vector<8x72xf32> to vector<8x1xf32>
    %531 = vector.extract_strided_slice %487 {offsets = [7, 0], sizes = [1, 32], strides = [1, 1]} : vector<8x32xf32> to vector<1x32xf32>
    %532 = vector.broadcast %530 : vector<8x1xf32> to vector<8x32xf32>
    %533 = vector.broadcast %531 : vector<1x32xf32> to vector<8x32xf32>
    %534 = arith.mulf %532, %533 : vector<8x32xf32>
    %535 = arith.addf %529, %534 : vector<8x32xf32>
    %536 = vector.extract_strided_slice %425 {offsets = [0, 29], sizes = [8, 3], strides = [1, 1]} : vector<8x32xf32> to vector<8x3xf32>
    %537 = vector.extract_strided_slice %425 {offsets = [0, 0], sizes = [8, 29], strides = [1, 1]} : vector<8x32xf32> to vector<8x29xf32>
    %538 = tpu.concatenate %536, %537 in 1 : vector<8x3xf32>, vector<8x29xf32> -> vector<8x32xf32>
    %c2_66 = arith.constant 2 : index
    %c0_67 = arith.constant 0 : index
    %539 = vector.load %arg3[%c2_66, %c0_67] : memref<9x32xf32, #tpu.memory_space<vmem>>, vector<1x32xf32>
    %540 = vector.broadcast %539 : vector<1x32xf32> to vector<8x32xf32>
    %541 = arith.mulf %538, %540 : vector<8x32xf32>
    %542 = vector.extract_strided_slice %426 {offsets = [0, 16], sizes = [8, 1], strides = [1, 1]} : vector<8x72xf32> to vector<8x1xf32>
    %543 = vector.extract_strided_slice %541 {offsets = [0, 0], sizes = [1, 32], strides = [1, 1]} : vector<8x32xf32> to vector<1x32xf32>
    %544 = vector.broadcast %542 : vector<8x1xf32> to vector<8x32xf32>
    %545 = vector.broadcast %543 : vector<1x32xf32> to vector<8x32xf32>
    %546 = arith.mulf %544, %545 : vector<8x32xf32>
    %547 = arith.addf %535, %546 : vector<8x32xf32>
    %548 = vector.extract_strided_slice %426 {offsets = [0, 17], sizes = [8, 1], strides = [1, 1]} : vector<8x72xf32> to vector<8x1xf32>
    %549 = vector.extract_strided_slice %541 {offsets = [1, 0], sizes = [1, 32], strides = [1, 1]} : vector<8x32xf32> to vector<1x32xf32>
    %550 = vector.broadcast %548 : vector<8x1xf32> to vector<8x32xf32>
    %551 = vector.broadcast %549 : vector<1x32xf32> to vector<8x32xf32>
    %552 = arith.mulf %550, %551 : vector<8x32xf32>
    %553 = arith.addf %547, %552 : vector<8x32xf32>
    %554 = vector.extract_strided_slice %426 {offsets = [0, 18], sizes = [8, 1], strides = [1, 1]} : vector<8x72xf32> to vector<8x1xf32>
    %555 = vector.extract_strided_slice %541 {offsets = [2, 0], sizes = [1, 32], strides = [1, 1]} : vector<8x32xf32> to vector<1x32xf32>
    %556 = vector.broadcast %554 : vector<8x1xf32> to vector<8x32xf32>
    %557 = vector.broadcast %555 : vector<1x32xf32> to vector<8x32xf32>
    %558 = arith.mulf %556, %557 : vector<8x32xf32>
    %559 = arith.addf %553, %558 : vector<8x32xf32>
    %560 = vector.extract_strided_slice %426 {offsets = [0, 19], sizes = [8, 1], strides = [1, 1]} : vector<8x72xf32> to vector<8x1xf32>
    %561 = vector.extract_strided_slice %541 {offsets = [3, 0], sizes = [1, 32], strides = [1, 1]} : vector<8x32xf32> to vector<1x32xf32>
    %562 = vector.broadcast %560 : vector<8x1xf32> to vector<8x32xf32>
    %563 = vector.broadcast %561 : vector<1x32xf32> to vector<8x32xf32>
    %564 = arith.mulf %562, %563 : vector<8x32xf32>
    %565 = arith.addf %559, %564 : vector<8x32xf32>
    %566 = vector.extract_strided_slice %426 {offsets = [0, 20], sizes = [8, 1], strides = [1, 1]} : vector<8x72xf32> to vector<8x1xf32>
    %567 = vector.extract_strided_slice %541 {offsets = [4, 0], sizes = [1, 32], strides = [1, 1]} : vector<8x32xf32> to vector<1x32xf32>
    %568 = vector.broadcast %566 : vector<8x1xf32> to vector<8x32xf32>
    %569 = vector.broadcast %567 : vector<1x32xf32> to vector<8x32xf32>
    %570 = arith.mulf %568, %569 : vector<8x32xf32>
    %571 = arith.addf %565, %570 : vector<8x32xf32>
    %572 = vector.extract_strided_slice %426 {offsets = [0, 21], sizes = [8, 1], strides = [1, 1]} : vector<8x72xf32> to vector<8x1xf32>
    %573 = vector.extract_strided_slice %541 {offsets = [5, 0], sizes = [1, 32], strides = [1, 1]} : vector<8x32xf32> to vector<1x32xf32>
    %574 = vector.broadcast %572 : vector<8x1xf32> to vector<8x32xf32>
    %575 = vector.broadcast %573 : vector<1x32xf32> to vector<8x32xf32>
    %576 = arith.mulf %574, %575 : vector<8x32xf32>
    %577 = arith.addf %571, %576 : vector<8x32xf32>
    %578 = vector.extract_strided_slice %426 {offsets = [0, 22], sizes = [8, 1], strides = [1, 1]} : vector<8x72xf32> to vector<8x1xf32>
    %579 = vector.extract_strided_slice %541 {offsets = [6, 0], sizes = [1, 32], strides = [1, 1]} : vector<8x32xf32> to vector<1x32xf32>
    %580 = vector.broadcast %578 : vector<8x1xf32> to vector<8x32xf32>
    %581 = vector.broadcast %579 : vector<1x32xf32> to vector<8x32xf32>
    %582 = arith.mulf %580, %581 : vector<8x32xf32>
    %583 = arith.addf %577, %582 : vector<8x32xf32>
    %584 = vector.extract_strided_slice %426 {offsets = [0, 23], sizes = [8, 1], strides = [1, 1]} : vector<8x72xf32> to vector<8x1xf32>
    %585 = vector.extract_strided_slice %541 {offsets = [7, 0], sizes = [1, 32], strides = [1, 1]} : vector<8x32xf32> to vector<1x32xf32>
    %586 = vector.broadcast %584 : vector<8x1xf32> to vector<8x32xf32>
    %587 = vector.broadcast %585 : vector<1x32xf32> to vector<8x32xf32>
    %588 = arith.mulf %586, %587 : vector<8x32xf32>
    %589 = arith.addf %583, %588 : vector<8x32xf32>
    %590 = vector.extract_strided_slice %425 {offsets = [0, 31], sizes = [8, 1], strides = [1, 1]} : vector<8x32xf32> to vector<8x1xf32>
    %591 = vector.extract_strided_slice %425 {offsets = [0, 0], sizes = [8, 31], strides = [1, 1]} : vector<8x32xf32> to vector<8x31xf32>
    %592 = tpu.concatenate %590, %591 in 1 : vector<8x1xf32>, vector<8x31xf32> -> vector<8x32xf32>
    %c3_68 = arith.constant 3 : index
    %c0_69 = arith.constant 0 : index
    %593 = vector.load %arg3[%c3_68, %c0_69] : memref<9x32xf32, #tpu.memory_space<vmem>>, vector<1x32xf32>
    %594 = vector.broadcast %593 : vector<1x32xf32> to vector<8x32xf32>
    %595 = arith.mulf %592, %594 : vector<8x32xf32>
    %596 = vector.extract_strided_slice %426 {offsets = [0, 24], sizes = [8, 1], strides = [1, 1]} : vector<8x72xf32> to vector<8x1xf32>
    %597 = vector.extract_strided_slice %595 {offsets = [0, 0], sizes = [1, 32], strides = [1, 1]} : vector<8x32xf32> to vector<1x32xf32>
    %598 = vector.broadcast %596 : vector<8x1xf32> to vector<8x32xf32>
    %599 = vector.broadcast %597 : vector<1x32xf32> to vector<8x32xf32>
    %600 = arith.mulf %598, %599 : vector<8x32xf32>
    %601 = arith.addf %589, %600 : vector<8x32xf32>
    %602 = vector.extract_strided_slice %426 {offsets = [0, 25], sizes = [8, 1], strides = [1, 1]} : vector<8x72xf32> to vector<8x1xf32>
    %603 = vector.extract_strided_slice %595 {offsets = [1, 0], sizes = [1, 32], strides = [1, 1]} : vector<8x32xf32> to vector<1x32xf32>
    %604 = vector.broadcast %602 : vector<8x1xf32> to vector<8x32xf32>
    %605 = vector.broadcast %603 : vector<1x32xf32> to vector<8x32xf32>
    %606 = arith.mulf %604, %605 : vector<8x32xf32>
    %607 = arith.addf %601, %606 : vector<8x32xf32>
    %608 = vector.extract_strided_slice %426 {offsets = [0, 26], sizes = [8, 1], strides = [1, 1]} : vector<8x72xf32> to vector<8x1xf32>
    %609 = vector.extract_strided_slice %595 {offsets = [2, 0], sizes = [1, 32], strides = [1, 1]} : vector<8x32xf32> to vector<1x32xf32>
    %610 = vector.broadcast %608 : vector<8x1xf32> to vector<8x32xf32>
    %611 = vector.broadcast %609 : vector<1x32xf32> to vector<8x32xf32>
    %612 = arith.mulf %610, %611 : vector<8x32xf32>
    %613 = arith.addf %607, %612 : vector<8x32xf32>
    %614 = vector.extract_strided_slice %426 {offsets = [0, 27], sizes = [8, 1], strides = [1, 1]} : vector<8x72xf32> to vector<8x1xf32>
    %615 = vector.extract_strided_slice %595 {offsets = [3, 0], sizes = [1, 32], strides = [1, 1]} : vector<8x32xf32> to vector<1x32xf32>
    %616 = vector.broadcast %614 : vector<8x1xf32> to vector<8x32xf32>
    %617 = vector.broadcast %615 : vector<1x32xf32> to vector<8x32xf32>
    %618 = arith.mulf %616, %617 : vector<8x32xf32>
    %619 = arith.addf %613, %618 : vector<8x32xf32>
    %620 = vector.extract_strided_slice %426 {offsets = [0, 28], sizes = [8, 1], strides = [1, 1]} : vector<8x72xf32> to vector<8x1xf32>
    %621 = vector.extract_strided_slice %595 {offsets = [4, 0], sizes = [1, 32], strides = [1, 1]} : vector<8x32xf32> to vector<1x32xf32>
    %622 = vector.broadcast %620 : vector<8x1xf32> to vector<8x32xf32>
    %623 = vector.broadcast %621 : vector<1x32xf32> to vector<8x32xf32>
    %624 = arith.mulf %622, %623 : vector<8x32xf32>
    %625 = arith.addf %619, %624 : vector<8x32xf32>
    %626 = vector.extract_strided_slice %426 {offsets = [0, 29], sizes = [8, 1], strides = [1, 1]} : vector<8x72xf32> to vector<8x1xf32>
    %627 = vector.extract_strided_slice %595 {offsets = [5, 0], sizes = [1, 32], strides = [1, 1]} : vector<8x32xf32> to vector<1x32xf32>
    %628 = vector.broadcast %626 : vector<8x1xf32> to vector<8x32xf32>
    %629 = vector.broadcast %627 : vector<1x32xf32> to vector<8x32xf32>
    %630 = arith.mulf %628, %629 : vector<8x32xf32>
    %631 = arith.addf %625, %630 : vector<8x32xf32>
    %632 = vector.extract_strided_slice %426 {offsets = [0, 30], sizes = [8, 1], strides = [1, 1]} : vector<8x72xf32> to vector<8x1xf32>
    %633 = vector.extract_strided_slice %595 {offsets = [6, 0], sizes = [1, 32], strides = [1, 1]} : vector<8x32xf32> to vector<1x32xf32>
    %634 = vector.broadcast %632 : vector<8x1xf32> to vector<8x32xf32>
    %635 = vector.broadcast %633 : vector<1x32xf32> to vector<8x32xf32>
    %636 = arith.mulf %634, %635 : vector<8x32xf32>
    %637 = arith.addf %631, %636 : vector<8x32xf32>
    %638 = vector.extract_strided_slice %426 {offsets = [0, 31], sizes = [8, 1], strides = [1, 1]} : vector<8x72xf32> to vector<8x1xf32>
    %639 = vector.extract_strided_slice %595 {offsets = [7, 0], sizes = [1, 32], strides = [1, 1]} : vector<8x32xf32> to vector<1x32xf32>
    %640 = vector.broadcast %638 : vector<8x1xf32> to vector<8x32xf32>
    %641 = vector.broadcast %639 : vector<1x32xf32> to vector<8x32xf32>
    %642 = arith.mulf %640, %641 : vector<8x32xf32>
    %643 = arith.addf %637, %642 : vector<8x32xf32>
    %644 = vector.extract_strided_slice %426 {offsets = [0, 32], sizes = [8, 1], strides = [1, 1]} : vector<8x72xf32> to vector<8x1xf32>
    %645 = vector.extract_strided_slice %425 {offsets = [0, 0], sizes = [1, 32], strides = [1, 1]} : vector<8x32xf32> to vector<1x32xf32>
    %646 = vector.broadcast %644 : vector<8x1xf32> to vector<8x32xf32>
    %647 = vector.broadcast %645 : vector<1x32xf32> to vector<8x32xf32>
    %648 = arith.mulf %646, %647 : vector<8x32xf32>
    %649 = arith.addf %643, %648 : vector<8x32xf32>
    %650 = vector.extract_strided_slice %426 {offsets = [0, 33], sizes = [8, 1], strides = [1, 1]} : vector<8x72xf32> to vector<8x1xf32>
    %651 = vector.extract_strided_slice %425 {offsets = [1, 0], sizes = [1, 32], strides = [1, 1]} : vector<8x32xf32> to vector<1x32xf32>
    %652 = vector.broadcast %650 : vector<8x1xf32> to vector<8x32xf32>
    %653 = vector.broadcast %651 : vector<1x32xf32> to vector<8x32xf32>
    %654 = arith.mulf %652, %653 : vector<8x32xf32>
    %655 = arith.addf %649, %654 : vector<8x32xf32>
    %656 = vector.extract_strided_slice %426 {offsets = [0, 34], sizes = [8, 1], strides = [1, 1]} : vector<8x72xf32> to vector<8x1xf32>
    %657 = vector.extract_strided_slice %425 {offsets = [2, 0], sizes = [1, 32], strides = [1, 1]} : vector<8x32xf32> to vector<1x32xf32>
    %658 = vector.broadcast %656 : vector<8x1xf32> to vector<8x32xf32>
    %659 = vector.broadcast %657 : vector<1x32xf32> to vector<8x32xf32>
    %660 = arith.mulf %658, %659 : vector<8x32xf32>
    %661 = arith.addf %655, %660 : vector<8x32xf32>
    %662 = vector.extract_strided_slice %426 {offsets = [0, 35], sizes = [8, 1], strides = [1, 1]} : vector<8x72xf32> to vector<8x1xf32>
    %663 = vector.extract_strided_slice %425 {offsets = [3, 0], sizes = [1, 32], strides = [1, 1]} : vector<8x32xf32> to vector<1x32xf32>
    %664 = vector.broadcast %662 : vector<8x1xf32> to vector<8x32xf32>
    %665 = vector.broadcast %663 : vector<1x32xf32> to vector<8x32xf32>
    %666 = arith.mulf %664, %665 : vector<8x32xf32>
    %667 = arith.addf %661, %666 : vector<8x32xf32>
    %668 = vector.extract_strided_slice %426 {offsets = [0, 36], sizes = [8, 1], strides = [1, 1]} : vector<8x72xf32> to vector<8x1xf32>
    %669 = vector.extract_strided_slice %425 {offsets = [4, 0], sizes = [1, 32], strides = [1, 1]} : vector<8x32xf32> to vector<1x32xf32>
    %670 = vector.broadcast %668 : vector<8x1xf32> to vector<8x32xf32>
    %671 = vector.broadcast %669 : vector<1x32xf32> to vector<8x32xf32>
    %672 = arith.mulf %670, %671 : vector<8x32xf32>
    %673 = arith.addf %667, %672 : vector<8x32xf32>
    %674 = vector.extract_strided_slice %426 {offsets = [0, 37], sizes = [8, 1], strides = [1, 1]} : vector<8x72xf32> to vector<8x1xf32>
    %675 = vector.extract_strided_slice %425 {offsets = [5, 0], sizes = [1, 32], strides = [1, 1]} : vector<8x32xf32> to vector<1x32xf32>
    %676 = vector.broadcast %674 : vector<8x1xf32> to vector<8x32xf32>
    %677 = vector.broadcast %675 : vector<1x32xf32> to vector<8x32xf32>
    %678 = arith.mulf %676, %677 : vector<8x32xf32>
    %679 = arith.addf %673, %678 : vector<8x32xf32>
    %680 = vector.extract_strided_slice %426 {offsets = [0, 38], sizes = [8, 1], strides = [1, 1]} : vector<8x72xf32> to vector<8x1xf32>
    %681 = vector.extract_strided_slice %425 {offsets = [6, 0], sizes = [1, 32], strides = [1, 1]} : vector<8x32xf32> to vector<1x32xf32>
    %682 = vector.broadcast %680 : vector<8x1xf32> to vector<8x32xf32>
    %683 = vector.broadcast %681 : vector<1x32xf32> to vector<8x32xf32>
    %684 = arith.mulf %682, %683 : vector<8x32xf32>
    %685 = arith.addf %679, %684 : vector<8x32xf32>
    %686 = vector.extract_strided_slice %426 {offsets = [0, 39], sizes = [8, 1], strides = [1, 1]} : vector<8x72xf32> to vector<8x1xf32>
    %687 = vector.extract_strided_slice %425 {offsets = [7, 0], sizes = [1, 32], strides = [1, 1]} : vector<8x32xf32> to vector<1x32xf32>
    %688 = vector.broadcast %686 : vector<8x1xf32> to vector<8x32xf32>
    %689 = vector.broadcast %687 : vector<1x32xf32> to vector<8x32xf32>
    %690 = arith.mulf %688, %689 : vector<8x32xf32>
    %691 = arith.addf %685, %690 : vector<8x32xf32>
    %692 = vector.extract_strided_slice %425 {offsets = [0, 1], sizes = [8, 31], strides = [1, 1]} : vector<8x32xf32> to vector<8x31xf32>
    %693 = vector.extract_strided_slice %425 {offsets = [0, 0], sizes = [8, 1], strides = [1, 1]} : vector<8x32xf32> to vector<8x1xf32>
    %694 = tpu.concatenate %692, %693 in 1 : vector<8x31xf32>, vector<8x1xf32> -> vector<8x32xf32>
    %c5_70 = arith.constant 5 : index
    %c0_71 = arith.constant 0 : index
    %695 = vector.load %arg3[%c5_70, %c0_71] : memref<9x32xf32, #tpu.memory_space<vmem>>, vector<1x32xf32>
    %696 = vector.broadcast %695 : vector<1x32xf32> to vector<8x32xf32>
    %697 = arith.mulf %694, %696 : vector<8x32xf32>
    %698 = vector.extract_strided_slice %426 {offsets = [0, 40], sizes = [8, 1], strides = [1, 1]} : vector<8x72xf32> to vector<8x1xf32>
    %699 = vector.extract_strided_slice %697 {offsets = [0, 0], sizes = [1, 32], strides = [1, 1]} : vector<8x32xf32> to vector<1x32xf32>
    %700 = vector.broadcast %698 : vector<8x1xf32> to vector<8x32xf32>
    %701 = vector.broadcast %699 : vector<1x32xf32> to vector<8x32xf32>
    %702 = arith.mulf %700, %701 : vector<8x32xf32>
    %703 = arith.addf %691, %702 : vector<8x32xf32>
    %704 = vector.extract_strided_slice %426 {offsets = [0, 41], sizes = [8, 1], strides = [1, 1]} : vector<8x72xf32> to vector<8x1xf32>
    %705 = vector.extract_strided_slice %697 {offsets = [1, 0], sizes = [1, 32], strides = [1, 1]} : vector<8x32xf32> to vector<1x32xf32>
    %706 = vector.broadcast %704 : vector<8x1xf32> to vector<8x32xf32>
    %707 = vector.broadcast %705 : vector<1x32xf32> to vector<8x32xf32>
    %708 = arith.mulf %706, %707 : vector<8x32xf32>
    %709 = arith.addf %703, %708 : vector<8x32xf32>
    %710 = vector.extract_strided_slice %426 {offsets = [0, 42], sizes = [8, 1], strides = [1, 1]} : vector<8x72xf32> to vector<8x1xf32>
    %711 = vector.extract_strided_slice %697 {offsets = [2, 0], sizes = [1, 32], strides = [1, 1]} : vector<8x32xf32> to vector<1x32xf32>
    %712 = vector.broadcast %710 : vector<8x1xf32> to vector<8x32xf32>
    %713 = vector.broadcast %711 : vector<1x32xf32> to vector<8x32xf32>
    %714 = arith.mulf %712, %713 : vector<8x32xf32>
    %715 = arith.addf %709, %714 : vector<8x32xf32>
    %716 = vector.extract_strided_slice %426 {offsets = [0, 43], sizes = [8, 1], strides = [1, 1]} : vector<8x72xf32> to vector<8x1xf32>
    %717 = vector.extract_strided_slice %697 {offsets = [3, 0], sizes = [1, 32], strides = [1, 1]} : vector<8x32xf32> to vector<1x32xf32>
    %718 = vector.broadcast %716 : vector<8x1xf32> to vector<8x32xf32>
    %719 = vector.broadcast %717 : vector<1x32xf32> to vector<8x32xf32>
    %720 = arith.mulf %718, %719 : vector<8x32xf32>
    %721 = arith.addf %715, %720 : vector<8x32xf32>
    %722 = vector.extract_strided_slice %426 {offsets = [0, 44], sizes = [8, 1], strides = [1, 1]} : vector<8x72xf32> to vector<8x1xf32>
    %723 = vector.extract_strided_slice %697 {offsets = [4, 0], sizes = [1, 32], strides = [1, 1]} : vector<8x32xf32> to vector<1x32xf32>
    %724 = vector.broadcast %722 : vector<8x1xf32> to vector<8x32xf32>
    %725 = vector.broadcast %723 : vector<1x32xf32> to vector<8x32xf32>
    %726 = arith.mulf %724, %725 : vector<8x32xf32>
    %727 = arith.addf %721, %726 : vector<8x32xf32>
    %728 = vector.extract_strided_slice %426 {offsets = [0, 45], sizes = [8, 1], strides = [1, 1]} : vector<8x72xf32> to vector<8x1xf32>
    %729 = vector.extract_strided_slice %697 {offsets = [5, 0], sizes = [1, 32], strides = [1, 1]} : vector<8x32xf32> to vector<1x32xf32>
    %730 = vector.broadcast %728 : vector<8x1xf32> to vector<8x32xf32>
    %731 = vector.broadcast %729 : vector<1x32xf32> to vector<8x32xf32>
    %732 = arith.mulf %730, %731 : vector<8x32xf32>
    %733 = arith.addf %727, %732 : vector<8x32xf32>
    %734 = vector.extract_strided_slice %426 {offsets = [0, 46], sizes = [8, 1], strides = [1, 1]} : vector<8x72xf32> to vector<8x1xf32>
    %735 = vector.extract_strided_slice %697 {offsets = [6, 0], sizes = [1, 32], strides = [1, 1]} : vector<8x32xf32> to vector<1x32xf32>
    %736 = vector.broadcast %734 : vector<8x1xf32> to vector<8x32xf32>
    %737 = vector.broadcast %735 : vector<1x32xf32> to vector<8x32xf32>
    %738 = arith.mulf %736, %737 : vector<8x32xf32>
    %739 = arith.addf %733, %738 : vector<8x32xf32>
    %740 = vector.extract_strided_slice %426 {offsets = [0, 47], sizes = [8, 1], strides = [1, 1]} : vector<8x72xf32> to vector<8x1xf32>
    %741 = vector.extract_strided_slice %697 {offsets = [7, 0], sizes = [1, 32], strides = [1, 1]} : vector<8x32xf32> to vector<1x32xf32>
    %742 = vector.broadcast %740 : vector<8x1xf32> to vector<8x32xf32>
    %743 = vector.broadcast %741 : vector<1x32xf32> to vector<8x32xf32>
    %744 = arith.mulf %742, %743 : vector<8x32xf32>
    %745 = arith.addf %739, %744 : vector<8x32xf32>
    %746 = vector.extract_strided_slice %425 {offsets = [0, 3], sizes = [8, 29], strides = [1, 1]} : vector<8x32xf32> to vector<8x29xf32>
    %747 = vector.extract_strided_slice %425 {offsets = [0, 0], sizes = [8, 3], strides = [1, 1]} : vector<8x32xf32> to vector<8x3xf32>
    %748 = tpu.concatenate %746, %747 in 1 : vector<8x29xf32>, vector<8x3xf32> -> vector<8x32xf32>
    %c6_72 = arith.constant 6 : index
    %c0_73 = arith.constant 0 : index
    %749 = vector.load %arg3[%c6_72, %c0_73] : memref<9x32xf32, #tpu.memory_space<vmem>>, vector<1x32xf32>
    %750 = vector.broadcast %749 : vector<1x32xf32> to vector<8x32xf32>
    %751 = arith.mulf %748, %750 : vector<8x32xf32>
    %752 = vector.extract_strided_slice %426 {offsets = [0, 48], sizes = [8, 1], strides = [1, 1]} : vector<8x72xf32> to vector<8x1xf32>
    %753 = vector.extract_strided_slice %751 {offsets = [0, 0], sizes = [1, 32], strides = [1, 1]} : vector<8x32xf32> to vector<1x32xf32>
    %754 = vector.broadcast %752 : vector<8x1xf32> to vector<8x32xf32>
    %755 = vector.broadcast %753 : vector<1x32xf32> to vector<8x32xf32>
    %756 = arith.mulf %754, %755 : vector<8x32xf32>
    %757 = arith.addf %745, %756 : vector<8x32xf32>
    %758 = vector.extract_strided_slice %426 {offsets = [0, 49], sizes = [8, 1], strides = [1, 1]} : vector<8x72xf32> to vector<8x1xf32>
    %759 = vector.extract_strided_slice %751 {offsets = [1, 0], sizes = [1, 32], strides = [1, 1]} : vector<8x32xf32> to vector<1x32xf32>
    %760 = vector.broadcast %758 : vector<8x1xf32> to vector<8x32xf32>
    %761 = vector.broadcast %759 : vector<1x32xf32> to vector<8x32xf32>
    %762 = arith.mulf %760, %761 : vector<8x32xf32>
    %763 = arith.addf %757, %762 : vector<8x32xf32>
    %764 = vector.extract_strided_slice %426 {offsets = [0, 50], sizes = [8, 1], strides = [1, 1]} : vector<8x72xf32> to vector<8x1xf32>
    %765 = vector.extract_strided_slice %751 {offsets = [2, 0], sizes = [1, 32], strides = [1, 1]} : vector<8x32xf32> to vector<1x32xf32>
    %766 = vector.broadcast %764 : vector<8x1xf32> to vector<8x32xf32>
    %767 = vector.broadcast %765 : vector<1x32xf32> to vector<8x32xf32>
    %768 = arith.mulf %766, %767 : vector<8x32xf32>
    %769 = arith.addf %763, %768 : vector<8x32xf32>
    %770 = vector.extract_strided_slice %426 {offsets = [0, 51], sizes = [8, 1], strides = [1, 1]} : vector<8x72xf32> to vector<8x1xf32>
    %771 = vector.extract_strided_slice %751 {offsets = [3, 0], sizes = [1, 32], strides = [1, 1]} : vector<8x32xf32> to vector<1x32xf32>
    %772 = vector.broadcast %770 : vector<8x1xf32> to vector<8x32xf32>
    %773 = vector.broadcast %771 : vector<1x32xf32> to vector<8x32xf32>
    %774 = arith.mulf %772, %773 : vector<8x32xf32>
    %775 = arith.addf %769, %774 : vector<8x32xf32>
    %776 = vector.extract_strided_slice %426 {offsets = [0, 52], sizes = [8, 1], strides = [1, 1]} : vector<8x72xf32> to vector<8x1xf32>
    %777 = vector.extract_strided_slice %751 {offsets = [4, 0], sizes = [1, 32], strides = [1, 1]} : vector<8x32xf32> to vector<1x32xf32>
    %778 = vector.broadcast %776 : vector<8x1xf32> to vector<8x32xf32>
    %779 = vector.broadcast %777 : vector<1x32xf32> to vector<8x32xf32>
    %780 = arith.mulf %778, %779 : vector<8x32xf32>
    %781 = arith.addf %775, %780 : vector<8x32xf32>
    %782 = vector.extract_strided_slice %426 {offsets = [0, 53], sizes = [8, 1], strides = [1, 1]} : vector<8x72xf32> to vector<8x1xf32>
    %783 = vector.extract_strided_slice %751 {offsets = [5, 0], sizes = [1, 32], strides = [1, 1]} : vector<8x32xf32> to vector<1x32xf32>
    %784 = vector.broadcast %782 : vector<8x1xf32> to vector<8x32xf32>
    %785 = vector.broadcast %783 : vector<1x32xf32> to vector<8x32xf32>
    %786 = arith.mulf %784, %785 : vector<8x32xf32>
    %787 = arith.addf %781, %786 : vector<8x32xf32>
    %788 = vector.extract_strided_slice %426 {offsets = [0, 54], sizes = [8, 1], strides = [1, 1]} : vector<8x72xf32> to vector<8x1xf32>
    %789 = vector.extract_strided_slice %751 {offsets = [6, 0], sizes = [1, 32], strides = [1, 1]} : vector<8x32xf32> to vector<1x32xf32>
    %790 = vector.broadcast %788 : vector<8x1xf32> to vector<8x32xf32>
    %791 = vector.broadcast %789 : vector<1x32xf32> to vector<8x32xf32>
    %792 = arith.mulf %790, %791 : vector<8x32xf32>
    %793 = arith.addf %787, %792 : vector<8x32xf32>
    %794 = vector.extract_strided_slice %426 {offsets = [0, 55], sizes = [8, 1], strides = [1, 1]} : vector<8x72xf32> to vector<8x1xf32>
    %795 = vector.extract_strided_slice %751 {offsets = [7, 0], sizes = [1, 32], strides = [1, 1]} : vector<8x32xf32> to vector<1x32xf32>
    %796 = vector.broadcast %794 : vector<8x1xf32> to vector<8x32xf32>
    %797 = vector.broadcast %795 : vector<1x32xf32> to vector<8x32xf32>
    %798 = arith.mulf %796, %797 : vector<8x32xf32>
    %799 = arith.addf %793, %798 : vector<8x32xf32>
    %800 = vector.extract_strided_slice %425 {offsets = [0, 4], sizes = [8, 28], strides = [1, 1]} : vector<8x32xf32> to vector<8x28xf32>
    %801 = vector.extract_strided_slice %425 {offsets = [0, 0], sizes = [8, 4], strides = [1, 1]} : vector<8x32xf32> to vector<8x4xf32>
    %802 = tpu.concatenate %800, %801 in 1 : vector<8x28xf32>, vector<8x4xf32> -> vector<8x32xf32>
    %c7_74 = arith.constant 7 : index
    %c0_75 = arith.constant 0 : index
    %803 = vector.load %arg3[%c7_74, %c0_75] : memref<9x32xf32, #tpu.memory_space<vmem>>, vector<1x32xf32>
    %804 = vector.broadcast %803 : vector<1x32xf32> to vector<8x32xf32>
    %805 = arith.mulf %802, %804 : vector<8x32xf32>
    %806 = vector.extract_strided_slice %426 {offsets = [0, 56], sizes = [8, 1], strides = [1, 1]} : vector<8x72xf32> to vector<8x1xf32>
    %807 = vector.extract_strided_slice %805 {offsets = [0, 0], sizes = [1, 32], strides = [1, 1]} : vector<8x32xf32> to vector<1x32xf32>
    %808 = vector.broadcast %806 : vector<8x1xf32> to vector<8x32xf32>
    %809 = vector.broadcast %807 : vector<1x32xf32> to vector<8x32xf32>
    %810 = arith.mulf %808, %809 : vector<8x32xf32>
    %811 = arith.addf %799, %810 : vector<8x32xf32>
    %812 = vector.extract_strided_slice %426 {offsets = [0, 57], sizes = [8, 1], strides = [1, 1]} : vector<8x72xf32> to vector<8x1xf32>
    %813 = vector.extract_strided_slice %805 {offsets = [1, 0], sizes = [1, 32], strides = [1, 1]} : vector<8x32xf32> to vector<1x32xf32>
    %814 = vector.broadcast %812 : vector<8x1xf32> to vector<8x32xf32>
    %815 = vector.broadcast %813 : vector<1x32xf32> to vector<8x32xf32>
    %816 = arith.mulf %814, %815 : vector<8x32xf32>
    %817 = arith.addf %811, %816 : vector<8x32xf32>
    %818 = vector.extract_strided_slice %426 {offsets = [0, 58], sizes = [8, 1], strides = [1, 1]} : vector<8x72xf32> to vector<8x1xf32>
    %819 = vector.extract_strided_slice %805 {offsets = [2, 0], sizes = [1, 32], strides = [1, 1]} : vector<8x32xf32> to vector<1x32xf32>
    %820 = vector.broadcast %818 : vector<8x1xf32> to vector<8x32xf32>
    %821 = vector.broadcast %819 : vector<1x32xf32> to vector<8x32xf32>
    %822 = arith.mulf %820, %821 : vector<8x32xf32>
    %823 = arith.addf %817, %822 : vector<8x32xf32>
    %824 = vector.extract_strided_slice %426 {offsets = [0, 59], sizes = [8, 1], strides = [1, 1]} : vector<8x72xf32> to vector<8x1xf32>
    %825 = vector.extract_strided_slice %805 {offsets = [3, 0], sizes = [1, 32], strides = [1, 1]} : vector<8x32xf32> to vector<1x32xf32>
    %826 = vector.broadcast %824 : vector<8x1xf32> to vector<8x32xf32>
    %827 = vector.broadcast %825 : vector<1x32xf32> to vector<8x32xf32>
    %828 = arith.mulf %826, %827 : vector<8x32xf32>
    %829 = arith.addf %823, %828 : vector<8x32xf32>
    %830 = vector.extract_strided_slice %426 {offsets = [0, 60], sizes = [8, 1], strides = [1, 1]} : vector<8x72xf32> to vector<8x1xf32>
    %831 = vector.extract_strided_slice %805 {offsets = [4, 0], sizes = [1, 32], strides = [1, 1]} : vector<8x32xf32> to vector<1x32xf32>
    %832 = vector.broadcast %830 : vector<8x1xf32> to vector<8x32xf32>
    %833 = vector.broadcast %831 : vector<1x32xf32> to vector<8x32xf32>
    %834 = arith.mulf %832, %833 : vector<8x32xf32>
    %835 = arith.addf %829, %834 : vector<8x32xf32>
    %836 = vector.extract_strided_slice %426 {offsets = [0, 61], sizes = [8, 1], strides = [1, 1]} : vector<8x72xf32> to vector<8x1xf32>
    %837 = vector.extract_strided_slice %805 {offsets = [5, 0], sizes = [1, 32], strides = [1, 1]} : vector<8x32xf32> to vector<1x32xf32>
    %838 = vector.broadcast %836 : vector<8x1xf32> to vector<8x32xf32>
    %839 = vector.broadcast %837 : vector<1x32xf32> to vector<8x32xf32>
    %840 = arith.mulf %838, %839 : vector<8x32xf32>
    %841 = arith.addf %835, %840 : vector<8x32xf32>
    %842 = vector.extract_strided_slice %426 {offsets = [0, 62], sizes = [8, 1], strides = [1, 1]} : vector<8x72xf32> to vector<8x1xf32>
    %843 = vector.extract_strided_slice %805 {offsets = [6, 0], sizes = [1, 32], strides = [1, 1]} : vector<8x32xf32> to vector<1x32xf32>
    %844 = vector.broadcast %842 : vector<8x1xf32> to vector<8x32xf32>
    %845 = vector.broadcast %843 : vector<1x32xf32> to vector<8x32xf32>
    %846 = arith.mulf %844, %845 : vector<8x32xf32>
    %847 = arith.addf %841, %846 : vector<8x32xf32>
    %848 = vector.extract_strided_slice %426 {offsets = [0, 63], sizes = [8, 1], strides = [1, 1]} : vector<8x72xf32> to vector<8x1xf32>
    %849 = vector.extract_strided_slice %805 {offsets = [7, 0], sizes = [1, 32], strides = [1, 1]} : vector<8x32xf32> to vector<1x32xf32>
    %850 = vector.broadcast %848 : vector<8x1xf32> to vector<8x32xf32>
    %851 = vector.broadcast %849 : vector<1x32xf32> to vector<8x32xf32>
    %852 = arith.mulf %850, %851 : vector<8x32xf32>
    %853 = arith.addf %847, %852 : vector<8x32xf32>
    %854 = vector.extract_strided_slice %425 {offsets = [0, 5], sizes = [8, 27], strides = [1, 1]} : vector<8x32xf32> to vector<8x27xf32>
    %855 = vector.extract_strided_slice %425 {offsets = [0, 0], sizes = [8, 5], strides = [1, 1]} : vector<8x32xf32> to vector<8x5xf32>
    %856 = tpu.concatenate %854, %855 in 1 : vector<8x27xf32>, vector<8x5xf32> -> vector<8x32xf32>
    %c8_76 = arith.constant 8 : index
    %c0_77 = arith.constant 0 : index
    %857 = vector.load %arg3[%c8_76, %c0_77] : memref<9x32xf32, #tpu.memory_space<vmem>>, vector<1x32xf32>
    %858 = vector.broadcast %857 : vector<1x32xf32> to vector<8x32xf32>
    %859 = arith.mulf %856, %858 : vector<8x32xf32>
    %860 = vector.extract_strided_slice %426 {offsets = [0, 64], sizes = [8, 1], strides = [1, 1]} : vector<8x72xf32> to vector<8x1xf32>
    %861 = vector.extract_strided_slice %859 {offsets = [0, 0], sizes = [1, 32], strides = [1, 1]} : vector<8x32xf32> to vector<1x32xf32>
    %862 = vector.broadcast %860 : vector<8x1xf32> to vector<8x32xf32>
    %863 = vector.broadcast %861 : vector<1x32xf32> to vector<8x32xf32>
    %864 = arith.mulf %862, %863 : vector<8x32xf32>
    %865 = arith.addf %853, %864 : vector<8x32xf32>
    %866 = vector.extract_strided_slice %426 {offsets = [0, 65], sizes = [8, 1], strides = [1, 1]} : vector<8x72xf32> to vector<8x1xf32>
    %867 = vector.extract_strided_slice %859 {offsets = [1, 0], sizes = [1, 32], strides = [1, 1]} : vector<8x32xf32> to vector<1x32xf32>
    %868 = vector.broadcast %866 : vector<8x1xf32> to vector<8x32xf32>
    %869 = vector.broadcast %867 : vector<1x32xf32> to vector<8x32xf32>
    %870 = arith.mulf %868, %869 : vector<8x32xf32>
    %871 = arith.addf %865, %870 : vector<8x32xf32>
    %872 = vector.extract_strided_slice %426 {offsets = [0, 66], sizes = [8, 1], strides = [1, 1]} : vector<8x72xf32> to vector<8x1xf32>
    %873 = vector.extract_strided_slice %859 {offsets = [2, 0], sizes = [1, 32], strides = [1, 1]} : vector<8x32xf32> to vector<1x32xf32>
    %874 = vector.broadcast %872 : vector<8x1xf32> to vector<8x32xf32>
    %875 = vector.broadcast %873 : vector<1x32xf32> to vector<8x32xf32>
    %876 = arith.mulf %874, %875 : vector<8x32xf32>
    %877 = arith.addf %871, %876 : vector<8x32xf32>
    %878 = vector.extract_strided_slice %426 {offsets = [0, 67], sizes = [8, 1], strides = [1, 1]} : vector<8x72xf32> to vector<8x1xf32>
    %879 = vector.extract_strided_slice %859 {offsets = [3, 0], sizes = [1, 32], strides = [1, 1]} : vector<8x32xf32> to vector<1x32xf32>
    %880 = vector.broadcast %878 : vector<8x1xf32> to vector<8x32xf32>
    %881 = vector.broadcast %879 : vector<1x32xf32> to vector<8x32xf32>
    %882 = arith.mulf %880, %881 : vector<8x32xf32>
    %883 = arith.addf %877, %882 : vector<8x32xf32>
    %884 = vector.extract_strided_slice %426 {offsets = [0, 68], sizes = [8, 1], strides = [1, 1]} : vector<8x72xf32> to vector<8x1xf32>
    %885 = vector.extract_strided_slice %859 {offsets = [4, 0], sizes = [1, 32], strides = [1, 1]} : vector<8x32xf32> to vector<1x32xf32>
    %886 = vector.broadcast %884 : vector<8x1xf32> to vector<8x32xf32>
    %887 = vector.broadcast %885 : vector<1x32xf32> to vector<8x32xf32>
    %888 = arith.mulf %886, %887 : vector<8x32xf32>
    %889 = arith.addf %883, %888 : vector<8x32xf32>
    %890 = vector.extract_strided_slice %426 {offsets = [0, 69], sizes = [8, 1], strides = [1, 1]} : vector<8x72xf32> to vector<8x1xf32>
    %891 = vector.extract_strided_slice %859 {offsets = [5, 0], sizes = [1, 32], strides = [1, 1]} : vector<8x32xf32> to vector<1x32xf32>
    %892 = vector.broadcast %890 : vector<8x1xf32> to vector<8x32xf32>
    %893 = vector.broadcast %891 : vector<1x32xf32> to vector<8x32xf32>
    %894 = arith.mulf %892, %893 : vector<8x32xf32>
    %895 = arith.addf %889, %894 : vector<8x32xf32>
    %896 = vector.extract_strided_slice %426 {offsets = [0, 70], sizes = [8, 1], strides = [1, 1]} : vector<8x72xf32> to vector<8x1xf32>
    %897 = vector.extract_strided_slice %859 {offsets = [6, 0], sizes = [1, 32], strides = [1, 1]} : vector<8x32xf32> to vector<1x32xf32>
    %898 = vector.broadcast %896 : vector<8x1xf32> to vector<8x32xf32>
    %899 = vector.broadcast %897 : vector<1x32xf32> to vector<8x32xf32>
    %900 = arith.mulf %898, %899 : vector<8x32xf32>
    %901 = arith.addf %895, %900 : vector<8x32xf32>
    %902 = vector.extract_strided_slice %426 {offsets = [0, 71], sizes = [8, 1], strides = [1, 1]} : vector<8x72xf32> to vector<8x1xf32>
    %903 = vector.extract_strided_slice %859 {offsets = [7, 0], sizes = [1, 32], strides = [1, 1]} : vector<8x32xf32> to vector<1x32xf32>
    %904 = vector.broadcast %902 : vector<8x1xf32> to vector<8x32xf32>
    %905 = vector.broadcast %903 : vector<1x32xf32> to vector<8x32xf32>
    %906 = arith.mulf %904, %905 : vector<8x32xf32>
    %907 = arith.addf %901, %906 : vector<8x32xf32>
    %c0_78 = arith.constant 0 : index
    %c2_79 = arith.constant 2 : index
    %908 = vector.load %arg9[%c0_78, %c2_79] : memref<8x6xf32, #tpu.memory_space<vmem>>, vector<8x1xf32>
    %909 = vector.broadcast %908 : vector<8x1xf32> to vector<8x32xf32>
    %910 = arith.addf %907, %909 : vector<8x32xf32>
    %c0_80 = arith.constant 0 : index
    %c4 = arith.constant 4 : index
    %911 = vector.load %arg10[%c0_80, %c4] : memref<8x10xf32, #tpu.memory_space<vmem>>, vector<8x1xf32>
    %c0_81 = arith.constant 0 : index
    %c5_82 = arith.constant 5 : index
    %912 = vector.load %arg10[%c0_81, %c5_82] : memref<8x10xf32, #tpu.memory_space<vmem>>, vector<8x1xf32>
    %cst_83 = arith.constant dense<0.000000e+00> : vector<8xf32>
    %913 = vector.multi_reduction <add>, %910, %cst_83 [1] : vector<8x32xf32> to vector<8xf32>
    %914 = vector.shape_cast %913 : vector<8xf32> to vector<8x1xf32>
    %cst_84 = arith.constant 3.200000e+01 : f32
    %915 = vector.broadcast %cst_84 : f32 to vector<8x1xf32>
    %916 = arith.divf %914, %915 : vector<8x1xf32>
    %917 = vector.broadcast %916 : vector<8x1xf32> to vector<8x32xf32>
    %918 = arith.subf %910, %917 : vector<8x32xf32>
    %919 = arith.mulf %918, %918 : vector<8x32xf32>
    %cst_85 = arith.constant dense<0.000000e+00> : vector<8xf32>
    %920 = vector.multi_reduction <add>, %919, %cst_85 [1] : vector<8x32xf32> to vector<8xf32>
    %921 = vector.shape_cast %920 : vector<8xf32> to vector<8x1xf32>
    %cst_86 = arith.constant 3.200000e+01 : f32
    %922 = vector.broadcast %cst_86 : f32 to vector<8x1xf32>
    %923 = arith.divf %921, %922 : vector<8x1xf32>
    %cst_87 = arith.constant 9.99999974E-6 : f32
    %924 = vector.broadcast %cst_87 : f32 to vector<8x1xf32>
    %925 = arith.addf %923, %924 : vector<8x1xf32>
    %926 = math.rsqrt %925 : vector<8x1xf32>
    %927 = arith.mulf %926, %911 : vector<8x1xf32>
    %928 = vector.broadcast %927 : vector<8x1xf32> to vector<8x32xf32>
    %929 = arith.mulf %918, %928 : vector<8x32xf32>
    %930 = vector.broadcast %912 : vector<8x1xf32> to vector<8x32xf32>
    %931 = arith.addf %929, %930 : vector<8x32xf32>
    %cst_88 = arith.constant 0.000000e+00 : f32
    %932 = vector.broadcast %cst_88 : f32 to vector<8x32xf32>
    %933 = arith.maximumf %931, %932 : vector<8x32xf32>
    %c0_89 = arith.constant 0 : index
    %c117 = arith.constant 117 : index
    %934 = vector.load %arg8[%c0_89, %c117] : memref<8x252xf32, #tpu.memory_space<vmem>>, vector<4x72xf32>
    %cst_90 = arith.constant 0.000000e+00 : f32
    %935 = vector.broadcast %cst_90 : f32 to vector<4x32xf32>
    %936 = vector.extract_strided_slice %933 {offsets = [0, 27], sizes = [8, 5], strides = [1, 1]} : vector<8x32xf32> to vector<8x5xf32>
    %937 = vector.extract_strided_slice %933 {offsets = [0, 0], sizes = [8, 27], strides = [1, 1]} : vector<8x32xf32> to vector<8x27xf32>
    %938 = tpu.concatenate %936, %937 in 1 : vector<8x5xf32>, vector<8x27xf32> -> vector<8x32xf32>
    %c0_91 = arith.constant 0 : index
    %c0_92 = arith.constant 0 : index
    %939 = vector.load %arg3[%c0_91, %c0_92] : memref<9x32xf32, #tpu.memory_space<vmem>>, vector<1x32xf32>
    %940 = vector.broadcast %939 : vector<1x32xf32> to vector<8x32xf32>
    %941 = arith.mulf %938, %940 : vector<8x32xf32>
    %942 = vector.extract_strided_slice %934 {offsets = [0, 0], sizes = [4, 1], strides = [1, 1]} : vector<4x72xf32> to vector<4x1xf32>
    %943 = vector.extract_strided_slice %941 {offsets = [0, 0], sizes = [1, 32], strides = [1, 1]} : vector<8x32xf32> to vector<1x32xf32>
    %944 = vector.broadcast %942 : vector<4x1xf32> to vector<4x32xf32>
    %945 = vector.broadcast %943 : vector<1x32xf32> to vector<4x32xf32>
    %946 = arith.mulf %944, %945 : vector<4x32xf32>
    %947 = arith.addf %935, %946 : vector<4x32xf32>
    %948 = vector.extract_strided_slice %934 {offsets = [0, 1], sizes = [4, 1], strides = [1, 1]} : vector<4x72xf32> to vector<4x1xf32>
    %949 = vector.extract_strided_slice %941 {offsets = [1, 0], sizes = [1, 32], strides = [1, 1]} : vector<8x32xf32> to vector<1x32xf32>
    %950 = vector.broadcast %948 : vector<4x1xf32> to vector<4x32xf32>
    %951 = vector.broadcast %949 : vector<1x32xf32> to vector<4x32xf32>
    %952 = arith.mulf %950, %951 : vector<4x32xf32>
    %953 = arith.addf %947, %952 : vector<4x32xf32>
    %954 = vector.extract_strided_slice %934 {offsets = [0, 2], sizes = [4, 1], strides = [1, 1]} : vector<4x72xf32> to vector<4x1xf32>
    %955 = vector.extract_strided_slice %941 {offsets = [2, 0], sizes = [1, 32], strides = [1, 1]} : vector<8x32xf32> to vector<1x32xf32>
    %956 = vector.broadcast %954 : vector<4x1xf32> to vector<4x32xf32>
    %957 = vector.broadcast %955 : vector<1x32xf32> to vector<4x32xf32>
    %958 = arith.mulf %956, %957 : vector<4x32xf32>
    %959 = arith.addf %953, %958 : vector<4x32xf32>
    %960 = vector.extract_strided_slice %934 {offsets = [0, 3], sizes = [4, 1], strides = [1, 1]} : vector<4x72xf32> to vector<4x1xf32>
    %961 = vector.extract_strided_slice %941 {offsets = [3, 0], sizes = [1, 32], strides = [1, 1]} : vector<8x32xf32> to vector<1x32xf32>
    %962 = vector.broadcast %960 : vector<4x1xf32> to vector<4x32xf32>
    %963 = vector.broadcast %961 : vector<1x32xf32> to vector<4x32xf32>
    %964 = arith.mulf %962, %963 : vector<4x32xf32>
    %965 = arith.addf %959, %964 : vector<4x32xf32>
    %966 = vector.extract_strided_slice %934 {offsets = [0, 4], sizes = [4, 1], strides = [1, 1]} : vector<4x72xf32> to vector<4x1xf32>
    %967 = vector.extract_strided_slice %941 {offsets = [4, 0], sizes = [1, 32], strides = [1, 1]} : vector<8x32xf32> to vector<1x32xf32>
    %968 = vector.broadcast %966 : vector<4x1xf32> to vector<4x32xf32>
    %969 = vector.broadcast %967 : vector<1x32xf32> to vector<4x32xf32>
    %970 = arith.mulf %968, %969 : vector<4x32xf32>
    %971 = arith.addf %965, %970 : vector<4x32xf32>
    %972 = vector.extract_strided_slice %934 {offsets = [0, 5], sizes = [4, 1], strides = [1, 1]} : vector<4x72xf32> to vector<4x1xf32>
    %973 = vector.extract_strided_slice %941 {offsets = [5, 0], sizes = [1, 32], strides = [1, 1]} : vector<8x32xf32> to vector<1x32xf32>
    %974 = vector.broadcast %972 : vector<4x1xf32> to vector<4x32xf32>
    %975 = vector.broadcast %973 : vector<1x32xf32> to vector<4x32xf32>
    %976 = arith.mulf %974, %975 : vector<4x32xf32>
    %977 = arith.addf %971, %976 : vector<4x32xf32>
    %978 = vector.extract_strided_slice %934 {offsets = [0, 6], sizes = [4, 1], strides = [1, 1]} : vector<4x72xf32> to vector<4x1xf32>
    %979 = vector.extract_strided_slice %941 {offsets = [6, 0], sizes = [1, 32], strides = [1, 1]} : vector<8x32xf32> to vector<1x32xf32>
    %980 = vector.broadcast %978 : vector<4x1xf32> to vector<4x32xf32>
    %981 = vector.broadcast %979 : vector<1x32xf32> to vector<4x32xf32>
    %982 = arith.mulf %980, %981 : vector<4x32xf32>
    %983 = arith.addf %977, %982 : vector<4x32xf32>
    %984 = vector.extract_strided_slice %934 {offsets = [0, 7], sizes = [4, 1], strides = [1, 1]} : vector<4x72xf32> to vector<4x1xf32>
    %985 = vector.extract_strided_slice %941 {offsets = [7, 0], sizes = [1, 32], strides = [1, 1]} : vector<8x32xf32> to vector<1x32xf32>
    %986 = vector.broadcast %984 : vector<4x1xf32> to vector<4x32xf32>
    %987 = vector.broadcast %985 : vector<1x32xf32> to vector<4x32xf32>
    %988 = arith.mulf %986, %987 : vector<4x32xf32>
    %989 = arith.addf %983, %988 : vector<4x32xf32>
    %990 = vector.extract_strided_slice %933 {offsets = [0, 28], sizes = [8, 4], strides = [1, 1]} : vector<8x32xf32> to vector<8x4xf32>
    %991 = vector.extract_strided_slice %933 {offsets = [0, 0], sizes = [8, 28], strides = [1, 1]} : vector<8x32xf32> to vector<8x28xf32>
    %992 = tpu.concatenate %990, %991 in 1 : vector<8x4xf32>, vector<8x28xf32> -> vector<8x32xf32>
    %c1_93 = arith.constant 1 : index
    %c0_94 = arith.constant 0 : index
    %993 = vector.load %arg3[%c1_93, %c0_94] : memref<9x32xf32, #tpu.memory_space<vmem>>, vector<1x32xf32>
    %994 = vector.broadcast %993 : vector<1x32xf32> to vector<8x32xf32>
    %995 = arith.mulf %992, %994 : vector<8x32xf32>
    %996 = vector.extract_strided_slice %934 {offsets = [0, 8], sizes = [4, 1], strides = [1, 1]} : vector<4x72xf32> to vector<4x1xf32>
    %997 = vector.extract_strided_slice %995 {offsets = [0, 0], sizes = [1, 32], strides = [1, 1]} : vector<8x32xf32> to vector<1x32xf32>
    %998 = vector.broadcast %996 : vector<4x1xf32> to vector<4x32xf32>
    %999 = vector.broadcast %997 : vector<1x32xf32> to vector<4x32xf32>
    %1000 = arith.mulf %998, %999 : vector<4x32xf32>
    %1001 = arith.addf %989, %1000 : vector<4x32xf32>
    %1002 = vector.extract_strided_slice %934 {offsets = [0, 9], sizes = [4, 1], strides = [1, 1]} : vector<4x72xf32> to vector<4x1xf32>
    %1003 = vector.extract_strided_slice %995 {offsets = [1, 0], sizes = [1, 32], strides = [1, 1]} : vector<8x32xf32> to vector<1x32xf32>
    %1004 = vector.broadcast %1002 : vector<4x1xf32> to vector<4x32xf32>
    %1005 = vector.broadcast %1003 : vector<1x32xf32> to vector<4x32xf32>
    %1006 = arith.mulf %1004, %1005 : vector<4x32xf32>
    %1007 = arith.addf %1001, %1006 : vector<4x32xf32>
    %1008 = vector.extract_strided_slice %934 {offsets = [0, 10], sizes = [4, 1], strides = [1, 1]} : vector<4x72xf32> to vector<4x1xf32>
    %1009 = vector.extract_strided_slice %995 {offsets = [2, 0], sizes = [1, 32], strides = [1, 1]} : vector<8x32xf32> to vector<1x32xf32>
    %1010 = vector.broadcast %1008 : vector<4x1xf32> to vector<4x32xf32>
    %1011 = vector.broadcast %1009 : vector<1x32xf32> to vector<4x32xf32>
    %1012 = arith.mulf %1010, %1011 : vector<4x32xf32>
    %1013 = arith.addf %1007, %1012 : vector<4x32xf32>
    %1014 = vector.extract_strided_slice %934 {offsets = [0, 11], sizes = [4, 1], strides = [1, 1]} : vector<4x72xf32> to vector<4x1xf32>
    %1015 = vector.extract_strided_slice %995 {offsets = [3, 0], sizes = [1, 32], strides = [1, 1]} : vector<8x32xf32> to vector<1x32xf32>
    %1016 = vector.broadcast %1014 : vector<4x1xf32> to vector<4x32xf32>
    %1017 = vector.broadcast %1015 : vector<1x32xf32> to vector<4x32xf32>
    %1018 = arith.mulf %1016, %1017 : vector<4x32xf32>
    %1019 = arith.addf %1013, %1018 : vector<4x32xf32>
    %1020 = vector.extract_strided_slice %934 {offsets = [0, 12], sizes = [4, 1], strides = [1, 1]} : vector<4x72xf32> to vector<4x1xf32>
    %1021 = vector.extract_strided_slice %995 {offsets = [4, 0], sizes = [1, 32], strides = [1, 1]} : vector<8x32xf32> to vector<1x32xf32>
    %1022 = vector.broadcast %1020 : vector<4x1xf32> to vector<4x32xf32>
    %1023 = vector.broadcast %1021 : vector<1x32xf32> to vector<4x32xf32>
    %1024 = arith.mulf %1022, %1023 : vector<4x32xf32>
    %1025 = arith.addf %1019, %1024 : vector<4x32xf32>
    %1026 = vector.extract_strided_slice %934 {offsets = [0, 13], sizes = [4, 1], strides = [1, 1]} : vector<4x72xf32> to vector<4x1xf32>
    %1027 = vector.extract_strided_slice %995 {offsets = [5, 0], sizes = [1, 32], strides = [1, 1]} : vector<8x32xf32> to vector<1x32xf32>
    %1028 = vector.broadcast %1026 : vector<4x1xf32> to vector<4x32xf32>
    %1029 = vector.broadcast %1027 : vector<1x32xf32> to vector<4x32xf32>
    %1030 = arith.mulf %1028, %1029 : vector<4x32xf32>
    %1031 = arith.addf %1025, %1030 : vector<4x32xf32>
    %1032 = vector.extract_strided_slice %934 {offsets = [0, 14], sizes = [4, 1], strides = [1, 1]} : vector<4x72xf32> to vector<4x1xf32>
    %1033 = vector.extract_strided_slice %995 {offsets = [6, 0], sizes = [1, 32], strides = [1, 1]} : vector<8x32xf32> to vector<1x32xf32>
    %1034 = vector.broadcast %1032 : vector<4x1xf32> to vector<4x32xf32>
    %1035 = vector.broadcast %1033 : vector<1x32xf32> to vector<4x32xf32>
    %1036 = arith.mulf %1034, %1035 : vector<4x32xf32>
    %1037 = arith.addf %1031, %1036 : vector<4x32xf32>
    %1038 = vector.extract_strided_slice %934 {offsets = [0, 15], sizes = [4, 1], strides = [1, 1]} : vector<4x72xf32> to vector<4x1xf32>
    %1039 = vector.extract_strided_slice %995 {offsets = [7, 0], sizes = [1, 32], strides = [1, 1]} : vector<8x32xf32> to vector<1x32xf32>
    %1040 = vector.broadcast %1038 : vector<4x1xf32> to vector<4x32xf32>
    %1041 = vector.broadcast %1039 : vector<1x32xf32> to vector<4x32xf32>
    %1042 = arith.mulf %1040, %1041 : vector<4x32xf32>
    %1043 = arith.addf %1037, %1042 : vector<4x32xf32>
    %1044 = vector.extract_strided_slice %933 {offsets = [0, 29], sizes = [8, 3], strides = [1, 1]} : vector<8x32xf32> to vector<8x3xf32>
    %1045 = vector.extract_strided_slice %933 {offsets = [0, 0], sizes = [8, 29], strides = [1, 1]} : vector<8x32xf32> to vector<8x29xf32>
    %1046 = tpu.concatenate %1044, %1045 in 1 : vector<8x3xf32>, vector<8x29xf32> -> vector<8x32xf32>
    %c2_95 = arith.constant 2 : index
    %c0_96 = arith.constant 0 : index
    %1047 = vector.load %arg3[%c2_95, %c0_96] : memref<9x32xf32, #tpu.memory_space<vmem>>, vector<1x32xf32>
    %1048 = vector.broadcast %1047 : vector<1x32xf32> to vector<8x32xf32>
    %1049 = arith.mulf %1046, %1048 : vector<8x32xf32>
    %1050 = vector.extract_strided_slice %934 {offsets = [0, 16], sizes = [4, 1], strides = [1, 1]} : vector<4x72xf32> to vector<4x1xf32>
    %1051 = vector.extract_strided_slice %1049 {offsets = [0, 0], sizes = [1, 32], strides = [1, 1]} : vector<8x32xf32> to vector<1x32xf32>
    %1052 = vector.broadcast %1050 : vector<4x1xf32> to vector<4x32xf32>
    %1053 = vector.broadcast %1051 : vector<1x32xf32> to vector<4x32xf32>
    %1054 = arith.mulf %1052, %1053 : vector<4x32xf32>
    %1055 = arith.addf %1043, %1054 : vector<4x32xf32>
    %1056 = vector.extract_strided_slice %934 {offsets = [0, 17], sizes = [4, 1], strides = [1, 1]} : vector<4x72xf32> to vector<4x1xf32>
    %1057 = vector.extract_strided_slice %1049 {offsets = [1, 0], sizes = [1, 32], strides = [1, 1]} : vector<8x32xf32> to vector<1x32xf32>
    %1058 = vector.broadcast %1056 : vector<4x1xf32> to vector<4x32xf32>
    %1059 = vector.broadcast %1057 : vector<1x32xf32> to vector<4x32xf32>
    %1060 = arith.mulf %1058, %1059 : vector<4x32xf32>
    %1061 = arith.addf %1055, %1060 : vector<4x32xf32>
    %1062 = vector.extract_strided_slice %934 {offsets = [0, 18], sizes = [4, 1], strides = [1, 1]} : vector<4x72xf32> to vector<4x1xf32>
    %1063 = vector.extract_strided_slice %1049 {offsets = [2, 0], sizes = [1, 32], strides = [1, 1]} : vector<8x32xf32> to vector<1x32xf32>
    %1064 = vector.broadcast %1062 : vector<4x1xf32> to vector<4x32xf32>
    %1065 = vector.broadcast %1063 : vector<1x32xf32> to vector<4x32xf32>
    %1066 = arith.mulf %1064, %1065 : vector<4x32xf32>
    %1067 = arith.addf %1061, %1066 : vector<4x32xf32>
    %1068 = vector.extract_strided_slice %934 {offsets = [0, 19], sizes = [4, 1], strides = [1, 1]} : vector<4x72xf32> to vector<4x1xf32>
    %1069 = vector.extract_strided_slice %1049 {offsets = [3, 0], sizes = [1, 32], strides = [1, 1]} : vector<8x32xf32> to vector<1x32xf32>
    %1070 = vector.broadcast %1068 : vector<4x1xf32> to vector<4x32xf32>
    %1071 = vector.broadcast %1069 : vector<1x32xf32> to vector<4x32xf32>
    %1072 = arith.mulf %1070, %1071 : vector<4x32xf32>
    %1073 = arith.addf %1067, %1072 : vector<4x32xf32>
    %1074 = vector.extract_strided_slice %934 {offsets = [0, 20], sizes = [4, 1], strides = [1, 1]} : vector<4x72xf32> to vector<4x1xf32>
    %1075 = vector.extract_strided_slice %1049 {offsets = [4, 0], sizes = [1, 32], strides = [1, 1]} : vector<8x32xf32> to vector<1x32xf32>
    %1076 = vector.broadcast %1074 : vector<4x1xf32> to vector<4x32xf32>
    %1077 = vector.broadcast %1075 : vector<1x32xf32> to vector<4x32xf32>
    %1078 = arith.mulf %1076, %1077 : vector<4x32xf32>
    %1079 = arith.addf %1073, %1078 : vector<4x32xf32>
    %1080 = vector.extract_strided_slice %934 {offsets = [0, 21], sizes = [4, 1], strides = [1, 1]} : vector<4x72xf32> to vector<4x1xf32>
    %1081 = vector.extract_strided_slice %1049 {offsets = [5, 0], sizes = [1, 32], strides = [1, 1]} : vector<8x32xf32> to vector<1x32xf32>
    %1082 = vector.broadcast %1080 : vector<4x1xf32> to vector<4x32xf32>
    %1083 = vector.broadcast %1081 : vector<1x32xf32> to vector<4x32xf32>
    %1084 = arith.mulf %1082, %1083 : vector<4x32xf32>
    %1085 = arith.addf %1079, %1084 : vector<4x32xf32>
    %1086 = vector.extract_strided_slice %934 {offsets = [0, 22], sizes = [4, 1], strides = [1, 1]} : vector<4x72xf32> to vector<4x1xf32>
    %1087 = vector.extract_strided_slice %1049 {offsets = [6, 0], sizes = [1, 32], strides = [1, 1]} : vector<8x32xf32> to vector<1x32xf32>
    %1088 = vector.broadcast %1086 : vector<4x1xf32> to vector<4x32xf32>
    %1089 = vector.broadcast %1087 : vector<1x32xf32> to vector<4x32xf32>
    %1090 = arith.mulf %1088, %1089 : vector<4x32xf32>
    %1091 = arith.addf %1085, %1090 : vector<4x32xf32>
    %1092 = vector.extract_strided_slice %934 {offsets = [0, 23], sizes = [4, 1], strides = [1, 1]} : vector<4x72xf32> to vector<4x1xf32>
    %1093 = vector.extract_strided_slice %1049 {offsets = [7, 0], sizes = [1, 32], strides = [1, 1]} : vector<8x32xf32> to vector<1x32xf32>
    %1094 = vector.broadcast %1092 : vector<4x1xf32> to vector<4x32xf32>
    %1095 = vector.broadcast %1093 : vector<1x32xf32> to vector<4x32xf32>
    %1096 = arith.mulf %1094, %1095 : vector<4x32xf32>
    %1097 = arith.addf %1091, %1096 : vector<4x32xf32>
    %1098 = vector.extract_strided_slice %933 {offsets = [0, 31], sizes = [8, 1], strides = [1, 1]} : vector<8x32xf32> to vector<8x1xf32>
    %1099 = vector.extract_strided_slice %933 {offsets = [0, 0], sizes = [8, 31], strides = [1, 1]} : vector<8x32xf32> to vector<8x31xf32>
    %1100 = tpu.concatenate %1098, %1099 in 1 : vector<8x1xf32>, vector<8x31xf32> -> vector<8x32xf32>
    %c3_97 = arith.constant 3 : index
    %c0_98 = arith.constant 0 : index
    %1101 = vector.load %arg3[%c3_97, %c0_98] : memref<9x32xf32, #tpu.memory_space<vmem>>, vector<1x32xf32>
    %1102 = vector.broadcast %1101 : vector<1x32xf32> to vector<8x32xf32>
    %1103 = arith.mulf %1100, %1102 : vector<8x32xf32>
    %1104 = vector.extract_strided_slice %934 {offsets = [0, 24], sizes = [4, 1], strides = [1, 1]} : vector<4x72xf32> to vector<4x1xf32>
    %1105 = vector.extract_strided_slice %1103 {offsets = [0, 0], sizes = [1, 32], strides = [1, 1]} : vector<8x32xf32> to vector<1x32xf32>
    %1106 = vector.broadcast %1104 : vector<4x1xf32> to vector<4x32xf32>
    %1107 = vector.broadcast %1105 : vector<1x32xf32> to vector<4x32xf32>
    %1108 = arith.mulf %1106, %1107 : vector<4x32xf32>
    %1109 = arith.addf %1097, %1108 : vector<4x32xf32>
    %1110 = vector.extract_strided_slice %934 {offsets = [0, 25], sizes = [4, 1], strides = [1, 1]} : vector<4x72xf32> to vector<4x1xf32>
    %1111 = vector.extract_strided_slice %1103 {offsets = [1, 0], sizes = [1, 32], strides = [1, 1]} : vector<8x32xf32> to vector<1x32xf32>
    %1112 = vector.broadcast %1110 : vector<4x1xf32> to vector<4x32xf32>
    %1113 = vector.broadcast %1111 : vector<1x32xf32> to vector<4x32xf32>
    %1114 = arith.mulf %1112, %1113 : vector<4x32xf32>
    %1115 = arith.addf %1109, %1114 : vector<4x32xf32>
    %1116 = vector.extract_strided_slice %934 {offsets = [0, 26], sizes = [4, 1], strides = [1, 1]} : vector<4x72xf32> to vector<4x1xf32>
    %1117 = vector.extract_strided_slice %1103 {offsets = [2, 0], sizes = [1, 32], strides = [1, 1]} : vector<8x32xf32> to vector<1x32xf32>
    %1118 = vector.broadcast %1116 : vector<4x1xf32> to vector<4x32xf32>
    %1119 = vector.broadcast %1117 : vector<1x32xf32> to vector<4x32xf32>
    %1120 = arith.mulf %1118, %1119 : vector<4x32xf32>
    %1121 = arith.addf %1115, %1120 : vector<4x32xf32>
    %1122 = vector.extract_strided_slice %934 {offsets = [0, 27], sizes = [4, 1], strides = [1, 1]} : vector<4x72xf32> to vector<4x1xf32>
    %1123 = vector.extract_strided_slice %1103 {offsets = [3, 0], sizes = [1, 32], strides = [1, 1]} : vector<8x32xf32> to vector<1x32xf32>
    %1124 = vector.broadcast %1122 : vector<4x1xf32> to vector<4x32xf32>
    %1125 = vector.broadcast %1123 : vector<1x32xf32> to vector<4x32xf32>
    %1126 = arith.mulf %1124, %1125 : vector<4x32xf32>
    %1127 = arith.addf %1121, %1126 : vector<4x32xf32>
    %1128 = vector.extract_strided_slice %934 {offsets = [0, 28], sizes = [4, 1], strides = [1, 1]} : vector<4x72xf32> to vector<4x1xf32>
    %1129 = vector.extract_strided_slice %1103 {offsets = [4, 0], sizes = [1, 32], strides = [1, 1]} : vector<8x32xf32> to vector<1x32xf32>
    %1130 = vector.broadcast %1128 : vector<4x1xf32> to vector<4x32xf32>
    %1131 = vector.broadcast %1129 : vector<1x32xf32> to vector<4x32xf32>
    %1132 = arith.mulf %1130, %1131 : vector<4x32xf32>
    %1133 = arith.addf %1127, %1132 : vector<4x32xf32>
    %1134 = vector.extract_strided_slice %934 {offsets = [0, 29], sizes = [4, 1], strides = [1, 1]} : vector<4x72xf32> to vector<4x1xf32>
    %1135 = vector.extract_strided_slice %1103 {offsets = [5, 0], sizes = [1, 32], strides = [1, 1]} : vector<8x32xf32> to vector<1x32xf32>
    %1136 = vector.broadcast %1134 : vector<4x1xf32> to vector<4x32xf32>
    %1137 = vector.broadcast %1135 : vector<1x32xf32> to vector<4x32xf32>
    %1138 = arith.mulf %1136, %1137 : vector<4x32xf32>
    %1139 = arith.addf %1133, %1138 : vector<4x32xf32>
    %1140 = vector.extract_strided_slice %934 {offsets = [0, 30], sizes = [4, 1], strides = [1, 1]} : vector<4x72xf32> to vector<4x1xf32>
    %1141 = vector.extract_strided_slice %1103 {offsets = [6, 0], sizes = [1, 32], strides = [1, 1]} : vector<8x32xf32> to vector<1x32xf32>
    %1142 = vector.broadcast %1140 : vector<4x1xf32> to vector<4x32xf32>
    %1143 = vector.broadcast %1141 : vector<1x32xf32> to vector<4x32xf32>
    %1144 = arith.mulf %1142, %1143 : vector<4x32xf32>
    %1145 = arith.addf %1139, %1144 : vector<4x32xf32>
    %1146 = vector.extract_strided_slice %934 {offsets = [0, 31], sizes = [4, 1], strides = [1, 1]} : vector<4x72xf32> to vector<4x1xf32>
    %1147 = vector.extract_strided_slice %1103 {offsets = [7, 0], sizes = [1, 32], strides = [1, 1]} : vector<8x32xf32> to vector<1x32xf32>
    %1148 = vector.broadcast %1146 : vector<4x1xf32> to vector<4x32xf32>
    %1149 = vector.broadcast %1147 : vector<1x32xf32> to vector<4x32xf32>
    %1150 = arith.mulf %1148, %1149 : vector<4x32xf32>
    %1151 = arith.addf %1145, %1150 : vector<4x32xf32>
    %1152 = vector.extract_strided_slice %934 {offsets = [0, 32], sizes = [4, 1], strides = [1, 1]} : vector<4x72xf32> to vector<4x1xf32>
    %1153 = vector.extract_strided_slice %933 {offsets = [0, 0], sizes = [1, 32], strides = [1, 1]} : vector<8x32xf32> to vector<1x32xf32>
    %1154 = vector.broadcast %1152 : vector<4x1xf32> to vector<4x32xf32>
    %1155 = vector.broadcast %1153 : vector<1x32xf32> to vector<4x32xf32>
    %1156 = arith.mulf %1154, %1155 : vector<4x32xf32>
    %1157 = arith.addf %1151, %1156 : vector<4x32xf32>
    %1158 = vector.extract_strided_slice %934 {offsets = [0, 33], sizes = [4, 1], strides = [1, 1]} : vector<4x72xf32> to vector<4x1xf32>
    %1159 = vector.extract_strided_slice %933 {offsets = [1, 0], sizes = [1, 32], strides = [1, 1]} : vector<8x32xf32> to vector<1x32xf32>
    %1160 = vector.broadcast %1158 : vector<4x1xf32> to vector<4x32xf32>
    %1161 = vector.broadcast %1159 : vector<1x32xf32> to vector<4x32xf32>
    %1162 = arith.mulf %1160, %1161 : vector<4x32xf32>
    %1163 = arith.addf %1157, %1162 : vector<4x32xf32>
    %1164 = vector.extract_strided_slice %934 {offsets = [0, 34], sizes = [4, 1], strides = [1, 1]} : vector<4x72xf32> to vector<4x1xf32>
    %1165 = vector.extract_strided_slice %933 {offsets = [2, 0], sizes = [1, 32], strides = [1, 1]} : vector<8x32xf32> to vector<1x32xf32>
    %1166 = vector.broadcast %1164 : vector<4x1xf32> to vector<4x32xf32>
    %1167 = vector.broadcast %1165 : vector<1x32xf32> to vector<4x32xf32>
    %1168 = arith.mulf %1166, %1167 : vector<4x32xf32>
    %1169 = arith.addf %1163, %1168 : vector<4x32xf32>
    %1170 = vector.extract_strided_slice %934 {offsets = [0, 35], sizes = [4, 1], strides = [1, 1]} : vector<4x72xf32> to vector<4x1xf32>
    %1171 = vector.extract_strided_slice %933 {offsets = [3, 0], sizes = [1, 32], strides = [1, 1]} : vector<8x32xf32> to vector<1x32xf32>
    %1172 = vector.broadcast %1170 : vector<4x1xf32> to vector<4x32xf32>
    %1173 = vector.broadcast %1171 : vector<1x32xf32> to vector<4x32xf32>
    %1174 = arith.mulf %1172, %1173 : vector<4x32xf32>
    %1175 = arith.addf %1169, %1174 : vector<4x32xf32>
    %1176 = vector.extract_strided_slice %934 {offsets = [0, 36], sizes = [4, 1], strides = [1, 1]} : vector<4x72xf32> to vector<4x1xf32>
    %1177 = vector.extract_strided_slice %933 {offsets = [4, 0], sizes = [1, 32], strides = [1, 1]} : vector<8x32xf32> to vector<1x32xf32>
    %1178 = vector.broadcast %1176 : vector<4x1xf32> to vector<4x32xf32>
    %1179 = vector.broadcast %1177 : vector<1x32xf32> to vector<4x32xf32>
    %1180 = arith.mulf %1178, %1179 : vector<4x32xf32>
    %1181 = arith.addf %1175, %1180 : vector<4x32xf32>
    %1182 = vector.extract_strided_slice %934 {offsets = [0, 37], sizes = [4, 1], strides = [1, 1]} : vector<4x72xf32> to vector<4x1xf32>
    %1183 = vector.extract_strided_slice %933 {offsets = [5, 0], sizes = [1, 32], strides = [1, 1]} : vector<8x32xf32> to vector<1x32xf32>
    %1184 = vector.broadcast %1182 : vector<4x1xf32> to vector<4x32xf32>
    %1185 = vector.broadcast %1183 : vector<1x32xf32> to vector<4x32xf32>
    %1186 = arith.mulf %1184, %1185 : vector<4x32xf32>
    %1187 = arith.addf %1181, %1186 : vector<4x32xf32>
    %1188 = vector.extract_strided_slice %934 {offsets = [0, 38], sizes = [4, 1], strides = [1, 1]} : vector<4x72xf32> to vector<4x1xf32>
    %1189 = vector.extract_strided_slice %933 {offsets = [6, 0], sizes = [1, 32], strides = [1, 1]} : vector<8x32xf32> to vector<1x32xf32>
    %1190 = vector.broadcast %1188 : vector<4x1xf32> to vector<4x32xf32>
    %1191 = vector.broadcast %1189 : vector<1x32xf32> to vector<4x32xf32>
    %1192 = arith.mulf %1190, %1191 : vector<4x32xf32>
    %1193 = arith.addf %1187, %1192 : vector<4x32xf32>
    %1194 = vector.extract_strided_slice %934 {offsets = [0, 39], sizes = [4, 1], strides = [1, 1]} : vector<4x72xf32> to vector<4x1xf32>
    %1195 = vector.extract_strided_slice %933 {offsets = [7, 0], sizes = [1, 32], strides = [1, 1]} : vector<8x32xf32> to vector<1x32xf32>
    %1196 = vector.broadcast %1194 : vector<4x1xf32> to vector<4x32xf32>
    %1197 = vector.broadcast %1195 : vector<1x32xf32> to vector<4x32xf32>
    %1198 = arith.mulf %1196, %1197 : vector<4x32xf32>
    %1199 = arith.addf %1193, %1198 : vector<4x32xf32>
    %1200 = vector.extract_strided_slice %933 {offsets = [0, 1], sizes = [8, 31], strides = [1, 1]} : vector<8x32xf32> to vector<8x31xf32>
    %1201 = vector.extract_strided_slice %933 {offsets = [0, 0], sizes = [8, 1], strides = [1, 1]} : vector<8x32xf32> to vector<8x1xf32>
    %1202 = tpu.concatenate %1200, %1201 in 1 : vector<8x31xf32>, vector<8x1xf32> -> vector<8x32xf32>
    %c5_99 = arith.constant 5 : index
    %c0_100 = arith.constant 0 : index
    %1203 = vector.load %arg3[%c5_99, %c0_100] : memref<9x32xf32, #tpu.memory_space<vmem>>, vector<1x32xf32>
    %1204 = vector.broadcast %1203 : vector<1x32xf32> to vector<8x32xf32>
    %1205 = arith.mulf %1202, %1204 : vector<8x32xf32>
    %1206 = vector.extract_strided_slice %934 {offsets = [0, 40], sizes = [4, 1], strides = [1, 1]} : vector<4x72xf32> to vector<4x1xf32>
    %1207 = vector.extract_strided_slice %1205 {offsets = [0, 0], sizes = [1, 32], strides = [1, 1]} : vector<8x32xf32> to vector<1x32xf32>
    %1208 = vector.broadcast %1206 : vector<4x1xf32> to vector<4x32xf32>
    %1209 = vector.broadcast %1207 : vector<1x32xf32> to vector<4x32xf32>
    %1210 = arith.mulf %1208, %1209 : vector<4x32xf32>
    %1211 = arith.addf %1199, %1210 : vector<4x32xf32>
    %1212 = vector.extract_strided_slice %934 {offsets = [0, 41], sizes = [4, 1], strides = [1, 1]} : vector<4x72xf32> to vector<4x1xf32>
    %1213 = vector.extract_strided_slice %1205 {offsets = [1, 0], sizes = [1, 32], strides = [1, 1]} : vector<8x32xf32> to vector<1x32xf32>
    %1214 = vector.broadcast %1212 : vector<4x1xf32> to vector<4x32xf32>
    %1215 = vector.broadcast %1213 : vector<1x32xf32> to vector<4x32xf32>
    %1216 = arith.mulf %1214, %1215 : vector<4x32xf32>
    %1217 = arith.addf %1211, %1216 : vector<4x32xf32>
    %1218 = vector.extract_strided_slice %934 {offsets = [0, 42], sizes = [4, 1], strides = [1, 1]} : vector<4x72xf32> to vector<4x1xf32>
    %1219 = vector.extract_strided_slice %1205 {offsets = [2, 0], sizes = [1, 32], strides = [1, 1]} : vector<8x32xf32> to vector<1x32xf32>
    %1220 = vector.broadcast %1218 : vector<4x1xf32> to vector<4x32xf32>
    %1221 = vector.broadcast %1219 : vector<1x32xf32> to vector<4x32xf32>
    %1222 = arith.mulf %1220, %1221 : vector<4x32xf32>
    %1223 = arith.addf %1217, %1222 : vector<4x32xf32>
    %1224 = vector.extract_strided_slice %934 {offsets = [0, 43], sizes = [4, 1], strides = [1, 1]} : vector<4x72xf32> to vector<4x1xf32>
    %1225 = vector.extract_strided_slice %1205 {offsets = [3, 0], sizes = [1, 32], strides = [1, 1]} : vector<8x32xf32> to vector<1x32xf32>
    %1226 = vector.broadcast %1224 : vector<4x1xf32> to vector<4x32xf32>
    %1227 = vector.broadcast %1225 : vector<1x32xf32> to vector<4x32xf32>
    %1228 = arith.mulf %1226, %1227 : vector<4x32xf32>
    %1229 = arith.addf %1223, %1228 : vector<4x32xf32>
    %1230 = vector.extract_strided_slice %934 {offsets = [0, 44], sizes = [4, 1], strides = [1, 1]} : vector<4x72xf32> to vector<4x1xf32>
    %1231 = vector.extract_strided_slice %1205 {offsets = [4, 0], sizes = [1, 32], strides = [1, 1]} : vector<8x32xf32> to vector<1x32xf32>
    %1232 = vector.broadcast %1230 : vector<4x1xf32> to vector<4x32xf32>
    %1233 = vector.broadcast %1231 : vector<1x32xf32> to vector<4x32xf32>
    %1234 = arith.mulf %1232, %1233 : vector<4x32xf32>
    %1235 = arith.addf %1229, %1234 : vector<4x32xf32>
    %1236 = vector.extract_strided_slice %934 {offsets = [0, 45], sizes = [4, 1], strides = [1, 1]} : vector<4x72xf32> to vector<4x1xf32>
    %1237 = vector.extract_strided_slice %1205 {offsets = [5, 0], sizes = [1, 32], strides = [1, 1]} : vector<8x32xf32> to vector<1x32xf32>
    %1238 = vector.broadcast %1236 : vector<4x1xf32> to vector<4x32xf32>
    %1239 = vector.broadcast %1237 : vector<1x32xf32> to vector<4x32xf32>
    %1240 = arith.mulf %1238, %1239 : vector<4x32xf32>
    %1241 = arith.addf %1235, %1240 : vector<4x32xf32>
    %1242 = vector.extract_strided_slice %934 {offsets = [0, 46], sizes = [4, 1], strides = [1, 1]} : vector<4x72xf32> to vector<4x1xf32>
    %1243 = vector.extract_strided_slice %1205 {offsets = [6, 0], sizes = [1, 32], strides = [1, 1]} : vector<8x32xf32> to vector<1x32xf32>
    %1244 = vector.broadcast %1242 : vector<4x1xf32> to vector<4x32xf32>
    %1245 = vector.broadcast %1243 : vector<1x32xf32> to vector<4x32xf32>
    %1246 = arith.mulf %1244, %1245 : vector<4x32xf32>
    %1247 = arith.addf %1241, %1246 : vector<4x32xf32>
    %1248 = vector.extract_strided_slice %934 {offsets = [0, 47], sizes = [4, 1], strides = [1, 1]} : vector<4x72xf32> to vector<4x1xf32>
    %1249 = vector.extract_strided_slice %1205 {offsets = [7, 0], sizes = [1, 32], strides = [1, 1]} : vector<8x32xf32> to vector<1x32xf32>
    %1250 = vector.broadcast %1248 : vector<4x1xf32> to vector<4x32xf32>
    %1251 = vector.broadcast %1249 : vector<1x32xf32> to vector<4x32xf32>
    %1252 = arith.mulf %1250, %1251 : vector<4x32xf32>
    %1253 = arith.addf %1247, %1252 : vector<4x32xf32>
    %1254 = vector.extract_strided_slice %933 {offsets = [0, 3], sizes = [8, 29], strides = [1, 1]} : vector<8x32xf32> to vector<8x29xf32>
    %1255 = vector.extract_strided_slice %933 {offsets = [0, 0], sizes = [8, 3], strides = [1, 1]} : vector<8x32xf32> to vector<8x3xf32>
    %1256 = tpu.concatenate %1254, %1255 in 1 : vector<8x29xf32>, vector<8x3xf32> -> vector<8x32xf32>
    %c6_101 = arith.constant 6 : index
    %c0_102 = arith.constant 0 : index
    %1257 = vector.load %arg3[%c6_101, %c0_102] : memref<9x32xf32, #tpu.memory_space<vmem>>, vector<1x32xf32>
    %1258 = vector.broadcast %1257 : vector<1x32xf32> to vector<8x32xf32>
    %1259 = arith.mulf %1256, %1258 : vector<8x32xf32>
    %1260 = vector.extract_strided_slice %934 {offsets = [0, 48], sizes = [4, 1], strides = [1, 1]} : vector<4x72xf32> to vector<4x1xf32>
    %1261 = vector.extract_strided_slice %1259 {offsets = [0, 0], sizes = [1, 32], strides = [1, 1]} : vector<8x32xf32> to vector<1x32xf32>
    %1262 = vector.broadcast %1260 : vector<4x1xf32> to vector<4x32xf32>
    %1263 = vector.broadcast %1261 : vector<1x32xf32> to vector<4x32xf32>
    %1264 = arith.mulf %1262, %1263 : vector<4x32xf32>
    %1265 = arith.addf %1253, %1264 : vector<4x32xf32>
    %1266 = vector.extract_strided_slice %934 {offsets = [0, 49], sizes = [4, 1], strides = [1, 1]} : vector<4x72xf32> to vector<4x1xf32>
    %1267 = vector.extract_strided_slice %1259 {offsets = [1, 0], sizes = [1, 32], strides = [1, 1]} : vector<8x32xf32> to vector<1x32xf32>
    %1268 = vector.broadcast %1266 : vector<4x1xf32> to vector<4x32xf32>
    %1269 = vector.broadcast %1267 : vector<1x32xf32> to vector<4x32xf32>
    %1270 = arith.mulf %1268, %1269 : vector<4x32xf32>
    %1271 = arith.addf %1265, %1270 : vector<4x32xf32>
    %1272 = vector.extract_strided_slice %934 {offsets = [0, 50], sizes = [4, 1], strides = [1, 1]} : vector<4x72xf32> to vector<4x1xf32>
    %1273 = vector.extract_strided_slice %1259 {offsets = [2, 0], sizes = [1, 32], strides = [1, 1]} : vector<8x32xf32> to vector<1x32xf32>
    %1274 = vector.broadcast %1272 : vector<4x1xf32> to vector<4x32xf32>
    %1275 = vector.broadcast %1273 : vector<1x32xf32> to vector<4x32xf32>
    %1276 = arith.mulf %1274, %1275 : vector<4x32xf32>
    %1277 = arith.addf %1271, %1276 : vector<4x32xf32>
    %1278 = vector.extract_strided_slice %934 {offsets = [0, 51], sizes = [4, 1], strides = [1, 1]} : vector<4x72xf32> to vector<4x1xf32>
    %1279 = vector.extract_strided_slice %1259 {offsets = [3, 0], sizes = [1, 32], strides = [1, 1]} : vector<8x32xf32> to vector<1x32xf32>
    %1280 = vector.broadcast %1278 : vector<4x1xf32> to vector<4x32xf32>
    %1281 = vector.broadcast %1279 : vector<1x32xf32> to vector<4x32xf32>
    %1282 = arith.mulf %1280, %1281 : vector<4x32xf32>
    %1283 = arith.addf %1277, %1282 : vector<4x32xf32>
    %1284 = vector.extract_strided_slice %934 {offsets = [0, 52], sizes = [4, 1], strides = [1, 1]} : vector<4x72xf32> to vector<4x1xf32>
    %1285 = vector.extract_strided_slice %1259 {offsets = [4, 0], sizes = [1, 32], strides = [1, 1]} : vector<8x32xf32> to vector<1x32xf32>
    %1286 = vector.broadcast %1284 : vector<4x1xf32> to vector<4x32xf32>
    %1287 = vector.broadcast %1285 : vector<1x32xf32> to vector<4x32xf32>
    %1288 = arith.mulf %1286, %1287 : vector<4x32xf32>
    %1289 = arith.addf %1283, %1288 : vector<4x32xf32>
    %1290 = vector.extract_strided_slice %934 {offsets = [0, 53], sizes = [4, 1], strides = [1, 1]} : vector<4x72xf32> to vector<4x1xf32>
    %1291 = vector.extract_strided_slice %1259 {offsets = [5, 0], sizes = [1, 32], strides = [1, 1]} : vector<8x32xf32> to vector<1x32xf32>
    %1292 = vector.broadcast %1290 : vector<4x1xf32> to vector<4x32xf32>
    %1293 = vector.broadcast %1291 : vector<1x32xf32> to vector<4x32xf32>
    %1294 = arith.mulf %1292, %1293 : vector<4x32xf32>
    %1295 = arith.addf %1289, %1294 : vector<4x32xf32>
    %1296 = vector.extract_strided_slice %934 {offsets = [0, 54], sizes = [4, 1], strides = [1, 1]} : vector<4x72xf32> to vector<4x1xf32>
    %1297 = vector.extract_strided_slice %1259 {offsets = [6, 0], sizes = [1, 32], strides = [1, 1]} : vector<8x32xf32> to vector<1x32xf32>
    %1298 = vector.broadcast %1296 : vector<4x1xf32> to vector<4x32xf32>
    %1299 = vector.broadcast %1297 : vector<1x32xf32> to vector<4x32xf32>
    %1300 = arith.mulf %1298, %1299 : vector<4x32xf32>
    %1301 = arith.addf %1295, %1300 : vector<4x32xf32>
    %1302 = vector.extract_strided_slice %934 {offsets = [0, 55], sizes = [4, 1], strides = [1, 1]} : vector<4x72xf32> to vector<4x1xf32>
    %1303 = vector.extract_strided_slice %1259 {offsets = [7, 0], sizes = [1, 32], strides = [1, 1]} : vector<8x32xf32> to vector<1x32xf32>
    %1304 = vector.broadcast %1302 : vector<4x1xf32> to vector<4x32xf32>
    %1305 = vector.broadcast %1303 : vector<1x32xf32> to vector<4x32xf32>
    %1306 = arith.mulf %1304, %1305 : vector<4x32xf32>
    %1307 = arith.addf %1301, %1306 : vector<4x32xf32>
    %1308 = vector.extract_strided_slice %933 {offsets = [0, 4], sizes = [8, 28], strides = [1, 1]} : vector<8x32xf32> to vector<8x28xf32>
    %1309 = vector.extract_strided_slice %933 {offsets = [0, 0], sizes = [8, 4], strides = [1, 1]} : vector<8x32xf32> to vector<8x4xf32>
    %1310 = tpu.concatenate %1308, %1309 in 1 : vector<8x28xf32>, vector<8x4xf32> -> vector<8x32xf32>
    %c7_103 = arith.constant 7 : index
    %c0_104 = arith.constant 0 : index
    %1311 = vector.load %arg3[%c7_103, %c0_104] : memref<9x32xf32, #tpu.memory_space<vmem>>, vector<1x32xf32>
    %1312 = vector.broadcast %1311 : vector<1x32xf32> to vector<8x32xf32>
    %1313 = arith.mulf %1310, %1312 : vector<8x32xf32>
    %1314 = vector.extract_strided_slice %934 {offsets = [0, 56], sizes = [4, 1], strides = [1, 1]} : vector<4x72xf32> to vector<4x1xf32>
    %1315 = vector.extract_strided_slice %1313 {offsets = [0, 0], sizes = [1, 32], strides = [1, 1]} : vector<8x32xf32> to vector<1x32xf32>
    %1316 = vector.broadcast %1314 : vector<4x1xf32> to vector<4x32xf32>
    %1317 = vector.broadcast %1315 : vector<1x32xf32> to vector<4x32xf32>
    %1318 = arith.mulf %1316, %1317 : vector<4x32xf32>
    %1319 = arith.addf %1307, %1318 : vector<4x32xf32>
    %1320 = vector.extract_strided_slice %934 {offsets = [0, 57], sizes = [4, 1], strides = [1, 1]} : vector<4x72xf32> to vector<4x1xf32>
    %1321 = vector.extract_strided_slice %1313 {offsets = [1, 0], sizes = [1, 32], strides = [1, 1]} : vector<8x32xf32> to vector<1x32xf32>
    %1322 = vector.broadcast %1320 : vector<4x1xf32> to vector<4x32xf32>
    %1323 = vector.broadcast %1321 : vector<1x32xf32> to vector<4x32xf32>
    %1324 = arith.mulf %1322, %1323 : vector<4x32xf32>
    %1325 = arith.addf %1319, %1324 : vector<4x32xf32>
    %1326 = vector.extract_strided_slice %934 {offsets = [0, 58], sizes = [4, 1], strides = [1, 1]} : vector<4x72xf32> to vector<4x1xf32>
    %1327 = vector.extract_strided_slice %1313 {offsets = [2, 0], sizes = [1, 32], strides = [1, 1]} : vector<8x32xf32> to vector<1x32xf32>
    %1328 = vector.broadcast %1326 : vector<4x1xf32> to vector<4x32xf32>
    %1329 = vector.broadcast %1327 : vector<1x32xf32> to vector<4x32xf32>
    %1330 = arith.mulf %1328, %1329 : vector<4x32xf32>
    %1331 = arith.addf %1325, %1330 : vector<4x32xf32>
    %1332 = vector.extract_strided_slice %934 {offsets = [0, 59], sizes = [4, 1], strides = [1, 1]} : vector<4x72xf32> to vector<4x1xf32>
    %1333 = vector.extract_strided_slice %1313 {offsets = [3, 0], sizes = [1, 32], strides = [1, 1]} : vector<8x32xf32> to vector<1x32xf32>
    %1334 = vector.broadcast %1332 : vector<4x1xf32> to vector<4x32xf32>
    %1335 = vector.broadcast %1333 : vector<1x32xf32> to vector<4x32xf32>
    %1336 = arith.mulf %1334, %1335 : vector<4x32xf32>
    %1337 = arith.addf %1331, %1336 : vector<4x32xf32>
    %1338 = vector.extract_strided_slice %934 {offsets = [0, 60], sizes = [4, 1], strides = [1, 1]} : vector<4x72xf32> to vector<4x1xf32>
    %1339 = vector.extract_strided_slice %1313 {offsets = [4, 0], sizes = [1, 32], strides = [1, 1]} : vector<8x32xf32> to vector<1x32xf32>
    %1340 = vector.broadcast %1338 : vector<4x1xf32> to vector<4x32xf32>
    %1341 = vector.broadcast %1339 : vector<1x32xf32> to vector<4x32xf32>
    %1342 = arith.mulf %1340, %1341 : vector<4x32xf32>
    %1343 = arith.addf %1337, %1342 : vector<4x32xf32>
    %1344 = vector.extract_strided_slice %934 {offsets = [0, 61], sizes = [4, 1], strides = [1, 1]} : vector<4x72xf32> to vector<4x1xf32>
    %1345 = vector.extract_strided_slice %1313 {offsets = [5, 0], sizes = [1, 32], strides = [1, 1]} : vector<8x32xf32> to vector<1x32xf32>
    %1346 = vector.broadcast %1344 : vector<4x1xf32> to vector<4x32xf32>
    %1347 = vector.broadcast %1345 : vector<1x32xf32> to vector<4x32xf32>
    %1348 = arith.mulf %1346, %1347 : vector<4x32xf32>
    %1349 = arith.addf %1343, %1348 : vector<4x32xf32>
    %1350 = vector.extract_strided_slice %934 {offsets = [0, 62], sizes = [4, 1], strides = [1, 1]} : vector<4x72xf32> to vector<4x1xf32>
    %1351 = vector.extract_strided_slice %1313 {offsets = [6, 0], sizes = [1, 32], strides = [1, 1]} : vector<8x32xf32> to vector<1x32xf32>
    %1352 = vector.broadcast %1350 : vector<4x1xf32> to vector<4x32xf32>
    %1353 = vector.broadcast %1351 : vector<1x32xf32> to vector<4x32xf32>
    %1354 = arith.mulf %1352, %1353 : vector<4x32xf32>
    %1355 = arith.addf %1349, %1354 : vector<4x32xf32>
    %1356 = vector.extract_strided_slice %934 {offsets = [0, 63], sizes = [4, 1], strides = [1, 1]} : vector<4x72xf32> to vector<4x1xf32>
    %1357 = vector.extract_strided_slice %1313 {offsets = [7, 0], sizes = [1, 32], strides = [1, 1]} : vector<8x32xf32> to vector<1x32xf32>
    %1358 = vector.broadcast %1356 : vector<4x1xf32> to vector<4x32xf32>
    %1359 = vector.broadcast %1357 : vector<1x32xf32> to vector<4x32xf32>
    %1360 = arith.mulf %1358, %1359 : vector<4x32xf32>
    %1361 = arith.addf %1355, %1360 : vector<4x32xf32>
    %1362 = vector.extract_strided_slice %933 {offsets = [0, 5], sizes = [8, 27], strides = [1, 1]} : vector<8x32xf32> to vector<8x27xf32>
    %1363 = vector.extract_strided_slice %933 {offsets = [0, 0], sizes = [8, 5], strides = [1, 1]} : vector<8x32xf32> to vector<8x5xf32>
    %1364 = tpu.concatenate %1362, %1363 in 1 : vector<8x27xf32>, vector<8x5xf32> -> vector<8x32xf32>
    %c8_105 = arith.constant 8 : index
    %c0_106 = arith.constant 0 : index
    %1365 = vector.load %arg3[%c8_105, %c0_106] : memref<9x32xf32, #tpu.memory_space<vmem>>, vector<1x32xf32>
    %1366 = vector.broadcast %1365 : vector<1x32xf32> to vector<8x32xf32>
    %1367 = arith.mulf %1364, %1366 : vector<8x32xf32>
    %1368 = vector.extract_strided_slice %934 {offsets = [0, 64], sizes = [4, 1], strides = [1, 1]} : vector<4x72xf32> to vector<4x1xf32>
    %1369 = vector.extract_strided_slice %1367 {offsets = [0, 0], sizes = [1, 32], strides = [1, 1]} : vector<8x32xf32> to vector<1x32xf32>
    %1370 = vector.broadcast %1368 : vector<4x1xf32> to vector<4x32xf32>
    %1371 = vector.broadcast %1369 : vector<1x32xf32> to vector<4x32xf32>
    %1372 = arith.mulf %1370, %1371 : vector<4x32xf32>
    %1373 = arith.addf %1361, %1372 : vector<4x32xf32>
    %1374 = vector.extract_strided_slice %934 {offsets = [0, 65], sizes = [4, 1], strides = [1, 1]} : vector<4x72xf32> to vector<4x1xf32>
    %1375 = vector.extract_strided_slice %1367 {offsets = [1, 0], sizes = [1, 32], strides = [1, 1]} : vector<8x32xf32> to vector<1x32xf32>
    %1376 = vector.broadcast %1374 : vector<4x1xf32> to vector<4x32xf32>
    %1377 = vector.broadcast %1375 : vector<1x32xf32> to vector<4x32xf32>
    %1378 = arith.mulf %1376, %1377 : vector<4x32xf32>
    %1379 = arith.addf %1373, %1378 : vector<4x32xf32>
    %1380 = vector.extract_strided_slice %934 {offsets = [0, 66], sizes = [4, 1], strides = [1, 1]} : vector<4x72xf32> to vector<4x1xf32>
    %1381 = vector.extract_strided_slice %1367 {offsets = [2, 0], sizes = [1, 32], strides = [1, 1]} : vector<8x32xf32> to vector<1x32xf32>
    %1382 = vector.broadcast %1380 : vector<4x1xf32> to vector<4x32xf32>
    %1383 = vector.broadcast %1381 : vector<1x32xf32> to vector<4x32xf32>
    %1384 = arith.mulf %1382, %1383 : vector<4x32xf32>
    %1385 = arith.addf %1379, %1384 : vector<4x32xf32>
    %1386 = vector.extract_strided_slice %934 {offsets = [0, 67], sizes = [4, 1], strides = [1, 1]} : vector<4x72xf32> to vector<4x1xf32>
    %1387 = vector.extract_strided_slice %1367 {offsets = [3, 0], sizes = [1, 32], strides = [1, 1]} : vector<8x32xf32> to vector<1x32xf32>
    %1388 = vector.broadcast %1386 : vector<4x1xf32> to vector<4x32xf32>
    %1389 = vector.broadcast %1387 : vector<1x32xf32> to vector<4x32xf32>
    %1390 = arith.mulf %1388, %1389 : vector<4x32xf32>
    %1391 = arith.addf %1385, %1390 : vector<4x32xf32>
    %1392 = vector.extract_strided_slice %934 {offsets = [0, 68], sizes = [4, 1], strides = [1, 1]} : vector<4x72xf32> to vector<4x1xf32>
    %1393 = vector.extract_strided_slice %1367 {offsets = [4, 0], sizes = [1, 32], strides = [1, 1]} : vector<8x32xf32> to vector<1x32xf32>
    %1394 = vector.broadcast %1392 : vector<4x1xf32> to vector<4x32xf32>
    %1395 = vector.broadcast %1393 : vector<1x32xf32> to vector<4x32xf32>
    %1396 = arith.mulf %1394, %1395 : vector<4x32xf32>
    %1397 = arith.addf %1391, %1396 : vector<4x32xf32>
    %1398 = vector.extract_strided_slice %934 {offsets = [0, 69], sizes = [4, 1], strides = [1, 1]} : vector<4x72xf32> to vector<4x1xf32>
    %1399 = vector.extract_strided_slice %1367 {offsets = [5, 0], sizes = [1, 32], strides = [1, 1]} : vector<8x32xf32> to vector<1x32xf32>
    %1400 = vector.broadcast %1398 : vector<4x1xf32> to vector<4x32xf32>
    %1401 = vector.broadcast %1399 : vector<1x32xf32> to vector<4x32xf32>
    %1402 = arith.mulf %1400, %1401 : vector<4x32xf32>
    %1403 = arith.addf %1397, %1402 : vector<4x32xf32>
    %1404 = vector.extract_strided_slice %934 {offsets = [0, 70], sizes = [4, 1], strides = [1, 1]} : vector<4x72xf32> to vector<4x1xf32>
    %1405 = vector.extract_strided_slice %1367 {offsets = [6, 0], sizes = [1, 32], strides = [1, 1]} : vector<8x32xf32> to vector<1x32xf32>
    %1406 = vector.broadcast %1404 : vector<4x1xf32> to vector<4x32xf32>
    %1407 = vector.broadcast %1405 : vector<1x32xf32> to vector<4x32xf32>
    %1408 = arith.mulf %1406, %1407 : vector<4x32xf32>
    %1409 = arith.addf %1403, %1408 : vector<4x32xf32>
    %1410 = vector.extract_strided_slice %934 {offsets = [0, 71], sizes = [4, 1], strides = [1, 1]} : vector<4x72xf32> to vector<4x1xf32>
    %1411 = vector.extract_strided_slice %1367 {offsets = [7, 0], sizes = [1, 32], strides = [1, 1]} : vector<8x32xf32> to vector<1x32xf32>
    %1412 = vector.broadcast %1410 : vector<4x1xf32> to vector<4x32xf32>
    %1413 = vector.broadcast %1411 : vector<1x32xf32> to vector<4x32xf32>
    %1414 = arith.mulf %1412, %1413 : vector<4x32xf32>
    %1415 = arith.addf %1409, %1414 : vector<4x32xf32>
    %c0_107 = arith.constant 0 : index
    %c3_108 = arith.constant 3 : index
    %1416 = vector.load %arg9[%c0_107, %c3_108] : memref<8x6xf32, #tpu.memory_space<vmem>>, vector<4x1xf32>
    %1417 = vector.broadcast %1416 : vector<4x1xf32> to vector<4x32xf32>
    %1418 = arith.addf %1415, %1417 : vector<4x32xf32>
    %c0_109 = arith.constant 0 : index
    %c0_110 = arith.constant 0 : index
    %1419 = vector.load %arg6[%c0_109, %c0_110] : memref<32x128xf32, #tpu.memory_space<vmem>>, vector<32x128xf32>
    %cst_111 = arith.constant dense<0.000000e+00> : vector<4x128xf32>
    %1420 = tpu.matmul %1418, %1419, %cst_111 {dimension_numbers = #tpu.dot_dimension_numbers<[1], [0], [0], [1], [0, 0, 1, 1], [], []>} : vector<4x32xf32>, vector<32x128xf32>, vector<4x128xf32> -> vector<4x128xf32>
    %c0_112 = arith.constant 0 : index
    %c6_113 = arith.constant 6 : index
    %1421 = vector.load %arg10[%c0_112, %c6_113] : memref<8x10xf32, #tpu.memory_space<vmem>>, vector<4x1xf32>
    %c0_114 = arith.constant 0 : index
    %c7_115 = arith.constant 7 : index
    %1422 = vector.load %arg10[%c0_114, %c7_115] : memref<8x10xf32, #tpu.memory_space<vmem>>, vector<4x1xf32>
    %cst_116 = arith.constant dense<0.000000e+00> : vector<4xf32>
    %1423 = vector.multi_reduction <add>, %1420, %cst_116 [1] : vector<4x128xf32> to vector<4xf32>
    %1424 = vector.shape_cast %1423 : vector<4xf32> to vector<4x1xf32>
    %cst_117 = arith.constant 1.280000e+02 : f32
    %1425 = vector.broadcast %cst_117 : f32 to vector<4x1xf32>
    %1426 = arith.divf %1424, %1425 : vector<4x1xf32>
    %1427 = vector.broadcast %1426 : vector<4x1xf32> to vector<4x128xf32>
    %1428 = arith.subf %1420, %1427 : vector<4x128xf32>
    %1429 = arith.mulf %1428, %1428 : vector<4x128xf32>
    %cst_118 = arith.constant dense<0.000000e+00> : vector<4xf32>
    %1430 = vector.multi_reduction <add>, %1429, %cst_118 [1] : vector<4x128xf32> to vector<4xf32>
    %1431 = vector.shape_cast %1430 : vector<4xf32> to vector<4x1xf32>
    %cst_119 = arith.constant 1.280000e+02 : f32
    %1432 = vector.broadcast %cst_119 : f32 to vector<4x1xf32>
    %1433 = arith.divf %1431, %1432 : vector<4x1xf32>
    %cst_120 = arith.constant 9.99999974E-6 : f32
    %1434 = vector.broadcast %cst_120 : f32 to vector<4x1xf32>
    %1435 = arith.addf %1433, %1434 : vector<4x1xf32>
    %1436 = math.rsqrt %1435 : vector<4x1xf32>
    %1437 = arith.mulf %1436, %1421 : vector<4x1xf32>
    %1438 = vector.broadcast %1437 : vector<4x1xf32> to vector<4x128xf32>
    %1439 = arith.mulf %1428, %1438 : vector<4x128xf32>
    %1440 = vector.broadcast %1422 : vector<4x1xf32> to vector<4x128xf32>
    %1441 = arith.addf %1439, %1440 : vector<4x128xf32>
    %cst_121 = arith.constant 0.000000e+00 : f32
    %1442 = vector.broadcast %cst_121 : f32 to vector<4x128xf32>
    %1443 = arith.maximumf %1441, %1442 : vector<4x128xf32>
    %c0_122 = arith.constant 0 : index
    %c189 = arith.constant 189 : index
    %1444 = vector.load %arg8[%c0_122, %c189] : memref<8x252xf32, #tpu.memory_space<vmem>>, vector<3x36xf32>
    %cst_123 = arith.constant 0.000000e+00 : f32
    %1445 = vector.broadcast %cst_123 : f32 to vector<3x128xf32>
    %1446 = vector.extract_strided_slice %1443 {offsets = [0, 119], sizes = [4, 9], strides = [1, 1]} : vector<4x128xf32> to vector<4x9xf32>
    %1447 = vector.extract_strided_slice %1443 {offsets = [0, 0], sizes = [4, 119], strides = [1, 1]} : vector<4x128xf32> to vector<4x119xf32>
    %1448 = tpu.concatenate %1446, %1447 in 1 : vector<4x9xf32>, vector<4x119xf32> -> vector<4x128xf32>
    %c0_124 = arith.constant 0 : index
    %c0_125 = arith.constant 0 : index
    %1449 = vector.load %arg2[%c0_124, %c0_125] : memref<9x128xf32, #tpu.memory_space<vmem>>, vector<1x128xf32>
    %1450 = vector.broadcast %1449 : vector<1x128xf32> to vector<4x128xf32>
    %1451 = arith.mulf %1448, %1450 : vector<4x128xf32>
    %1452 = vector.extract_strided_slice %1444 {offsets = [0, 0], sizes = [3, 1], strides = [1, 1]} : vector<3x36xf32> to vector<3x1xf32>
    %1453 = vector.extract_strided_slice %1451 {offsets = [0, 0], sizes = [1, 128], strides = [1, 1]} : vector<4x128xf32> to vector<1x128xf32>
    %1454 = vector.broadcast %1452 : vector<3x1xf32> to vector<3x128xf32>
    %1455 = vector.broadcast %1453 : vector<1x128xf32> to vector<3x128xf32>
    %1456 = arith.mulf %1454, %1455 : vector<3x128xf32>
    %1457 = arith.addf %1445, %1456 : vector<3x128xf32>
    %1458 = vector.extract_strided_slice %1444 {offsets = [0, 1], sizes = [3, 1], strides = [1, 1]} : vector<3x36xf32> to vector<3x1xf32>
    %1459 = vector.extract_strided_slice %1451 {offsets = [1, 0], sizes = [1, 128], strides = [1, 1]} : vector<4x128xf32> to vector<1x128xf32>
    %1460 = vector.broadcast %1458 : vector<3x1xf32> to vector<3x128xf32>
    %1461 = vector.broadcast %1459 : vector<1x128xf32> to vector<3x128xf32>
    %1462 = arith.mulf %1460, %1461 : vector<3x128xf32>
    %1463 = arith.addf %1457, %1462 : vector<3x128xf32>
    %1464 = vector.extract_strided_slice %1444 {offsets = [0, 2], sizes = [3, 1], strides = [1, 1]} : vector<3x36xf32> to vector<3x1xf32>
    %1465 = vector.extract_strided_slice %1451 {offsets = [2, 0], sizes = [1, 128], strides = [1, 1]} : vector<4x128xf32> to vector<1x128xf32>
    %1466 = vector.broadcast %1464 : vector<3x1xf32> to vector<3x128xf32>
    %1467 = vector.broadcast %1465 : vector<1x128xf32> to vector<3x128xf32>
    %1468 = arith.mulf %1466, %1467 : vector<3x128xf32>
    %1469 = arith.addf %1463, %1468 : vector<3x128xf32>
    %1470 = vector.extract_strided_slice %1444 {offsets = [0, 3], sizes = [3, 1], strides = [1, 1]} : vector<3x36xf32> to vector<3x1xf32>
    %1471 = vector.extract_strided_slice %1451 {offsets = [3, 0], sizes = [1, 128], strides = [1, 1]} : vector<4x128xf32> to vector<1x128xf32>
    %1472 = vector.broadcast %1470 : vector<3x1xf32> to vector<3x128xf32>
    %1473 = vector.broadcast %1471 : vector<1x128xf32> to vector<3x128xf32>
    %1474 = arith.mulf %1472, %1473 : vector<3x128xf32>
    %1475 = arith.addf %1469, %1474 : vector<3x128xf32>
    %1476 = vector.extract_strided_slice %1443 {offsets = [0, 120], sizes = [4, 8], strides = [1, 1]} : vector<4x128xf32> to vector<4x8xf32>
    %1477 = vector.extract_strided_slice %1443 {offsets = [0, 0], sizes = [4, 120], strides = [1, 1]} : vector<4x128xf32> to vector<4x120xf32>
    %1478 = tpu.concatenate %1476, %1477 in 1 : vector<4x8xf32>, vector<4x120xf32> -> vector<4x128xf32>
    %c1_126 = arith.constant 1 : index
    %c0_127 = arith.constant 0 : index
    %1479 = vector.load %arg2[%c1_126, %c0_127] : memref<9x128xf32, #tpu.memory_space<vmem>>, vector<1x128xf32>
    %1480 = vector.broadcast %1479 : vector<1x128xf32> to vector<4x128xf32>
    %1481 = arith.mulf %1478, %1480 : vector<4x128xf32>
    %1482 = vector.extract_strided_slice %1444 {offsets = [0, 4], sizes = [3, 1], strides = [1, 1]} : vector<3x36xf32> to vector<3x1xf32>
    %1483 = vector.extract_strided_slice %1481 {offsets = [0, 0], sizes = [1, 128], strides = [1, 1]} : vector<4x128xf32> to vector<1x128xf32>
    %1484 = vector.broadcast %1482 : vector<3x1xf32> to vector<3x128xf32>
    %1485 = vector.broadcast %1483 : vector<1x128xf32> to vector<3x128xf32>
    %1486 = arith.mulf %1484, %1485 : vector<3x128xf32>
    %1487 = arith.addf %1475, %1486 : vector<3x128xf32>
    %1488 = vector.extract_strided_slice %1444 {offsets = [0, 5], sizes = [3, 1], strides = [1, 1]} : vector<3x36xf32> to vector<3x1xf32>
    %1489 = vector.extract_strided_slice %1481 {offsets = [1, 0], sizes = [1, 128], strides = [1, 1]} : vector<4x128xf32> to vector<1x128xf32>
    %1490 = vector.broadcast %1488 : vector<3x1xf32> to vector<3x128xf32>
    %1491 = vector.broadcast %1489 : vector<1x128xf32> to vector<3x128xf32>
    %1492 = arith.mulf %1490, %1491 : vector<3x128xf32>
    %1493 = arith.addf %1487, %1492 : vector<3x128xf32>
    %1494 = vector.extract_strided_slice %1444 {offsets = [0, 6], sizes = [3, 1], strides = [1, 1]} : vector<3x36xf32> to vector<3x1xf32>
    %1495 = vector.extract_strided_slice %1481 {offsets = [2, 0], sizes = [1, 128], strides = [1, 1]} : vector<4x128xf32> to vector<1x128xf32>
    %1496 = vector.broadcast %1494 : vector<3x1xf32> to vector<3x128xf32>
    %1497 = vector.broadcast %1495 : vector<1x128xf32> to vector<3x128xf32>
    %1498 = arith.mulf %1496, %1497 : vector<3x128xf32>
    %1499 = arith.addf %1493, %1498 : vector<3x128xf32>
    %1500 = vector.extract_strided_slice %1444 {offsets = [0, 7], sizes = [3, 1], strides = [1, 1]} : vector<3x36xf32> to vector<3x1xf32>
    %1501 = vector.extract_strided_slice %1481 {offsets = [3, 0], sizes = [1, 128], strides = [1, 1]} : vector<4x128xf32> to vector<1x128xf32>
    %1502 = vector.broadcast %1500 : vector<3x1xf32> to vector<3x128xf32>
    %1503 = vector.broadcast %1501 : vector<1x128xf32> to vector<3x128xf32>
    %1504 = arith.mulf %1502, %1503 : vector<3x128xf32>
    %1505 = arith.addf %1499, %1504 : vector<3x128xf32>
    %1506 = vector.extract_strided_slice %1443 {offsets = [0, 121], sizes = [4, 7], strides = [1, 1]} : vector<4x128xf32> to vector<4x7xf32>
    %1507 = vector.extract_strided_slice %1443 {offsets = [0, 0], sizes = [4, 121], strides = [1, 1]} : vector<4x128xf32> to vector<4x121xf32>
    %1508 = tpu.concatenate %1506, %1507 in 1 : vector<4x7xf32>, vector<4x121xf32> -> vector<4x128xf32>
    %c2_128 = arith.constant 2 : index
    %c0_129 = arith.constant 0 : index
    %1509 = vector.load %arg2[%c2_128, %c0_129] : memref<9x128xf32, #tpu.memory_space<vmem>>, vector<1x128xf32>
    %1510 = vector.broadcast %1509 : vector<1x128xf32> to vector<4x128xf32>
    %1511 = arith.mulf %1508, %1510 : vector<4x128xf32>
    %1512 = vector.extract_strided_slice %1444 {offsets = [0, 8], sizes = [3, 1], strides = [1, 1]} : vector<3x36xf32> to vector<3x1xf32>
    %1513 = vector.extract_strided_slice %1511 {offsets = [0, 0], sizes = [1, 128], strides = [1, 1]} : vector<4x128xf32> to vector<1x128xf32>
    %1514 = vector.broadcast %1512 : vector<3x1xf32> to vector<3x128xf32>
    %1515 = vector.broadcast %1513 : vector<1x128xf32> to vector<3x128xf32>
    %1516 = arith.mulf %1514, %1515 : vector<3x128xf32>
    %1517 = arith.addf %1505, %1516 : vector<3x128xf32>
    %1518 = vector.extract_strided_slice %1444 {offsets = [0, 9], sizes = [3, 1], strides = [1, 1]} : vector<3x36xf32> to vector<3x1xf32>
    %1519 = vector.extract_strided_slice %1511 {offsets = [1, 0], sizes = [1, 128], strides = [1, 1]} : vector<4x128xf32> to vector<1x128xf32>
    %1520 = vector.broadcast %1518 : vector<3x1xf32> to vector<3x128xf32>
    %1521 = vector.broadcast %1519 : vector<1x128xf32> to vector<3x128xf32>
    %1522 = arith.mulf %1520, %1521 : vector<3x128xf32>
    %1523 = arith.addf %1517, %1522 : vector<3x128xf32>
    %1524 = vector.extract_strided_slice %1444 {offsets = [0, 10], sizes = [3, 1], strides = [1, 1]} : vector<3x36xf32> to vector<3x1xf32>
    %1525 = vector.extract_strided_slice %1511 {offsets = [2, 0], sizes = [1, 128], strides = [1, 1]} : vector<4x128xf32> to vector<1x128xf32>
    %1526 = vector.broadcast %1524 : vector<3x1xf32> to vector<3x128xf32>
    %1527 = vector.broadcast %1525 : vector<1x128xf32> to vector<3x128xf32>
    %1528 = arith.mulf %1526, %1527 : vector<3x128xf32>
    %1529 = arith.addf %1523, %1528 : vector<3x128xf32>
    %1530 = vector.extract_strided_slice %1444 {offsets = [0, 11], sizes = [3, 1], strides = [1, 1]} : vector<3x36xf32> to vector<3x1xf32>
    %1531 = vector.extract_strided_slice %1511 {offsets = [3, 0], sizes = [1, 128], strides = [1, 1]} : vector<4x128xf32> to vector<1x128xf32>
    %1532 = vector.broadcast %1530 : vector<3x1xf32> to vector<3x128xf32>
    %1533 = vector.broadcast %1531 : vector<1x128xf32> to vector<3x128xf32>
    %1534 = arith.mulf %1532, %1533 : vector<3x128xf32>
    %1535 = arith.addf %1529, %1534 : vector<3x128xf32>
    %1536 = vector.extract_strided_slice %1443 {offsets = [0, 127], sizes = [4, 1], strides = [1, 1]} : vector<4x128xf32> to vector<4x1xf32>
    %1537 = vector.extract_strided_slice %1443 {offsets = [0, 0], sizes = [4, 127], strides = [1, 1]} : vector<4x128xf32> to vector<4x127xf32>
    %1538 = tpu.concatenate %1536, %1537 in 1 : vector<4x1xf32>, vector<4x127xf32> -> vector<4x128xf32>
    %c3_130 = arith.constant 3 : index
    %c0_131 = arith.constant 0 : index
    %1539 = vector.load %arg2[%c3_130, %c0_131] : memref<9x128xf32, #tpu.memory_space<vmem>>, vector<1x128xf32>
    %1540 = vector.broadcast %1539 : vector<1x128xf32> to vector<4x128xf32>
    %1541 = arith.mulf %1538, %1540 : vector<4x128xf32>
    %1542 = vector.extract_strided_slice %1444 {offsets = [0, 12], sizes = [3, 1], strides = [1, 1]} : vector<3x36xf32> to vector<3x1xf32>
    %1543 = vector.extract_strided_slice %1541 {offsets = [0, 0], sizes = [1, 128], strides = [1, 1]} : vector<4x128xf32> to vector<1x128xf32>
    %1544 = vector.broadcast %1542 : vector<3x1xf32> to vector<3x128xf32>
    %1545 = vector.broadcast %1543 : vector<1x128xf32> to vector<3x128xf32>
    %1546 = arith.mulf %1544, %1545 : vector<3x128xf32>
    %1547 = arith.addf %1535, %1546 : vector<3x128xf32>
    %1548 = vector.extract_strided_slice %1444 {offsets = [0, 13], sizes = [3, 1], strides = [1, 1]} : vector<3x36xf32> to vector<3x1xf32>
    %1549 = vector.extract_strided_slice %1541 {offsets = [1, 0], sizes = [1, 128], strides = [1, 1]} : vector<4x128xf32> to vector<1x128xf32>
    %1550 = vector.broadcast %1548 : vector<3x1xf32> to vector<3x128xf32>
    %1551 = vector.broadcast %1549 : vector<1x128xf32> to vector<3x128xf32>
    %1552 = arith.mulf %1550, %1551 : vector<3x128xf32>
    %1553 = arith.addf %1547, %1552 : vector<3x128xf32>
    %1554 = vector.extract_strided_slice %1444 {offsets = [0, 14], sizes = [3, 1], strides = [1, 1]} : vector<3x36xf32> to vector<3x1xf32>
    %1555 = vector.extract_strided_slice %1541 {offsets = [2, 0], sizes = [1, 128], strides = [1, 1]} : vector<4x128xf32> to vector<1x128xf32>
    %1556 = vector.broadcast %1554 : vector<3x1xf32> to vector<3x128xf32>
    %1557 = vector.broadcast %1555 : vector<1x128xf32> to vector<3x128xf32>
    %1558 = arith.mulf %1556, %1557 : vector<3x128xf32>
    %1559 = arith.addf %1553, %1558 : vector<3x128xf32>
    %1560 = vector.extract_strided_slice %1444 {offsets = [0, 15], sizes = [3, 1], strides = [1, 1]} : vector<3x36xf32> to vector<3x1xf32>
    %1561 = vector.extract_strided_slice %1541 {offsets = [3, 0], sizes = [1, 128], strides = [1, 1]} : vector<4x128xf32> to vector<1x128xf32>
    %1562 = vector.broadcast %1560 : vector<3x1xf32> to vector<3x128xf32>
    %1563 = vector.broadcast %1561 : vector<1x128xf32> to vector<3x128xf32>
    %1564 = arith.mulf %1562, %1563 : vector<3x128xf32>
    %1565 = arith.addf %1559, %1564 : vector<3x128xf32>
    %1566 = vector.extract_strided_slice %1444 {offsets = [0, 16], sizes = [3, 1], strides = [1, 1]} : vector<3x36xf32> to vector<3x1xf32>
    %1567 = vector.extract_strided_slice %1443 {offsets = [0, 0], sizes = [1, 128], strides = [1, 1]} : vector<4x128xf32> to vector<1x128xf32>
    %1568 = vector.broadcast %1566 : vector<3x1xf32> to vector<3x128xf32>
    %1569 = vector.broadcast %1567 : vector<1x128xf32> to vector<3x128xf32>
    %1570 = arith.mulf %1568, %1569 : vector<3x128xf32>
    %1571 = arith.addf %1565, %1570 : vector<3x128xf32>
    %1572 = vector.extract_strided_slice %1444 {offsets = [0, 17], sizes = [3, 1], strides = [1, 1]} : vector<3x36xf32> to vector<3x1xf32>
    %1573 = vector.extract_strided_slice %1443 {offsets = [1, 0], sizes = [1, 128], strides = [1, 1]} : vector<4x128xf32> to vector<1x128xf32>
    %1574 = vector.broadcast %1572 : vector<3x1xf32> to vector<3x128xf32>
    %1575 = vector.broadcast %1573 : vector<1x128xf32> to vector<3x128xf32>
    %1576 = arith.mulf %1574, %1575 : vector<3x128xf32>
    %1577 = arith.addf %1571, %1576 : vector<3x128xf32>
    %1578 = vector.extract_strided_slice %1444 {offsets = [0, 18], sizes = [3, 1], strides = [1, 1]} : vector<3x36xf32> to vector<3x1xf32>
    %1579 = vector.extract_strided_slice %1443 {offsets = [2, 0], sizes = [1, 128], strides = [1, 1]} : vector<4x128xf32> to vector<1x128xf32>
    %1580 = vector.broadcast %1578 : vector<3x1xf32> to vector<3x128xf32>
    %1581 = vector.broadcast %1579 : vector<1x128xf32> to vector<3x128xf32>
    %1582 = arith.mulf %1580, %1581 : vector<3x128xf32>
    %1583 = arith.addf %1577, %1582 : vector<3x128xf32>
    %1584 = vector.extract_strided_slice %1444 {offsets = [0, 19], sizes = [3, 1], strides = [1, 1]} : vector<3x36xf32> to vector<3x1xf32>
    %1585 = vector.extract_strided_slice %1443 {offsets = [3, 0], sizes = [1, 128], strides = [1, 1]} : vector<4x128xf32> to vector<1x128xf32>
    %1586 = vector.broadcast %1584 : vector<3x1xf32> to vector<3x128xf32>
    %1587 = vector.broadcast %1585 : vector<1x128xf32> to vector<3x128xf32>
    %1588 = arith.mulf %1586, %1587 : vector<3x128xf32>
    %1589 = arith.addf %1583, %1588 : vector<3x128xf32>
    %1590 = vector.extract_strided_slice %1443 {offsets = [0, 1], sizes = [4, 127], strides = [1, 1]} : vector<4x128xf32> to vector<4x127xf32>
    %1591 = vector.extract_strided_slice %1443 {offsets = [0, 0], sizes = [4, 1], strides = [1, 1]} : vector<4x128xf32> to vector<4x1xf32>
    %1592 = tpu.concatenate %1590, %1591 in 1 : vector<4x127xf32>, vector<4x1xf32> -> vector<4x128xf32>
    %c5_132 = arith.constant 5 : index
    %c0_133 = arith.constant 0 : index
    %1593 = vector.load %arg2[%c5_132, %c0_133] : memref<9x128xf32, #tpu.memory_space<vmem>>, vector<1x128xf32>
    %1594 = vector.broadcast %1593 : vector<1x128xf32> to vector<4x128xf32>
    %1595 = arith.mulf %1592, %1594 : vector<4x128xf32>
    %1596 = vector.extract_strided_slice %1444 {offsets = [0, 20], sizes = [3, 1], strides = [1, 1]} : vector<3x36xf32> to vector<3x1xf32>
    %1597 = vector.extract_strided_slice %1595 {offsets = [0, 0], sizes = [1, 128], strides = [1, 1]} : vector<4x128xf32> to vector<1x128xf32>
    %1598 = vector.broadcast %1596 : vector<3x1xf32> to vector<3x128xf32>
    %1599 = vector.broadcast %1597 : vector<1x128xf32> to vector<3x128xf32>
    %1600 = arith.mulf %1598, %1599 : vector<3x128xf32>
    %1601 = arith.addf %1589, %1600 : vector<3x128xf32>
    %1602 = vector.extract_strided_slice %1444 {offsets = [0, 21], sizes = [3, 1], strides = [1, 1]} : vector<3x36xf32> to vector<3x1xf32>
    %1603 = vector.extract_strided_slice %1595 {offsets = [1, 0], sizes = [1, 128], strides = [1, 1]} : vector<4x128xf32> to vector<1x128xf32>
    %1604 = vector.broadcast %1602 : vector<3x1xf32> to vector<3x128xf32>
    %1605 = vector.broadcast %1603 : vector<1x128xf32> to vector<3x128xf32>
    %1606 = arith.mulf %1604, %1605 : vector<3x128xf32>
    %1607 = arith.addf %1601, %1606 : vector<3x128xf32>
    %1608 = vector.extract_strided_slice %1444 {offsets = [0, 22], sizes = [3, 1], strides = [1, 1]} : vector<3x36xf32> to vector<3x1xf32>
    %1609 = vector.extract_strided_slice %1595 {offsets = [2, 0], sizes = [1, 128], strides = [1, 1]} : vector<4x128xf32> to vector<1x128xf32>
    %1610 = vector.broadcast %1608 : vector<3x1xf32> to vector<3x128xf32>
    %1611 = vector.broadcast %1609 : vector<1x128xf32> to vector<3x128xf32>
    %1612 = arith.mulf %1610, %1611 : vector<3x128xf32>
    %1613 = arith.addf %1607, %1612 : vector<3x128xf32>
    %1614 = vector.extract_strided_slice %1444 {offsets = [0, 23], sizes = [3, 1], strides = [1, 1]} : vector<3x36xf32> to vector<3x1xf32>
    %1615 = vector.extract_strided_slice %1595 {offsets = [3, 0], sizes = [1, 128], strides = [1, 1]} : vector<4x128xf32> to vector<1x128xf32>
    %1616 = vector.broadcast %1614 : vector<3x1xf32> to vector<3x128xf32>
    %1617 = vector.broadcast %1615 : vector<1x128xf32> to vector<3x128xf32>
    %1618 = arith.mulf %1616, %1617 : vector<3x128xf32>
    %1619 = arith.addf %1613, %1618 : vector<3x128xf32>
    %1620 = vector.extract_strided_slice %1443 {offsets = [0, 7], sizes = [4, 121], strides = [1, 1]} : vector<4x128xf32> to vector<4x121xf32>
    %1621 = vector.extract_strided_slice %1443 {offsets = [0, 0], sizes = [4, 7], strides = [1, 1]} : vector<4x128xf32> to vector<4x7xf32>
    %1622 = tpu.concatenate %1620, %1621 in 1 : vector<4x121xf32>, vector<4x7xf32> -> vector<4x128xf32>
    %c6_134 = arith.constant 6 : index
    %c0_135 = arith.constant 0 : index
    %1623 = vector.load %arg2[%c6_134, %c0_135] : memref<9x128xf32, #tpu.memory_space<vmem>>, vector<1x128xf32>
    %1624 = vector.broadcast %1623 : vector<1x128xf32> to vector<4x128xf32>
    %1625 = arith.mulf %1622, %1624 : vector<4x128xf32>
    %1626 = vector.extract_strided_slice %1444 {offsets = [0, 24], sizes = [3, 1], strides = [1, 1]} : vector<3x36xf32> to vector<3x1xf32>
    %1627 = vector.extract_strided_slice %1625 {offsets = [0, 0], sizes = [1, 128], strides = [1, 1]} : vector<4x128xf32> to vector<1x128xf32>
    %1628 = vector.broadcast %1626 : vector<3x1xf32> to vector<3x128xf32>
    %1629 = vector.broadcast %1627 : vector<1x128xf32> to vector<3x128xf32>
    %1630 = arith.mulf %1628, %1629 : vector<3x128xf32>
    %1631 = arith.addf %1619, %1630 : vector<3x128xf32>
    %1632 = vector.extract_strided_slice %1444 {offsets = [0, 25], sizes = [3, 1], strides = [1, 1]} : vector<3x36xf32> to vector<3x1xf32>
    %1633 = vector.extract_strided_slice %1625 {offsets = [1, 0], sizes = [1, 128], strides = [1, 1]} : vector<4x128xf32> to vector<1x128xf32>
    %1634 = vector.broadcast %1632 : vector<3x1xf32> to vector<3x128xf32>
    %1635 = vector.broadcast %1633 : vector<1x128xf32> to vector<3x128xf32>
    %1636 = arith.mulf %1634, %1635 : vector<3x128xf32>
    %1637 = arith.addf %1631, %1636 : vector<3x128xf32>
    %1638 = vector.extract_strided_slice %1444 {offsets = [0, 26], sizes = [3, 1], strides = [1, 1]} : vector<3x36xf32> to vector<3x1xf32>
    %1639 = vector.extract_strided_slice %1625 {offsets = [2, 0], sizes = [1, 128], strides = [1, 1]} : vector<4x128xf32> to vector<1x128xf32>
    %1640 = vector.broadcast %1638 : vector<3x1xf32> to vector<3x128xf32>
    %1641 = vector.broadcast %1639 : vector<1x128xf32> to vector<3x128xf32>
    %1642 = arith.mulf %1640, %1641 : vector<3x128xf32>
    %1643 = arith.addf %1637, %1642 : vector<3x128xf32>
    %1644 = vector.extract_strided_slice %1444 {offsets = [0, 27], sizes = [3, 1], strides = [1, 1]} : vector<3x36xf32> to vector<3x1xf32>
    %1645 = vector.extract_strided_slice %1625 {offsets = [3, 0], sizes = [1, 128], strides = [1, 1]} : vector<4x128xf32> to vector<1x128xf32>
    %1646 = vector.broadcast %1644 : vector<3x1xf32> to vector<3x128xf32>
    %1647 = vector.broadcast %1645 : vector<1x128xf32> to vector<3x128xf32>
    %1648 = arith.mulf %1646, %1647 : vector<3x128xf32>
    %1649 = arith.addf %1643, %1648 : vector<3x128xf32>
    %1650 = vector.extract_strided_slice %1443 {offsets = [0, 8], sizes = [4, 120], strides = [1, 1]} : vector<4x128xf32> to vector<4x120xf32>
    %1651 = vector.extract_strided_slice %1443 {offsets = [0, 0], sizes = [4, 8], strides = [1, 1]} : vector<4x128xf32> to vector<4x8xf32>
    %1652 = tpu.concatenate %1650, %1651 in 1 : vector<4x120xf32>, vector<4x8xf32> -> vector<4x128xf32>
    %c7_136 = arith.constant 7 : index
    %c0_137 = arith.constant 0 : index
    %1653 = vector.load %arg2[%c7_136, %c0_137] : memref<9x128xf32, #tpu.memory_space<vmem>>, vector<1x128xf32>
    %1654 = vector.broadcast %1653 : vector<1x128xf32> to vector<4x128xf32>
    %1655 = arith.mulf %1652, %1654 : vector<4x128xf32>
    %1656 = vector.extract_strided_slice %1444 {offsets = [0, 28], sizes = [3, 1], strides = [1, 1]} : vector<3x36xf32> to vector<3x1xf32>
    %1657 = vector.extract_strided_slice %1655 {offsets = [0, 0], sizes = [1, 128], strides = [1, 1]} : vector<4x128xf32> to vector<1x128xf32>
    %1658 = vector.broadcast %1656 : vector<3x1xf32> to vector<3x128xf32>
    %1659 = vector.broadcast %1657 : vector<1x128xf32> to vector<3x128xf32>
    %1660 = arith.mulf %1658, %1659 : vector<3x128xf32>
    %1661 = arith.addf %1649, %1660 : vector<3x128xf32>
    %1662 = vector.extract_strided_slice %1444 {offsets = [0, 29], sizes = [3, 1], strides = [1, 1]} : vector<3x36xf32> to vector<3x1xf32>
    %1663 = vector.extract_strided_slice %1655 {offsets = [1, 0], sizes = [1, 128], strides = [1, 1]} : vector<4x128xf32> to vector<1x128xf32>
    %1664 = vector.broadcast %1662 : vector<3x1xf32> to vector<3x128xf32>
    %1665 = vector.broadcast %1663 : vector<1x128xf32> to vector<3x128xf32>
    %1666 = arith.mulf %1664, %1665 : vector<3x128xf32>
    %1667 = arith.addf %1661, %1666 : vector<3x128xf32>
    %1668 = vector.extract_strided_slice %1444 {offsets = [0, 30], sizes = [3, 1], strides = [1, 1]} : vector<3x36xf32> to vector<3x1xf32>
    %1669 = vector.extract_strided_slice %1655 {offsets = [2, 0], sizes = [1, 128], strides = [1, 1]} : vector<4x128xf32> to vector<1x128xf32>
    %1670 = vector.broadcast %1668 : vector<3x1xf32> to vector<3x128xf32>
    %1671 = vector.broadcast %1669 : vector<1x128xf32> to vector<3x128xf32>
    %1672 = arith.mulf %1670, %1671 : vector<3x128xf32>
    %1673 = arith.addf %1667, %1672 : vector<3x128xf32>
    %1674 = vector.extract_strided_slice %1444 {offsets = [0, 31], sizes = [3, 1], strides = [1, 1]} : vector<3x36xf32> to vector<3x1xf32>
    %1675 = vector.extract_strided_slice %1655 {offsets = [3, 0], sizes = [1, 128], strides = [1, 1]} : vector<4x128xf32> to vector<1x128xf32>
    %1676 = vector.broadcast %1674 : vector<3x1xf32> to vector<3x128xf32>
    %1677 = vector.broadcast %1675 : vector<1x128xf32> to vector<3x128xf32>
    %1678 = arith.mulf %1676, %1677 : vector<3x128xf32>
    %1679 = arith.addf %1673, %1678 : vector<3x128xf32>
    %1680 = vector.extract_strided_slice %1443 {offsets = [0, 9], sizes = [4, 119], strides = [1, 1]} : vector<4x128xf32> to vector<4x119xf32>
    %1681 = vector.extract_strided_slice %1443 {offsets = [0, 0], sizes = [4, 9], strides = [1, 1]} : vector<4x128xf32> to vector<4x9xf32>
    %1682 = tpu.concatenate %1680, %1681 in 1 : vector<4x119xf32>, vector<4x9xf32> -> vector<4x128xf32>
    %c8_138 = arith.constant 8 : index
    %c0_139 = arith.constant 0 : index
    %1683 = vector.load %arg2[%c8_138, %c0_139] : memref<9x128xf32, #tpu.memory_space<vmem>>, vector<1x128xf32>
    %1684 = vector.broadcast %1683 : vector<1x128xf32> to vector<4x128xf32>
    %1685 = arith.mulf %1682, %1684 : vector<4x128xf32>
    %1686 = vector.extract_strided_slice %1444 {offsets = [0, 32], sizes = [3, 1], strides = [1, 1]} : vector<3x36xf32> to vector<3x1xf32>
    %1687 = vector.extract_strided_slice %1685 {offsets = [0, 0], sizes = [1, 128], strides = [1, 1]} : vector<4x128xf32> to vector<1x128xf32>
    %1688 = vector.broadcast %1686 : vector<3x1xf32> to vector<3x128xf32>
    %1689 = vector.broadcast %1687 : vector<1x128xf32> to vector<3x128xf32>
    %1690 = arith.mulf %1688, %1689 : vector<3x128xf32>
    %1691 = arith.addf %1679, %1690 : vector<3x128xf32>
    %1692 = vector.extract_strided_slice %1444 {offsets = [0, 33], sizes = [3, 1], strides = [1, 1]} : vector<3x36xf32> to vector<3x1xf32>
    %1693 = vector.extract_strided_slice %1685 {offsets = [1, 0], sizes = [1, 128], strides = [1, 1]} : vector<4x128xf32> to vector<1x128xf32>
    %1694 = vector.broadcast %1692 : vector<3x1xf32> to vector<3x128xf32>
    %1695 = vector.broadcast %1693 : vector<1x128xf32> to vector<3x128xf32>
    %1696 = arith.mulf %1694, %1695 : vector<3x128xf32>
    %1697 = arith.addf %1691, %1696 : vector<3x128xf32>
    %1698 = vector.extract_strided_slice %1444 {offsets = [0, 34], sizes = [3, 1], strides = [1, 1]} : vector<3x36xf32> to vector<3x1xf32>
    %1699 = vector.extract_strided_slice %1685 {offsets = [2, 0], sizes = [1, 128], strides = [1, 1]} : vector<4x128xf32> to vector<1x128xf32>
    %1700 = vector.broadcast %1698 : vector<3x1xf32> to vector<3x128xf32>
    %1701 = vector.broadcast %1699 : vector<1x128xf32> to vector<3x128xf32>
    %1702 = arith.mulf %1700, %1701 : vector<3x128xf32>
    %1703 = arith.addf %1697, %1702 : vector<3x128xf32>
    %1704 = vector.extract_strided_slice %1444 {offsets = [0, 35], sizes = [3, 1], strides = [1, 1]} : vector<3x36xf32> to vector<3x1xf32>
    %1705 = vector.extract_strided_slice %1685 {offsets = [3, 0], sizes = [1, 128], strides = [1, 1]} : vector<4x128xf32> to vector<1x128xf32>
    %1706 = vector.broadcast %1704 : vector<3x1xf32> to vector<3x128xf32>
    %1707 = vector.broadcast %1705 : vector<1x128xf32> to vector<3x128xf32>
    %1708 = arith.mulf %1706, %1707 : vector<3x128xf32>
    %1709 = arith.addf %1703, %1708 : vector<3x128xf32>
    %c0_140 = arith.constant 0 : index
    %c4_141 = arith.constant 4 : index
    %1710 = vector.load %arg9[%c0_140, %c4_141] : memref<8x6xf32, #tpu.memory_space<vmem>>, vector<3x1xf32>
    %1711 = vector.broadcast %1710 : vector<3x1xf32> to vector<3x128xf32>
    %1712 = arith.addf %1709, %1711 : vector<3x128xf32>
    %c0_142 = arith.constant 0 : index
    %c0_143 = arith.constant 0 : index
    %1713 = vector.load %arg7[%c0_142, %c0_143] : memref<128x512xf32, #tpu.memory_space<vmem>>, vector<128x512xf32>
    %cst_144 = arith.constant dense<0.000000e+00> : vector<3x512xf32>
    %1714 = tpu.matmul %1712, %1713, %cst_144 {dimension_numbers = #tpu.dot_dimension_numbers<[1], [0], [0], [1], [0, 0, 1, 1], [], []>} : vector<3x128xf32>, vector<128x512xf32>, vector<3x512xf32> -> vector<3x512xf32>
    %c0_145 = arith.constant 0 : index
    %c8_146 = arith.constant 8 : index
    %1715 = vector.load %arg10[%c0_145, %c8_146] : memref<8x10xf32, #tpu.memory_space<vmem>>, vector<3x1xf32>
    %c0_147 = arith.constant 0 : index
    %c9_148 = arith.constant 9 : index
    %1716 = vector.load %arg10[%c0_147, %c9_148] : memref<8x10xf32, #tpu.memory_space<vmem>>, vector<3x1xf32>
    %cst_149 = arith.constant dense<0.000000e+00> : vector<3xf32>
    %1717 = vector.multi_reduction <add>, %1714, %cst_149 [1] : vector<3x512xf32> to vector<3xf32>
    %1718 = vector.shape_cast %1717 : vector<3xf32> to vector<3x1xf32>
    %cst_150 = arith.constant 5.120000e+02 : f32
    %1719 = vector.broadcast %cst_150 : f32 to vector<3x1xf32>
    %1720 = arith.divf %1718, %1719 : vector<3x1xf32>
    %1721 = vector.broadcast %1720 : vector<3x1xf32> to vector<3x512xf32>
    %1722 = arith.subf %1714, %1721 : vector<3x512xf32>
    %1723 = arith.mulf %1722, %1722 : vector<3x512xf32>
    %cst_151 = arith.constant dense<0.000000e+00> : vector<3xf32>
    %1724 = vector.multi_reduction <add>, %1723, %cst_151 [1] : vector<3x512xf32> to vector<3xf32>
    %1725 = vector.shape_cast %1724 : vector<3xf32> to vector<3x1xf32>
    %cst_152 = arith.constant 5.120000e+02 : f32
    %1726 = vector.broadcast %cst_152 : f32 to vector<3x1xf32>
    %1727 = arith.divf %1725, %1726 : vector<3x1xf32>
    %cst_153 = arith.constant 9.99999974E-6 : f32
    %1728 = vector.broadcast %cst_153 : f32 to vector<3x1xf32>
    %1729 = arith.addf %1727, %1728 : vector<3x1xf32>
    %1730 = math.rsqrt %1729 : vector<3x1xf32>
    %1731 = arith.mulf %1730, %1715 : vector<3x1xf32>
    %1732 = vector.broadcast %1731 : vector<3x1xf32> to vector<3x512xf32>
    %1733 = arith.mulf %1722, %1732 : vector<3x512xf32>
    %1734 = vector.broadcast %1716 : vector<3x1xf32> to vector<3x512xf32>
    %1735 = arith.addf %1733, %1734 : vector<3x512xf32>
    %cst_154 = arith.constant 0.000000e+00 : f32
    %1736 = vector.broadcast %cst_154 : f32 to vector<3x512xf32>
    %1737 = arith.maximumf %1735, %1736 : vector<3x512xf32>
    %c0_155 = arith.constant 0 : index
    %c225 = arith.constant 225 : index
    %1738 = vector.load %arg8[%c0_155, %c225] : memref<8x252xf32, #tpu.memory_space<vmem>>, vector<3x27xf32>
    %cst_156 = arith.constant 0.000000e+00 : f32
    %1739 = vector.broadcast %cst_156 : f32 to vector<3x512xf32>
    %1740 = vector.extract_strided_slice %1737 {offsets = [0, 495], sizes = [3, 17], strides = [1, 1]} : vector<3x512xf32> to vector<3x17xf32>
    %1741 = vector.extract_strided_slice %1737 {offsets = [0, 0], sizes = [3, 495], strides = [1, 1]} : vector<3x512xf32> to vector<3x495xf32>
    %1742 = tpu.concatenate %1740, %1741 in 1 : vector<3x17xf32>, vector<3x495xf32> -> vector<3x512xf32>
    %c0_157 = arith.constant 0 : index
    %c0_158 = arith.constant 0 : index
    %1743 = vector.load %arg1[%c0_157, %c0_158] : memref<9x512xf32, #tpu.memory_space<vmem>>, vector<1x512xf32>
    %1744 = vector.broadcast %1743 : vector<1x512xf32> to vector<3x512xf32>
    %1745 = arith.mulf %1742, %1744 : vector<3x512xf32>
    %1746 = vector.extract_strided_slice %1738 {offsets = [0, 0], sizes = [3, 1], strides = [1, 1]} : vector<3x27xf32> to vector<3x1xf32>
    %1747 = vector.extract_strided_slice %1745 {offsets = [0, 0], sizes = [1, 512], strides = [1, 1]} : vector<3x512xf32> to vector<1x512xf32>
    %1748 = vector.broadcast %1746 : vector<3x1xf32> to vector<3x512xf32>
    %1749 = vector.broadcast %1747 : vector<1x512xf32> to vector<3x512xf32>
    %1750 = arith.mulf %1748, %1749 : vector<3x512xf32>
    %1751 = arith.addf %1739, %1750 : vector<3x512xf32>
    %1752 = vector.extract_strided_slice %1738 {offsets = [0, 1], sizes = [3, 1], strides = [1, 1]} : vector<3x27xf32> to vector<3x1xf32>
    %1753 = vector.extract_strided_slice %1745 {offsets = [1, 0], sizes = [1, 512], strides = [1, 1]} : vector<3x512xf32> to vector<1x512xf32>
    %1754 = vector.broadcast %1752 : vector<3x1xf32> to vector<3x512xf32>
    %1755 = vector.broadcast %1753 : vector<1x512xf32> to vector<3x512xf32>
    %1756 = arith.mulf %1754, %1755 : vector<3x512xf32>
    %1757 = arith.addf %1751, %1756 : vector<3x512xf32>
    %1758 = vector.extract_strided_slice %1738 {offsets = [0, 2], sizes = [3, 1], strides = [1, 1]} : vector<3x27xf32> to vector<3x1xf32>
    %1759 = vector.extract_strided_slice %1745 {offsets = [2, 0], sizes = [1, 512], strides = [1, 1]} : vector<3x512xf32> to vector<1x512xf32>
    %1760 = vector.broadcast %1758 : vector<3x1xf32> to vector<3x512xf32>
    %1761 = vector.broadcast %1759 : vector<1x512xf32> to vector<3x512xf32>
    %1762 = arith.mulf %1760, %1761 : vector<3x512xf32>
    %1763 = arith.addf %1757, %1762 : vector<3x512xf32>
    %1764 = vector.extract_strided_slice %1737 {offsets = [0, 496], sizes = [3, 16], strides = [1, 1]} : vector<3x512xf32> to vector<3x16xf32>
    %1765 = vector.extract_strided_slice %1737 {offsets = [0, 0], sizes = [3, 496], strides = [1, 1]} : vector<3x512xf32> to vector<3x496xf32>
    %1766 = tpu.concatenate %1764, %1765 in 1 : vector<3x16xf32>, vector<3x496xf32> -> vector<3x512xf32>
    %c1_159 = arith.constant 1 : index
    %c0_160 = arith.constant 0 : index
    %1767 = vector.load %arg1[%c1_159, %c0_160] : memref<9x512xf32, #tpu.memory_space<vmem>>, vector<1x512xf32>
    %1768 = vector.broadcast %1767 : vector<1x512xf32> to vector<3x512xf32>
    %1769 = arith.mulf %1766, %1768 : vector<3x512xf32>
    %1770 = vector.extract_strided_slice %1738 {offsets = [0, 3], sizes = [3, 1], strides = [1, 1]} : vector<3x27xf32> to vector<3x1xf32>
    %1771 = vector.extract_strided_slice %1769 {offsets = [0, 0], sizes = [1, 512], strides = [1, 1]} : vector<3x512xf32> to vector<1x512xf32>
    %1772 = vector.broadcast %1770 : vector<3x1xf32> to vector<3x512xf32>
    %1773 = vector.broadcast %1771 : vector<1x512xf32> to vector<3x512xf32>
    %1774 = arith.mulf %1772, %1773 : vector<3x512xf32>
    %1775 = arith.addf %1763, %1774 : vector<3x512xf32>
    %1776 = vector.extract_strided_slice %1738 {offsets = [0, 4], sizes = [3, 1], strides = [1, 1]} : vector<3x27xf32> to vector<3x1xf32>
    %1777 = vector.extract_strided_slice %1769 {offsets = [1, 0], sizes = [1, 512], strides = [1, 1]} : vector<3x512xf32> to vector<1x512xf32>
    %1778 = vector.broadcast %1776 : vector<3x1xf32> to vector<3x512xf32>
    %1779 = vector.broadcast %1777 : vector<1x512xf32> to vector<3x512xf32>
    %1780 = arith.mulf %1778, %1779 : vector<3x512xf32>
    %1781 = arith.addf %1775, %1780 : vector<3x512xf32>
    %1782 = vector.extract_strided_slice %1738 {offsets = [0, 5], sizes = [3, 1], strides = [1, 1]} : vector<3x27xf32> to vector<3x1xf32>
    %1783 = vector.extract_strided_slice %1769 {offsets = [2, 0], sizes = [1, 512], strides = [1, 1]} : vector<3x512xf32> to vector<1x512xf32>
    %1784 = vector.broadcast %1782 : vector<3x1xf32> to vector<3x512xf32>
    %1785 = vector.broadcast %1783 : vector<1x512xf32> to vector<3x512xf32>
    %1786 = arith.mulf %1784, %1785 : vector<3x512xf32>
    %1787 = arith.addf %1781, %1786 : vector<3x512xf32>
    %1788 = vector.extract_strided_slice %1737 {offsets = [0, 497], sizes = [3, 15], strides = [1, 1]} : vector<3x512xf32> to vector<3x15xf32>
    %1789 = vector.extract_strided_slice %1737 {offsets = [0, 0], sizes = [3, 497], strides = [1, 1]} : vector<3x512xf32> to vector<3x497xf32>
    %1790 = tpu.concatenate %1788, %1789 in 1 : vector<3x15xf32>, vector<3x497xf32> -> vector<3x512xf32>
    %c2_161 = arith.constant 2 : index
    %c0_162 = arith.constant 0 : index
    %1791 = vector.load %arg1[%c2_161, %c0_162] : memref<9x512xf32, #tpu.memory_space<vmem>>, vector<1x512xf32>
    %1792 = vector.broadcast %1791 : vector<1x512xf32> to vector<3x512xf32>
    %1793 = arith.mulf %1790, %1792 : vector<3x512xf32>
    %1794 = vector.extract_strided_slice %1738 {offsets = [0, 6], sizes = [3, 1], strides = [1, 1]} : vector<3x27xf32> to vector<3x1xf32>
    %1795 = vector.extract_strided_slice %1793 {offsets = [0, 0], sizes = [1, 512], strides = [1, 1]} : vector<3x512xf32> to vector<1x512xf32>
    %1796 = vector.broadcast %1794 : vector<3x1xf32> to vector<3x512xf32>
    %1797 = vector.broadcast %1795 : vector<1x512xf32> to vector<3x512xf32>
    %1798 = arith.mulf %1796, %1797 : vector<3x512xf32>
    %1799 = arith.addf %1787, %1798 : vector<3x512xf32>
    %1800 = vector.extract_strided_slice %1738 {offsets = [0, 7], sizes = [3, 1], strides = [1, 1]} : vector<3x27xf32> to vector<3x1xf32>
    %1801 = vector.extract_strided_slice %1793 {offsets = [1, 0], sizes = [1, 512], strides = [1, 1]} : vector<3x512xf32> to vector<1x512xf32>
    %1802 = vector.broadcast %1800 : vector<3x1xf32> to vector<3x512xf32>
    %1803 = vector.broadcast %1801 : vector<1x512xf32> to vector<3x512xf32>
    %1804 = arith.mulf %1802, %1803 : vector<3x512xf32>
    %1805 = arith.addf %1799, %1804 : vector<3x512xf32>
    %1806 = vector.extract_strided_slice %1738 {offsets = [0, 8], sizes = [3, 1], strides = [1, 1]} : vector<3x27xf32> to vector<3x1xf32>
    %1807 = vector.extract_strided_slice %1793 {offsets = [2, 0], sizes = [1, 512], strides = [1, 1]} : vector<3x512xf32> to vector<1x512xf32>
    %1808 = vector.broadcast %1806 : vector<3x1xf32> to vector<3x512xf32>
    %1809 = vector.broadcast %1807 : vector<1x512xf32> to vector<3x512xf32>
    %1810 = arith.mulf %1808, %1809 : vector<3x512xf32>
    %1811 = arith.addf %1805, %1810 : vector<3x512xf32>
    %1812 = vector.extract_strided_slice %1737 {offsets = [0, 511], sizes = [3, 1], strides = [1, 1]} : vector<3x512xf32> to vector<3x1xf32>
    %1813 = vector.extract_strided_slice %1737 {offsets = [0, 0], sizes = [3, 511], strides = [1, 1]} : vector<3x512xf32> to vector<3x511xf32>
    %1814 = tpu.concatenate %1812, %1813 in 1 : vector<3x1xf32>, vector<3x511xf32> -> vector<3x512xf32>
    %c3_163 = arith.constant 3 : index
    %c0_164 = arith.constant 0 : index
    %1815 = vector.load %arg1[%c3_163, %c0_164] : memref<9x512xf32, #tpu.memory_space<vmem>>, vector<1x512xf32>
    %1816 = vector.broadcast %1815 : vector<1x512xf32> to vector<3x512xf32>
    %1817 = arith.mulf %1814, %1816 : vector<3x512xf32>
    %1818 = vector.extract_strided_slice %1738 {offsets = [0, 9], sizes = [3, 1], strides = [1, 1]} : vector<3x27xf32> to vector<3x1xf32>
    %1819 = vector.extract_strided_slice %1817 {offsets = [0, 0], sizes = [1, 512], strides = [1, 1]} : vector<3x512xf32> to vector<1x512xf32>
    %1820 = vector.broadcast %1818 : vector<3x1xf32> to vector<3x512xf32>
    %1821 = vector.broadcast %1819 : vector<1x512xf32> to vector<3x512xf32>
    %1822 = arith.mulf %1820, %1821 : vector<3x512xf32>
    %1823 = arith.addf %1811, %1822 : vector<3x512xf32>
    %1824 = vector.extract_strided_slice %1738 {offsets = [0, 10], sizes = [3, 1], strides = [1, 1]} : vector<3x27xf32> to vector<3x1xf32>
    %1825 = vector.extract_strided_slice %1817 {offsets = [1, 0], sizes = [1, 512], strides = [1, 1]} : vector<3x512xf32> to vector<1x512xf32>
    %1826 = vector.broadcast %1824 : vector<3x1xf32> to vector<3x512xf32>
    %1827 = vector.broadcast %1825 : vector<1x512xf32> to vector<3x512xf32>
    %1828 = arith.mulf %1826, %1827 : vector<3x512xf32>
    %1829 = arith.addf %1823, %1828 : vector<3x512xf32>
    %1830 = vector.extract_strided_slice %1738 {offsets = [0, 11], sizes = [3, 1], strides = [1, 1]} : vector<3x27xf32> to vector<3x1xf32>
    %1831 = vector.extract_strided_slice %1817 {offsets = [2, 0], sizes = [1, 512], strides = [1, 1]} : vector<3x512xf32> to vector<1x512xf32>
    %1832 = vector.broadcast %1830 : vector<3x1xf32> to vector<3x512xf32>
    %1833 = vector.broadcast %1831 : vector<1x512xf32> to vector<3x512xf32>
    %1834 = arith.mulf %1832, %1833 : vector<3x512xf32>
    %1835 = arith.addf %1829, %1834 : vector<3x512xf32>
    %1836 = vector.extract_strided_slice %1738 {offsets = [0, 12], sizes = [3, 1], strides = [1, 1]} : vector<3x27xf32> to vector<3x1xf32>
    %1837 = vector.extract_strided_slice %1737 {offsets = [0, 0], sizes = [1, 512], strides = [1, 1]} : vector<3x512xf32> to vector<1x512xf32>
    %1838 = vector.broadcast %1836 : vector<3x1xf32> to vector<3x512xf32>
    %1839 = vector.broadcast %1837 : vector<1x512xf32> to vector<3x512xf32>
    %1840 = arith.mulf %1838, %1839 : vector<3x512xf32>
    %1841 = arith.addf %1835, %1840 : vector<3x512xf32>
    %1842 = vector.extract_strided_slice %1738 {offsets = [0, 13], sizes = [3, 1], strides = [1, 1]} : vector<3x27xf32> to vector<3x1xf32>
    %1843 = vector.extract_strided_slice %1737 {offsets = [1, 0], sizes = [1, 512], strides = [1, 1]} : vector<3x512xf32> to vector<1x512xf32>
    %1844 = vector.broadcast %1842 : vector<3x1xf32> to vector<3x512xf32>
    %1845 = vector.broadcast %1843 : vector<1x512xf32> to vector<3x512xf32>
    %1846 = arith.mulf %1844, %1845 : vector<3x512xf32>
    %1847 = arith.addf %1841, %1846 : vector<3x512xf32>
    %1848 = vector.extract_strided_slice %1738 {offsets = [0, 14], sizes = [3, 1], strides = [1, 1]} : vector<3x27xf32> to vector<3x1xf32>
    %1849 = vector.extract_strided_slice %1737 {offsets = [2, 0], sizes = [1, 512], strides = [1, 1]} : vector<3x512xf32> to vector<1x512xf32>
    %1850 = vector.broadcast %1848 : vector<3x1xf32> to vector<3x512xf32>
    %1851 = vector.broadcast %1849 : vector<1x512xf32> to vector<3x512xf32>
    %1852 = arith.mulf %1850, %1851 : vector<3x512xf32>
    %1853 = arith.addf %1847, %1852 : vector<3x512xf32>
    %1854 = vector.extract_strided_slice %1737 {offsets = [0, 1], sizes = [3, 511], strides = [1, 1]} : vector<3x512xf32> to vector<3x511xf32>
    %1855 = vector.extract_strided_slice %1737 {offsets = [0, 0], sizes = [3, 1], strides = [1, 1]} : vector<3x512xf32> to vector<3x1xf32>
    %1856 = tpu.concatenate %1854, %1855 in 1 : vector<3x511xf32>, vector<3x1xf32> -> vector<3x512xf32>
    %c5_165 = arith.constant 5 : index
    %c0_166 = arith.constant 0 : index
    %1857 = vector.load %arg1[%c5_165, %c0_166] : memref<9x512xf32, #tpu.memory_space<vmem>>, vector<1x512xf32>
    %1858 = vector.broadcast %1857 : vector<1x512xf32> to vector<3x512xf32>
    %1859 = arith.mulf %1856, %1858 : vector<3x512xf32>
    %1860 = vector.extract_strided_slice %1738 {offsets = [0, 15], sizes = [3, 1], strides = [1, 1]} : vector<3x27xf32> to vector<3x1xf32>
    %1861 = vector.extract_strided_slice %1859 {offsets = [0, 0], sizes = [1, 512], strides = [1, 1]} : vector<3x512xf32> to vector<1x512xf32>
    %1862 = vector.broadcast %1860 : vector<3x1xf32> to vector<3x512xf32>
    %1863 = vector.broadcast %1861 : vector<1x512xf32> to vector<3x512xf32>
    %1864 = arith.mulf %1862, %1863 : vector<3x512xf32>
    %1865 = arith.addf %1853, %1864 : vector<3x512xf32>
    %1866 = vector.extract_strided_slice %1738 {offsets = [0, 16], sizes = [3, 1], strides = [1, 1]} : vector<3x27xf32> to vector<3x1xf32>
    %1867 = vector.extract_strided_slice %1859 {offsets = [1, 0], sizes = [1, 512], strides = [1, 1]} : vector<3x512xf32> to vector<1x512xf32>
    %1868 = vector.broadcast %1866 : vector<3x1xf32> to vector<3x512xf32>
    %1869 = vector.broadcast %1867 : vector<1x512xf32> to vector<3x512xf32>
    %1870 = arith.mulf %1868, %1869 : vector<3x512xf32>
    %1871 = arith.addf %1865, %1870 : vector<3x512xf32>
    %1872 = vector.extract_strided_slice %1738 {offsets = [0, 17], sizes = [3, 1], strides = [1, 1]} : vector<3x27xf32> to vector<3x1xf32>
    %1873 = vector.extract_strided_slice %1859 {offsets = [2, 0], sizes = [1, 512], strides = [1, 1]} : vector<3x512xf32> to vector<1x512xf32>
    %1874 = vector.broadcast %1872 : vector<3x1xf32> to vector<3x512xf32>
    %1875 = vector.broadcast %1873 : vector<1x512xf32> to vector<3x512xf32>
    %1876 = arith.mulf %1874, %1875 : vector<3x512xf32>
    %1877 = arith.addf %1871, %1876 : vector<3x512xf32>
    %1878 = vector.extract_strided_slice %1737 {offsets = [0, 15], sizes = [3, 497], strides = [1, 1]} : vector<3x512xf32> to vector<3x497xf32>
    %1879 = vector.extract_strided_slice %1737 {offsets = [0, 0], sizes = [3, 15], strides = [1, 1]} : vector<3x512xf32> to vector<3x15xf32>
    %1880 = tpu.concatenate %1878, %1879 in 1 : vector<3x497xf32>, vector<3x15xf32> -> vector<3x512xf32>
    %c6_167 = arith.constant 6 : index
    %c0_168 = arith.constant 0 : index
    %1881 = vector.load %arg1[%c6_167, %c0_168] : memref<9x512xf32, #tpu.memory_space<vmem>>, vector<1x512xf32>
    %1882 = vector.broadcast %1881 : vector<1x512xf32> to vector<3x512xf32>
    %1883 = arith.mulf %1880, %1882 : vector<3x512xf32>
    %1884 = vector.extract_strided_slice %1738 {offsets = [0, 18], sizes = [3, 1], strides = [1, 1]} : vector<3x27xf32> to vector<3x1xf32>
    %1885 = vector.extract_strided_slice %1883 {offsets = [0, 0], sizes = [1, 512], strides = [1, 1]} : vector<3x512xf32> to vector<1x512xf32>
    %1886 = vector.broadcast %1884 : vector<3x1xf32> to vector<3x512xf32>
    %1887 = vector.broadcast %1885 : vector<1x512xf32> to vector<3x512xf32>
    %1888 = arith.mulf %1886, %1887 : vector<3x512xf32>
    %1889 = arith.addf %1877, %1888 : vector<3x512xf32>
    %1890 = vector.extract_strided_slice %1738 {offsets = [0, 19], sizes = [3, 1], strides = [1, 1]} : vector<3x27xf32> to vector<3x1xf32>
    %1891 = vector.extract_strided_slice %1883 {offsets = [1, 0], sizes = [1, 512], strides = [1, 1]} : vector<3x512xf32> to vector<1x512xf32>
    %1892 = vector.broadcast %1890 : vector<3x1xf32> to vector<3x512xf32>
    %1893 = vector.broadcast %1891 : vector<1x512xf32> to vector<3x512xf32>
    %1894 = arith.mulf %1892, %1893 : vector<3x512xf32>
    %1895 = arith.addf %1889, %1894 : vector<3x512xf32>
    %1896 = vector.extract_strided_slice %1738 {offsets = [0, 20], sizes = [3, 1], strides = [1, 1]} : vector<3x27xf32> to vector<3x1xf32>
    %1897 = vector.extract_strided_slice %1883 {offsets = [2, 0], sizes = [1, 512], strides = [1, 1]} : vector<3x512xf32> to vector<1x512xf32>
    %1898 = vector.broadcast %1896 : vector<3x1xf32> to vector<3x512xf32>
    %1899 = vector.broadcast %1897 : vector<1x512xf32> to vector<3x512xf32>
    %1900 = arith.mulf %1898, %1899 : vector<3x512xf32>
    %1901 = arith.addf %1895, %1900 : vector<3x512xf32>
    %1902 = vector.extract_strided_slice %1737 {offsets = [0, 16], sizes = [3, 496], strides = [1, 1]} : vector<3x512xf32> to vector<3x496xf32>
    %1903 = vector.extract_strided_slice %1737 {offsets = [0, 0], sizes = [3, 16], strides = [1, 1]} : vector<3x512xf32> to vector<3x16xf32>
    %1904 = tpu.concatenate %1902, %1903 in 1 : vector<3x496xf32>, vector<3x16xf32> -> vector<3x512xf32>
    %c7_169 = arith.constant 7 : index
    %c0_170 = arith.constant 0 : index
    %1905 = vector.load %arg1[%c7_169, %c0_170] : memref<9x512xf32, #tpu.memory_space<vmem>>, vector<1x512xf32>
    %1906 = vector.broadcast %1905 : vector<1x512xf32> to vector<3x512xf32>
    %1907 = arith.mulf %1904, %1906 : vector<3x512xf32>
    %1908 = vector.extract_strided_slice %1738 {offsets = [0, 21], sizes = [3, 1], strides = [1, 1]} : vector<3x27xf32> to vector<3x1xf32>
    %1909 = vector.extract_strided_slice %1907 {offsets = [0, 0], sizes = [1, 512], strides = [1, 1]} : vector<3x512xf32> to vector<1x512xf32>
    %1910 = vector.broadcast %1908 : vector<3x1xf32> to vector<3x512xf32>
    %1911 = vector.broadcast %1909 : vector<1x512xf32> to vector<3x512xf32>
    %1912 = arith.mulf %1910, %1911 : vector<3x512xf32>
    %1913 = arith.addf %1901, %1912 : vector<3x512xf32>
    %1914 = vector.extract_strided_slice %1738 {offsets = [0, 22], sizes = [3, 1], strides = [1, 1]} : vector<3x27xf32> to vector<3x1xf32>
    %1915 = vector.extract_strided_slice %1907 {offsets = [1, 0], sizes = [1, 512], strides = [1, 1]} : vector<3x512xf32> to vector<1x512xf32>
    %1916 = vector.broadcast %1914 : vector<3x1xf32> to vector<3x512xf32>
    %1917 = vector.broadcast %1915 : vector<1x512xf32> to vector<3x512xf32>
    %1918 = arith.mulf %1916, %1917 : vector<3x512xf32>
    %1919 = arith.addf %1913, %1918 : vector<3x512xf32>
    %1920 = vector.extract_strided_slice %1738 {offsets = [0, 23], sizes = [3, 1], strides = [1, 1]} : vector<3x27xf32> to vector<3x1xf32>
    %1921 = vector.extract_strided_slice %1907 {offsets = [2, 0], sizes = [1, 512], strides = [1, 1]} : vector<3x512xf32> to vector<1x512xf32>
    %1922 = vector.broadcast %1920 : vector<3x1xf32> to vector<3x512xf32>
    %1923 = vector.broadcast %1921 : vector<1x512xf32> to vector<3x512xf32>
    %1924 = arith.mulf %1922, %1923 : vector<3x512xf32>
    %1925 = arith.addf %1919, %1924 : vector<3x512xf32>
    %1926 = vector.extract_strided_slice %1737 {offsets = [0, 17], sizes = [3, 495], strides = [1, 1]} : vector<3x512xf32> to vector<3x495xf32>
    %1927 = vector.extract_strided_slice %1737 {offsets = [0, 0], sizes = [3, 17], strides = [1, 1]} : vector<3x512xf32> to vector<3x17xf32>
    %1928 = tpu.concatenate %1926, %1927 in 1 : vector<3x495xf32>, vector<3x17xf32> -> vector<3x512xf32>
    %c8_171 = arith.constant 8 : index
    %c0_172 = arith.constant 0 : index
    %1929 = vector.load %arg1[%c8_171, %c0_172] : memref<9x512xf32, #tpu.memory_space<vmem>>, vector<1x512xf32>
    %1930 = vector.broadcast %1929 : vector<1x512xf32> to vector<3x512xf32>
    %1931 = arith.mulf %1928, %1930 : vector<3x512xf32>
    %1932 = vector.extract_strided_slice %1738 {offsets = [0, 24], sizes = [3, 1], strides = [1, 1]} : vector<3x27xf32> to vector<3x1xf32>
    %1933 = vector.extract_strided_slice %1931 {offsets = [0, 0], sizes = [1, 512], strides = [1, 1]} : vector<3x512xf32> to vector<1x512xf32>
    %1934 = vector.broadcast %1932 : vector<3x1xf32> to vector<3x512xf32>
    %1935 = vector.broadcast %1933 : vector<1x512xf32> to vector<3x512xf32>
    %1936 = arith.mulf %1934, %1935 : vector<3x512xf32>
    %1937 = arith.addf %1925, %1936 : vector<3x512xf32>
    %1938 = vector.extract_strided_slice %1738 {offsets = [0, 25], sizes = [3, 1], strides = [1, 1]} : vector<3x27xf32> to vector<3x1xf32>
    %1939 = vector.extract_strided_slice %1931 {offsets = [1, 0], sizes = [1, 512], strides = [1, 1]} : vector<3x512xf32> to vector<1x512xf32>
    %1940 = vector.broadcast %1938 : vector<3x1xf32> to vector<3x512xf32>
    %1941 = vector.broadcast %1939 : vector<1x512xf32> to vector<3x512xf32>
    %1942 = arith.mulf %1940, %1941 : vector<3x512xf32>
    %1943 = arith.addf %1937, %1942 : vector<3x512xf32>
    %1944 = vector.extract_strided_slice %1738 {offsets = [0, 26], sizes = [3, 1], strides = [1, 1]} : vector<3x27xf32> to vector<3x1xf32>
    %1945 = vector.extract_strided_slice %1931 {offsets = [2, 0], sizes = [1, 512], strides = [1, 1]} : vector<3x512xf32> to vector<1x512xf32>
    %1946 = vector.broadcast %1944 : vector<3x1xf32> to vector<3x512xf32>
    %1947 = vector.broadcast %1945 : vector<1x512xf32> to vector<3x512xf32>
    %1948 = arith.mulf %1946, %1947 : vector<3x512xf32>
    %1949 = arith.addf %1943, %1948 : vector<3x512xf32>
    %c0_173 = arith.constant 0 : index
    %c5_174 = arith.constant 5 : index
    %1950 = vector.load %arg9[%c0_173, %c5_174] : memref<8x6xf32, #tpu.memory_space<vmem>>, vector<3x1xf32>
    %1951 = vector.broadcast %1950 : vector<3x1xf32> to vector<3x512xf32>
    %1952 = arith.addf %1949, %1951 : vector<3x512xf32>
    %c0_175 = arith.constant 0 : index
    %c0_176 = arith.constant 0 : index
    %1953 = vector.load %arg11[%c0_175, %c0_176] : memref<3x512xf32, #tpu.memory_space<vmem>>, vector<3x512xf32>
    tpu.vector_store %arg11[%c0_175, %c0_176], %1952 {strides = array<i32>} : memref<3x512xf32, #tpu.memory_space<vmem>>, vector<3x512xf32>,
    return
  }
}

</mosaic_0001>

<bundles_post_ra>
// kernel: regression_cnn_forward.1
= control target key start
LH: loop header
LB: loop body
LE: loop exit
PB: predicated region body
PF: predicated region fallthrough
CT: control target
= control target key end

     0   :  { %16 = vsyncpa [#allocation3], 0  ;;  %s8734_s0 = inlined_call_operand.vmem [shape: f32[1,512], index: 0, kind: input, shape index: {}]   ;;  %s8735_s1 = inlined_call_operand.vmem [shape: f32[9,512], index: 1, kind: input, shape index: {}]   ;;  %s8736_s2 = inlined_call_operand.hbm [shape: f32[9,128], index: 2, kind: input, shape index: {}]   ;;  %s8737_s3 = inlined_call_operand.hbm [shape: f32[9,32], index: 3, kind: input, shape index: {}]   ;;  %s8738_s4 = inlined_call_operand.vmem [shape: f32[512,128], index: 4, kind: input, shape index: {}]   ;;  %s8739_s5 = inlined_call_operand.vmem [shape: f32[128,32], index: 5, kind: input, shape index: {}]   ;;  %s8740_s6 = inlined_call_operand.vmem [shape: f32[32,128], index: 6, kind: input, shape index: {}]   ;;  %s8741_s7 = inlined_call_operand.vmem [shape: f32[128,512], index: 7, kind: input, shape index: {}]   ;;  %s8742_s8 = inlined_call_operand.vmem [shape: f32[8,252], index: 8, kind: input, shape index: {}]   ;;  %s8743_s9 = inlined_call_operand.vmem [shape: f32[8,6], index: 9, kind: input, shape index: {}]   ;;  %s8744_s10 = inlined_call_operand.vmem [shape: f32[8,10], index: 10, kind: input, shape index: {}]   ;;  %s8745_s11 = inlined_call_operand.vmem [shape: f32[3,512], index: 11, kind: output, shape index: {}]  }
   0x1   :  { %17 = vsyncpa [#allocation5], 0  ;;  %s5768_s17 = smov [#allocation2]   ;;  %s5720_s21 = scalar_lea.hbm %s8736_s2, 256 }
   0x2   :  { %s27_s18 = sshll.u32 %s5768_s17, 4  ;;  %p5721_p0 = scmp.ne.s32.totalorder %s8736_s2, %s5720_s21  ;;  %s28_s18 = int_to_ptr.vmem [resolvable:$true] %s27_s18 }
   0x3   :  { %p5724_p1 = scmp.lt.u32.totalorder %s5720_s21, %s8736_s2 }
   0x5   :  { %p5726_p2 = pnand %p5724_p1, %p5721_p0 }
   0x7   :  { %5729 = shalt.err (!%p5726_p2)
}
   0x8   :  { %s5730_s26 = scalar_lea.vmem %s28_s18, 256  ;;  %p5735_p4 = scmp.lt.s32.totalorder %s28_s18, %s28_s18 }
   0x9   :  { %p5731_p3 = scmp.ne.s32.totalorder %s28_s18, %s5730_s26  ;;  %p5736_p5 = scmp.lt.s32.totalorder %s5730_s26, %s5730_s26 }
   0xb   :  { %p5737_p6 = por %p5736_p5, %p5735_p4 }
   0xd   :  { %p5738_p7 = pnand %p5737_p6, %p5731_p3 }
   0xf   :  { %5741 = shalt.err (!%p5738_p7)
}
  0x10   :  { %s5769_s27 = smov 128   ;;  %s5770_s28 = smov 8  }
  0x11   :  { %33 = dma.hbm_to_vmem [thread:$0]  %s8736_s2, 256, %s28_s18, [#allocation3], %s5769_s27, %s5769_s27, %s5770_s28  }
  0x12   :  { %s5771_s12 = smov [#allocation4]   ;;  %s5742_s16 = scalar_lea.hbm %s8737_s3, 256 }
  0x13   :  { %s39_s13 = sshll.u32 %s5771_s12, 4  ;;  %p5743_p8 = scmp.ne.s32.totalorder %s8737_s3, %s5742_s16  ;;  %s40_s13 = int_to_ptr.vmem [resolvable:$true] %s39_s13 }
  0x14   :  { %p5746_p9 = scmp.lt.u32.totalorder %s5742_s16, %s8737_s3 }
  0x16   :  { %p5748_p10 = pnand %p5746_p9, %p5743_p8 }
  0x18   :  { %5751 = shalt.err (!%p5748_p10)
}
  0x19   :  { %s5752_s22 = scalar_lea.vmem %s40_s13, 256  ;;  %p5757_p12 = scmp.lt.s32.totalorder %s40_s13, %s40_s13 }
  0x1a   :  { %p5753_p11 = scmp.ne.s32.totalorder %s40_s13, %s5752_s22  ;;  %p5758_p13 = scmp.lt.s32.totalorder %s5752_s22, %s5752_s22 }
  0x1c   :  { %p5759_p0 = por %p5758_p13, %p5757_p12 }
  0x1e   :  { %p5760_p1 = pnand %p5759_p0, %p5753_p11 }
  0x20   :  { %5763 = shalt.err (!%p5760_p1)
}
  0x21   :  { %45 = dma.hbm_to_vmem [thread:$0]  %s8737_s3, 256, %s40_s13, [#allocation5], %s5769_s27, %s5769_s27, %s5770_s28  }
  0x22   :  { %5764 = dma.done.wait [#allocation3], 256  }
  0x23   :  { %5765 = vsyncadd [#allocation3], 4294967040 }
  0x24   :  { %5766 = dma.done.wait [#allocation5], 256  }
  0x25   :  { %5767 = vsyncadd [#allocation5], 4294967040  ;;  %v69_v0 = vlaneseq  ;;  %v8750_v1 = vmov 0   ;;  %v8761_v3 = vmov 2   ;;  %v67_v6 = vld [vmem:[%s8742_s8] sm:$0xf] }
  0x26   :  { %5401 = vset.pattern.permute.xlu0 %v8750_v1  ;;  %5403 = vset.pattern.permute.xlu1 %v8761_v3  ;;  %v66_v7 = vld [vmem:[%s8734_s0] sm:$0xf]  ;;  %s5774_s26 = smov 17   ;;  %v8759_v12 = vmov 1   ;;  %v8757_v15 = vmov 3   ;;  %s8913_s0 = smov 16  }
  0x27   :  { %v6017_v2 = vshrl.u32 %v69_v0, 7  ;;  %131 = vperm.xlu0 %5401, %v67_v6   ;;  %s8911_s27 = smov 15   ;;  %v8755_v16 = vmov 5   ;;  %s5780_s29 = smov 1   ;;  %v8753_v17 = vmov 4   ;;  %v8751_v18 = vmov 7  }
  0x28   :  { %s5782_s30 = smov 127   ;;  %s8901_s12 = smov 113   ;;  %v8748_v19 = vmov 6   ;;  %v8746_v20 = vmov 8   ;;  %v685_v21 = vld [vmem:[%s8743_s9] sm:$0xf] }
  0x29   :  { %8928 = vst [vmem:[#allocation8_spill] sm:$0xff] %v6017_v2  ;;  %v6021_v4 = vsub.s32 3, %v6017_v2  ;;  %v6024_v5 = vsub.s32 0, %v6017_v2  ;;  %v6036_v9 = vsub.s32 2, %v6017_v2  ;;  %v6039_v10 = vsub.s32 1, %v6017_v2  ;;  %s8892_s13 = smov 112  }
  0x2a   :  { %s8889_s14 = smov 111   ;;  %v103_v43 = vld [vmem:[%s8735_s1] ss:$8 sm:$0xf]  ;;  %vm94_vm0 = vcmask 138240   ;;  %vm167_vm1 = vcmask 130048  }
  0x2b   :  { %v6033_v8 = vrot.slane %v66_v7, %v6021_v4  ;;  %v6044_v11 = vrot.slane %v66_v7, %v6024_v5  ;;  %5402 = vset.pattern.permute.xlu0 %v8759_v12  ;;  %v6048_v13 = vrot.slane %v66_v7, %v6036_v9  ;;  %v6053_v14 = vrot.slane %v66_v7, %v6039_v10  ;;  %v4919_v44 = vld [vmem:[%s8735_s1 + $0x1] ss:$8 sm:$0xf]  ;;  %v4920_v48 = vld [vmem:[%s8735_s1 + $0x2] ss:$8 sm:$0xf] }
  0x2c   :  { %204 = vperm.xlu0 %5402, %v67_v6   ;;  %v6167_v46 = vrot.slane %v103_v43, %v6024_v5  ;;  %v6170_v47 = vrot.slane %v103_v43, %v6039_v10  ;;  %v6178_v50 = vrot.slane %v103_v43, %v6036_v9  ;;  %v6181_v51 = vrot.slane %v103_v43, %v6021_v4  ;;  %v4921_v53 = vld [vmem:[%s8735_s1 + $0x3] ss:$8 sm:$0xf]  ;;  %v4922_v57 = vld [vmem:[%s8735_s1 + $0x5] ss:$8 sm:$0xf] }
  0x2d   :  { %73 = vrot.lane.b32.xlu1 %v6033_v8, %s5774_s26  ;;  %v6184_v52 = vrot.slane %v4919_v44, %v6024_v5  ;;  %v6190_v54 = vrot.slane %v4919_v44, %v6039_v10  ;;  %v6193_v55 = vrot.slane %v4919_v44, %v6036_v9  ;;  %v6196_v56 = vrot.slane %v4919_v44, %v6021_v4  ;;  %v4923_v62 = vld [vmem:[%s8735_s1 + $0x6] ss:$8 sm:$0xf]  ;;  %s5807_s3 = smov 9   ;;  %s5808_s23 = smov 7  }
  0x2e   :  { %8929 = vst [vmem:[#allocation9_spill] sm:$0xff] %v6167_v46  ;;  %8930 = vst [vmem:[#allocation10_spill] sm:$0xff] %v6170_v47  ;;  %vm240_vm2 = vcmask 121856   ;;  %v6202_v58 = vrot.slane %v4920_v48, %v6024_v5  ;;  %v6205_v59 = vrot.slane %v4920_v48, %v6039_v10  ;;  %v6208_v60 = vrot.slane %v4920_v48, %v6036_v9  ;;  %s5818_s24 = smov 121   ;;  %s5820_s25 = smov 120  }
  0x2f   :  { %8932 = vst [vmem:[#allocation12_spill] sm:$0xff] %v6178_v50  ;;  %8933 = vst [vmem:[#allocation13_spill] sm:$0xff] %v6181_v51  ;;  %v6211_v61 = vrot.slane %v4920_v48, %v6021_v4  ;;  %v6217_v63 = vrot.slane %v4921_v53, %v6024_v5  ;;  %v6220_v0 = vrot.slane %v4921_v53, %v6039_v10  ;;  %vm313_vm3 = vcmask 7168   ;;  %s5822_s15 = smov 119   ;;  %s5870_s21 = smov 3  }
  0x30   :  { %92 = vrot.lane.b32.xlu0 %v6048_v13, %s5774_s26  ;;  %8934 = vst [vmem:[#allocation14_spill] sm:$0xff] %v6184_v52  ;;  %8935 = vst [vmem:[#allocation15_spill] sm:$0xff] %v6190_v54  ;;  %v6226_v7 = vrot.slane %v4921_v53, %v6021_v4  ;;  %v6235_v48 = vrot.slane %v4922_v57, %v6024_v5  ;;  %v6260_v3 = vrot.slane %v4923_v62, %v6036_v9  ;;  %vm401_vm4 = vcmask 1039360   ;;  %s5872_s22 = smov 5   ;;  %s5876_s16 = smov 100  }
  0x31   :  { %88 = vrot.lane.b32.xlu1 %v6044_v11, %s5774_s26  ;;  %5404 = vset.pattern.permute.xlu0 %v8757_v15  ;;  %8936 = vst [vmem:[#allocation16_spill] sm:$0xff] %v6193_v55  ;;  %8937 = vst [vmem:[#allocation17_spill] sm:$0xff] %v6196_v56  ;;  %v6263_v2 = vrot.slane %v4923_v62, %v6021_v4  ;;  %vm474_vm5 = vcmask 924672   ;;  %vm547_vm6 = vcmask 916480   ;;  %vm8910_vm7 = vcmask 908288   ;;  %s5879_s17 = smov 4  }
  0x32   :  { %8938 = vst [vmem:[#allocation18_spill] sm:$0xff] %v6202_v58  ;;  %8939 = vst [vmem:[#allocation19_spill] sm:$0xff] %v6205_v59  ;;  %vm950_vm8 = vcmask 1043456   ;;  %vm5831_vm9 = vmmov 0   ;;  %vm1517_vm10 = vcmask 261120   ;;  %s5881_s19 = smov 99  }
  0x33   :  { %8940 = vst [vmem:[#allocation20_spill] sm:$0xff] %v6208_v60  ;;  %8941 = vst [vmem:[#allocation21_spill] sm:$0xff] %v6211_v61  ;;  %s5887_s20 = smov 29   ;;  %s5904_s2 = smov 31   ;;  %vm1552_vm11 = vcmask 39936   ;;  %vm1646_vm12 = vcmask 31744  }
  0x34   :  { %161 = vrot.lane.b32.xlu0 %v6044_v11, %s8913_s0  ;;  %8942 = vst [vmem:[#allocation22_spill] sm:$0xff] %v6226_v7  ;;  %8943 = vst [vmem:[#allocation23_spill] sm:$0xff] %v6235_v48  ;;  %s5905_s18 = smov 125   ;;  %vm1740_vm13 = vcmask 23552   ;;  %vm2007_vm14 = vcmask 252928   ;;  %vm2101_vm15 = vcmask 236544  }
  0x35   :  { %90 = vrot.lane.b32.xlu1 %v6053_v14, %s5774_s26  ;;  %8949 = vst [vmem:[#allocation29_spill] sm:$0xff] %v6260_v3  ;;  %8950 = vst [vmem:[#allocation30_spill] sm:$0xff] %v6263_v2 }
  0x38   :  { %165 = vrot.lane.b32.xlu0 %v6048_v13, %s8913_s0 }
  0x39   :  { %158 = vrot.lane.b32.xlu1 %v6033_v8, %s8913_s0 }
  0x3c   :  { %231 = vrot.lane.b32.xlu0 %v6033_v8, %s8911_s27 }
  0x3d   :  { %163 = vrot.lane.b32.xlu1 %v6053_v14, %s8913_s0 }
  0x40   :  { %236 = vrot.lane.b32.xlu0 %v6053_v14, %s8911_s27 }
  0x41   :  { %277 = vperm.xlu1 %5403, %v67_v6  }
  0x44   :  { %350 = vperm.xlu0 %5404, %v67_v6  }
  0x45   :  { %234 = vrot.lane.b32.xlu1 %v6044_v11, %s8911_s27 }
  0x46   :  { %5406 = vset.pattern.permute.xlu1 %v8755_v16  ;;  %v6255_v16 = vrot.slane %v4923_v62, %v6039_v10 }
  0x48   :  { %309 = vrot.lane.b32.xlu0 %v6053_v14, %s5780_s29  ;;  %8948 = vst [vmem:[#allocation28_spill] sm:$0xff] %v6255_v16 }
  0x49   :  { %238 = vrot.lane.b32.xlu1 %v6048_v13, %s8911_s27  ;;  %5405 = vset.pattern.permute.xlu0 %v8753_v17  ;;  %v6252_v17 = vrot.slane %v4923_v62, %v6024_v5 }
  0x4b   :  { %8947 = vst [vmem:[#allocation27_spill] sm:$0xff] %v6252_v17 }
  0x4c   :  { %378 = vperm.xlu0 %5405, %v67_v6  }
  0x4d   :  { %304 = vrot.lane.b32.xlu1 %v6033_v8, %s5780_s29 }
  0x50   :  { %395 = vrot.lane.b32.xlu0 %v6053_v14, %s5782_s30 }
  0x51   :  { %307 = vrot.lane.b32.xlu1 %v6044_v11, %s5780_s29  ;;  %5408 = vset.pattern.permute.xlu0 %v8751_v18  ;;  %v6249_v18 = vrot.slane %v4922_v57, %v6036_v9 }
  0x53   :  { %8946 = vst [vmem:[#allocation26_spill] sm:$0xff] %v6249_v18 }
  0x54   :  { %399 = vrot.lane.b32.xlu0 %v6033_v8, %s5782_s30 }
  0x55   :  { %311 = vrot.lane.b32.xlu1 %v6048_v13, %s5780_s29 }
  0x58   :  { %466 = vrot.lane.b32.xlu0 %v6044_v11, %s8901_s12 }
  0x59   :  { %439 = vperm.xlu1 %5406, %v67_v6  }
  0x5c   :  { %470 = vrot.lane.b32.xlu0 %v6048_v13, %s8901_s12 }
  0x5d   :  { %393 = vrot.lane.b32.xlu1 %v6044_v11, %s5782_s30 }
  0x5e   :  { %5407 = vset.pattern.permute.xlu1 %v8748_v19  ;;  %v6241_v19 = vrot.slane %v4922_v57, %v6039_v10 }
  0x60   :  { %585 = vperm.xlu0 %5408, %v67_v6   ;;  %8945 = vst [vmem:[#allocation25_spill] sm:$0xff] %v6241_v19 }
  0x61   :  { %397 = vrot.lane.b32.xlu1 %v6048_v13, %s5782_s30 }
  0x64   :  { %543 = vrot.lane.b32.xlu0 %v6048_v13, %s8892_s13 }
  0x65   :  { %512 = vperm.xlu1 %5407, %v67_v6   ;;  %5409 = vset.pattern.permute.xlu0 %v8746_v20  ;;  %v6238_v20 = vrot.slane %v4922_v57, %v6021_v4 }
  0x67   :  { %8944 = vst [vmem:[#allocation24_spill] sm:$0xff] %v6238_v20 }
  0x68   :  { %658 = vperm.xlu0 %5409, %v67_v6   ;;  %v6223_v6 = vrot.slane %v4921_v53, %v6036_v9  ;;  %v4924_v53 = vld [vmem:[%s8735_s1 + $0x7] ss:$8 sm:$0xf] }
  0x69   :  { %468 = vrot.lane.b32.xlu1 %v6053_v14, %s8901_s12  ;;  %v6271_v20 = vrot.slane %v4924_v53, %v6024_v5 }
  0x6a   :  { %5431 = vset.pattern.permute.xlu1 %v8759_v12 }
  0x6b   :  { %8951 = vst [vmem:[#allocation31_spill] sm:$0xff] %v6271_v20 }
  0x6c   :  { %616 = vrot.lane.b32.xlu0 %v6048_v13, %s8889_s14 }
  0x6d   :  { %472 = vrot.lane.b32.xlu1 %v6033_v8, %s8901_s12  ;;  %5410 = vset.pattern.permute.xlu0 %v8750_v1  ;;  %s5914_s12 = smov 123  }
  0x70   :  { %688 = vperm.xlu0 %5410, %v685_v21  }
  0x71   :  { %539 = vrot.lane.b32.xlu1 %v6044_v11, %s8892_s13 }
  0x75   :  { %541 = vrot.lane.b32.xlu1 %v6053_v14, %s8892_s13 }
  0x79   :  { %545 = vrot.lane.b32.xlu1 %v6033_v8, %s8892_s13 }
  0x7d   :  { %612 = vrot.lane.b32.xlu1 %v6044_v11, %s8889_s14 }
  0x81   :  { %614 = vrot.lane.b32.xlu1 %v6053_v14, %s8889_s14 }
  0x85   :  { %618 = vrot.lane.b32.xlu1 %v6033_v8, %s8889_s14  ;;  %s5910_s14 = smov 124  }
  0x9f   :  { %v6126_v22 = vpop.permute.xlu1 %73 }
  0xa3   :  { %v89_v23 = vpop.permute.xlu1 %88 }
  0xa4   :  { %v102_v1 = vsel %vm94_vm0, %v6126_v22, %v89_v23 }
  0xa5   :  { %v125_v16 = vmul.f32 %v6167_v46, %v102_v1 }
  0xa6   :  { %v6128_v24 = vpop.permute.xlu0 %131 }
  0xa7   :  { %v6132_v26 = vpop.permute.xlu1 %90 }
  0xa8   :  { %v95_v44 = vsel %vm94_vm0, %v89_v23, %v6132_v26 }
  0xa9   :  { %v126_v23 = vmul.f32 %v6170_v47, %v95_v44  ;;  %v6281_v44 = vrot.slane %v4924_v53, %v6039_v10 }
  0xab   :  { %v6130_v25 = vpop.permute.xlu0 %204  ;;  %v159_v28 = vpop.permute.xlu1 %158  ;;  %8952 = vst [vmem:[#allocation32_spill] sm:$0xff] %v6281_v44 }
  0xaf   :  { %v6134_v27 = vpop.permute.xlu0 %92  ;;  %v164_v31 = vpop.permute.xlu1 %163 }
  0xb0   :  { %v97_v62 = vsel %vm94_vm0, %v6134_v27, %v6126_v22  ;;  %v4925_v22 = vld [vmem:[%s8735_s1 + $0x20] ss:$8 sm:$0xf]  ;;  %s5895_s1 = smov 27  }
  0xb1   :  { %v128_v47 = vmul.f32 %v6181_v51, %v97_v62  ;;  %v6324_v62 = vrot.slane %v4925_v22, %v6039_v10 }
  0xb3   :  { %v162_v29 = vpop.permute.xlu0 %161  ;;  %8956 = vst [vmem:[#allocation36_spill] sm:$0xff] %v6324_v62 }
  0xb4   :  { %v168_v15 = vsel %vm167_vm1, %v162_v29, %v164_v31  ;;  %v175_v12 = vsel %vm167_vm1, %v159_v28, %v162_v29  ;;  %v96_v29 = vsel %vm94_vm0, %v6132_v26, %v6134_v27 }
  0xb7   :  { %v166_v30 = vpop.permute.xlu0 %165 }
  0xb8   :  { %v169_v57 = vsel %vm167_vm1, %v164_v31, %v166_v30 }
  0xb9   :  { %v201_v27 = vmul.f32 %v6193_v55, %v169_v57  ;;  %v6310_v57 = vrot.slane %v4924_v53, %v6036_v9 }
  0xbb   :  { %v6136_v32 = vpop.permute.xlu0 %231  ;;  %8953 = vst [vmem:[#allocation33_spill] sm:$0xff] %v6310_v57 }
  0xbf   :  { %v6140_v34 = vpop.permute.xlu0 %236 }
  0xc0   :  { %v6138_v33 = vpop.permute.xlu1 %277 }
  0xc3   :  { %v6144_v36 = vpop.permute.xlu0 %350 }
  0xc4   :  { %v6142_v35 = vpop.permute.xlu1 %234 }
  0xc5   :  { %v241_v31 = vsel %vm240_vm2, %v6142_v35, %v6140_v34  ;;  %v248_v1 = vsel %vm240_vm2, %v6136_v32, %v6142_v35  ;;  %v141_v35 = vrot.slane %v126_v23, %v6024_v5 }
  0xc7   :  { %v6148_v38 = vpop.permute.xlu0 %309  ;;  %v151_v55 = vmul.f32 %v141_v35, %v6128_v24 }
  0xc8   :  { %v6146_v37 = vpop.permute.xlu1 %238 }
  0xcb   :  { %v6154_v41 = vpop.permute.xlu0 %378 }
  0xcc   :  { %v6150_v39 = vpop.permute.xlu1 %304 }
  0xcf   :  { %v6164_v45 = vpop.permute.xlu0 %395 }
  0xd0   :  { %v6152_v40 = vpop.permute.xlu1 %307 }
  0xd3   :  { %v6228_v21 = vpop.permute.xlu0 %399 }
  0xd4   :  { %v6156_v42 = vpop.permute.xlu1 %311 }
  0xd5   :  { %v315_v35 = vsel %vm313_vm3, %v6148_v38, %v6156_v42 }
  0xd7   :  { %v6291_v26 = vpop.permute.xlu0 %466 }
  0xd8   :  { %v6175_v49 = vpop.permute.xlu1 %439 }
  0xd9   :  { %8931 = vst [vmem:[#allocation11_spill] sm:$0xff] %v6175_v49  ;;  %v170_v49 = vsel %vm167_vm1, %v166_v30, %v159_v28  ;;  %v199_v28 = vmul.f32 %v6184_v52, %v175_v12  ;;  %v200_v30 = vmul.f32 %v6190_v54, %v168_v15  ;;  %v242_v15 = vsel %vm240_vm2, %v6140_v34, %v6146_v37 }
  0xda   :  { %v202_v12 = vmul.f32 %v6196_v56, %v170_v49  ;;  %v243_v54 = vsel %vm240_vm2, %v6146_v37, %v6136_v32  ;;  %v127_v52 = vmul.f32 %v6178_v50, %v96_v29  ;;  %v272_v49 = vmul.f32 %v6202_v58, %v248_v1 }
  0xdb   :  { %v273_v56 = vmul.f32 %v6205_v59, %v241_v31  ;;  %v6315_v34 = vrot.slane %v4924_v53, %v6021_v4  ;;  %v6318_v32 = vrot.slane %v4925_v22, %v6024_v5  ;;  %v137_v37 = vrot.slane %v125_v16, %v6024_v5 }
  0xdc   :  { %v6230_v43 = vpop.permute.xlu1 %393  ;;  %v274_v23 = vmul.f32 %v6208_v60, %v242_v15  ;;  %v275_v29 = vmul.f32 %v6211_v61, %v243_v54  ;;  %v210_v1 = vrot.slane %v199_v28, %v6024_v5  ;;  %v214_v31 = vrot.slane %v200_v30, %v6024_v5  ;;  %v6334_v54 = vpop.permute.xlu0 %470 }
  0xdd   :  { %8954 = vst [vmem:[#allocation34_spill] sm:$0xff] %v6315_v34  ;;  %8955 = vst [vmem:[#allocation35_spill] sm:$0xff] %v6318_v32  ;;  %v218_v59 = vrot.slane %v201_v27, %v6024_v5  ;;  %v222_v53 = vrot.slane %v202_v12, %v6024_v5  ;;  %v150_v58 = vmul.f32 %v137_v37, %v6128_v24 }
  0xde   :  { %v145_v16 = vrot.slane %v127_v52, %v6024_v5  ;;  %v149_v15 = vrot.slane %v128_v47, %v6024_v5  ;;  %v283_v28 = vrot.slane %v272_v49, %v6024_v5  ;;  %v287_v30 = vrot.slane %v273_v56, %v6024_v5 }
  0xdf   :  { %v314_v27 = vsel %vm313_vm3, %v6152_v40, %v6148_v38  ;;  %v321_v12 = vsel %vm313_vm3, %v6150_v39, %v6152_v40  ;;  %v291_v52 = vrot.slane %v274_v23, %v6024_v5  ;;  %v295_v47 = vrot.slane %v275_v29, %v6024_v5 }
  0xe0   :  { %v6268_v18 = vpop.permute.xlu1 %397  ;;  %v316_v56 = vsel %vm313_vm3, %v6156_v42, %v6150_v39  ;;  %v223_v49 = vmul.f32 %v210_v1, %v6130_v25  ;;  %v224_v37 = vmul.f32 %v214_v31, %v6130_v25  ;;  %v225_v60 = vmul.f32 %v218_v59, %v6130_v25 }
  0xe1   :  { %v226_v40 = vmul.f32 %v222_v53, %v6130_v25  ;;  %v152_v23 = vmul.f32 %v145_v16, %v6128_v24  ;;  %v153_v29 = vmul.f32 %v149_v15, %v6128_v24  ;;  %v345_v51 = vmul.f32 %v6217_v63, %v321_v12  ;;  %v6366_v53 = vpop.permute.xlu0 %585 }
  0xe2   :  { %v346_v38 = vmul.f32 %v6220_v0, %v314_v27  ;;  %v296_v39 = vmul.f32 %v283_v28, %v6138_v33  ;;  %v297_v42 = vmul.f32 %v287_v30, %v6138_v33  ;;  %v347_v1 = vmul.f32 %v6223_v6, %v315_v35 }
  0xe3   :  { %v348_v31 = vmul.f32 %v6226_v7, %v316_v56  ;;  %v298_v59 = vmul.f32 %v291_v52, %v6138_v33  ;;  %v299_v25 = vmul.f32 %v295_v47, %v6138_v33  ;;  %v6369_v24 = vrot.slane %v4925_v22, %v6036_v9 }
  0xe4   :  { %v6307_v46 = vpop.permute.xlu1 %512  ;;  %v6372_v16 = vrot.slane %v4925_v22, %v6021_v4  ;;  %v227_v15 = vadd.f32 %v223_v49, %v150_v58  ;;  %v228_v28 = vadd.f32 %v224_v37, %v151_v55  ;;  %v229_v27 = vadd.f32 %v225_v60, %v152_v23 }
  0xe5   :  { %8957 = vst [vmem:[#allocation37_spill] sm:$0xff] %v6369_v24  ;;  %v230_v30 = vadd.f32 %v226_v40, %v153_v29  ;;  %v356_v12 = vrot.slane %v345_v51, %v6024_v5  ;;  %v360_v35 = vrot.slane %v346_v38, %v6024_v5  ;;  %v402_v33 = vsel %vm401_vm4, %v6230_v43, %v6164_v45 }
  0xe6   :  { %8958 = vst [vmem:[#allocation38_spill] sm:$0xff] %v6372_v16  ;;  %v403_v52 = vsel %vm401_vm4, %v6164_v45, %v6268_v18  ;;  %v300_v56 = vadd.f32 %v296_v39, %v227_v15  ;;  %v301_v22 = vadd.f32 %v297_v42, %v228_v28  ;;  %v364_v58 = vrot.slane %v347_v1, %v6024_v5  ;;  %v544_v42 = vpop.permute.xlu0 %543 }
  0xe7   :  { %v368_v55 = vrot.slane %v348_v31, %v6024_v5  ;;  %v302_v60 = vadd.f32 %v298_v59, %v229_v27  ;;  %v303_v49 = vadd.f32 %v299_v25, %v230_v30  ;;  %v385_v51 = vmul.f32 %v6154_v41, %v6044_v11  ;;  %v8959_v27 = vld [vmem:[#allocation28_spill] sm:$0xff] }
  0xe8   :  { %v469_v61 = vpop.permute.xlu1 %468  ;;  %v386_v37 = vmul.f32 %v6154_v41, %v6053_v14  ;;  %v434_v40 = vmul.f32 %v6235_v48, %v402_v33  ;;  %v435_v23 = vmul.f32 %v6241_v19, %v403_v52  ;;  %v369_v38 = vmul.f32 %v356_v12, %v6144_v36 }
  0xe9   :  { %v475_v45 = vsel %vm474_vm5, %v6291_v26, %v469_v61  ;;  %v476_v29 = vsel %vm474_vm5, %v469_v61, %v6334_v54  ;;  %v370_v39 = vmul.f32 %v360_v35, %v6144_v36  ;;  %v410_v11 = vsel %vm401_vm4, %v6228_v21, %v6230_v43 }
  0xea   :  { %v404_v14 = vsel %vm401_vm4, %v6268_v18, %v6228_v21  ;;  %v371_v31 = vmul.f32 %v364_v58, %v6144_v36  ;;  %v372_v59 = vmul.f32 %v368_v55, %v6144_v36  ;;  %v387_v15 = vmul.f32 %v6154_v41, %v6048_v13  ;;  %v8960_v21 = vld [vmem:[#allocation24_spill] sm:$0xff]  ;;  %v8961_v36 = vld [vmem:[#allocation26_spill] sm:$0xff] }
  0xeb   :  { %v388_v43 = vmul.f32 %v6154_v41, %v6033_v8  ;;  %v507_v28 = vmul.f32 %v6252_v17, %v475_v45  ;;  %v508_v18 = vmul.f32 %v8959_v27, %v476_v29  ;;  %v437_v30 = vmul.f32 %v8960_v21, %v410_v11 }
  0xec   :  { %v473_v50 = vpop.permute.xlu1 %472  ;;  %v445_v12 = vrot.slane %v434_v40, %v6024_v5  ;;  %v436_v35 = vmul.f32 %v8961_v36, %v404_v14  ;;  %v449_v33 = vrot.slane %v435_v23, %v6024_v5  ;;  %v373_v55 = vadd.f32 %v369_v38, %v300_v56  ;;  %v6424_v23 = vpop.permute.xlu0 %658 }
  0xed   :  { %v477_v52 = vsel %vm474_vm5, %v6334_v54, %v473_v50  ;;  %v483_v13 = vsel %vm474_vm5, %v473_v50, %v6291_v26  ;;  %v374_v45 = vadd.f32 %v370_v39, %v301_v22  ;;  %v375_v29 = vadd.f32 %v371_v31, %v302_v60  ;;  %v8962_v22 = vld [vmem:[#allocation11_spill] sm:$0xff] }
  0xee   :  { %v376_v11 = vadd.f32 %v372_v59, %v303_v49  ;;  %v518_v40 = vrot.slane %v507_v28, %v6024_v5  ;;  %v522_v14 = vrot.slane %v508_v18, %v6024_v5  ;;  %v457_v50 = vrot.slane %v437_v30, %v6024_v5 }
  0xef   :  { %v453_v26 = vrot.slane %v436_v35, %v6024_v5  ;;  %v510_v56 = vmul.f32 %v6263_v2, %v483_v13  ;;  %v458_v60 = vmul.f32 %v445_v12, %v8962_v22  ;;  %v459_v49 = vmul.f32 %v449_v33, %v8962_v22 }
  0xf0   :  { %v540_v47 = vpop.permute.xlu1 %539  ;;  %v390_v59 = vadd.f32 %v386_v37, %v374_v45  ;;  %v392_v28 = vadd.f32 %v388_v43, %v376_v11  ;;  %v391_v18 = vadd.f32 %v387_v15, %v375_v29  ;;  %v531_v30 = vmul.f32 %v518_v40, %v6307_v46  ;;  %v617_v43 = vpop.permute.xlu0 %616 }
  0xf1   :  { %v532_v35 = vmul.f32 %v522_v14, %v6307_v46  ;;  %v461_v12 = vmul.f32 %v457_v50, %v8962_v22  ;;  %v460_v33 = vmul.f32 %v453_v26, %v8962_v22  ;;  %v530_v13 = vrot.slane %v510_v56, %v6024_v5 }
  0xf2   :  { %v463_v37 = vadd.f32 %v459_v49, %v390_v59  ;;  %v8908_v19 = vmov 113  }
  0xf3   :  { %v464_v50 = vadd.f32 %v460_v33, %v391_v18 }
  0xf4   :  { %v542_v1 = vpop.permute.xlu1 %541  ;;  %v536_v40 = vadd.f32 %v532_v35, %v463_v37 }
  0xf5   :  { %v548_v61 = vsel %vm547_vm6, %v540_v47, %v542_v1  ;;  %v549_v25 = vsel %vm547_vm6, %v542_v1, %v544_v42 }
  0xf6   :  { %v580_v8 = vmul.f32 %v6271_v20, %v548_v61  ;;  %v581_v41 = vmul.f32 %v6281_v44, %v549_v25  ;;  %v509_v61 = vmul.f32 %v6260_v3, %v477_v52  ;;  %v8903_v3 = vmov 110  }
  0xf8   :  { %v546_v58 = vpop.permute.xlu1 %545  ;;  %v591_v38 = vrot.slane %v580_v8, %v6024_v5  ;;  %v595_v39 = vrot.slane %v581_v41, %v6024_v5  ;;  %v526_v52 = vrot.slane %v509_v61, %v6024_v5  ;;  %v534_v61 = vmul.f32 %v530_v13, %v6307_v46 }
  0xf9   :  { %v550_v54 = vsel %vm547_vm6, %v544_v42, %v546_v58  ;;  %v556_v1 = vsel %vm547_vm6, %v546_v58, %v540_v47  ;;  %v389_v42 = vadd.f32 %v385_v51, %v373_v55 }
  0xfa   :  { %v582_v47 = vmul.f32 %v6310_v57, %v550_v54  ;;  %v583_v25 = vmul.f32 %v6315_v34, %v556_v1  ;;  %v604_v8 = vmul.f32 %v591_v38, %v6366_v53  ;;  %v605_v41 = vmul.f32 %v595_v39, %v6366_v53 }
  0xfb   :  { %v462_v51 = vadd.f32 %v458_v60, %v389_v42  ;;  %v465_v1 = vadd.f32 %v461_v12, %v392_v28  ;;  %v533_v26 = vmul.f32 %v526_v52, %v6307_v46  ;;  %v689_v12 = vpop.permute.xlu0 %688 }
  0xfc   :  { %v613_v31 = vpop.permute.xlu1 %612  ;;  %v599_v58 = vrot.slane %v582_v47, %v6024_v5  ;;  %v603_v55 = vrot.slane %v583_v25, %v6024_v5  ;;  %v609_v38 = vadd.f32 %v605_v41, %v536_v40  ;;  %v794_v40 = vld [vmem:[%s8738_s4 + $0x188] sm:$0xff] }
  0xfd   :  { %v535_v11 = vadd.f32 %v531_v30, %v462_v51  ;;  %v537_v30 = vadd.f32 %v533_v26, %v464_v50  ;;  %v538_v35 = vadd.f32 %v534_v61, %v465_v1 }
  0xfe   :  { %v606_v39 = vmul.f32 %v599_v58, %v6366_v53  ;;  %v607_v42 = vmul.f32 %v603_v55, %v6366_v53 }
  0xff   :  { %v608_v49 = vadd.f32 %v604_v8, %v535_v11 }
 0x100   :  { %v615_v15 = vpop.permute.xlu1 %614  ;;  %v610_v51 = vadd.f32 %v606_v39, %v537_v30  ;;  %v611_v37 = vadd.f32 %v607_v42, %v538_v35  ;;  %v795_v39 = vld [vmem:[%s8738_s4 + $0x190] sm:$0xff]  ;;  %v796_v42 = vld [vmem:[%s8738_s4 + $0x198] sm:$0xff] }
 0x101   :  { %v621_v45 = vsel %vm8910_vm7, %v613_v31, %v615_v15  ;;  %v622_v29 = vsel %vm8910_vm7, %v615_v15, %v617_v43  ;;  %v780_v35 = vld [vmem:[%s8738_s4 + $0x118] sm:$0xff] }
 0x102   :  { %v653_v14 = vmul.f32 %v6318_v32, %v621_v45  ;;  %v654_v54 = vmul.f32 %v6324_v62, %v622_v29  ;;  %v761_v45 = vld [vmem:[%s8738_s4 + $0x80] sm:$0xff]  ;;  %v762_v29 = vld [vmem:[%s8738_s4 + $0x88] sm:$0xff] }
 0x103   :  { %v5081_v11 = vpack.c.bf16 %v762_v29, %v761_v45  ;;  %v767_v45 = vld [vmem:[%s8738_s4 + $0xb0] sm:$0xff]  ;;  %v768_v29 = vld [vmem:[%s8738_s4 + $0xb8] sm:$0xff] }
 0x104   :  { %v664_v56 = vrot.slane %v653_v14, %v6024_v5  ;;  %v668_v22 = vrot.slane %v654_v54, %v6024_v5  ;;  %v619_v60 = vpop.permute.xlu1 %618  ;;  %v745_v14 = vld [vmem:[%s8738_s4] sm:$0xff]  ;;  %v746_v54 = vld [vmem:[%s8738_s4 + $0x8] sm:$0xff] }
 0x105   :  { %v623_v59 = vsel %vm8910_vm7, %v617_v43, %v619_v60  ;;  %v629_v47 = vsel %vm8910_vm7, %v619_v60, %v613_v31  ;;  %v5083_v61 = vpack.c.bf16 %v746_v54, %v745_v14  ;;  %v763_v60 = vld [vmem:[%s8738_s4 + $0x90] sm:$0xff]  ;;  %5082 = vmatprep.subr.bf16.mxu0 %v5081_v11  ;;  %v800_v14 = vld [vmem:[%s8738_s4 + $0x1b8] sm:$0xff]  ;;  %vm2289_vm7 = vcmask 220160  }
 0x106   :  { %v677_v25 = vmul.f32 %v664_v56, %v6424_v23  ;;  %v678_v28 = vmul.f32 %v668_v22, %v6424_v23  ;;  %v655_v46 = vmul.f32 %v6369_v24, %v623_v59  ;;  %v656_v18 = vmul.f32 %v6372_v16, %v629_v47  ;;  %v777_v56 = vld [vmem:[%s8738_s4 + $0x100] sm:$0xff]  ;;  %v778_v22 = vld [vmem:[%s8738_s4 + $0x108] sm:$0xff]  ;;  %v751_v54 = vld [vmem:[%s8738_s4 + $0x30] sm:$0xff] }
 0x107   :  { %5084 = vmatpush3.bf16.msra.mxu0 %v5083_v61 }
 0x108   :  { %v672_v33 = vrot.slane %v655_v46, %v6024_v5  ;;  %v676_v52 = vrot.slane %v656_v18, %v6024_v5  ;;  %v681_v53 = vadd.f32 %v677_v25, %v608_v49  ;;  %v682_v13 = vadd.f32 %v678_v28, %v609_v38  ;;  %v764_v38 = vld [vmem:[%s8738_s4 + $0x98] sm:$0xff]  ;;  %v747_v28 = vld [vmem:[%s8738_s4 + $0x10] sm:$0xff] }
 0x109   :  { %v5115_v49 = vpack.c.bf16 %v778_v22, %v777_v56  ;;  %v5085_v47 = vpack.c.bf16 %v764_v38, %v763_v60  ;;  %v5117_v25 = vpack.c.bf16 %v796_v42, %v795_v39  ;;  %v748_v46 = vld [vmem:[%s8738_s4 + $0x18] sm:$0xff]  ;;  %v779_v18 = vld [vmem:[%s8738_s4 + $0x110] sm:$0xff]  ;;  %v769_v60 = vld [vmem:[%s8738_s4 + $0xc0] sm:$0xff] }
 0x10a   :  { %v679_v31 = vmul.f32 %v672_v33, %v6424_v23  ;;  %v680_v8 = vmul.f32 %v676_v52, %v6424_v23  ;;  %v6468_v41 = vadd.f32 %v689_v12, %v681_v53  ;;  %v6470_v43 = vadd.f32 %v689_v12, %v682_v13  ;;  %v793_v23 = vld [vmem:[%s8738_s4 + $0x180] sm:$0xff]  ;;  %v766_v33 = vld [vmem:[%s8738_s4 + $0xa8] sm:$0xff]  ;;  %v783_v56 = vld [vmem:[%s8738_s4 + $0x130] sm:$0xff] }
 0x10b   :  { %v5113_v26 = vpack.c.bf16 %v794_v40, %v793_v23  ;;  %v5087_v30 = vpack.c.bf16 %v748_v46, %v747_v28  ;;  %5086 = vmatprep.subr.bf16.mxu0 %v5085_v47  ;;  %v5119_v52 = vpack.c.bf16 %v780_v35, %v779_v18  ;;  %v797_v13 = vld [vmem:[%s8738_s4 + $0x1a0] sm:$0xff]  ;;  %v799_v23 = vld [vmem:[%s8738_s4 + $0x1b0] sm:$0xff]  ;;  %v5093_v40 = vpack.c.bf16 %v768_v29, %v767_v45  ;;  %v784_v22 = vld [vmem:[%s8738_s4 + $0x138] sm:$0xff] }
 0x10c   :  { %v5411_v15 = vpack.i.bf16 %v6470_v43, %v6468_v41  ;;  %v683_v58 = vadd.f32 %v679_v31, %v610_v51  ;;  %v684_v55 = vadd.f32 %v680_v8, %v611_v37  ;;  %v798_v51 = vld [vmem:[%s8738_s4 + $0x1a8] sm:$0xff]  ;;  %v749_v37 = vld [vmem:[%s8738_s4 + $0x20] sm:$0xff]  ;;  %v5125_v61 = vpack.c.bf16 %v800_v14, %v799_v23  ;;  %v771_v35 = vld [vmem:[%s8738_s4 + $0xd0] sm:$0xff] }
 0x10d   :  { %5114 = vmatprep.subr.bf16.mxu1 %v5113_v26  ;;  %v5121_v31 = vpack.c.bf16 %v798_v51, %v797_v13  ;;  %v750_v8 = vld [vmem:[%s8738_s4 + $0x28] sm:$0xff]  ;;  %5088 = vmatpush3.bf16.msra.mxu0 %v5087_v30  ;;  %v752_v26 = vld [vmem:[%s8738_s4 + $0x38] sm:$0xff]  ;;  %v801_v38 = vld [vmem:[%s8738_s4 + $0x1c0] sm:$0xff] }
 0x10e   :  { %5412 = vrot.lane.b32.xlu1 %v5411_v15, %s5782_s30  ;;  %v6493_v1 = vadd.f32 %v689_v12, %v683_v58  ;;  %v6495_v50 = vadd.f32 %v689_v12, %v684_v55  ;;  %5116 = vmatpush3.bf16.msra.mxu1 %v5115_v49  ;;  %v765_v12 = vld [vmem:[%s8738_s4 + $0xa0] sm:$0xff]  ;;  %v782_v58 = vld [vmem:[%s8738_s4 + $0x128] sm:$0xff]  ;;  %v5091_v55 = vpack.c.bf16 %v750_v8, %v749_v37  ;;  %v755_v37 = vld [vmem:[%s8738_s4 + $0x50] sm:$0xff] }
 0x10f   :  { %v5089_v53 = vpack.c.bf16 %v766_v33, %v765_v12  ;;  %5118 = vmatprep.subr.bf16.mxu1 %v5117_v25  ;;  %v781_v15 = vld [vmem:[%s8738_s4 + $0x120] sm:$0xff]  ;;  %v770_v49 = vld [vmem:[%s8738_s4 + $0xc8] sm:$0xff]  ;;  %v5095_v42 = vpack.c.bf16 %v752_v26, %v751_v54  ;;  %v772_v12 = vld [vmem:[%s8738_s4 + $0xd8] sm:$0xff] }
 0x110   :  { %v5416_v59 = vpack.i.bf16 %v6495_v50, %v6493_v1  ;;  %v5123_v11 = vpack.c.bf16 %v782_v58, %v781_v15  ;;  %v802_v39 = vld [vmem:[%s8738_s4 + $0x1c8] sm:$0xff]  ;;  %v5097_v47 = vpack.c.bf16 %v770_v49, %v769_v60  ;;  %v753_v25 = vld [vmem:[%s8738_s4 + $0x40] sm:$0xff]  ;;  %v803_v33 = vld [vmem:[%s8738_s4 + $0x1d0] sm:$0xff]  ;;  %v5101_v51 = vpack.c.bf16 %v772_v12, %v771_v35 }
 0x111   :  { %5090 = vmatprep.subr.bf16.mxu0 %v5089_v53  ;;  %v754_v28 = vld [vmem:[%s8738_s4 + $0x48] sm:$0xff]  ;;  %v785_v46 = vld [vmem:[%s8738_s4 + $0x140] sm:$0xff]  ;;  %v5129_v18 = vpack.c.bf16 %v802_v39, %v801_v38  ;;  %v787_v8 = vld [vmem:[%s8738_s4 + $0x150] sm:$0xff] }
 0x112   :  { %5417 = vrot.lane.b32.xlu1 %v5416_v59, %s5782_s30  ;;  %5120 = vmatpush3.bf16.msra.mxu1 %v5119_v52  ;;  %v5127_v59 = vpack.c.bf16 %v784_v22, %v783_v56  ;;  %v786_v30 = vld [vmem:[%s8738_s4 + $0x148] sm:$0xff]  ;;  %v804_v52 = vld [vmem:[%s8738_s4 + $0x1d8] sm:$0xff]  ;;  %v5099_v53 = vpack.c.bf16 %v754_v28, %v753_v25  ;;  %v805_v29 = vld [vmem:[%s8738_s4 + $0x1e0] sm:$0xff] }
 0x113   :  { %5122 = vmatprep.subr.bf16.mxu1 %v5121_v31  ;;  %5092 = vmatpush3.bf16.msra.mxu0 %v5091_v55  ;;  %v5131_v13 = vpack.c.bf16 %v786_v30, %v785_v46  ;;  %v756_v31 = vld [vmem:[%s8738_s4 + $0x58] sm:$0xff]  ;;  %v5133_v15 = vpack.c.bf16 %v804_v52, %v803_v33  ;;  %v773_v55 = vld [vmem:[%s8738_s4 + $0xe0] sm:$0xff]  ;;  %v774_v45 = vld [vmem:[%s8738_s4 + $0xe8] sm:$0xff] }
 0x114   :  { %5094 = vmatprep.subr.bf16.mxu0 %v5093_v40  ;;  %v788_v58 = vld [vmem:[%s8738_s4 + $0x158] sm:$0xff]  ;;  %v806_v23 = vld [vmem:[%s8738_s4 + $0x1e8] sm:$0xff]  ;;  %v5105_v14 = vpack.c.bf16 %v774_v45, %v773_v55  ;;  %v757_v54 = vld [vmem:[%s8738_s4 + $0x60] sm:$0xff] }
 0x115   :  { %v5135_v40 = vpack.c.bf16 %v788_v58, %v787_v8  ;;  %v758_v26 = vld [vmem:[%s8738_s4 + $0x68] sm:$0xff]  ;;  %v789_v56 = vld [vmem:[%s8738_s4 + $0x160] sm:$0xff]  ;;  %v775_v38 = vld [vmem:[%s8738_s4 + $0xf0] sm:$0xff] }
 0x116   :  { %5124 = vmatpush3.bf16.msra.mxu1 %v5123_v11  ;;  %v5103_v11 = vpack.c.bf16 %v756_v31, %v755_v37  ;;  %v790_v22 = vld [vmem:[%s8738_s4 + $0x168] sm:$0xff]  ;;  %v5107_v60 = vpack.c.bf16 %v758_v26, %v757_v54  ;;  %v776_v39 = vld [vmem:[%s8738_s4 + $0xf8] sm:$0xff]  ;;  %v759_v25 = vld [vmem:[%s8738_s4 + $0x70] sm:$0xff] }
 0x117   :  { %5126 = vmatprep.subr.bf16.mxu1 %v5125_v61  ;;  %5096 = vmatpush3.bf16.msra.mxu0 %v5095_v42  ;;  %v5137_v61 = vpack.c.bf16 %v806_v23, %v805_v29  ;;  %v5139_v49 = vpack.c.bf16 %v790_v22, %v789_v56  ;;  %v807_v42 = vld [vmem:[%s8738_s4 + $0x1f0] sm:$0xff]  ;;  %v760_v28 = vld [vmem:[%s8738_s4 + $0x78] sm:$0xff] }
 0x118   :  { %5098 = vmatprep.subr.bf16.mxu0 %v5097_v47  ;;  %v808_v47 = vld [vmem:[%s8738_s4 + $0x1f8] sm:$0xff]  ;;  %v5111_v30 = vpack.c.bf16 %v760_v28, %v759_v25  ;;  %v791_v35 = vld [vmem:[%s8738_s4 + $0x170] sm:$0xff] }
 0x119   :  { %v792_v12 = vld [vmem:[%s8738_s4 + $0x178] sm:$0xff]  ;;  %s5871_s4 = smov 101  }
 0x11a   :  { %5128 = vmatpush3.bf16.msra.mxu1 %v5127_v59  ;;  %v5109_v59 = vpack.c.bf16 %v776_v39, %v775_v38 }
 0x11b   :  { %5130 = vmatprep.subr.bf16.mxu1 %v5129_v18  ;;  %5100 = vmatpush3.bf16.msra.mxu0 %v5099_v53  ;;  %v5141_v18 = vpack.c.bf16 %v808_v47, %v807_v42  ;;  %v5143_v53 = vpack.c.bf16 %v792_v12, %v791_v35 }
 0x11c   :  { %5102 = vmatprep.subr.bf16.mxu0 %v5101_v51 }
 0x11e   :  { %5132 = vmatpush3.bf16.msra.mxu1 %v5131_v13 }
 0x11f   :  { %5134 = vmatprep.subr.bf16.mxu1 %v5133_v15  ;;  %5104 = vmatpush3.bf16.msra.mxu0 %v5103_v11 }
 0x120   :  { %5106 = vmatprep.subr.bf16.mxu0 %v5105_v14 }
 0x122   :  { %5136 = vmatpush3.bf16.msra.mxu1 %v5135_v40 }
 0x123   :  { %5138 = vmatprep.subr.bf16.mxu1 %v5137_v61  ;;  %5108 = vmatpush3.bf16.msra.mxu0 %v5107_v60 }
 0x124   :  { %5110 = vmatprep.subr.bf16.mxu0 %v5109_v59 }
 0x126   :  { %5140 = vmatpush3.bf16.msra.mxu1 %v5139_v49 }
 0x127   :  { %5142 = vmatprep.subr.bf16.mxu1 %v5141_v18  ;;  %5112 = vmatpush3.bf16.msra.mxu0 %v5111_v30 }
 0x12a   :  { %5144 = vmatpush3.bf16.msra.mxu1 %v5143_v53 }
 0x180   :  { %v5413_v46 = vpop.permute.xlu1 %5412 }
 0x181   :  { %v5415_v33 = vunpack.i.h.bf16 %v5413_v46  ;;  %v5414_v52 = vunpack.i.l.bf16 %v5413_v46 }
 0x183   :  { %v707_v31 = vsel %vm401_vm4, %v5414_v52, %v5415_v33 }
 0x184   :  { %v5418_v13 = vpop.permute.xlu1 %5417  ;;  %v716_v29 = vmax.f32 %v6468_v41, %v707_v31  ;;  %v8808_v31 = vmov 11  }
 0x185   :  { %v5420_v51 = vunpack.i.h.bf16 %v5418_v13  ;;  %v5419_v37 = vunpack.i.l.bf16 %v5418_v13  ;;  %v949_v13 = vld [vmem:[%s8744_s10] sm:$0xf] }
 0x187   :  { %v709_v8 = vsel %vm401_vm4, %v5419_v37, %v5420_v51  ;;  %v715_v15 = vsel %vm401_vm4, %v5420_v51, %v5414_v52  ;;  %v708_v58 = vsel %vm401_vm4, %v5415_v33, %v5419_v37  ;;  %v6700_v51 = vld [vmem:[%s8742_s8] sm:$0xff]  ;;  %v8817_v37 = vmov 10  }
 0x188   :  { %v718_v55 = vmax.f32 %v6493_v1, %v709_v8  ;;  %v719_v45 = vmax.f32 %v6495_v50, %v715_v15  ;;  %v717_v23 = vmax.f32 %v6470_v43, %v708_v58  ;;  %v8807_v8 = vmov 12  }
 0x189   :  { %v8815_v15 = vmov 14   ;;  %v8805_v58 = vmov 16  }
 0x18a   :  { %v5426_v11 = vpack.i.bf16 %v719_v45, %v718_v55  ;;  %v5421_v40 = vpack.i.bf16 %v717_v23, %v716_v29 }
 0x18c   :  { %5427 = vrot.lane.b32.xlu1 %v5426_v11, %s8892_s13  ;;  %5422 = vrot.lane.b32.xlu0 %v5421_v40, %s8892_s13  ;;  %v8812_v11 = vmov 23   ;;  %v8798_v40 = vmov 25   ;;  %s5912_s13 = smov 28  }
 0x1fe   :  { %v5428_v14 = vpop.permute.xlu1 %5427  ;;  %v5423_v54 = vpop.permute.xlu0 %5422 }
 0x1ff   :  { %v5430_v26 = vunpack.i.h.bf16 %v5428_v14  ;;  %v5429_v61 = vunpack.i.l.bf16 %v5428_v14  ;;  %v5425_v56 = vunpack.i.h.bf16 %v5423_v54  ;;  %v5424_v22 = vunpack.i.l.bf16 %v5423_v54 }
 0x201   :  { %v733_v1 = vsel %vm547_vm6, %v5425_v56, %v5429_v61  ;;  %v740_v50 = vsel %vm547_vm6, %v5430_v26, %v5424_v22  ;;  %v732_v41 = vsel %vm547_vm6, %v5424_v22, %v5425_v56  ;;  %v734_v43 = vsel %vm547_vm6, %v5429_v61, %v5430_v26 }
 0x202   :  { %v742_v60 = vmax.f32 %v717_v23, %v733_v1  ;;  %v744_v49 = vmax.f32 %v719_v45, %v740_v50  ;;  %v741_v38 = vmax.f32 %v716_v29, %v732_v41  ;;  %v743_v39 = vmax.f32 %v718_v55, %v734_v43 }
 0x203   :  { %v8814_v55 = vmov 17   ;;  %v8803_v45 = vmov 19   ;;  %v8802_v29 = vmov 21   ;;  %v8801_v23 = vmov 22  }
 0x204   :  { %873 = vmatprep.mubr.f32.mxu0 %v742_v60  ;;  %943 = vmatprep.mubr.f32.mxu1 %v744_v49  ;;  %v8809_v22 = vmov 9   ;;  %v8816_v1 = vmov 13   ;;  %v8811_v50 = vmov 26   ;;  %v8806_v41 = vmov 15  }
 0x205   :  { %874 = vmatmul.mubr.f32.vlgmr.msra.gmra.mrb[0].mxu0 %v741_v38  ;;  %944 = vmatmul.mubr.f32.vlgmr.msra.gmra.mrb[0].mxu1 %v743_v39  ;;  %v8804_v43 = vmov 18   ;;  %v8813_v60 = vmov 20   ;;  %v8800_v49 = vmov 24  }
 0x2d8   :  { %v4975_v42 = vpop.f32.mrb[0].mxu0  ;;  %v5010_v59 = vpop.f32.mrb[0].mxu1 }
 0x2d9   :  { %v4976_v47 = vpop.f32.mrb[1].mxu0  ;;  %v5011_v25 = vpop.f32.mrb[1].mxu1 }
 0x2da   :  { %v4977_v28 = vadd.f32 %v4976_v47, %v4975_v42  ;;  %v5012_v46 = vadd.f32 %v5011_v25, %v5010_v59  ;;  %v8795_v25 = vmov 27  }
 0x2dc   :  { %v946_v18 = vadd.f32 %v5012_v46, %v4977_v28  ;;  %v8790_v28 = vmov 28   ;;  %v8797_v46 = vmov 30  }
 0x2de   :  { %v951_v30 = vsel %vm950_vm8, %v946_v18, 0.0 }
 0x2df   :  { %952 = vadd.xlane.f32.xlu0 %v951_v30  ;;  %v8789_v30 = vmov 31  }
 0x36c   :  { %v953_v35 = vpop.xlane.xlu0 %952 }
 0x36d   :  { %v955_v12 = vmul.f32 0.0078125, %v953_v35  ;;  %v8788_v35 = vmov 32  }
 0x36f   :  { %v6689_v33 = vsub.f32 %v946_v18, %v955_v12  ;;  %v8799_v18 = vmov 29   ;;  %v8796_v12 = vmov 33  }
 0x371   :  { %v957_v52 = vmul.f32 %v6689_v33, %v6689_v33 }
 0x373   :  { %v958_v53 = vsel %vm950_vm8, %v957_v52, 0.0  ;;  %v8787_v52 = vmov 34  }
 0x374   :  { %959 = vadd.xlane.f32.xlu1 %v958_v53  ;;  %v8782_v53 = vmov 40  }
 0x385   :  { %973 = vperm.xlu1 %5431, %v949_v13  }
 0x389   :  { %5433 = vset.pattern.permute.xlu1 %v8817_v37 }
 0x38a   :  { %1001 = vperm.xlu1 %5433, %v6700_v51  }
 0x38e   :  { %5434 = vset.pattern.permute.xlu1 %v8808_v31 }
 0x38f   :  { %1011 = vperm.xlu1 %5434, %v6700_v51  }
 0x393   :  { %5435 = vset.pattern.permute.xlu1 %v8807_v8 }
 0x394   :  { %1021 = vperm.xlu1 %5435, %v6700_v51  }
 0x398   :  { %5437 = vset.pattern.permute.xlu1 %v8815_v15 }
 0x399   :  { %1050 = vperm.xlu1 %5437, %v6700_v51  }
 0x39d   :  { %5439 = vset.pattern.permute.xlu1 %v8805_v58 }
 0x39e   :  { %1070 = vperm.xlu1 %5439, %v6700_v51  }
 0x3a2   :  { %5440 = vset.pattern.permute.xlu1 %v8814_v55 }
 0x3a3   :  { %1089 = vperm.xlu1 %5440, %v6700_v51  }
 0x3a7   :  { %5442 = vset.pattern.permute.xlu1 %v8803_v45 }
 0x3a8   :  { %1109 = vperm.xlu1 %5442, %v6700_v51  }
 0x3ac   :  { %5444 = vset.pattern.permute.xlu1 %v8802_v29  ;;  %v4927_v29 = vld [vmem:[#allocation2 + $0x1] ss:$0 sm:$0xff] }
 0x3ad   :  { %1138 = vperm.xlu1 %5444, %v6700_v51  }
 0x3b1   :  { %5445 = vset.pattern.permute.xlu1 %v8801_v23 }
 0x3b2   :  { %1148 = vperm.xlu1 %5445, %v6700_v51  }
 0x3b6   :  { %5446 = vset.pattern.permute.xlu1 %v8812_v11 }
 0x3b7   :  { %1158 = vperm.xlu1 %5446, %v6700_v51  }
 0x3bb   :  { %5448 = vset.pattern.permute.xlu1 %v8798_v40 }
 0x3bc   :  { %1178 = vperm.xlu1 %5448, %v6700_v51  }
 0x3c0   :  { %5449 = vset.pattern.permute.xlu1 %v8811_v50 }
 0x401   :  { %v960_v14 = vpop.xlane.xlu1 %959 }
 0x402   :  { %v961_v54 = vmul.f32 0.0078125, %v960_v14  ;;  %v8784_v14 = vmov 37  }
 0x404   :  { %v962_v26 = vadd.f32 1e-05, %v961_v54  ;;  %v8781_v54 = vmov 44  }
 0x405   :  { %v974_v42 = vpop.permute.xlu1 %973 }
 0x406   :  { %5689 = vrsqrt.f32 %v962_v26  ;;  %v8783_v26 = vmov 38  }
 0x410   :  { %v5690_v61 = vpop.eup %5689 }
 0x411   :  { %v964_v56 = vmul.f32 %v5690_v61, %v949_v13  ;;  %v8786_v13 = vmov 35   ;;  %v1002_v61 = vpop.permute.xlu1 %1001 }
 0x413   :  { %967 = vperm.xlu0 %5410, %v964_v56   ;;  %v8963_v56 = vmov 2  }
 0x417   :  { %5432 = vset.pattern.permute.xlu0 %v8809_v22 }
 0x418   :  { %991 = vperm.xlu0 %5432, %v6700_v51  }
 0x41c   :  { %5436 = vset.pattern.permute.xlu0 %v8816_v1 }
 0x41d   :  { %1040 = vperm.xlu0 %5436, %v6700_v51  }
 0x421   :  { %5438 = vset.pattern.permute.xlu0 %v8806_v41 }
 0x422   :  { %1060 = vperm.xlu0 %5438, %v6700_v51  }
 0x426   :  { %5441 = vset.pattern.permute.xlu0 %v8804_v43 }
 0x427   :  { %1099 = vperm.xlu0 %5441, %v6700_v51  }
 0x42b   :  { %5443 = vset.pattern.permute.xlu0 %v8813_v60 }
 0x42c   :  { %1119 = vperm.xlu0 %5443, %v6700_v51  }
 0x430   :  { %5447 = vset.pattern.permute.xlu0 %v8800_v49 }
 0x492   :  { %v968_v38 = vpop.permute.xlu0 %967 }
 0x493   :  { %v970_v39 = vmul.f32 %v968_v38, %v6689_v33  ;;  %v8794_v33 = vmov 36   ;;  %v8792_v38 = vmov 39  }
 0x495   :  { %v976_v59 = vadd.f32 %v974_v42, %v970_v39  ;;  %v1012_v39 = vpop.permute.xlu1 %1011  ;;  %v8785_v42 = vmov 41  }
 0x497   :  { %v6737_v47 = vmax.f32 %v976_v59, 0.0 }
 0x499   :  { %1030 = vrot.lane.b32.xlu1 %v6737_v47, %s5770_s28  ;;  %980 = vrot.lane.b32.xlu0 %v6737_v47, %s5807_s3  ;;  %v1022_v59 = vpop.permute.xlu1 %1021 }
 0x49d   :  { %1188 = vperm.xlu1 %5449, %v6700_v51   ;;  %1168 = vperm.xlu0 %5447, %v6700_v51  }
 0x4a1   :  { %1079 = vrot.lane.b32.xlu1 %v6737_v47, %s5808_s23  ;;  %5450 = vset.pattern.permute.xlu0 %v8795_v25 }
 0x4a2   :  { %1198 = vperm.xlu0 %5450, %v6700_v51   ;;  %5451 = vset.pattern.permute.xlu1 %v8790_v28 }
 0x4a5   :  { %1208 = vperm.xlu1 %5451, %v6700_v51  }
 0x4a6   :  { %1128 = vrot.lane.b32.xlu0 %v6737_v47, %s5780_s29 }
 0x4a7   :  { %5453 = vset.pattern.permute.xlu0 %v8797_v46 }
 0x4a9   :  { %5452 = vset.pattern.permute.xlu1 %v8799_v18  ;;  %v4926_v18 = vld [vmem:[#allocation2] ss:$0 sm:$0xff] }
 0x4aa   :  { %1227 = vperm.xlu1 %5452, %v6700_v51   ;;  %1237 = vperm.xlu0 %5453, %v6700_v51  }
 0x4ae   :  { %5454 = vset.pattern.permute.xlu1 %v8789_v30  ;;  %5455 = vset.pattern.permute.xlu0 %v8788_v35  ;;  %v992_v30 = vpop.permute.xlu0 %991 }
 0x4af   :  { %1247 = vperm.xlu1 %5454, %v6700_v51   ;;  %1257 = vperm.xlu0 %5455, %v6700_v51  }
 0x4b3   :  { %5456 = vset.pattern.permute.xlu1 %v8796_v12  ;;  %5459 = vset.pattern.permute.xlu0 %v8794_v33 }
 0x4b4   :  { %1276 = vperm.xlu1 %5456, %v6700_v51   ;;  %1306 = vperm.xlu0 %5459, %v6700_v51  }
 0x4b8   :  { %5457 = vset.pattern.permute.xlu1 %v8787_v52  ;;  %1266 = vrot.lane.b32.xlu0 %v6737_v47, %s5818_s24  ;;  %v8965_v52 = vmov 3  }
 0x4b9   :  { %1286 = vperm.xlu1 %5457, %v6700_v51   ;;  %5463 = vset.pattern.permute.xlu0 %v8782_v53  ;;  %v1051_v53 = vpop.permute.xlu1 %1050 }
 0x4bc   :  { %1315 = vrot.lane.b32.xlu0 %v6737_v47, %s5820_s25 }
 0x4bd   :  { %1217 = vrot.lane.b32.xlu1 %v6737_v47, %s5782_s30 }
 0x4be   :  { %5458 = vset.pattern.permute.xlu1 %v8786_v13  ;;  %v1071_v13 = vpop.permute.xlu1 %1070 }
 0x4c0   :  { %1355 = vperm.xlu0 %5463, %v6700_v51  }
 0x4c1   :  { %1296 = vperm.xlu1 %5458, %v6700_v51  }
 0x4c2   :  { %v1090_v35 = vpop.permute.xlu1 %1089 }
 0x4c4   :  { %1364 = vrot.lane.b32.xlu0 %v6737_v47, %s5822_s15 }
 0x4c5   :  { %5460 = vset.pattern.permute.xlu1 %v8784_v14  ;;  %5467 = vset.pattern.permute.xlu0 %v8781_v54  ;;  %v8791_v54 = vmov 42   ;;  %v6797_v14 = vld [vmem:[%s8743_s9] sm:$0xff] }
 0x4c6   :  { %1325 = vperm.xlu1 %5460, %v6700_v51   ;;  %v1110_v28 = vpop.permute.xlu1 %1109 }
 0x4c8   :  { %1404 = vperm.xlu0 %5467, %v6700_v51  }
 0x4ca   :  { %5461 = vset.pattern.permute.xlu1 %v8783_v26  ;;  %v8793_v26 = vmov 43  }
 0x4cb   :  { %1335 = vperm.xlu1 %5461, %v6700_v51  }
 0x4cc   :  { %5475 = vset.pattern.permute.xlu0 %v8963_v56 }
 0x4cf   :  { %5462 = vset.pattern.permute.xlu1 %v8792_v38  ;;  %v1139_v38 = vpop.permute.xlu1 %1138 }
 0x4d0   :  { %1345 = vperm.xlu1 %5462, %v6700_v51  }
 0x4d3   :  { %v6802_v33 = vpop.permute.xlu1 %1148 }
 0x4d4   :  { %5464 = vset.pattern.permute.xlu1 %v8785_v42  ;;  %v8964_v42 = vmov 1  }
 0x4d5   :  { %1374 = vperm.xlu1 %5464, %v6700_v51  }
 0x4d7   :  { %v6804_v12 = vpop.permute.xlu1 %1158 }
 0x4d9   :  { %5465 = vset.pattern.permute.xlu1 %v8791_v54  ;;  %v1041_v54 = vpop.permute.xlu0 %1040 }
 0x4da   :  { %1384 = vperm.xlu1 %5465, %v6700_v51  }
 0x4db   :  { %v6806_v40 = vpop.permute.xlu1 %1178 }
 0x4de   :  { %5466 = vset.pattern.permute.xlu1 %v8793_v26  ;;  %v1061_v26 = vpop.permute.xlu0 %1060 }
 0x4df   :  { %1394 = vperm.xlu1 %5466, %v6700_v51  }
 0x4e2   :  { %v1100_v25 = vpop.permute.xlu0 %1099 }
 0x4e3   :  { %5468 = vset.pattern.permute.xlu1 %v8964_v42 }
 0x4e4   :  { %1416 = vperm.xlu1 %5468, %v6797_v14  }
 0x4e6   :  { %v1120_v46 = vpop.permute.xlu0 %1119 }
 0x4e8   :  { %5469 = vset.pattern.permute.xlu1 %v8965_v52 }
 0x50b   :  { %v981_v49 = vpop.permute.xlu0 %980  ;;  %v1031_v45 = vpop.permute.xlu1 %1030 }
 0x50c   :  { %v988_v23 = vmul.f32 %v4926_v18, %v981_v49  ;;  %v1038_v8 = vmul.f32 %v4927_v29, %v1031_v45 }
 0x50e   :  { %v997_v43 = vrot.slane %v988_v23, %v6024_v5  ;;  %v1007_v58 = vrot.slane %v988_v23, %v6039_v10  ;;  %v1017_v41 = vrot.slane %v988_v23, %v6036_v9  ;;  %v1027_v50 = vrot.slane %v988_v23, %v6021_v4 }
 0x50f   :  { %v1046_v55 = vrot.slane %v1038_v8, %v6024_v5  ;;  %v1056_v37 = vrot.slane %v1038_v8, %v6039_v10  ;;  %v1066_v62 = vrot.slane %v1038_v8, %v6036_v9 }
 0x510   :  { %v998_v31 = vmul.f32 %v997_v43, %v992_v30  ;;  %v1008_v22 = vmul.f32 %v1007_v58, %v1002_v61  ;;  %v1018_v60 = vmul.f32 %v1017_v41, %v1012_v39  ;;  %v1028_v1 = vmul.f32 %v1027_v50, %v1022_v59  ;;  %v4928_v58 = vld [vmem:[#allocation2 + $0x2] ss:$0 sm:$0xff] }
 0x511   :  { %v1047_v18 = vmul.f32 %v1046_v55, %v1041_v54  ;;  %v1057_v24 = vmul.f32 %v1056_v37, %v1051_v53  ;;  %v1067_v43 = vmul.f32 %v1066_v62, %v1061_v26 }
 0x512   :  { %v1009_v11 = vadd.f32 %v1008_v22, %v998_v31  ;;  %v1076_v31 = vrot.slane %v1038_v8, %v6021_v4 }
 0x514   :  { %v1019_v15 = vadd.f32 %v1018_v60, %v1009_v11  ;;  %v1077_v50 = vmul.f32 %v1076_v31, %v1071_v13 }
 0x516   :  { %v1029_v49 = vadd.f32 %v1028_v1, %v1019_v15  ;;  %v4929_v1 = vld [vmem:[#allocation2 + $0x3] ss:$0 sm:$0xff] }
 0x518   :  { %v1048_v16 = vadd.f32 %v1047_v18, %v1029_v49 }
 0x51a   :  { %v1058_v29 = vadd.f32 %v1057_v24, %v1048_v16 }
 0x51c   :  { %v1189_v32 = vpop.permute.xlu1 %1188  ;;  %v1169_v45 = vpop.permute.xlu0 %1168  ;;  %v1068_v22 = vadd.f32 %v1067_v43, %v1058_v29 }
 0x51e   :  { %v1078_v60 = vadd.f32 %v1077_v50, %v1068_v22 }
 0x520   :  { %v1080_v23 = vpop.permute.xlu1 %1079 }
 0x521   :  { %v1087_v41 = vmul.f32 %v4928_v58, %v1080_v23  ;;  %v1199_v11 = vpop.permute.xlu0 %1198 }
 0x523   :  { %v1095_v15 = vrot.slane %v1087_v41, %v6024_v5  ;;  %v1105_v55 = vrot.slane %v1087_v41, %v6039_v10  ;;  %v1115_v53 = vrot.slane %v1087_v41, %v6036_v9  ;;  %v1125_v8 = vrot.slane %v1087_v41, %v6021_v4 }
 0x524   :  { %v1209_v37 = vpop.permute.xlu1 %1208 }
 0x525   :  { %v1096_v30 = vmul.f32 %v1095_v15, %v1090_v35  ;;  %v1129_v24 = vpop.permute.xlu0 %1128  ;;  %v1106_v54 = vmul.f32 %v1105_v55, %v1100_v25  ;;  %v1116_v61 = vmul.f32 %v1115_v53, %v1110_v28  ;;  %v1126_v49 = vmul.f32 %v1125_v8, %v1120_v46  ;;  %v4930_v8 = vld [vmem:[#allocation2 + $0x5] ss:$0 sm:$0xff] }
 0x526   :  { %v1136_v16 = vmul.f32 %v4929_v1, %v1129_v24  ;;  %v1184_v28 = vrot.slane %v6737_v47, %v6024_v5 }
 0x527   :  { %v1097_v62 = vadd.f32 %v1096_v30, %v1078_v60  ;;  %v1194_v60 = vrot.slane %v6737_v47, %v6039_v10 }
 0x528   :  { %v1144_v13 = vrot.slane %v1136_v16, %v6024_v5  ;;  %v1154_v18 = vrot.slane %v1136_v16, %v6039_v10  ;;  %v1164_v43 = vrot.slane %v1136_v16, %v6036_v9  ;;  %v1174_v22 = vrot.slane %v1136_v16, %v6021_v4 }
 0x529   :  { %v1107_v26 = vadd.f32 %v1106_v54, %v1097_v62  ;;  %v1228_v39 = vpop.permute.xlu1 %1227  ;;  %v1238_v29 = vpop.permute.xlu0 %1237  ;;  %v1195_v53 = vmul.f32 %v1194_v60, %v1189_v32  ;;  %v1204_v62 = vrot.slane %v6737_v47, %v6036_v9 }
 0x52a   :  { %v1145_v35 = vmul.f32 %v1144_v13, %v1139_v38  ;;  %v1155_v25 = vmul.f32 %v1154_v18, %v6802_v33  ;;  %v1165_v50 = vmul.f32 %v1164_v43, %v6804_v12  ;;  %v1175_v55 = vmul.f32 %v1174_v22, %v1169_v45  ;;  %v4931_v13 = vld [vmem:[#allocation2 + $0x6] ss:$0 sm:$0xff] }
 0x52b   :  { %v1117_v59 = vadd.f32 %v1116_v61, %v1107_v26  ;;  %v1185_v38 = vmul.f32 %v1184_v28, %v6806_v40  ;;  %v1205_v12 = vmul.f32 %v1204_v62, %v1199_v11  ;;  %v1214_v45 = vrot.slane %v6737_v47, %v6021_v4 }
 0x52d   :  { %v1127_v58 = vadd.f32 %v1126_v49, %v1117_v59  ;;  %v1215_v49 = vmul.f32 %v1214_v45, %v1209_v37 }
 0x52e   :  { %v1248_v31 = vpop.permute.xlu1 %1247  ;;  %v1258_v46 = vpop.permute.xlu0 %1257 }
 0x52f   :  { %v1146_v23 = vadd.f32 %v1145_v35, %v1127_v58 }
 0x531   :  { %v1156_v41 = vadd.f32 %v1155_v25, %v1146_v23 }
 0x533   :  { %v1166_v15 = vadd.f32 %v1165_v50, %v1156_v41  ;;  %v1277_v1 = vpop.permute.xlu1 %1276  ;;  %v1307_v24 = vpop.permute.xlu0 %1306 }
 0x535   :  { %v1176_v30 = vadd.f32 %v1175_v55, %v1166_v15 }
 0x537   :  { %v1186_v33 = vadd.f32 %v1185_v38, %v1176_v30  ;;  %v1267_v59 = vpop.permute.xlu0 %1266  ;;  %v4932_v30 = vld [vmem:[#allocation2 + $0x7] ss:$0 sm:$0xff] }
 0x538   :  { %v1287_v16 = vpop.permute.xlu1 %1286  ;;  %v1274_v35 = vmul.f32 %v4931_v13, %v1267_v59 }
 0x539   :  { %v1196_v54 = vadd.f32 %v1195_v53, %v1186_v33 }
 0x53a   :  { %v1282_v41 = vrot.slane %v1274_v35, %v6024_v5  ;;  %v1292_v55 = vrot.slane %v1274_v35, %v6039_v10  ;;  %v1302_v62 = vrot.slane %v1274_v35, %v6036_v9 }
 0x53b   :  { %v1206_v61 = vadd.f32 %v1205_v12, %v1196_v54  ;;  %v1316_v47 = vpop.permute.xlu0 %1315 }
 0x53c   :  { %v1218_v26 = vpop.permute.xlu1 %1217  ;;  %v1283_v33 = vmul.f32 %v1282_v41, %v1277_v1 }
 0x53d   :  { %v1225_v40 = vmul.f32 %v4930_v8, %v1218_v26  ;;  %v1216_v43 = vadd.f32 %v1215_v49, %v1206_v61  ;;  %v1323_v8 = vmul.f32 %v4932_v30, %v1316_v47  ;;  %v1312_v26 = vrot.slane %v1274_v35, %v6021_v4  ;;  %v1431_v30 = vld [vmem:[%s8739_s5 + $0x8] sm:$0xff] }
 0x53f   :  { %v1233_v32 = vrot.slane %v1225_v40, %v6024_v5  ;;  %v1243_v18 = vrot.slane %v1225_v40, %v6039_v10  ;;  %v1253_v25 = vrot.slane %v1225_v40, %v6036_v9  ;;  %v1263_v28 = vrot.slane %v1225_v40, %v6021_v4 }
 0x540   :  { %v1297_v58 = vpop.permute.xlu1 %1296  ;;  %v1313_v40 = vmul.f32 %v1312_v26, %v1307_v24  ;;  %v1331_v13 = vrot.slane %v1323_v8, %v6024_v5  ;;  %v1351_v35 = vrot.slane %v1323_v8, %v6036_v9 }
 0x541   :  { %v1234_v23 = vmul.f32 %v1233_v32, %v1228_v39  ;;  %v1244_v22 = vmul.f32 %v1243_v18, %v1238_v29  ;;  %v1254_v50 = vmul.f32 %v1253_v25, %v1248_v31  ;;  %v1264_v60 = vmul.f32 %v1263_v28, %v1258_v46  ;;  %v1356_v39 = vpop.permute.xlu0 %1355  ;;  %v4933_v46 = vld [vmem:[#allocation2 + $0x8] ss:$0 sm:$0xff] }
 0x542   :  { %v1293_v29 = vmul.f32 %v1292_v55, %v1287_v16  ;;  %v1303_v31 = vmul.f32 %v1302_v62, %v1297_v58  ;;  %v1341_v18 = vrot.slane %v1323_v8, %v6039_v10  ;;  %v8865_v62 = vmov 0.0|0.0  }
 0x543   :  { %v1235_v11 = vadd.f32 %v1234_v23, %v1216_v43  ;;  %v1361_v43 = vrot.slane %v1323_v8, %v6021_v4  ;;  %5145 = vmatprep.subr.bf16.mxu0 %v8865_v62  ;;  %5169 = vmatprep.subr.bf16.mxu1 %v8865_v62 }
 0x545   :  { %v1245_v15 = vadd.f32 %v1244_v22, %v1235_v11  ;;  %v1326_v37 = vpop.permute.xlu1 %1325  ;;  %v1365_v49 = vpop.permute.xlu0 %1364  ;;  %v1362_v24 = vmul.f32 %v1361_v43, %v1356_v39 }
 0x546   :  { %v1332_v1 = vmul.f32 %v1331_v13, %v1326_v37  ;;  %v1372_v16 = vmul.f32 %v4933_v46, %v1365_v49 }
 0x547   :  { %v1255_v38 = vadd.f32 %v1254_v50, %v1245_v15 }
 0x548   :  { %v1380_v47 = vrot.slane %v1372_v16, %v6024_v5  ;;  %v1390_v15 = vrot.slane %v1372_v16, %v6039_v10  ;;  %v1400_v39 = vrot.slane %v1372_v16, %v6036_v9 }
 0x549   :  { %v1265_v53 = vadd.f32 %v1264_v60, %v1255_v38  ;;  %v1430_v60 = vld [vmem:[%s8739_s5] sm:$0xff]  ;;  %v1405_v8 = vpop.permute.xlu0 %1404 }
 0x54a   :  { %v1336_v54 = vpop.permute.xlu1 %1335 }
 0x54b   :  { %v1284_v12 = vadd.f32 %v1283_v33, %v1265_v53  ;;  %v1342_v25 = vmul.f32 %v1341_v18, %v1336_v54  ;;  %v1432_v53 = vld [vmem:[%s8739_s5 + $0x10] sm:$0xff]  ;;  %v1410_v33 = vrot.slane %v1372_v16, %v6021_v4  ;;  %v5146_v54 = vpack.c.bf16 %v1431_v30, %v1430_v60  ;;  %v1437_v18 = vld [vmem:[%s8739_s5 + $0x38] sm:$0xff] }
 0x54d   :  { %v1294_v45 = vadd.f32 %v1293_v29, %v1284_v12  ;;  %v1433_v29 = vld [vmem:[%s8739_s5 + $0x18] sm:$0xff]  ;;  %5147 = vmatpush3.bf16.msra.mxu0 %v5146_v54  ;;  %v1411_v13 = vmul.f32 %v1410_v33, %v1405_v8  ;;  %v6917_v54 = vld [vmem:[%s8744_s10] sm:$0xff]  ;;  %v8885_v8 = vmov 46  }
 0x54e   :  { %5148 = vmatprep.subr.bf16.mxu0 %v8865_v62 }
 0x54f   :  { %v1304_v61 = vadd.f32 %v1303_v31, %v1294_v45  ;;  %v1346_v59 = vpop.permute.xlu1 %1345  ;;  %v5149_v31 = vpack.c.bf16 %v1433_v29, %v1432_v53  ;;  %v8887_v29 = vmov 45  }
 0x550   :  { %v1352_v22 = vmul.f32 %v1351_v35, %v1346_v59 }
 0x551   :  { %v1314_v32 = vadd.f32 %v1313_v40, %v1304_v61  ;;  %v1434_v61 = vld [vmem:[%s8739_s5 + $0x20] sm:$0xff]  ;;  %v1435_v40 = vld [vmem:[%s8739_s5 + $0x28] sm:$0xff]  ;;  %5150 = vmatpush3.bf16.msra.mxu0 %v5149_v31  ;;  %v8876_v31 = vmov 51  }
 0x552   :  { %5151 = vmatprep.subr.bf16.mxu0 %v8865_v62 }
 0x553   :  { %v1333_v23 = vadd.f32 %v1332_v1, %v1314_v32  ;;  %v5152_v32 = vpack.c.bf16 %v1435_v40, %v1434_v61  ;;  %v1436_v1 = vld [vmem:[%s8739_s5 + $0x30] sm:$0xff]  ;;  %v8883_v61 = vmov 52   ;;  %v8882_v40 = vmov 55  }
 0x554   :  { %v1375_v11 = vpop.permute.xlu1 %1374  ;;  %v5155_v16 = vpack.c.bf16 %v1437_v18, %v1436_v1  ;;  %v8833_v1 = vmov 64   ;;  %v8832_v18 = vmov 65  }
 0x555   :  { %v1343_v58 = vadd.f32 %v1342_v25, %v1333_v23  ;;  %v1381_v50 = vmul.f32 %v1380_v47, %v1375_v11  ;;  %5153 = vmatpush3.bf16.msra.mxu0 %v5152_v32  ;;  %v1438_v23 = vld [vmem:[%s8739_s5 + $0x40] sm:$0xff]  ;;  %v1439_v25 = vld [vmem:[%s8739_s5 + $0x48] sm:$0xff]  ;;  %v1440_v11 = vld [vmem:[%s8739_s5 + $0x50] sm:$0xff]  ;;  %v8840_v32 = vmov 62  }
 0x556   :  { %5154 = vmatprep.subr.bf16.mxu0 %v8865_v62  ;;  %v5158_v35 = vpack.c.bf16 %v1439_v25, %v1438_v23  ;;  %v8828_v23 = vmov 71  }
 0x557   :  { %v1353_v28 = vadd.f32 %v1352_v22, %v1343_v58  ;;  %v1441_v58 = vld [vmem:[%s8739_s5 + $0x58] sm:$0xff] }
 0x558   :  { %v5161_v22 = vpack.c.bf16 %v1441_v58, %v1440_v11 }
 0x559   :  { %v1363_v41 = vadd.f32 %v1362_v24, %v1353_v28  ;;  %v1385_v37 = vpop.permute.xlu1 %1384  ;;  %5156 = vmatpush3.bf16.msra.mxu0 %v5155_v16  ;;  %v1442_v24 = vld [vmem:[%s8739_s5 + $0x60] sm:$0xff]  ;;  %v1443_v28 = vld [vmem:[%s8739_s5 + $0x68] sm:$0xff]  ;;  %v8830_v16 = vmov 68  }
 0x55a   :  { %v1391_v38 = vmul.f32 %v1390_v15, %v1385_v37  ;;  %5157 = vmatprep.subr.bf16.mxu0 %v8865_v62  ;;  %v5164_v47 = vpack.c.bf16 %v1443_v28, %v1442_v24  ;;  %v8862_v37 = vmov 0.0   ;;  %v8853_v24 = vmov 72  }
 0x55b   :  { %v1382_v55 = vadd.f32 %v1381_v50, %v1363_v41  ;;  %v1444_v41 = vld [vmem:[%s8739_s5 + $0x70] sm:$0xff]  ;;  %v1445_v50 = vld [vmem:[%s8739_s5 + $0x78] sm:$0xff]  ;;  %5067 = vmatprep.mubr.msk.f32.mxu0 %vm5831_vm9, %v8862_v37  ;;  %5078 = vmatprep.mubr.msk.f32.mxu1 %vm5831_vm9, %v8862_v37  ;;  %v8826_v28 = vmov 74   ;;  %s5892_s5 = smov 97   ;;  %vm2195_vm9 = vcmask 228352  }
 0x55c   :  { %v5167_v15 = vpack.c.bf16 %v1445_v50, %v1444_v41  ;;  %v8824_v41 = vmov 77   ;;  %v8823_v50 = vmov 78  }
 0x55d   :  { %v1392_v26 = vadd.f32 %v1391_v38, %v1382_v55  ;;  %5159 = vmatpush3.bf16.msra.mxu0 %v5158_v35 }
 0x55e   :  { %v1395_v12 = vpop.permute.xlu1 %1394  ;;  %5160 = vmatprep.subr.bf16.mxu0 %v8865_v62 }
 0x55f   :  { %v1401_v45 = vmul.f32 %v1400_v39, %v1395_v12  ;;  %v8879_v12 = vmov 47  }
 0x561   :  { %v1402_v59 = vadd.f32 %v1401_v45, %v1392_v26  ;;  %5162 = vmatpush3.bf16.msra.mxu0 %v5161_v22  ;;  %v8878_v26 = vmov 48   ;;  %v8884_v45 = vmov 49  }
 0x562   :  { %5163 = vmatprep.subr.bf16.mxu0 %v8865_v62 }
 0x563   :  { %v1412_v46 = vadd.f32 %v1411_v13, %v1402_v59  ;;  %v1417_v49 = vpop.permute.xlu1 %1416  ;;  %v8872_v13 = vmov 56   ;;  %v8881_v59 = vmov 58  }
 0x565   :  { %v1419_v43 = vadd.f32 %v1417_v49, %v1412_v46  ;;  %5165 = vmatpush3.bf16.msra.mxu0 %v5164_v47  ;;  %v8868_v46 = vmov 59   ;;  %v8842_v49 = vmov 61   ;;  %v8825_v47 = vmov 75  }
 0x566   :  { %5166 = vmatprep.subr.bf16.mxu0 %v8865_v62  ;;  %v8870_v62 = vmov 99  }
 0x567   :  { %1421 = vrot.lane.b32.xlu1 %v1419_v43, %s5782_s30 }
 0x569   :  { %5168 = vmatpush3.bf16.msra.mxu0 %v5167_v15 }
 0x5d9   :  { %v1422_v55 = vpop.permute.xlu1 %1421 }
 0x5da   :  { %v1424_v38 = vmax.f32 %v1419_v43, %v1422_v55  ;;  %v8859_v43 = vmov 67  }
 0x5dc   :  { %1426 = vrot.lane.b32.xlu0 %v1424_v38, %s5820_s25 }
 0x64e   :  { %v1427_v60 = vpop.permute.xlu0 %1426 }
 0x64f   :  { %v1429_v30 = vmax.f32 %v1424_v38, %v1427_v60 }
 0x651   :  { %5068 = vmatmul.mubr.f32.vlgmr.msra.gmra.mrb[2].mxu0 %v1429_v30 }
 0x652   :  { %3904 = vmatprep.mubr.f32.mxu0 %v8862_v37  ;;  %v8966_v37 = vmov 5  }
 0x724   :  { %v1512_v53 = vpop.f32.mrb[2].mxu0 }
 0x725   :  { %v5069_v33 = vpop.f32.mrb[3].mxu0  ;;  %v1518_v39 = vsel %vm1517_vm10, %v1512_v53, 0.0 }
 0x726   :  { %1519 = vadd.xlane.f32.xlu1 %v1518_v39  ;;  %v8875_v33 = vmov 53   ;;  %v8822_v39 = vmov 80  }
 0x737   :  { %1540 = vperm.xlu1 %5469, %v6917_v54  }
 0x73b   :  { %5470 = vset.pattern.permute.xlu1 %v8887_v29 }
 0x73c   :  { %1561 = vperm.xlu1 %5470, %v6700_v51  }
 0x740   :  { %5471 = vset.pattern.permute.xlu1 %v8885_v8  ;;  %v8894_v8 = vmov 107  }
 0x741   :  { %1571 = vperm.xlu1 %5471, %v6700_v51  }
 0x745   :  { %5472 = vset.pattern.permute.xlu1 %v8879_v12  ;;  %v8888_v12 = vmov 106  }
 0x746   :  { %1581 = vperm.xlu1 %5472, %v6700_v51  }
 0x74a   :  { %5473 = vset.pattern.permute.xlu1 %v8878_v26 }
 0x74b   :  { %1591 = vperm.xlu1 %5473, %v6700_v51  }
 0x74f   :  { %5474 = vset.pattern.permute.xlu1 %v8884_v45 }
 0x750   :  { %1601 = vperm.xlu1 %5474, %v6700_v51  }
 0x754   :  { %5477 = vset.pattern.permute.xlu1 %v8876_v31  ;;  %v8886_v31 = vmov 104  }
 0x755   :  { %1621 = vperm.xlu1 %5477, %v6700_v51  }
 0x759   :  { %5478 = vset.pattern.permute.xlu1 %v8883_v61 }
 0x75a   :  { %1631 = vperm.xlu1 %5478, %v6700_v51  }
 0x75e   :  { %5481 = vset.pattern.permute.xlu1 %v8882_v40 }
 0x75f   :  { %1675 = vperm.xlu1 %5481, %v6700_v51  }
 0x763   :  { %5482 = vset.pattern.permute.xlu1 %v8872_v13  ;;  %v8880_v13 = vmov 103  }
 0x764   :  { %1685 = vperm.xlu1 %5482, %v6700_v51  }
 0x768   :  { %5484 = vset.pattern.permute.xlu1 %v8881_v59 }
 0x769   :  { %1705 = vperm.xlu1 %5484, %v6700_v51  }
 0x76d   :  { %5485 = vset.pattern.permute.xlu1 %v8868_v46 }
 0x76e   :  { %1715 = vperm.xlu1 %5485, %v6700_v51  }
 0x772   :  { %5487 = vset.pattern.permute.xlu1 %v8842_v49 }
 0x773   :  { %1749 = vperm.xlu1 %5487, %v6700_v51  }
 0x777   :  { %5488 = vset.pattern.permute.xlu1 %v8840_v32  ;;  %v8845_v32 = vmov 98  }
 0x778   :  { %1759 = vperm.xlu1 %5488, %v6700_v51  }
 0x77c   :  { %5490 = vset.pattern.permute.xlu1 %v8833_v1 }
 0x77d   :  { %1779 = vperm.xlu1 %5490, %v6700_v51  }
 0x781   :  { %5491 = vset.pattern.permute.xlu1 %v8832_v18 }
 0x782   :  { %1789 = vperm.xlu1 %5491, %v6700_v51  }
 0x786   :  { %5493 = vset.pattern.permute.xlu1 %v8859_v43  ;;  %v8864_v43 = vmov 94  }
 0x787   :  { %1809 = vperm.xlu1 %5493, %v6700_v51  }
 0x78b   :  { %5494 = vset.pattern.permute.xlu1 %v8830_v16 }
 0x78c   :  { %1819 = vperm.xlu1 %5494, %v6700_v51  }
 0x790   :  { %5497 = vset.pattern.permute.xlu1 %v8828_v23 }
 0x791   :  { %1862 = vperm.xlu1 %5497, %v6700_v51  }
 0x795   :  { %5498 = vset.pattern.permute.xlu1 %v8853_v24  ;;  %v8857_v24 = vmov 108  }
 0x796   :  { %1872 = vperm.xlu1 %5498, %v6700_v51  }
 0x79a   :  { %5500 = vset.pattern.permute.xlu1 %v8826_v28 }
 0x79b   :  { %1892 = vperm.xlu1 %5500, %v6700_v51  }
 0x79f   :  { %5501 = vset.pattern.permute.xlu1 %v8825_v47 }
 0x7a0   :  { %1902 = vperm.xlu1 %5501, %v6700_v51  }
 0x7a4   :  { %5503 = vset.pattern.permute.xlu1 %v8824_v41 }
 0x7a5   :  { %1922 = vperm.xlu1 %5503, %v6700_v51  }
 0x7a9   :  { %5504 = vset.pattern.permute.xlu1 %v8823_v50 }
 0x7aa   :  { %1932 = vperm.xlu1 %5504, %v6700_v51  }
 0x7ae   :  { %5506 = vset.pattern.permute.xlu1 %v8822_v39  ;;  %v8843_v39 = vmov 82  }
 0x7b3   :  { %v1520_v25 = vpop.xlane.xlu1 %1519 }
 0x7b4   :  { %v1522_v35 = vmul.f32 0.03125, %v1520_v25  ;;  %v8874_v25 = vmov 54  }
 0x7b6   :  { %v6956_v11 = vsub.f32 %v1512_v53, %v1522_v35  ;;  %v8877_v53 = vmov 50   ;;  %v8866_v35 = vmov 60  }
 0x7b7   :  { %v1541_v50 = vpop.permute.xlu1 %1540 }
 0x7b8   :  { %v1524_v58 = vmul.f32 %v6956_v11, %v6956_v11 }
 0x7ba   :  { %v1525_v22 = vsel %vm1517_vm10, %v1524_v58, 0.0  ;;  %v8839_v58 = vmov 63  }
 0x7bb   :  { %1526 = vadd.xlane.f32.xlu0 %v1525_v22  ;;  %v8831_v22 = vmov 66   ;;  %v6998_v41 = vpop.permute.xlu1 %1561 }
 0x7c0   :  { %v7000_v47 = vpop.permute.xlu1 %1571 }
 0x7c5   :  { %v7002_v28 = vpop.permute.xlu1 %1581 }
 0x848   :  { %v1527_v15 = vpop.xlane.xlu0 %1526 }
 0x849   :  { %v1528_v55 = vmul.f32 0.03125, %v1527_v15  ;;  %v8829_v15 = vmov 69  }
 0x84b   :  { %v1529_v38 = vadd.f32 1e-05, %v1528_v55  ;;  %v8858_v55 = vmov 70  }
 0x84d   :  { %5691 = vrsqrt.f32 %v1529_v38  ;;  %v8827_v38 = vmov 73  }
 0x857   :  { %v5692_v60 = vpop.eup %5691 }
 0x858   :  { %v1531_v30 = vmul.f32 %v5692_v60, %v6917_v54  ;;  %v8871_v54 = vmov 57   ;;  %v8850_v60 = vmov 76  }
 0x85a   :  { %1534 = vperm.xlu0 %5475, %v1531_v30   ;;  %v8847_v30 = vmov 79  }
 0x85e   :  { %5476 = vset.pattern.permute.xlu0 %v8877_v53 }
 0x85f   :  { %1611 = vperm.xlu0 %5476, %v6700_v51  }
 0x863   :  { %5479 = vset.pattern.permute.xlu0 %v8875_v33 }
 0x864   :  { %1655 = vperm.xlu0 %5479, %v6700_v51  }
 0x868   :  { %5480 = vset.pattern.permute.xlu0 %v8874_v25 }
 0x869   :  { %1665 = vperm.xlu0 %5480, %v6700_v51  }
 0x86d   :  { %5483 = vset.pattern.permute.xlu0 %v8871_v54 }
 0x86e   :  { %1695 = vperm.xlu0 %5483, %v6700_v51  }
 0x872   :  { %5486 = vset.pattern.permute.xlu0 %v8866_v35 }
 0x873   :  { %1725 = vperm.xlu0 %5486, %v6700_v51  }
 0x877   :  { %5489 = vset.pattern.permute.xlu0 %v8839_v58 }
 0x878   :  { %1769 = vperm.xlu0 %5489, %v6700_v51  }
 0x87c   :  { %5492 = vset.pattern.permute.xlu0 %v8831_v22 }
 0x87d   :  { %1799 = vperm.xlu0 %5492, %v6700_v51  }
 0x881   :  { %5495 = vset.pattern.permute.xlu0 %v8829_v15  ;;  %v7005_v15 = vpop.permute.xlu1 %1591 }
 0x882   :  { %1842 = vperm.xlu0 %5495, %v6700_v51  }
 0x885   :  { %v7013_v18 = vpop.permute.xlu1 %1601 }
 0x886   :  { %5496 = vset.pattern.permute.xlu0 %v8858_v55  ;;  %v8863_v55 = vmov 114  }
 0x887   :  { %1852 = vperm.xlu0 %5496, %v6700_v51  }
 0x88b   :  { %5499 = vset.pattern.permute.xlu0 %v8827_v38 }
 0x88c   :  { %1882 = vperm.xlu0 %5499, %v6700_v51  }
 0x890   :  { %5502 = vset.pattern.permute.xlu0 %v8850_v60  ;;  %v8854_v60 = vmov 105  }
 0x891   :  { %1912 = vperm.xlu0 %5502, %v6700_v51  }
 0x895   :  { %5505 = vset.pattern.permute.xlu0 %v8847_v30  ;;  %v8852_v30 = vmov 102  }
 0x896   :  { %1942 = vperm.xlu0 %5505, %v6700_v51  }
 0x89a   :  { %5508 = vset.pattern.permute.xlu0 %v8843_v39  ;;  %v8848_v39 = vmov 101  }
 0x8d9   :  { %v1535_v38 = vpop.permute.xlu0 %1534 }
 0x8da   :  { %v1537_v23 = vmul.f32 %v1535_v38, %v6956_v11  ;;  %v7018_v11 = vpop.permute.xlu1 %1621  ;;  %v7028_v38 = vld [vmem:[%s8742_s8] sm:$0xff] }
 0x8dc   :  { %v1543_v16 = vadd.f32 %v1541_v50, %v1537_v23  ;;  %v8836_v23 = vmov 81   ;;  %v8835_v50 = vmov 86  }
 0x8de   :  { %v7007_v22 = vmax.f32 %v1543_v16, 0.0  ;;  %v8834_v16 = vmov 85   ;;  %v7031_v1 = vpop.permute.xlu1 %1631 }
 0x8e0   :  { %1737 = vrot.lane.b32.xlu0 %v7007_v22, %s5870_s21  ;;  %1546 = vrot.lane.b32.xlu1 %v7007_v22, %s5871_s4 }
 0x8e4   :  { %1972 = vperm.xlu0 %5508, %v6700_v51   ;;  %1549 = vrot.lane.b32.xlu1 %v7007_v22, %s5872_s22 }
 0x8e8   :  { %5511 = vset.pattern.permute.xlu0 %v8834_v16  ;;  %1952 = vperm.xlu1 %5506, %v6700_v51   ;;  %v8838_v16 = vmov 83  }
 0x8e9   :  { %2016 = vperm.xlu0 %5511, %v6700_v51   ;;  %v8837_v51 = vmov 89  }
 0x8ec   :  { %5507 = vset.pattern.permute.xlu1 %v8836_v23  ;;  %v8841_v23 = vmov 92  }
 0x8ed   :  { %5512 = vset.pattern.permute.xlu0 %v8835_v50  ;;  %1962 = vperm.xlu1 %5507, %v7028_v38   ;;  %v7039_v50 = vpop.permute.xlu1 %1675 }
 0x8ee   :  { %2026 = vperm.xlu0 %5512, %v7028_v38  }
 0x8f1   :  { %1640 = vrot.lane.b32.xlu1 %v7007_v22, %s5876_s16 }
 0x8f2   :  { %5515 = vset.pattern.permute.xlu0 %v8837_v51  ;;  %5509 = vset.pattern.permute.xlu1 %v8838_v16  ;;  %v7047_v51 = vpop.permute.xlu1 %1685  ;;  %v8844_v16 = vmov 95  }
 0x8f3   :  { %2056 = vperm.xlu0 %5515, %v7028_v38  }
 0x8f5   :  { %1643 = vrot.lane.b32.xlu1 %v7007_v22, %s5879_s17 }
 0x8f6   :  { %v7052_v58 = vpop.permute.xlu1 %1705 }
 0x8f7   :  { %5518 = vset.pattern.permute.xlu0 %v8841_v23  ;;  %v8846_v23 = vmov 84  }
 0x8f8   :  { %2086 = vperm.xlu0 %5518, %v7028_v38  }
 0x8f9   :  { %1734 = vrot.lane.b32.xlu1 %v7007_v22, %s5881_s19 }
 0x8fa   :  { %v7058_v49 = vpop.permute.xlu1 %1715 }
 0x8fc   :  { %5521 = vset.pattern.permute.xlu0 %v8844_v16  ;;  %v8849_v16 = vmov 87  }
 0x8fd   :  { %2130 = vperm.xlu0 %5521, %v7028_v38   ;;  %1982 = vperm.xlu1 %5509, %v7028_v38  }
 0x901   :  { %5524 = vset.pattern.permute.xlu0 %v8845_v32  ;;  %5510 = vset.pattern.permute.xlu1 %v8846_v23  ;;  %v8851_v32 = vmov 88   ;;  %v7067_v23 = vpop.permute.xlu1 %1749 }
 0x902   :  { %2160 = vperm.xlu0 %5524, %v7028_v38   ;;  %1992 = vperm.xlu1 %5510, %v7028_v38  }
 0x906   :  { %5527 = vset.pattern.permute.xlu0 %v8848_v39  ;;  %5513 = vset.pattern.permute.xlu1 %v8849_v16  ;;  %v8855_v39 = vmov 90   ;;  %v7074_v16 = vpop.permute.xlu1 %1759 }
 0x907   :  { %2204 = vperm.xlu0 %5527, %v7028_v38   ;;  %2036 = vperm.xlu1 %5513, %v7028_v38  }
 0x90b   :  { %2098 = vrot.lane.b32.xlu0 %v7007_v22, %s5887_s20  ;;  %5514 = vset.pattern.permute.xlu1 %v8851_v32  ;;  %v8856_v32 = vmov 91  }
 0x90c   :  { %2046 = vperm.xlu1 %5514, %v7028_v38   ;;  %5528 = vset.pattern.permute.xlu0 %v8852_v30  ;;  %v7081_v30 = vpop.permute.xlu1 %1779 }
 0x90f   :  { %2214 = vperm.xlu0 %5528, %v7028_v38  }
 0x910   :  { %5516 = vset.pattern.permute.xlu1 %v8855_v39  ;;  %v8860_v39 = vmov 111  }
 0x911   :  { %2066 = vperm.xlu1 %5516, %v7028_v38  }
 0x913   :  { %5531 = vset.pattern.permute.xlu0 %v8854_v60  ;;  %v7090_v60 = vpop.permute.xlu1 %1789 }
 0x914   :  { %2244 = vperm.xlu0 %5531, %v7028_v38  }
 0x915   :  { %1828 = vrot.lane.b32.xlu1 %v7007_v22, %s5892_s5 }
 0x916   :  { %5517 = vset.pattern.permute.xlu1 %v8856_v32  ;;  %v8861_v32 = vmov 93  }
 0x918   :  { %5534 = vset.pattern.permute.xlu0 %v8857_v24  ;;  %v7096_v24 = vpop.permute.xlu1 %1809 }
 0x919   :  { %2274 = vperm.xlu0 %5534, %v7028_v38   ;;  %1831 = vrot.lane.b32.xlu1 %v7007_v22, %s5780_s29 }
 0x91d   :  { %2286 = vrot.lane.b32.xlu0 %v7007_v22, %s5895_s1  ;;  %2076 = vperm.xlu1 %5517, %v7028_v38  }
 0x91e   :  { %5537 = vset.pattern.permute.xlu0 %v8860_v39  ;;  %v7102_v39 = vpop.permute.xlu1 %1819 }
 0x921   :  { %5519 = vset.pattern.permute.xlu1 %v8861_v32  ;;  %2318 = vperm.xlu0 %5537, %v7028_v38   ;;  %v8867_v32 = vmov 96  }
 0x922   :  { %2110 = vperm.xlu1 %5519, %v7028_v38  }
 0x925   :  { %5540 = vset.pattern.permute.xlu0 %v8863_v55  ;;  %v7109_v55 = vpop.permute.xlu1 %1862 }
 0x926   :  { %5520 = vset.pattern.permute.xlu1 %v8864_v43  ;;  %2348 = vperm.xlu0 %5540, %v7028_v38   ;;  %v8869_v43 = vmov 97  }
 0x927   :  { %2120 = vperm.xlu1 %5520, %v7028_v38  }
 0x929   :  { %v7114_v35 = vpop.permute.xlu1 %1872 }
 0x92a   :  { %5543 = vset.pattern.permute.xlu0 %v8963_v56 }
 0x92b   :  { %5522 = vset.pattern.permute.xlu1 %v8867_v32  ;;  %2378 = vperm.xlu0 %5543, %v6797_v14   ;;  %v7117_v32 = vpop.permute.xlu0 %1611  ;;  %v8873_v14 = vmov 100  }
 0x92c   :  { %2140 = vperm.xlu1 %5522, %v7028_v38  }
 0x92d   :  { %v7122_v46 = vpop.permute.xlu1 %1892 }
 0x92f   :  { %5544 = vset.pattern.permute.xlu0 %v8966_v37 }
 0x930   :  { %5523 = vset.pattern.permute.xlu1 %v8869_v43  ;;  %v7124_v43 = vpop.permute.xlu0 %1655 }
 0x931   :  { %2150 = vperm.xlu1 %5523, %v7028_v38  }
 0x934   :  { %v7131_v54 = vpop.permute.xlu0 %1665 }
 0x935   :  { %5525 = vset.pattern.permute.xlu1 %v8870_v62  ;;  %v7128_v62 = vpop.permute.xlu1 %1902 }
 0x936   :  { %2170 = vperm.xlu1 %5525, %v7028_v38  }
 0x938   :  { %v7138_v25 = vpop.permute.xlu0 %1695 }
 0x93a   :  { %2001 = vrot.lane.b32.xlu1 %v7007_v22, %s5782_s30 }
 0x93b   :  { %5526 = vset.pattern.permute.xlu1 %v8873_v14  ;;  %v7136_v14 = vpop.permute.xlu1 %1922 }
 0x93c   :  { %v7145_v53 = vpop.permute.xlu0 %1725 }
 0x93e   :  { %2004 = vrot.lane.b32.xlu1 %v7007_v22, %s5904_s2 }
 0x93f   :  { %v7141_v33 = vpop.permute.xlu1 %1932 }
 0x940   :  { %v7149_v59 = vpop.permute.xlu0 %1769 }
 0x942   :  { %2180 = vperm.xlu1 %5526, %v7028_v38  }
 0x946   :  { %2095 = vrot.lane.b32.xlu1 %v7007_v22, %s5905_s18 }
 0x947   :  { %5529 = vset.pattern.permute.xlu1 %v8880_v13  ;;  %v4934_v13 = vld [vmem:[#allocation4] ss:$0 sm:$0xff] }
 0x94a   :  { %2224 = vperm.xlu1 %5529, %v7028_v38  }
 0x94e   :  { %5530 = vset.pattern.permute.xlu1 %v8886_v31 }
 0x94f   :  { %2234 = vperm.xlu1 %5530, %v7028_v38  }
 0x952   :  { %v1547_v26 = vpop.permute.xlu1 %1546 }
 0x953   :  { %5532 = vset.pattern.permute.xlu1 %v8888_v12  ;;  %v7156_v12 = vpop.permute.xlu0 %1799 }
 0x954   :  { %2254 = vperm.xlu1 %5532, %v7028_v38  }
 0x956   :  { %v1550_v40 = vpop.permute.xlu1 %1549 }
 0x957   :  { %v1553_v61 = vsel %vm1552_vm11, %v1547_v26, %v1550_v40 }
 0x958   :  { %v1559_v45 = vmul.f32 %v4934_v13, %v1553_v61  ;;  %5533 = vset.pattern.permute.xlu1 %v8894_v8  ;;  %v8897_v61 = vmov 109   ;;  %v7166_v13 = vpop.permute.xlu0 %1842 }
 0x959   :  { %2264 = vperm.xlu1 %5533, %v7028_v38  }
 0x95a   :  { %v1567_v31 = vrot.slane %v1559_v45, %v6024_v5  ;;  %v1577_v29 = vrot.slane %v1559_v45, %v6039_v10  ;;  %v1587_v40 = vrot.slane %v1559_v45, %v6036_v9  ;;  %v1597_v44 = vrot.slane %v1559_v45, %v6021_v4 }
 0x95c   :  { %v1568_v34 = vmul.f32 %v1567_v31, %v6998_v41  ;;  %v1578_v26 = vmul.f32 %v1577_v29, %v7000_v47  ;;  %v1588_v57 = vmul.f32 %v1587_v40, %v7002_v28  ;;  %v8967_v31 = vld [vmem:[#allocation8_spill] sm:$0xff]  ;;  %v1598_v20 = vmul.f32 %v1597_v44, %v7005_v15 }
 0x95d   :  { %2189 = vrot.lane.b32.xlu1 %v7007_v22, %s5910_s14  ;;  %v7172_v29 = vsub.s32 4, %v8967_v31  ;;  %v7192_v44 = vsub.s32 6, %v8967_v31 }
 0x95e   :  { %5535 = vset.pattern.permute.xlu1 %v8897_v61  ;;  %v1579_v8 = vadd.f32 %v1578_v26, %v1568_v34  ;;  %v7176_v61 = vpop.permute.xlu0 %1852  ;;  %v7182_v34 = vsub.s32 5, %v8967_v31 }
 0x95f   :  { %v1607_v2 = vrot.slane %v1559_v45, %v7172_v29 }
 0x960   :  { %v1589_v47 = vadd.f32 %v1588_v57, %v1579_v8  ;;  %v1617_v57 = vrot.slane %v1559_v45, %v7182_v34 }
 0x961   :  { %2192 = vrot.lane.b32.xlu1 %v7007_v22, %s5912_s13  ;;  %v1608_v26 = vmul.f32 %v1607_v2, %v7013_v18  ;;  %v1627_v2 = vrot.slane %v1559_v45, %v7192_v44 }
 0x962   :  { %v1599_v28 = vadd.f32 %v1598_v20, %v1589_v47  ;;  %v7189_v40 = vpop.permute.xlu0 %1882  ;;  %v1618_v20 = vmul.f32 %v1617_v57, %v7117_v32  ;;  %v7200_v47 = vsub.s32 7, %v8967_v31 }
 0x963   :  { %v1628_v17 = vmul.f32 %v1627_v2, %v7018_v11 }
 0x964   :  { %v1609_v15 = vadd.f32 %v1608_v26, %v1599_v28  ;;  %v4935_v28 = vld [vmem:[#allocation4 + $0x1] ss:$0 sm:$0xff]  ;;  %v1637_v21 = vrot.slane %v1559_v45, %v7200_v47 }
 0x965   :  { %2298 = vperm.xlu1 %5535, %v7028_v38  }
 0x966   :  { %v1619_v27 = vadd.f32 %v1618_v20, %v1609_v15  ;;  %v7203_v26 = vpop.permute.xlu0 %1912  ;;  %v1638_v31 = vmul.f32 %v1637_v21, %v7031_v1 }
 0x967   :  { %v7174_v41 = vpop.permute.xlu1 %1952 }
 0x968   :  { %v1629_v57 = vadd.f32 %v1628_v17, %v1619_v27  ;;  %v8909_v17 = vmov 115  }
 0x969   :  { %5536 = vset.pattern.permute.xlu1 %v8903_v3  ;;  %v8905_v3 = vmov 112  }
 0x96a   :  { %2308 = vperm.xlu1 %5536, %v7028_v38   ;;  %v7213_v11 = vpop.permute.xlu0 %1942  ;;  %v1639_v45 = vadd.f32 %v1638_v31, %v1629_v57  ;;  %v4936_v31 = vld [vmem:[#allocation4 + $0x2] ss:$0 sm:$0xff] }
 0x96c   :  { %v7187_v8 = vpop.permute.xlu1 %1962 }
 0x96e   :  { %2283 = vrot.lane.b32.xlu1 %v7007_v22, %s5914_s12 }
 0x96f   :  { %5538 = vset.pattern.permute.xlu1 %v8905_v3 }
 0x970   :  { %v1641_v18 = vpop.permute.xlu1 %1640 }
 0x972   :  { %2328 = vperm.xlu1 %5538, %v7028_v38  }
 0x974   :  { %v1644_v3 = vpop.permute.xlu1 %1643 }
 0x975   :  { %v1647_v32 = vsel %vm1646_vm12, %v1641_v18, %v1644_v3 }
 0x976   :  { %v1653_v36 = vmul.f32 %v4935_v28, %v1647_v32  ;;  %5539 = vset.pattern.permute.xlu1 %v8908_v19  ;;  %v1738_v28 = vpop.permute.xlu0 %1737 }
 0x977   :  { %2338 = vperm.xlu1 %5539, %v7028_v38  }
 0x978   :  { %v1661_v15 = vrot.slane %v1653_v36, %v6024_v5  ;;  %v1671_v20 = vrot.slane %v1653_v36, %v6039_v10  ;;  %v1735_v48 = vpop.permute.xlu1 %1734  ;;  %v1681_v3 = vrot.slane %v1653_v36, %v6036_v9  ;;  %v1691_v21 = vrot.slane %v1653_v36, %v6021_v4 }
 0x97a   :  { %v1662_v2 = vmul.f32 %v1661_v15, %v7124_v43  ;;  %v1672_v18 = vmul.f32 %v1671_v20, %v7131_v54  ;;  %v1682_v57 = vmul.f32 %v1681_v3, %v7039_v50  ;;  %v1701_v43 = vrot.slane %v1653_v36, %v7172_v29 }
 0x97b   :  { %5541 = vset.pattern.permute.xlu1 %v8909_v17  ;;  %v1741_v15 = vsel %vm1740_vm13, %v1735_v48, %v1738_v28  ;;  %v1711_v54 = vrot.slane %v1653_v36, %v7182_v34  ;;  %v8917_v20 = vmov 116   ;;  %v1721_v3 = vrot.slane %v1653_v36, %v7192_v44 }
 0x97c   :  { %v1663_v27 = vadd.f32 %v1662_v2, %v1639_v45  ;;  %2358 = vperm.xlu1 %5541, %v7028_v38   ;;  %v7221_v1 = vpop.permute.xlu1 %1982  ;;  %v1692_v45 = vmul.f32 %v1691_v21, %v7047_v51  ;;  %v1702_v50 = vmul.f32 %v1701_v43, %v7138_v25  ;;  %v1731_v51 = vrot.slane %v1653_v36, %v7200_v47 }
 0x97d   :  { %v1712_v48 = vmul.f32 %v1711_v54, %v7052_v58  ;;  %v1722_v28 = vmul.f32 %v1721_v3, %v7058_v49 }
 0x97e   :  { %v1673_v32 = vadd.f32 %v1672_v18, %v1663_v27  ;;  %v1747_v18 = vmul.f32 %v4936_v31, %v1741_v15 }
 0x980   :  { %v1683_v19 = vadd.f32 %v1682_v57, %v1673_v32  ;;  %5542 = vset.pattern.permute.xlu1 %v8917_v20  ;;  %v1755_v32 = vrot.slane %v1747_v18, %v6024_v5  ;;  %v1765_v25 = vrot.slane %v1747_v18, %v6039_v10  ;;  %v1775_v15 = vrot.slane %v1747_v18, %v6036_v9 }
 0x981   :  { %2368 = vperm.xlu1 %5542, %v7028_v38   ;;  %v7230_v2 = vpop.permute.xlu1 %1992  ;;  %v1785_v49 = vrot.slane %v1747_v18, %v6021_v4  ;;  %v1805_v3 = vrot.slane %v1747_v18, %v7182_v34 }
 0x982   :  { %v1693_v27 = vadd.f32 %v1692_v45, %v1683_v19  ;;  %v1732_v19 = vmul.f32 %v1731_v51, %v7145_v53  ;;  %v1756_v31 = vmul.f32 %v1755_v32, %v7067_v23  ;;  %v1776_v54 = vmul.f32 %v1775_v15, %v7149_v59  ;;  %v4937_v59 = vld [vmem:[#allocation4 + $0x3] ss:$0 sm:$0xff] }
 0x984   :  { %v1703_v17 = vadd.f32 %v1702_v50, %v1693_v27  ;;  %v1795_v27 = vrot.slane %v1747_v18, %v7172_v29  ;;  %v1786_v50 = vmul.f32 %v1785_v49, %v7081_v30 }
 0x986   :  { %v1713_v21 = vadd.f32 %v1712_v48, %v1703_v17  ;;  %v7238_v57 = vpop.permute.xlu1 %2036  ;;  %v1766_v17 = vmul.f32 %v1765_v25, %v7074_v16  ;;  %v1796_v51 = vmul.f32 %v1795_v27, %v7090_v60  ;;  %v1806_v16 = vmul.f32 %v1805_v3, %v7156_v12 }
 0x987   :  { %v1825_v25 = vrot.slane %v1747_v18, %v7200_v47 }
 0x988   :  { %v1723_v38 = vadd.f32 %v1722_v28, %v1713_v21  ;;  %v1815_v28 = vrot.slane %v1747_v18, %v7192_v44 }
 0x989   :  { %v1826_v60 = vmul.f32 %v1825_v25, %v7102_v39 }
 0x98a   :  { %v1733_v43 = vadd.f32 %v1732_v19, %v1723_v38  ;;  %v1816_v19 = vmul.f32 %v1815_v28, %v7096_v24 }
 0x98b   :  { %v7244_v58 = vpop.permute.xlu1 %2046 }
 0x98c   :  { %v1757_v36 = vadd.f32 %v1756_v31, %v1733_v43  ;;  %v1973_v43 = vpop.permute.xlu0 %1972 }
 0x98e   :  { %v1767_v45 = vadd.f32 %v1766_v17, %v1757_v36 }
 0x990   :  { %v1777_v53 = vadd.f32 %v1776_v54, %v1767_v45  ;;  %v7252_v23 = vpop.permute.xlu1 %2066  ;;  %v7265_v45 = vpop.permute.xlu0 %2016 }
 0x992   :  { %v1787_v48 = vadd.f32 %v1786_v50, %v1777_v53 }
 0x994   :  { %v1797_v21 = vadd.f32 %v1796_v51, %v1787_v48  ;;  %v1829_v32 = vpop.permute.xlu1 %1828 }
 0x996   :  { %v1807_v38 = vadd.f32 %v1806_v16, %v1797_v21  ;;  %v2027_v21 = vpop.permute.xlu0 %2026 }
 0x998   :  { %v1832_v30 = vpop.permute.xlu1 %1831  ;;  %v1817_v15 = vadd.f32 %v1816_v19, %v1807_v38 }
 0x999   :  { %v1834_v31 = vsel %vm313_vm3, %v1829_v32, %v1832_v30 }
 0x99a   :  { %v1840_v36 = vmul.f32 %v4937_v59, %v1834_v31  ;;  %v1827_v54 = vadd.f32 %v1826_v60, %v1817_v15  ;;  %v7283_v30 = vpop.permute.xlu0 %2056  ;;  %v1928_v31 = vrot.slane %v7007_v22, %v6024_v5 }
 0x99c   :  { %v1848_v17 = vrot.slane %v1840_v36, %v6024_v5  ;;  %v1858_v12 = vrot.slane %v1840_v36, %v6039_v10  ;;  %v7263_v49 = vpop.permute.xlu1 %2076  ;;  %v1868_v18 = vrot.slane %v1840_v36, %v6036_v9  ;;  %v1878_v50 = vrot.slane %v1840_v36, %v6021_v4 }
 0x99d   :  { %v1888_v51 = vrot.slane %v1840_v36, %v7172_v29 }
 0x99e   :  { %v1849_v24 = vmul.f32 %v1848_v17, %v7166_v13  ;;  %v1859_v53 = vmul.f32 %v1858_v12, %v7176_v61  ;;  %v1869_v48 = vmul.f32 %v1868_v18, %v7109_v55  ;;  %v1879_v28 = vmul.f32 %v1878_v50, %v7114_v35 }
 0x99f   :  { %v1898_v13 = vrot.slane %v1840_v36, %v7182_v34  ;;  %v1889_v38 = vmul.f32 %v1888_v51, %v7189_v40  ;;  %v1908_v61 = vrot.slane %v1840_v36, %v7192_v44  ;;  %v1918_v55 = vrot.slane %v1840_v36, %v7200_v47  ;;  %v7294_v36 = vpop.permute.xlu0 %2086 }
 0x9a0   :  { %v1850_v27 = vadd.f32 %v1849_v24, %v1827_v54  ;;  %v1938_v40 = vrot.slane %v7007_v22, %v6039_v10  ;;  %v1948_v18 = vrot.slane %v7007_v22, %v6036_v9  ;;  %v1958_v50 = vrot.slane %v7007_v22, %v6021_v4 }
 0x9a1   :  { %v7271_v3 = vpop.permute.xlu1 %2110  ;;  %v1899_v25 = vmul.f32 %v1898_v13, %v7122_v46  ;;  %v1909_v15 = vmul.f32 %v1908_v61, %v7128_v62  ;;  %v1919_v12 = vmul.f32 %v1918_v55, %v7203_v26  ;;  %v1929_v46 = vmul.f32 %v1928_v31, %v7136_v14 }
 0x9a2   :  { %v1860_v39 = vadd.f32 %v1859_v53, %v1850_v27  ;;  %v1939_v24 = vmul.f32 %v1938_v40, %v7141_v33  ;;  %v1949_v53 = vmul.f32 %v1948_v18, %v7213_v11  ;;  %v1959_v26 = vmul.f32 %v1958_v50, %v7174_v41 }
 0x9a3   :  { %v1968_v14 = vrot.slane %v7007_v22, %v7172_v29  ;;  %v7307_v51 = vpop.permute.xlu0 %2130  ;;  %v1978_v11 = vrot.slane %v7007_v22, %v7182_v34  ;;  %v1988_v41 = vrot.slane %v7007_v22, %v7192_v44 }
 0x9a4   :  { %v1870_v16 = vadd.f32 %v1869_v48, %v1860_v39 }
 0x9a5   :  { %v1989_v55 = vmul.f32 %v1988_v41, %v7221_v1 }
 0x9a6   :  { %v1880_v32 = vadd.f32 %v1879_v28, %v1870_v16  ;;  %v7279_v59 = vpop.permute.xlu1 %2120  ;;  %v1969_v16 = vmul.f32 %v1968_v14, %v7187_v8 }
 0x9a7   :  { %v7316_v61 = vpop.permute.xlu0 %2160 }
 0x9a8   :  { %v1890_v19 = vadd.f32 %v1889_v38, %v1880_v32  ;;  %v1979_v32 = vmul.f32 %v1978_v11, %v1973_v43 }
 0x9aa   :  { %v1900_v35 = vadd.f32 %v1899_v25, %v1890_v19  ;;  %v4938_v25 = vld [vmem:[#allocation4 + $0x5] ss:$0 sm:$0xff] }
 0x9ab   :  { %v7288_v60 = vpop.permute.xlu1 %2140 }
 0x9ac   :  { %v1910_v17 = vadd.f32 %v1909_v15, %v1900_v35  ;;  %v1998_v35 = vrot.slane %v7007_v22, %v7200_v47 }
 0x9ae   :  { %v1920_v54 = vadd.f32 %v1919_v12, %v1910_v17  ;;  %v1999_v43 = vmul.f32 %v1998_v35, %v7230_v2  ;;  %v7323_v17 = vpop.permute.xlu0 %2204 }
 0x9b0   :  { %v1930_v27 = vadd.f32 %v1929_v46, %v1920_v54  ;;  %v7299_v62 = vpop.permute.xlu1 %2150 }
 0x9b2   :  { %v1940_v39 = vadd.f32 %v1939_v24, %v1930_v27  ;;  %v2099_v2 = vpop.permute.xlu0 %2098 }
 0x9b4   :  { %v1950_v48 = vadd.f32 %v1949_v53, %v1940_v39 }
 0x9b5   :  { %v7309_v33 = vpop.permute.xlu1 %2170 }
 0x9b6   :  { %v1960_v28 = vadd.f32 %v1959_v26, %v1950_v48  ;;  %v4939_v48 = vld [vmem:[#allocation4 + $0x6] ss:$0 sm:$0xff] }
 0x9b8   :  { %v1970_v13 = vadd.f32 %v1969_v16, %v1960_v28 }
 0x9b9   :  { %v2002_v38 = vpop.permute.xlu1 %2001 }
 0x9ba   :  { %v1980_v19 = vadd.f32 %v1979_v32, %v1970_v13 }
 0x9bc   :  { %v1990_v15 = vadd.f32 %v1989_v55, %v1980_v19 }
 0x9bd   :  { %v2005_v31 = vpop.permute.xlu1 %2004 }
 0x9be   :  { %v2008_v8 = vsel %vm2007_vm14, %v2002_v38, %v2005_v31  ;;  %v2000_v24 = vadd.f32 %v1999_v43, %v1990_v15 }
 0x9bf   :  { %v2014_v40 = vmul.f32 %v4938_v25, %v2008_v8 }
 0x9c1   :  { %v2022_v12 = vrot.slane %v2014_v40, %v6024_v5  ;;  %v2032_v46 = vrot.slane %v2014_v40, %v6039_v10  ;;  %v7327_v54 = vpop.permute.xlu1 %2180  ;;  %v2042_v18 = vrot.slane %v2014_v40, %v6036_v9  ;;  %v2052_v22 = vrot.slane %v2014_v40, %v6021_v4 }
 0x9c2   :  { %v2062_v14 = vrot.slane %v2014_v40, %v7172_v29  ;;  %v2072_v11 = vrot.slane %v2014_v40, %v7182_v34  ;;  %v2082_v38 = vrot.slane %v2014_v40, %v7192_v44  ;;  %v2092_v25 = vrot.slane %v2014_v40, %v7200_v47 }
 0x9c3   :  { %v2023_v1 = vmul.f32 %v2022_v12, %v7265_v45  ;;  %v2033_v53 = vmul.f32 %v2032_v46, %v2027_v21  ;;  %v2043_v26 = vmul.f32 %v2042_v18, %v7238_v57  ;;  %v2053_v45 = vmul.f32 %v2052_v22, %v7244_v58 }
 0x9c4   :  { %v2063_v32 = vmul.f32 %v2062_v14, %v7283_v30  ;;  %v2073_v57 = vmul.f32 %v2072_v11, %v7252_v23  ;;  %v2083_v8 = vmul.f32 %v2082_v38, %v7263_v49  ;;  %v2093_v15 = vmul.f32 %v2092_v25, %v7294_v36 }
 0x9c5   :  { %v2024_v27 = vadd.f32 %v2023_v1, %v2000_v24  ;;  %v2096_v50 = vpop.permute.xlu1 %2095 }
 0x9c6   :  { %v2102_v16 = vsel %vm2101_vm15, %v2096_v50, %v2099_v2 }
 0x9c7   :  { %v2034_v39 = vadd.f32 %v2033_v53, %v2024_v27  ;;  %v2108_v41 = vmul.f32 %v4939_v48, %v2102_v16 }
 0x9c9   :  { %v2044_v28 = vadd.f32 %v2043_v26, %v2034_v39  ;;  %v2225_v13 = vpop.permute.xlu1 %2224  ;;  %v2116_v58 = vrot.slane %v2108_v41, %v6024_v5  ;;  %v2126_v43 = vrot.slane %v2108_v41, %v6039_v10  ;;  %v2136_v46 = vrot.slane %v2108_v41, %v6036_v9 }
 0x9ca   :  { %v2146_v1 = vrot.slane %v2108_v41, %v6021_v4  ;;  %v2156_v18 = vrot.slane %v2108_v41, %v7172_v29  ;;  %v2166_v50 = vrot.slane %v2108_v41, %v7182_v34 }
 0x9cb   :  { %v2054_v21 = vadd.f32 %v2053_v45, %v2044_v28  ;;  %v2117_v12 = vmul.f32 %v2116_v58, %v7271_v3  ;;  %v2127_v40 = vmul.f32 %v2126_v43, %v7279_v59  ;;  %v2137_v49 = vmul.f32 %v2136_v46, %v7307_v51  ;;  %v2215_v3 = vpop.permute.xlu0 %2214  ;;  %v4940_v51 = vld [vmem:[#allocation4 + $0x7] ss:$0 sm:$0xff] }
 0x9cc   :  { %v2147_v22 = vmul.f32 %v2146_v1, %v7288_v60  ;;  %v2157_v39 = vmul.f32 %v2156_v18, %v7299_v62  ;;  %v2176_v59 = vrot.slane %v2108_v41, %v7192_v44  ;;  %v2167_v48 = vmul.f32 %v2166_v50, %v7316_v61 }
 0x9cd   :  { %v2064_v19 = vadd.f32 %v2063_v32, %v2054_v21  ;;  %v2186_v60 = vrot.slane %v2108_v41, %v7200_v47 }
 0x9ce   :  { %v2235_v55 = vpop.permute.xlu1 %2234  ;;  %v2177_v45 = vmul.f32 %v2176_v59, %v7309_v33 }
 0x9cf   :  { %v2074_v31 = vadd.f32 %v2073_v57, %v2064_v19  ;;  %v2245_v11 = vpop.permute.xlu0 %2244  ;;  %v2187_v19 = vmul.f32 %v2186_v60, %v7327_v54  ;;  %v4941_v54 = vld [vmem:[#allocation4 + $0x8] ss:$0 sm:$0xff] }
 0x9d1   :  { %v2084_v35 = vadd.f32 %v2083_v8, %v2074_v31 }
 0x9d3   :  { %v2094_v30 = vadd.f32 %v2093_v15, %v2084_v35  ;;  %v2255_v24 = vpop.permute.xlu1 %2254  ;;  %v2275_v33 = vpop.permute.xlu0 %2274 }
 0x9d5   :  { %v2118_v23 = vadd.f32 %v2117_v12, %v2094_v30 }
 0x9d7   :  { %v2128_v27 = vadd.f32 %v2127_v40, %v2118_v23  ;;  %v2287_v1 = vpop.permute.xlu0 %2286 }
 0x9d8   :  { %v2265_v53 = vpop.permute.xlu1 %2264 }
 0x9d9   :  { %v2138_v36 = vadd.f32 %v2137_v49, %v2128_v27 }
 0x9db   :  { %v2148_v2 = vadd.f32 %v2147_v22, %v2138_v36  ;;  %v2319_v60 = vpop.permute.xlu0 %2318 }
 0x9dc   :  { %v2190_v26 = vpop.permute.xlu1 %2189 }
 0x9dd   :  { %v2158_v14 = vadd.f32 %v2157_v39, %v2148_v2 }
 0x9df   :  { %v2168_v16 = vadd.f32 %v2167_v48, %v2158_v14 }
 0x9e0   :  { %v2193_v28 = vpop.permute.xlu1 %2192 }
 0x9e1   :  { %v2196_v21 = vsel %vm2195_vm9, %v2190_v26, %v2193_v28  ;;  %v2178_v38 = vadd.f32 %v2177_v45, %v2168_v16 }
 0x9e2   :  { %v2202_v32 = vmul.f32 %v4940_v51, %v2196_v21 }
 0x9e3   :  { %v2188_v25 = vadd.f32 %v2187_v19, %v2178_v38 }
 0x9e4   :  { %v2299_v62 = vpop.permute.xlu1 %2298  ;;  %v2210_v57 = vrot.slane %v2202_v32, %v6024_v5  ;;  %v2220_v61 = vrot.slane %v2202_v32, %v6039_v10  ;;  %v2230_v8 = vrot.slane %v2202_v32, %v6036_v9  ;;  %v2240_v35 = vrot.slane %v2202_v32, %v6021_v4 }
 0x9e5   :  { %v2250_v12 = vrot.slane %v2202_v32, %v7172_v29  ;;  %v2260_v40 = vrot.slane %v2202_v32, %v7182_v34  ;;  %v2270_v36 = vrot.slane %v2202_v32, %v7192_v44 }
 0x9e6   :  { %v2211_v31 = vmul.f32 %v2210_v57, %v7323_v17  ;;  %v2221_v41 = vmul.f32 %v2220_v61, %v2215_v3  ;;  %v2231_v30 = vmul.f32 %v2230_v8, %v2225_v13  ;;  %v2241_v23 = vmul.f32 %v2240_v35, %v2235_v55 }
 0x9e7   :  { %v2251_v27 = vmul.f32 %v2250_v12, %v2245_v11  ;;  %v2261_v3 = vmul.f32 %v2260_v40, %v2255_v24  ;;  %v2280_v13 = vrot.slane %v2202_v32, %v7200_v47  ;;  %v2271_v26 = vmul.f32 %v2270_v36, %v2265_v53 }
 0x9e8   :  { %v2212_v58 = vadd.f32 %v2211_v31, %v2188_v25  ;;  %v2349_v31 = vpop.permute.xlu0 %2348  ;;  %v8920_v36 = vmov 120  }
 0x9e9   :  { %v2309_v15 = vpop.permute.xlu1 %2308  ;;  %v2281_v14 = vmul.f32 %v2280_v13, %v2275_v33 }
 0x9ea   :  { %v2222_v43 = vadd.f32 %v2221_v41, %v2212_v58 }
 0x9ec   :  { %v2232_v46 = vadd.f32 %v2231_v30, %v2222_v43 }
 0x9ed   :  { %v2284_v17 = vpop.permute.xlu1 %2283 }
 0x9ee   :  { %v2290_v49 = vsel %vm2289_vm7, %v2284_v17, %v2287_v1  ;;  %v2242_v18 = vadd.f32 %v2241_v23, %v2232_v46  ;;  %v2379_v46 = vpop.permute.xlu0 %2378  ;;  %v7382_v17 = vld [vmem:[%s8742_s8] sm:$0xf] }
 0x9ef   :  { %v2296_v22 = vmul.f32 %v4941_v54, %v2290_v49  ;;  %v8922_v49 = vmov 117  }
 0x9f0   :  { %v2252_v50 = vadd.f32 %v2251_v27, %v2242_v18  ;;  %5545 = vset.pattern.permute.xlu1 %v8922_v49  ;;  %v8921_v18 = vmov 118   ;;  %v8916_v27 = vmov 119   ;;  %v5703_v49 = vld [vmem:[#allocation4 + $0x1] ss:$0 sm:$0xff] }
 0x9f1   :  { %v2329_v2 = vpop.permute.xlu1 %2328  ;;  %v2304_v55 = vrot.slane %v2296_v22, %v6024_v5  ;;  %v2314_v48 = vrot.slane %v2296_v22, %v6039_v10  ;;  %v2324_v28 = vrot.slane %v2296_v22, %v6036_v9  ;;  %v2334_v24 = vrot.slane %v2296_v22, %v6021_v4 }
 0x9f2   :  { %v2262_v39 = vadd.f32 %v2261_v3, %v2252_v50  ;;  %v2354_v57 = vrot.slane %v2296_v22, %v7182_v34  ;;  %v2344_v25 = vrot.slane %v2296_v22, %v7172_v29  ;;  %v2364_v41 = vrot.slane %v2296_v22, %v7192_v44 }
 0x9f3   :  { %v2305_v16 = vmul.f32 %v2304_v55, %v2299_v62  ;;  %v2315_v21 = vmul.f32 %v2314_v48, %v2309_v15  ;;  %v2325_v38 = vmul.f32 %v2324_v28, %v2319_v60  ;;  %v2335_v61 = vmul.f32 %v2334_v24, %v2329_v2  ;;  %v7413_v28 = vld [vmem:[%s8742_s8 + $0x8] sm:$0xf] }
 0x9f4   :  { %v2272_v59 = vadd.f32 %v2271_v26, %v2262_v39  ;;  %v2355_v33 = vmul.f32 %v2354_v57, %v2349_v31  ;;  %v2374_v30 = vrot.slane %v2296_v22, %v7200_v47  ;;  %v8919_v39 = vmov 121   ;;  %v5700_v26 = vld [vmem:[%s8744_s10] sm:$0xff] }
 0x9f5   :  { %v8918_v55 = vmov 123   ;;  %v5927_v48 = vmov 125   ;;  %v8970_v60 = vmov 10   ;;  %v8974_v24 = vmov 20  }
 0x9f6   :  { %v2282_v51 = vadd.f32 %v2281_v14, %v2272_v59  ;;  %v2339_v45 = vpop.permute.xlu1 %2338  ;;  %v8915_v59 = vmov 122   ;;  %v5926_v14 = vmov 124   ;;  %v5929_v31 = vmov 127  }
 0x9f7   :  { %v2345_v62 = vmul.f32 %v2344_v25, %v2339_v45  ;;  %v8969_v45 = vmov 7  }
 0x9f8   :  { %v2306_v11 = vadd.f32 %v2305_v16, %v2282_v51  ;;  %v8968_v51 = vmov 4   ;;  %v5928_v16 = vmov 126  }
 0x9fa   :  { %v2316_v32 = vadd.f32 %v2315_v21, %v2306_v11  ;;  %v8971_v11 = vmov 13   ;;  %v8972_v21 = vmov 14  }
 0x9fb   :  { %v2359_v19 = vpop.permute.xlu1 %2358 }
 0x9fc   :  { %v2326_v53 = vadd.f32 %v2325_v38, %v2316_v32  ;;  %v2365_v43 = vmul.f32 %v2364_v41, %v2359_v19  ;;  %v8975_v32 = vmov 23   ;;  %v8976_v38 = vmov 26  }
 0x9fd   :  { %v8982_v41 = vmov 12  }
 0x9fe   :  { %v2336_v8 = vadd.f32 %v2335_v61, %v2326_v53 }
 0xa00   :  { %v2346_v58 = vadd.f32 %v2345_v62, %v2336_v8  ;;  %v2369_v35 = vpop.permute.xlu1 %2368  ;;  %v8977_v8 = vmov 0   ;;  %v8978_v62 = vmov 6  }
 0xa01   :  { %v2375_v54 = vmul.f32 %v2374_v30, %v2369_v35  ;;  %v8983_v35 = vmov 15   ;;  %v8986_v30 = vmov 19  }
 0xa02   :  { %v2356_v15 = vadd.f32 %v2355_v33, %v2346_v58  ;;  %v8979_v33 = vmov 8   ;;  %v8980_v58 = vmov 9  }
 0xa04   :  { %v2366_v12 = vadd.f32 %v2365_v43, %v2356_v15  ;;  %v8984_v15 = vmov 16   ;;  %v8985_v43 = vmov 18  }
 0xa06   :  { %v2376_v23 = vadd.f32 %v2375_v54, %v2366_v12  ;;  %v8987_v12 = vmov 21   ;;  %v8988_v54 = vmov 22  }
 0xa08   :  { %v2381_v40 = vadd.f32 %v2379_v46, %v2376_v23  ;;  %v8989_v46 = vmov 24  }
 0xa0a   :  { %v2382_v1 = vsel %vm1517_vm10, %v2381_v40, 0.0 }
 0xa0b   :  { %2383 = vadd.xlane.f32.xlu1 %v2382_v1 }
 0xa1c   :  { %2420 = vperm.xlu1 %5545, %v7382_v17  }
 0xa20   :  { %5546 = vset.pattern.permute.xlu1 %v8921_v18 }
 0xa21   :  { %2430 = vperm.xlu1 %5546, %v7382_v17  }
 0xa25   :  { %5547 = vset.pattern.permute.xlu1 %v8916_v27 }
 0xa26   :  { %2440 = vperm.xlu1 %5547, %v7382_v17  }
 0xa2a   :  { %5548 = vset.pattern.permute.xlu1 %v8920_v36 }
 0xa2b   :  { %2450 = vperm.xlu1 %5548, %v7382_v17  }
 0xa2f   :  { %5549 = vset.pattern.permute.xlu1 %v8919_v39 }
 0xa30   :  { %2460 = vperm.xlu1 %5549, %v7382_v17  }
 0xa34   :  { %5551 = vset.pattern.permute.xlu1 %v8918_v55 }
 0xa35   :  { %2480 = vperm.xlu1 %5551, %v7382_v17  }
 0xa39   :  { %5552 = vset.pattern.permute.xlu1 %v5926_v14 }
 0xa3a   :  { %2490 = vperm.xlu1 %5552, %v7382_v17  }
 0xa3e   :  { %5555 = vset.pattern.permute.xlu1 %v8968_v51 }
 0xa98   :  { %v2384_v22 = vpop.xlane.xlu1 %2383 }
 0xa99   :  { %v2385_v50 = vmul.f32 0.03125, %v2384_v22 }
 0xa9b   :  { %v7392_v3 = vsub.f32 %v2381_v40, %v2385_v50 }
 0xa9c   :  { %v7466_v23 = vpop.permute.xlu1 %2420 }
 0xa9d   :  { %v2387_v13 = vmul.f32 %v7392_v3, %v7392_v3 }
 0xa9f   :  { %v2388_v2 = vsel %vm1517_vm10, %v2387_v13, 0.0 }
 0xaa0   :  { %2389 = vadd.xlane.f32.xlu0 %v2388_v2  ;;  %v7468_v40 = vpop.permute.xlu1 %2430 }
 0xaa5   :  { %v7470_v1 = vpop.permute.xlu1 %2440 }
 0xab6   :  { %2402 = vperm.xlu0 %5544, %v5700_v26  }
 0xaba   :  { %5550 = vset.pattern.permute.xlu0 %v8915_v59 }
 0xabb   :  { %2470 = vperm.xlu0 %5550, %v7382_v17  }
 0xabf   :  { %5553 = vset.pattern.permute.xlu0 %v5927_v48 }
 0xac0   :  { %2508 = vperm.xlu0 %5553, %v7382_v17  }
 0xac4   :  { %5554 = vset.pattern.permute.xlu0 %v5928_v16 }
 0xac5   :  { %2518 = vperm.xlu0 %5554, %v7382_v17  }
 0xac9   :  { %5558 = vset.pattern.permute.xlu0 %v8964_v42  ;;  %v8973_v42 = vmov 17  }
 0xaca   :  { %2549 = vperm.xlu0 %5558, %v7413_v28  }
 0xace   :  { %5561 = vset.pattern.permute.xlu0 %v8968_v51 }
 0xacf   :  { %2579 = vperm.xlu0 %5561, %v7413_v28  }
 0xad3   :  { %5564 = vset.pattern.permute.xlu0 %v8969_v45 }
 0xad4   :  { %2617 = vperm.xlu0 %5564, %v7413_v28  }
 0xad8   :  { %5567 = vset.pattern.permute.xlu0 %v8970_v60  ;;  %v8990_v60 = vmov 29  }
 0xad9   :  { %2647 = vperm.xlu0 %5567, %v7413_v28  }
 0xadd   :  { %5570 = vset.pattern.permute.xlu0 %v8971_v11  ;;  %v8992_v11 = vmov 30  }
 0xade   :  { %2685 = vperm.xlu0 %5570, %v7413_v28  }
 0xae2   :  { %5571 = vset.pattern.permute.xlu0 %v8972_v21  ;;  %v8993_v21 = vmov 33  }
 0xae3   :  { %2695 = vperm.xlu0 %5571, %v7413_v28  }
 0xae7   :  { %5574 = vset.pattern.permute.xlu0 %v8973_v42  ;;  %v8994_v42 = vmov 27  }
 0xae8   :  { %2725 = vperm.xlu0 %5574, %v7413_v28  }
 0xaec   :  { %5577 = vset.pattern.permute.xlu0 %v8974_v24 }
 0xaed   :  { %2755 = vperm.xlu0 %5577, %v7413_v28  }
 0xaf1   :  { %5580 = vset.pattern.permute.xlu0 %v8975_v32  ;;  %v8995_v32 = vmov 36  }
 0xaf2   :  { %2785 = vperm.xlu0 %5580, %v7413_v28  }
 0xaf6   :  { %5583 = vset.pattern.permute.xlu0 %v8976_v38 }
 0xb2d   :  { %v2390_v19 = vpop.xlane.xlu0 %2389 }
 0xb2e   :  { %v2391_v53 = vmul.f32 0.03125, %v2390_v19  ;;  %v8996_v19 = vmov 39  }
 0xb30   :  { %v2392_v57 = vadd.f32 1e-05, %v2391_v53 }
 0xb32   :  { %5693 = vrsqrt.f32 %v2392_v57  ;;  %v8997_v57 = vmov 42  }
 0xb35   :  { %v2403_v14 = vpop.permute.xlu0 %2402 }
 0xb3c   :  { %v5694_v61 = vpop.eup %5693 }
 0xb3d   :  { %v2394_v25 = vmul.f32 %v5700_v26, %v5694_v61  ;;  %v8998_v61 = vmov 28  }
 0xb3f   :  { %2397 = vperm.xlu1 %5555, %v2394_v25  }
 0xb43   :  { %5556 = vset.pattern.permute.xlu1 %v5929_v31  ;;  %v8999_v31 = vmov 45  }
 0xb44   :  { %2528 = vperm.xlu1 %5556, %v7382_v17   ;;  %v7472_v17 = vpop.permute.xlu1 %2450 }
 0xb48   :  { %5557 = vset.pattern.permute.xlu1 %v8977_v8  ;;  %v7474_v22 = vpop.permute.xlu1 %2460  ;;  %v9000_v8 = vmov 31  }
 0xb49   :  { %2539 = vperm.xlu1 %5557, %v7413_v28  }
 0xb4c   :  { %v7476_v50 = vpop.permute.xlu1 %2480 }
 0xb4d   :  { %5559 = vset.pattern.permute.xlu1 %v8963_v56  ;;  %v8981_v56 = vmov 11  }
 0xb4e   :  { %2559 = vperm.xlu1 %5559, %v7413_v28  }
 0xb50   :  { %v7478_v13 = vpop.permute.xlu1 %2490 }
 0xb52   :  { %5560 = vset.pattern.permute.xlu1 %v8965_v52 }
 0xb53   :  { %2569 = vperm.xlu1 %5560, %v7413_v28  }
 0xb57   :  { %5562 = vset.pattern.permute.xlu1 %v8966_v37 }
 0xb58   :  { %2597 = vperm.xlu1 %5562, %v7413_v28  }
 0xb5c   :  { %5563 = vset.pattern.permute.xlu1 %v8978_v62 }
 0xb5d   :  { %2607 = vperm.xlu1 %5563, %v7413_v28  }
 0xb61   :  { %5565 = vset.pattern.permute.xlu1 %v8979_v33 }
 0xb62   :  { %2627 = vperm.xlu1 %5565, %v7413_v28  }
 0xb66   :  { %5566 = vset.pattern.permute.xlu1 %v8980_v58 }
 0xb67   :  { %2637 = vperm.xlu1 %5566, %v7413_v28  }
 0xb6b   :  { %5568 = vset.pattern.permute.xlu1 %v8981_v56  ;;  %v9001_v56 = vmov 32  }
 0xb6c   :  { %2657 = vperm.xlu1 %5568, %v7413_v28  }
 0xb70   :  { %5569 = vset.pattern.permute.xlu1 %v8982_v41 }
 0xb71   :  { %2667 = vperm.xlu1 %5569, %v7413_v28  }
 0xb75   :  { %5572 = vset.pattern.permute.xlu1 %v8983_v35  ;;  %v9002_v35 = vmov 46  }
 0xb76   :  { %2705 = vperm.xlu1 %5572, %v7413_v28  }
 0xb7a   :  { %5573 = vset.pattern.permute.xlu1 %v8984_v15  ;;  %v9003_v15 = vmov 34  }
 0xb7b   :  { %2715 = vperm.xlu1 %5573, %v7413_v28  }
 0xb7f   :  { %5575 = vset.pattern.permute.xlu1 %v8985_v43 }
 0xb80   :  { %2735 = vperm.xlu1 %5575, %v7413_v28  }
 0xb84   :  { %5576 = vset.pattern.permute.xlu1 %v8986_v30  ;;  %v9004_v30 = vmov 49  }
 0xb85   :  { %2745 = vperm.xlu1 %5576, %v7413_v28  }
 0xb89   :  { %5578 = vset.pattern.permute.xlu1 %v8987_v12  ;;  %v9005_v12 = vmov 35  }
 0xb8a   :  { %2765 = vperm.xlu1 %5578, %v7413_v28  }
 0xb8e   :  { %5579 = vset.pattern.permute.xlu1 %v8988_v54 }
 0xb8f   :  { %2775 = vperm.xlu1 %5579, %v7413_v28  }
 0xb93   :  { %5581 = vset.pattern.permute.xlu1 %v8989_v46  ;;  %v9006_v46 = vmov 52  }
 0xbbe   :  { %v2398_v2 = vpop.permute.xlu1 %2397 }
 0xbbf   :  { %v2400_v26 = vmul.f32 %v2398_v2, %v7392_v3  ;;  %v8991_v3 = vmov 25  }
 0xbc1   :  { %v2405_v48 = vadd.f32 %v2403_v14, %v2400_v26  ;;  %v9007_v26 = vmov 55   ;;  %v9008_v14 = vmov 37  }
 0xbc3   :  { %v7481_v16 = vmax.f32 %v2405_v48, 0.0  ;;  %v7502_v24 = vpop.permute.xlu1 %2528 }
 0xbc5   :  { %2591 = vrot.lane.b32.xlu0 %v7481_v16, %s5870_s21  ;;  %2410 = vrot.lane.b32.xlu1 %v7481_v16, %s5871_s4 }
 0xbc8   :  { %v7510_v38 = vpop.permute.xlu1 %2539 }
 0xbc9   :  { %2815 = vperm.xlu0 %5583, %v7413_v28   ;;  %2413 = vrot.lane.b32.xlu1 %v7481_v16, %s5872_s22  ;;  %s9091_s22 = smov 15  }
 0xbcd   :  { %5586 = vset.pattern.permute.xlu0 %v8990_v60  ;;  %2795 = vperm.xlu1 %5581, %v7413_v28   ;;  %v7515_v53 = vpop.permute.xlu1 %2559  ;;  %v9009_v60 = vmov 58  }
 0xbce   :  { %2853 = vperm.xlu0 %5586, %v7413_v28  }
 0xbd1   :  { %5582 = vset.pattern.permute.xlu1 %v8991_v3  ;;  %v9010_v3 = vmov 38  }
 0xbd2   :  { %5587 = vset.pattern.permute.xlu0 %v8992_v11  ;;  %2805 = vperm.xlu1 %5582, %v7413_v28   ;;  %v7521_v25 = vpop.permute.xlu1 %2569 }
 0xbd3   :  { %2863 = vperm.xlu0 %5587, %v7413_v28  }
 0xbd6   :  { %2499 = vrot.lane.b32.xlu1 %v7481_v16, %s5876_s16  ;;  %s9092_s16 = smov 113  }
 0xbd7   :  { %5590 = vset.pattern.permute.xlu0 %v8993_v21  ;;  %5584 = vset.pattern.permute.xlu1 %v8994_v42  ;;  %v7530_v41 = vpop.permute.xlu1 %2597  ;;  %v9011_v21 = vmov 40   ;;  %v5701_v42 = vld [vmem:[%s8743_s9] sm:$0xf] }
 0xbd8   :  { %2893 = vperm.xlu0 %5590, %v7413_v28  }
 0xbda   :  { %2502 = vrot.lane.b32.xlu1 %v7481_v16, %s5879_s17  ;;  %s9094_s17 = smov 111  }
 0xbdc   :  { %5593 = vset.pattern.permute.xlu0 %v8995_v32  ;;  %v7537_v43 = vpop.permute.xlu1 %2607 }
 0xbdd   :  { %2923 = vperm.xlu0 %5593, %v7413_v28  }
 0xbde   :  { %2588 = vrot.lane.b32.xlu1 %v7481_v16, %s5881_s19 }
 0xbe1   :  { %5596 = vset.pattern.permute.xlu0 %v8996_v19  ;;  %v7544_v54 = vpop.permute.xlu1 %2627  ;;  %v9012_v19 = vmov 41  }
 0xbe2   :  { %2961 = vperm.xlu0 %5596, %v7413_v28   ;;  %2825 = vperm.xlu1 %5584, %v7413_v28  }
 0xbe6   :  { %5599 = vset.pattern.permute.xlu0 %v8997_v57  ;;  %5585 = vset.pattern.permute.xlu1 %v8998_v61  ;;  %v7553_v2 = vpop.permute.xlu1 %2637  ;;  %v9013_v57 = vmov 43   ;;  %v2471_v61 = vpop.permute.xlu0 %2470 }
 0xbe7   :  { %2991 = vperm.xlu0 %5599, %v7413_v28   ;;  %2835 = vperm.xlu1 %5585, %v7413_v28  }
 0xbeb   :  { %5602 = vset.pattern.permute.xlu0 %v8999_v31  ;;  %5588 = vset.pattern.permute.xlu1 %v9000_v8  ;;  %v7559_v48 = vpop.permute.xlu1 %2657  ;;  %v9014_v31 = vmov 44  }
 0xbec   :  { %3029 = vperm.xlu0 %5602, %v7413_v28   ;;  %2873 = vperm.xlu1 %5588, %v7413_v28  }
 0xbf0   :  { %2935 = vrot.lane.b32.xlu0 %v7481_v16, %s5887_s20  ;;  %5589 = vset.pattern.permute.xlu1 %v9001_v56  ;;  %v7565_v11 = vpop.permute.xlu1 %2667 }
 0xbf1   :  { %2883 = vperm.xlu1 %5589, %v7413_v28   ;;  %5603 = vset.pattern.permute.xlu0 %v9002_v35 }
 0xbf4   :  { %3039 = vperm.xlu0 %5603, %v7413_v28  }
 0xbf5   :  { %5591 = vset.pattern.permute.xlu1 %v9003_v15  ;;  %v7574_v32 = vpop.permute.xlu1 %2705  ;;  %v9015_v15 = vmov 47  }
 0xbf6   :  { %2903 = vperm.xlu1 %5591, %v7413_v28  }
 0xbf8   :  { %5606 = vset.pattern.permute.xlu0 %v9004_v30 }
 0xbf9   :  { %3069 = vperm.xlu0 %5606, %v7413_v28  }
 0xbfa   :  { %2676 = vrot.lane.b32.xlu1 %v7481_v16, %s5892_s5 }
 0xbfb   :  { %5592 = vset.pattern.permute.xlu1 %v9005_v12 }
 0xbfd   :  { %5609 = vset.pattern.permute.xlu0 %v9006_v46 }
 0xbfe   :  { %3099 = vperm.xlu0 %5609, %v7413_v28   ;;  %2679 = vrot.lane.b32.xlu1 %v7481_v16, %s5780_s29 }
 0xc02   :  { %3111 = vrot.lane.b32.xlu0 %v7481_v16, %s5895_s1  ;;  %2913 = vperm.xlu1 %5592, %v7413_v28  }
 0xc03   :  { %5612 = vset.pattern.permute.xlu0 %v9007_v26  ;;  %v9016_v26 = vmov 48  }
 0xc06   :  { %5594 = vset.pattern.permute.xlu1 %v9008_v14  ;;  %3137 = vperm.xlu0 %5612, %v7413_v28  }
 0xc07   :  { %2941 = vperm.xlu1 %5594, %v7413_v28  }
 0xc0a   :  { %5615 = vset.pattern.permute.xlu0 %v9009_v60 }
 0xc0b   :  { %5595 = vset.pattern.permute.xlu1 %v9010_v3  ;;  %3167 = vperm.xlu0 %5615, %v7413_v28   ;;  %v9017_v3 = vmov 50  }
 0xc0c   :  { %2951 = vperm.xlu1 %5595, %v7413_v28  }
 0xc0f   :  { %5618 = vset.pattern.permute.xlu0 %v8965_v52  ;;  %v7579_v52 = vpop.permute.xlu1 %2715 }
 0xc10   :  { %5597 = vset.pattern.permute.xlu1 %v9011_v21  ;;  %3197 = vperm.xlu0 %5618, %v5701_v42  }
 0xc11   :  { %2971 = vperm.xlu1 %5597, %v7413_v28  }
 0xc13   :  { %v7585_v8 = vpop.permute.xlu1 %2735 }
 0xc14   :  { %5620 = vset.pattern.permute.xlu0 %v8969_v45  ;;  %v7587_v45 = vpop.permute.xlu0 %2508 }
 0xc15   :  { %5598 = vset.pattern.permute.xlu1 %v9012_v19 }
 0xc16   :  { %2981 = vperm.xlu1 %5598, %v7413_v28  }
 0xc17   :  { %v7591_v56 = vpop.permute.xlu1 %2745 }
 0xc18   :  { %v7594_v35 = vpop.permute.xlu0 %2518 }
 0xc1a   :  { %5600 = vset.pattern.permute.xlu1 %v9013_v57  ;;  %v5702_v57 = vld [vmem:[#allocation4] ss:$0 sm:$0xff] }
 0xc1b   :  { %3001 = vperm.xlu1 %5600, %v7413_v28   ;;  %v7599_v30 = vpop.permute.xlu1 %2765 }
 0xc1c   :  { %v7601_v12 = vpop.permute.xlu0 %2549 }
 0xc1f   :  { %2844 = vrot.lane.b32.xlu1 %v7481_v16, %s5782_s30  ;;  %v7604_v46 = vpop.permute.xlu1 %2775 }
 0xc20   :  { %5601 = vset.pattern.permute.xlu1 %v9014_v31  ;;  %v7608_v14 = vpop.permute.xlu0 %2579 }
 0xc23   :  { %2847 = vrot.lane.b32.xlu1 %v7481_v16, %s5904_s2 }
 0xc24   :  { %v7612_v21 = vpop.permute.xlu0 %2617 }
 0xc27   :  { %3011 = vperm.xlu1 %5601, %v7413_v28  }
 0xc28   :  { %v7619_v27 = vpop.permute.xlu0 %2647 }
 0xc2b   :  { %2932 = vrot.lane.b32.xlu1 %v7481_v16, %s5905_s18 }
 0xc2c   :  { %5604 = vset.pattern.permute.xlu1 %v9015_v15  ;;  %v9018_v15 = vmov 51  }
 0xc2f   :  { %3049 = vperm.xlu1 %5604, %v7413_v28  }
 0xc33   :  { %5605 = vset.pattern.permute.xlu1 %v9016_v26 }
 0xc34   :  { %3059 = vperm.xlu1 %5605, %v7413_v28  }
 0xc37   :  { %v2411_v60 = vpop.permute.xlu1 %2410 }
 0xc38   :  { %5607 = vset.pattern.permute.xlu1 %v9017_v3 }
 0xc39   :  { %3079 = vperm.xlu1 %5607, %v7413_v28  }
 0xc3b   :  { %v2414_v42 = vpop.permute.xlu1 %2413 }
 0xc3c   :  { %v2416_v19 = vsel %vm1552_vm11, %v2411_v60, %v2414_v42  ;;  %v9019_v60 = vmov 53  }
 0xc3d   :  { %v2417_v31 = vmul.f32 %v5702_v57, %v2416_v19  ;;  %5608 = vset.pattern.permute.xlu1 %v9018_v15  ;;  %v7629_v19 = vpop.permute.xlu0 %2685 }
 0xc3e   :  { %3089 = vperm.xlu1 %5608, %v7413_v28  }
 0xc3f   :  { %v2426_v26 = vrot.slane %v2417_v31, %v6024_v5  ;;  %v2436_v59 = vrot.slane %v2417_v31, %v6039_v10  ;;  %v2446_v42 = vrot.slane %v2417_v31, %v6036_v9  ;;  %v2456_v55 = vrot.slane %v2417_v31, %v6021_v4 }
 0xc41   :  { %v2427_v3 = vmul.f32 %v2426_v26, %v7466_v23  ;;  %v2437_v20 = vmul.f32 %v2436_v59, %v7468_v40  ;;  %v2447_v15 = vmul.f32 %v2446_v42, %v7470_v1  ;;  %v7636_v59 = vpop.permute.xlu0 %2695  ;;  %v2457_v40 = vmul.f32 %v2456_v55, %v7472_v17 }
 0xc42   :  { %3020 = vrot.lane.b32.xlu1 %v7481_v16, %s5910_s14  ;;  %v2466_v26 = vrot.slane %v2417_v31, %v7172_v29  ;;  %v2476_v1 = vrot.slane %v2417_v31, %v7182_v34  ;;  %v9021_v55 = vmov 56  }
 0xc43   :  { %5610 = vset.pattern.permute.xlu1 %v9019_v60  ;;  %v2438_v57 = vadd.f32 %v2437_v20, %v2427_v3  ;;  %v9020_v60 = vmov 54  }
 0xc44   :  { %v2467_v20 = vmul.f32 %v2466_v26, %v7474_v22  ;;  %v2477_v17 = vmul.f32 %v2476_v1, %v2471_v61 }
 0xc45   :  { %v2448_v39 = vadd.f32 %v2447_v15, %v2438_v57  ;;  %v7646_v42 = vpop.permute.xlu0 %2725  ;;  %v2486_v15 = vrot.slane %v2417_v31, %v7192_v44 }
 0xc46   :  { %3023 = vrot.lane.b32.xlu1 %v7481_v16, %s5912_s13 }
 0xc47   :  { %v2458_v36 = vadd.f32 %v2457_v40, %v2448_v39  ;;  %v2487_v26 = vmul.f32 %v2486_v15, %v7476_v50 }
 0xc49   :  { %v2468_v57 = vadd.f32 %v2467_v20, %v2458_v36  ;;  %v7653_v22 = vpop.permute.xlu0 %2755 }
 0xc4a   :  { %3117 = vperm.xlu1 %5610, %v7413_v28  }
 0xc4b   :  { %v2478_v40 = vadd.f32 %v2477_v17, %v2468_v57 }
 0xc4c   :  { %v7634_v23 = vpop.permute.xlu1 %2795 }
 0xc4d   :  { %v2488_v20 = vadd.f32 %v2487_v26, %v2478_v40  ;;  %v7663_v50 = vpop.permute.xlu0 %2785 }
 0xc4e   :  { %5611 = vset.pattern.permute.xlu1 %v9020_v60  ;;  %v2496_v60 = vrot.slane %v2417_v31, %v7200_v47 }
 0xc4f   :  { %3127 = vperm.xlu1 %5611, %v7413_v28  }
 0xc50   :  { %v2497_v61 = vmul.f32 %v2496_v60, %v7478_v13 }
 0xc51   :  { %v7644_v3 = vpop.permute.xlu1 %2805  ;;  %v2592_v60 = vpop.permute.xlu0 %2591 }
 0xc52   :  { %v2498_v31 = vadd.f32 %v2497_v61, %v2488_v20 }
 0xc53   :  { %3108 = vrot.lane.b32.xlu1 %v7481_v16, %s5914_s12 }
 0xc54   :  { %5613 = vset.pattern.permute.xlu1 %v9021_v55  ;;  %v9022_v55 = vmov 57  }
 0xc55   :  { %v2500_v39 = vpop.permute.xlu1 %2499 }
 0xc57   :  { %3147 = vperm.xlu1 %5613, %v7413_v28  }
 0xc59   :  { %v2503_v18 = vpop.permute.xlu1 %2502 }
 0xc5a   :  { %v2505_v36 = vsel %vm1646_vm12, %v2500_v39, %v2503_v18  ;;  %v9023_v39 = vmov 59  }
 0xc5b   :  { %v2506_v7 = vmul.f32 %v5703_v49, %v2505_v36  ;;  %5614 = vset.pattern.permute.xlu1 %v9022_v55 }
 0xc5c   :  { %3157 = vperm.xlu1 %5614, %v7413_v28  }
 0xc5d   :  { %v2514_v1 = vrot.slane %v2506_v7, %v6024_v5  ;;  %v2524_v57 = vrot.slane %v2506_v7, %v6039_v10  ;;  %v2589_v17 = vpop.permute.xlu1 %2588  ;;  %v2534_v18 = vrot.slane %v2506_v7, %v6036_v9  ;;  %v2545_v26 = vrot.slane %v2506_v7, %v6021_v4 }
 0xc5e   :  { %v2555_v20 = vrot.slane %v2506_v7, %v7172_v29 }
 0xc5f   :  { %v2515_v15 = vmul.f32 %v2514_v1, %v7587_v45  ;;  %v2525_v40 = vmul.f32 %v2524_v57, %v7594_v35  ;;  %v2535_v55 = vmul.f32 %v2534_v18, %v7502_v24  ;;  %v2594_v45 = vsel %vm1740_vm13, %v2589_v17, %v2592_v60  ;;  %v5704_v18 = vld [vmem:[#allocation4 + $0x2] ss:$0 sm:$0xff] }
 0xc60   :  { %5616 = vset.pattern.permute.xlu1 %v9023_v39  ;;  %v2546_v1 = vmul.f32 %v2545_v26, %v7510_v38  ;;  %v9024_v35 = vmov 60   ;;  %v2556_v39 = vmul.f32 %v2555_v20, %v7601_v12  ;;  %v2575_v24 = vrot.slane %v2506_v7, %v7192_v44  ;;  %v3201_v26 = vld [vmem:[%s8740_s6] sm:$0xff]  ;;  %v3203_v12 = vld [vmem:[%s8740_s6 + $0x10] sm:$0xff] }
 0xc61   :  { %v2516_v49 = vadd.f32 %v2515_v15, %v2498_v31  ;;  %3177 = vperm.xlu1 %5616, %v7413_v28   ;;  %v7671_v13 = vpop.permute.xlu1 %2825  ;;  %v2565_v31 = vrot.slane %v2506_v7, %v7182_v34  ;;  %v2585_v38 = vrot.slane %v2506_v7, %v7200_v47 }
 0xc63   :  { %v2526_v36 = vadd.f32 %v2525_v40, %v2516_v49  ;;  %v2595_v49 = vmul.f32 %v5704_v18, %v2594_v45  ;;  %v2566_v17 = vmul.f32 %v2565_v31, %v7515_v53  ;;  %v2576_v53 = vmul.f32 %v2575_v24, %v7521_v25 }
 0xc65   :  { %v2536_v61 = vadd.f32 %v2535_v55, %v2526_v36  ;;  %5617 = vset.pattern.permute.xlu1 %v9024_v35  ;;  %v3204_v36 = vld [vmem:[%s8740_s6 + $0x18] sm:$0xff]  ;;  %v2603_v55 = vrot.slane %v2595_v49, %v6024_v5  ;;  %v2613_v31 = vrot.slane %v2595_v49, %v6039_v10  ;;  %v9025_v35 = vmov 0.0|0.0  }
 0xc66   :  { %3187 = vperm.xlu1 %5617, %v7413_v28   ;;  %v7680_v57 = vpop.permute.xlu1 %2835  ;;  %v3202_v28 = vld [vmem:[%s8740_s6 + $0x8] sm:$0xff]  ;;  %v5173_v45 = vpack.c.bf16 %v3204_v36, %v3203_v12 }
 0xc67   :  { %v2547_v15 = vadd.f32 %v2546_v1, %v2536_v61  ;;  %v5170_v60 = vpack.c.bf16 %v3202_v28, %v3201_v26  ;;  %v2586_v1 = vmul.f32 %v2585_v38, %v7608_v14  ;;  %v2614_v24 = vmul.f32 %v2613_v31, %v7537_v43 }
 0xc68   :  { %v2643_v38 = vrot.slane %v2595_v49, %v7172_v29 }
 0xc69   :  { %v2557_v40 = vadd.f32 %v2556_v39, %v2547_v15  ;;  %5171 = vmatpush3.bf16.msra.mxu1 %v5170_v60  ;;  %v2604_v39 = vmul.f32 %v2603_v55, %v7530_v41  ;;  %v2653_v41 = vrot.slane %v2595_v49, %v7182_v34 }
 0xc6a   :  { %5619 = vset.pattern.permute.xlu1 %v8978_v62  ;;  %5172 = vmatprep.subr.bf16.mxu1 %v9025_v35  ;;  %v2623_v62 = vrot.slane %v2595_v49, %v6036_v9  ;;  %v2644_v36 = vmul.f32 %v2643_v38, %v7553_v2 }
 0xc6b   :  { %v2567_v7 = vadd.f32 %v2566_v17, %v2557_v40  ;;  %v7701_v20 = vpop.permute.xlu1 %2873  ;;  %v2633_v40 = vrot.slane %v2595_v49, %v6021_v4  ;;  %v2654_v43 = vmul.f32 %v2653_v41, %v7619_v27 }
 0xc6c   :  { %v2624_v14 = vmul.f32 %v2623_v62, %v7612_v21 }
 0xc6d   :  { %v2577_v61 = vadd.f32 %v2576_v53, %v2567_v7  ;;  %5174 = vmatpush3.bf16.msra.mxu1 %v5173_v45  ;;  %v2634_v28 = vmul.f32 %v2633_v40, %v7544_v54  ;;  %v2663_v53 = vrot.slane %v2595_v49, %v7192_v44  ;;  %v2816_v54 = vpop.permute.xlu0 %2815 }
 0xc6f   :  { %v2587_v15 = vadd.f32 %v2586_v1, %v2577_v61  ;;  %v2664_v21 = vmul.f32 %v2663_v53, %v7559_v48  ;;  %v2673_v61 = vrot.slane %v2595_v49, %v7200_v47 }
 0xc70   :  { %v7708_v18 = vpop.permute.xlu1 %2883 }
 0xc71   :  { %v2605_v25 = vadd.f32 %v2604_v39, %v2587_v15  ;;  %v5705_v15 = vld [vmem:[#allocation4 + $0x3] ss:$0 sm:$0xff]  ;;  %v2674_v2 = vmul.f32 %v2673_v61, %v7565_v11 }
 0xc73   :  { %v2615_v17 = vadd.f32 %v2614_v24, %v2605_v25  ;;  %v7729_v24 = vpop.permute.xlu0 %2853 }
 0xc75   :  { %v2625_v26 = vadd.f32 %v2624_v14, %v2615_v17  ;;  %v7716_v12 = vpop.permute.xlu1 %2903 }
 0xc77   :  { %v2635_v60 = vadd.f32 %v2634_v28, %v2625_v26 }
 0xc79   :  { %v2645_v7 = vadd.f32 %v2644_v36, %v2635_v60  ;;  %v2677_v55 = vpop.permute.xlu1 %2676  ;;  %v2864_v60 = vpop.permute.xlu0 %2863 }
 0xc7b   :  { %v2655_v45 = vadd.f32 %v2654_v43, %v2645_v7 }
 0xc7d   :  { %v2680_v1 = vpop.permute.xlu1 %2679  ;;  %v2665_v35 = vadd.f32 %v2664_v21, %v2655_v45  ;;  %v2894_v61 = vpop.permute.xlu0 %2893 }
 0xc7e   :  { %v2682_v31 = vsel %vm313_vm3, %v2677_v55, %v2680_v1 }
 0xc7f   :  { %v2683_v39 = vmul.f32 %v5705_v15, %v2682_v31  ;;  %v2675_v48 = vadd.f32 %v2674_v2, %v2665_v35  ;;  %v2791_v2 = vrot.slane %v7481_v16, %v6036_v9 }
 0xc81   :  { %v2691_v62 = vrot.slane %v2683_v39, %v6024_v5  ;;  %v2701_v27 = vrot.slane %v2683_v39, %v6039_v10  ;;  %v7727_v25 = vpop.permute.xlu1 %2913  ;;  %v2711_v40 = vrot.slane %v2683_v39, %v6036_v9  ;;  %v2721_v38 = vrot.slane %v2683_v39, %v6021_v4 }
 0xc82   :  { %v2731_v41 = vrot.slane %v2683_v39, %v7172_v29 }
 0xc83   :  { %v2692_v49 = vmul.f32 %v2691_v62, %v7629_v19  ;;  %v2702_v14 = vmul.f32 %v2701_v27, %v7636_v59  ;;  %v2712_v28 = vmul.f32 %v2711_v40, %v7574_v32  ;;  %v2722_v7 = vmul.f32 %v2721_v38, %v7579_v52  ;;  %v2924_v27 = vpop.permute.xlu0 %2923 }
 0xc84   :  { %v2741_v19 = vrot.slane %v2683_v39, %v7182_v34  ;;  %v2732_v53 = vmul.f32 %v2731_v41, %v7646_v42  ;;  %v2751_v59 = vrot.slane %v2683_v39, %v7192_v44  ;;  %v2761_v32 = vrot.slane %v2683_v39, %v7200_v47 }
 0xc85   :  { %v2693_v17 = vadd.f32 %v2692_v49, %v2675_v48  ;;  %v2771_v52 = vrot.slane %v7481_v16, %v6024_v5  ;;  %v2792_v40 = vmul.f32 %v2791_v2, %v7663_v50 }
 0xc86   :  { %v7735_v26 = vpop.permute.xlu1 %2941  ;;  %v2742_v21 = vmul.f32 %v2741_v19, %v7585_v8  ;;  %v2752_v31 = vmul.f32 %v2751_v59, %v7591_v56  ;;  %v2762_v42 = vmul.f32 %v2761_v32, %v7653_v22  ;;  %v2781_v8 = vrot.slane %v7481_v16, %v6039_v10 }
 0xc87   :  { %v2703_v11 = vadd.f32 %v2702_v14, %v2693_v17  ;;  %v2772_v62 = vmul.f32 %v2771_v52, %v7599_v30  ;;  %v2801_v22 = vrot.slane %v7481_v16, %v6021_v4  ;;  %v2811_v30 = vrot.slane %v7481_v16, %v7172_v29 }
 0xc88   :  { %v2782_v56 = vmul.f32 %v2781_v8, %v7604_v46 }
 0xc89   :  { %v2713_v36 = vadd.f32 %v2712_v28, %v2703_v11  ;;  %v2802_v14 = vmul.f32 %v2801_v22, %v7634_v23  ;;  %v2962_v11 = vpop.permute.xlu0 %2961  ;;  %v2812_v46 = vmul.f32 %v2811_v30, %v7644_v3  ;;  %v2841_v3 = vrot.slane %v7481_v16, %v7200_v47 }
 0xc8b   :  { %v2723_v43 = vadd.f32 %v2722_v7, %v2713_v36  ;;  %v7743_v55 = vpop.permute.xlu1 %2951  ;;  %v2821_v36 = vrot.slane %v7481_v16, %v7182_v34 }
 0xc8d   :  { %v2733_v45 = vadd.f32 %v2732_v53, %v2723_v43  ;;  %v2822_v7 = vmul.f32 %v2821_v36, %v2816_v54  ;;  %v2831_v43 = vrot.slane %v7481_v16, %v7192_v44  ;;  %v7774_v23 = vpop.permute.xlu0 %2991  ;;  %v2842_v54 = vmul.f32 %v2841_v3, %v7680_v57 }
 0xc8f   :  { %v2743_v1 = vadd.f32 %v2742_v21, %v2733_v45  ;;  %v2832_v59 = vmul.f32 %v2831_v43, %v7671_v13 }
 0xc90   :  { %v7748_v35 = vpop.permute.xlu1 %2971 }
 0xc91   :  { %v2753_v15 = vadd.f32 %v2752_v31, %v2743_v1  ;;  %v5706_v1 = vld [vmem:[#allocation4 + $0x5] ss:$0 sm:$0xff]  ;;  %v7781_v52 = vpop.permute.xlu0 %3029 }
 0xc93   :  { %v2763_v39 = vadd.f32 %v2762_v42, %v2753_v15 }
 0xc95   :  { %v2773_v48 = vadd.f32 %v2772_v62, %v2763_v39  ;;  %v7759_v49 = vpop.permute.xlu1 %2981 }
 0xc97   :  { %v2783_v17 = vadd.f32 %v2782_v56, %v2773_v48 }
 0xc99   :  { %v2793_v38 = vadd.f32 %v2792_v40, %v2783_v17  ;;  %v2936_v40 = vpop.permute.xlu0 %2935 }
 0xc9a   :  { %v7767_v28 = vpop.permute.xlu1 %3001 }
 0xc9b   :  { %v2803_v41 = vadd.f32 %v2802_v14, %v2793_v38 }
 0xc9d   :  { %v2813_v50 = vadd.f32 %v2812_v46, %v2803_v41 }
 0xc9e   :  { %v2845_v19 = vpop.permute.xlu1 %2844 }
 0xc9f   :  { %v2823_v53 = vadd.f32 %v2822_v7, %v2813_v50  ;;  %v5707_v50 = vld [vmem:[#allocation4 + $0x6] ss:$0 sm:$0xff] }
 0xca1   :  { %v2833_v32 = vadd.f32 %v2832_v59, %v2823_v53 }
 0xca2   :  { %v2848_v45 = vpop.permute.xlu1 %2847 }
 0xca3   :  { %v2850_v21 = vsel %vm2007_vm14, %v2845_v19, %v2848_v45  ;;  %v2843_v13 = vadd.f32 %v2842_v54, %v2833_v32 }
 0xca4   :  { %v2851_v31 = vmul.f32 %v5706_v1, %v2850_v21 }
 0xca6   :  { %v2859_v15 = vrot.slane %v2851_v31, %v6024_v5  ;;  %v2869_v42 = vrot.slane %v2851_v31, %v6039_v10  ;;  %v7785_v2 = vpop.permute.xlu1 %3011  ;;  %v2879_v8 = vrot.slane %v2851_v31, %v6036_v9  ;;  %v2889_v56 = vrot.slane %v2851_v31, %v6021_v4 }
 0xca7   :  { %v2899_v17 = vrot.slane %v2851_v31, %v7172_v29 }
 0xca8   :  { %v2860_v62 = vmul.f32 %v2859_v15, %v7729_v24  ;;  %v2870_v16 = vmul.f32 %v2869_v42, %v2864_v60  ;;  %v2880_v22 = vmul.f32 %v2879_v8, %v7701_v20  ;;  %v2890_v38 = vmul.f32 %v2889_v56, %v7708_v18  ;;  %v3040_v56 = vpop.permute.xlu0 %3039 }
 0xca9   :  { %v2909_v24 = vrot.slane %v2851_v31, %v7182_v34  ;;  %v2900_v36 = vmul.f32 %v2899_v17, %v2894_v61  ;;  %v2919_v60 = vrot.slane %v2851_v31, %v7192_v44  ;;  %v2929_v20 = vrot.slane %v2851_v31, %v7200_v47 }
 0xcaa   :  { %v2861_v39 = vadd.f32 %v2860_v62, %v2843_v13  ;;  %v2933_v48 = vpop.permute.xlu1 %2932 }
 0xcab   :  { %v2938_v14 = vsel %vm2101_vm15, %v2933_v48, %v2936_v40  ;;  %v2910_v43 = vmul.f32 %v2909_v24, %v7716_v12  ;;  %v2920_v45 = vmul.f32 %v2919_v60, %v7727_v25  ;;  %v2930_v3 = vmul.f32 %v2929_v20, %v2924_v27  ;;  %v5708_v24 = vld [vmem:[#allocation4 + $0x7] ss:$0 sm:$0xff] }
 0xcac   :  { %v2871_v57 = vadd.f32 %v2870_v16, %v2861_v39  ;;  %v2939_v7 = vmul.f32 %v5707_v50, %v2938_v14 }
 0xcae   :  { %v2881_v30 = vadd.f32 %v2880_v22, %v2871_v57  ;;  %v3050_v46 = vpop.permute.xlu1 %3049  ;;  %v2947_v18 = vrot.slane %v2939_v7, %v6024_v5  ;;  %v2957_v32 = vrot.slane %v2939_v7, %v6039_v10  ;;  %v2967_v54 = vrot.slane %v2939_v7, %v6036_v9 }
 0xcaf   :  { %v2977_v31 = vrot.slane %v2939_v7, %v6021_v4  ;;  %v2987_v25 = vrot.slane %v2939_v7, %v7172_v29  ;;  %v2997_v16 = vrot.slane %v2939_v7, %v7182_v34 }
 0xcb0   :  { %v2891_v41 = vadd.f32 %v2890_v38, %v2881_v30  ;;  %v2948_v1 = vmul.f32 %v2947_v18, %v7735_v26  ;;  %v2958_v12 = vmul.f32 %v2957_v32, %v7743_v55  ;;  %v2968_v62 = vmul.f32 %v2967_v54, %v2962_v11  ;;  %v3070_v38 = vpop.permute.xlu0 %3069 }
 0xcb1   :  { %v2978_v27 = vmul.f32 %v2977_v31, %v7748_v35  ;;  %v2988_v48 = vmul.f32 %v2987_v25, %v7759_v49  ;;  %v3007_v55 = vrot.slane %v2939_v7, %v7192_v44  ;;  %v2998_v22 = vmul.f32 %v2997_v16, %v7774_v23 }
 0xcb2   :  { %v2901_v19 = vadd.f32 %v2900_v36, %v2891_v41  ;;  %v3017_v30 = vrot.slane %v2939_v7, %v7200_v47 }
 0xcb3   :  { %v3060_v53 = vpop.permute.xlu1 %3059  ;;  %v3008_v14 = vmul.f32 %v3007_v55, %v7767_v28 }
 0xcb4   :  { %v2911_v59 = vadd.f32 %v2910_v43, %v2901_v19  ;;  %v3018_v49 = vmul.f32 %v3017_v30, %v7785_v2  ;;  %v3100_v20 = vpop.permute.xlu0 %3099 }
 0xcb6   :  { %v2921_v21 = vadd.f32 %v2920_v45, %v2911_v59 }
 0xcb8   :  { %v2931_v61 = vadd.f32 %v2930_v3, %v2921_v21  ;;  %v3080_v15 = vpop.permute.xlu1 %3079  ;;  %v3112_v54 = vpop.permute.xlu0 %3111 }
 0xcba   :  { %v2949_v42 = vadd.f32 %v2948_v1, %v2931_v61 }
 0xcbc   :  { %v2959_v13 = vadd.f32 %v2958_v12, %v2949_v42 }
 0xcbd   :  { %v3090_v8 = vpop.permute.xlu1 %3089 }
 0xcbe   :  { %v2969_v39 = vadd.f32 %v2968_v62, %v2959_v13  ;;  %v5709_v62 = vld [vmem:[#allocation4 + $0x8] ss:$0 sm:$0xff] }
 0xcc0   :  { %v2979_v26 = vadd.f32 %v2978_v27, %v2969_v39 }
 0xcc1   :  { %v3021_v40 = vpop.permute.xlu1 %3020 }
 0xcc2   :  { %v2989_v57 = vadd.f32 %v2988_v48, %v2979_v26 }
 0xcc4   :  { %v2999_v17 = vadd.f32 %v2998_v22, %v2989_v57 }
 0xcc5   :  { %v3024_v11 = vpop.permute.xlu1 %3023 }
 0xcc6   :  { %v3026_v35 = vsel %vm2195_vm9, %v3021_v40, %v3024_v11  ;;  %v3009_v36 = vadd.f32 %v3008_v14, %v2999_v17  ;;  %v3138_v14 = vpop.permute.xlu0 %3137 }
 0xcc7   :  { %v3027_v41 = vmul.f32 %v5708_v24, %v3026_v35 }
 0xcc8   :  { %v3019_v23 = vadd.f32 %v3018_v49, %v3009_v36 }
 0xcc9   :  { %v3118_v60 = vpop.permute.xlu1 %3117  ;;  %v3035_v50 = vrot.slane %v3027_v41, %v6024_v5  ;;  %v3045_v19 = vrot.slane %v3027_v41, %v6039_v10  ;;  %v3055_v28 = vrot.slane %v3027_v41, %v6036_v9  ;;  %v3065_v45 = vrot.slane %v3027_v41, %v6021_v4 }
 0xcca   :  { %v3075_v32 = vrot.slane %v3027_v41, %v7172_v29  ;;  %v3085_v1 = vrot.slane %v3027_v41, %v7182_v34  ;;  %v3095_v13 = vrot.slane %v3027_v41, %v7192_v44 }
 0xccb   :  { %v3036_v43 = vmul.f32 %v3035_v50, %v7781_v52  ;;  %v3046_v59 = vmul.f32 %v3045_v19, %v3040_v56  ;;  %v3056_v3 = vmul.f32 %v3055_v28, %v3050_v46  ;;  %v3066_v61 = vmul.f32 %v3065_v45, %v3060_v53  ;;  %v3168_v19 = vpop.permute.xlu0 %3167 }
 0xccc   :  { %v3076_v42 = vmul.f32 %v3075_v32, %v3070_v38  ;;  %v3086_v27 = vmul.f32 %v3085_v1, %v3080_v15  ;;  %v3105_v46 = vrot.slane %v3027_v41, %v7200_v47  ;;  %v3096_v26 = vmul.f32 %v3095_v13, %v3090_v8  ;;  %v7843_v13 = vld [vmem:[%s8742_s8 + $0x8] sm:$0x7] }
 0xccd   :  { %v3037_v7 = vadd.f32 %v3036_v43, %v3019_v23 }
 0xcce   :  { %v3128_v18 = vpop.permute.xlu1 %3127  ;;  %v3106_v40 = vmul.f32 %v3105_v46, %v3100_v20  ;;  %v9031_v46 = vmov 79  }
 0xccf   :  { %v3047_v21 = vadd.f32 %v3046_v59, %v3037_v7  ;;  %v3198_v32 = vpop.permute.xlu0 %3197 }
 0xcd1   :  { %v3057_v2 = vadd.f32 %v3056_v3, %v3047_v21 }
 0xcd2   :  { %v3109_v12 = vpop.permute.xlu1 %3108 }
 0xcd3   :  { %v3114_v52 = vsel %vm2289_vm7, %v3109_v12, %v3112_v54  ;;  %v3067_v31 = vadd.f32 %v3066_v61, %v3057_v2  ;;  %vm3912_vm7 = vcmask 1042432  }
 0xcd4   :  { %v3115_v25 = vmul.f32 %v5709_v62, %v3114_v52  ;;  %v9027_v62 = vmov 67  }
 0xcd5   :  { %v3077_v39 = vadd.f32 %v3076_v42, %v3067_v31  ;;  %v5710_v42 = vld [vmem:[%s8744_s10] sm:$0xf] }
 0xcd6   :  { %v3148_v16 = vpop.permute.xlu1 %3147  ;;  %v3123_v53 = vrot.slane %v3115_v25, %v6024_v5  ;;  %v3133_v55 = vrot.slane %v3115_v25, %v6039_v10  ;;  %v3143_v17 = vrot.slane %v3115_v25, %v6036_v9  ;;  %v3153_v15 = vrot.slane %v3115_v25, %v6021_v4 }
 0xcd7   :  { %v3087_v56 = vadd.f32 %v3086_v27, %v3077_v39  ;;  %v3173_v36 = vrot.slane %v3115_v25, %v7182_v34  ;;  %v3163_v50 = vrot.slane %v3115_v25, %v7172_v29  ;;  %v3183_v20 = vrot.slane %v3115_v25, %v7192_v44 }
 0xcd8   :  { %v3124_v22 = vmul.f32 %v3123_v53, %v3118_v60  ;;  %v3134_v38 = vmul.f32 %v3133_v55, %v3128_v18  ;;  %v3144_v24 = vmul.f32 %v3143_v17, %v3138_v14  ;;  %v3154_v49 = vmul.f32 %v3153_v15, %v3148_v16 }
 0xcd9   :  { %v3097_v48 = vadd.f32 %v3096_v26, %v3087_v56  ;;  %v3174_v43 = vmul.f32 %v3173_v36, %v3168_v19  ;;  %v3193_v18 = vrot.slane %v3115_v25, %v7200_v47  ;;  %v9026_v29 = vmov 0.0  }
 0xcda   :  { %v9028_v25 = vmov 70   ;;  %v9029_v39 = vmov 72   ;;  %v9030_v27 = vmov 76   ;;  %v9032_v16 = vmov 82  }
 0xcdb   :  { %v3107_v57 = vadd.f32 %v3106_v40, %v3097_v48  ;;  %v3158_v11 = vpop.permute.xlu1 %3157  ;;  %v9033_v55 = vmov 61   ;;  %v9036_v17 = vmov 64   ;;  %v9038_v14 = vmov 66  }
 0xcdc   :  { %v3164_v60 = vmul.f32 %v3163_v50, %v3158_v11  ;;  %v9037_v11 = vmov 65   ;;  %v9041_v15 = vmov 71   ;;  %v9046_v36 = vmov 78  }
 0xcdd   :  { %v3125_v30 = vadd.f32 %v3124_v22, %v3107_v57  ;;  %v9034_v57 = vmov 62   ;;  %v9035_v22 = vmov 63  }
 0xcdf   :  { %v3135_v35 = vadd.f32 %v3134_v38, %v3125_v30  ;;  %v9039_v30 = vmov 68   ;;  %v9040_v38 = vmov 69  }
 0xce0   :  { %v3178_v41 = vpop.permute.xlu1 %3177 }
 0xce1   :  { %v3145_v8 = vadd.f32 %v3144_v24, %v3135_v35  ;;  %v3184_v45 = vmul.f32 %v3183_v20, %v3178_v41  ;;  %v9042_v35 = vmov 73   ;;  %v9043_v24 = vmov 74  }
 0xce2   :  { %v9044_v41 = vmov 75   ;;  %v9049_v20 = vmov 80  }
 0xce3   :  { %v3155_v23 = vadd.f32 %v3154_v49, %v3145_v8  ;;  %v9045_v8 = vmov 77  }
 0xce5   :  { %v3165_v28 = vadd.f32 %v3164_v60, %v3155_v23  ;;  %v3188_v7 = vpop.permute.xlu1 %3187 }
 0xce6   :  { %v3194_v3 = vmul.f32 %v3193_v18, %v3188_v7  ;;  %v9050_v7 = vmov 92   ;;  %v9053_v18 = vmov 85  }
 0xce7   :  { %v3175_v59 = vadd.f32 %v3174_v43, %v3165_v28  ;;  %v9047_v43 = vmov 84   ;;  %v9048_v28 = vmov 88  }
 0xce9   :  { %v3185_v21 = vadd.f32 %v3184_v45, %v3175_v59  ;;  %v9051_v59 = vmov 81   ;;  %v9052_v45 = vmov 83  }
 0xceb   :  { %v3195_v2 = vadd.f32 %v3194_v3, %v3185_v21  ;;  %v9054_v21 = vmov 96   ;;  %v9055_v3 = vmov 86  }
 0xced   :  { %v3200_v34 = vadd.f32 %v3198_v32, %v3195_v2  ;;  %v9056_v2 = vmov 99  }
 0xcef   :  { %5079 = vmatmul.mubr.msk.f32.vlgmr.msra.gmra.mrb[2].mxu1 %vm1517_vm10, %v3200_v34  ;;  %v9057_v34 = vmov 87  }
 0xcf0   :  { %3833 = vmatprep.mubr.f32.mxu1 %v9026_v29 }
 0xdc2   :  { %v3274_v61 = vpop.f32.mrb[2].mxu1 }
 0xdc3   :  { %v5080_v1 = vpop.f32.mrb[3].mxu1  ;;  %v3278_v54 = vsel %vm950_vm8, %v3274_v61, 0.0 }
 0xdc4   :  { %3279 = vadd.xlane.f32.xlu1 %v3278_v54  ;;  %v9059_v54 = vmov 90  }
 0xe51   :  { %v3280_v44 = vpop.xlane.xlu1 %3279 }
 0xe52   :  { %v3281_v12 = vmul.f32 0.0078125, %v3280_v44  ;;  %v3706_v44 = vld [vmem:[%s8741_s7 + $0x8] sm:$0xff] }
 0xe54   :  { %v3282_v52 = vsub.f32 %v3274_v61, %v3281_v12  ;;  %v9058_v61 = vmov 89   ;;  %v3710_v12 = vld [vmem:[%s8741_s7 + $0x28] sm:$0xff] }
 0xe56   :  { %v3283_v31 = vmul.f32 %v3282_v52, %v3282_v52 }
 0xe58   :  { %v3284_v47 = vsel %vm950_vm8, %v3283_v31, 0.0  ;;  %v5175_v31 = vpack.c.bf16 %v3710_v12, %v3706_v44  ;;  %v9062_v44 = vmov 94  }
 0xe59   :  { %3285 = vadd.xlane.f32.xlu0 %v3284_v47  ;;  %v3712_v47 = vld [vmem:[%s8741_s7 + $0x38] sm:$0xff] }
 0xe5a   :  { %5176 = vmatprep.subr.bf16.mxu1 %v5175_v31  ;;  %v3731_v31 = vld [vmem:[%s8741_s7 + $0xd0] sm:$0xff] }
 0xe6f   :  { %3298 = vperm.xlu0 %5620, %v5710_v42  }
 0xe73   :  { %5627 = vset.pattern.permute.xlu0 %v9027_v62  ;;  %v3709_v62 = vld [vmem:[%s8741_s7 + $0x20] sm:$0xff] }
 0xe74   :  { %3375 = vperm.xlu0 %5627, %v7843_v13  }
 0xe78   :  { %5630 = vset.pattern.permute.xlu0 %v9028_v25 }
 0xe79   :  { %3409 = vperm.xlu0 %5630, %v7843_v13  }
 0xe7d   :  { %5632 = vset.pattern.permute.xlu0 %v9029_v39 }
 0xe7e   :  { %3429 = vperm.xlu0 %5632, %v7843_v13  }
 0xe82   :  { %5636 = vset.pattern.permute.xlu0 %v9030_v27 }
 0xe83   :  { %3473 = vperm.xlu0 %5636, %v7843_v13  }
 0xe87   :  { %5639 = vset.pattern.permute.xlu0 %v9031_v46  ;;  %v3707_v46 = vld [vmem:[%s8741_s7 + $0x10] sm:$0xff] }
 0xe88   :  { %3503 = vperm.xlu0 %5639, %v7843_v13  }
 0xe8c   :  { %5642 = vset.pattern.permute.xlu0 %v9032_v16  ;;  %v3711_v16 = vld [vmem:[%s8741_s7 + $0x30] sm:$0xff] }
 0xee6   :  { %v3286_v56 = vpop.xlane.xlu0 %3285 }
 0xee7   :  { %v3287_v26 = vmul.f32 0.0078125, %v3286_v56  ;;  %v5209_v56 = vpack.c.bf16 %v3711_v16, %v3707_v46  ;;  %v3744_v16 = vld [vmem:[%s8741_s7 + $0x138] sm:$0xff] }
 0xee9   :  { %v3288_v53 = vadd.f32 1e-05, %v3287_v26  ;;  %v9060_v26 = vmov 91  }
 0xeeb   :  { %5695 = vrsqrt.f32 %v3288_v53  ;;  %v3714_v53 = vld [vmem:[%s8741_s7 + $0x48] sm:$0xff] }
 0xeee   :  { %v3299_v19 = vpop.permute.xlu0 %3298 }
 0xef5   :  { %v5696_v48 = vpop.eup %5695 }
 0xef6   :  { %v3290_v40 = vmul.f32 %v5710_v42, %v5696_v48  ;;  %v3705_v42 = vld [vmem:[%s8741_s7] sm:$0xff]  ;;  %v3718_v48 = vld [vmem:[%s8741_s7 + $0x68] sm:$0xff] }
 0xef7   :  { %v5177_v27 = vpack.c.bf16 %v3709_v62, %v3705_v42  ;;  %v3738_v62 = vld [vmem:[%s8741_s7 + $0x108] sm:$0xff] }
 0xef8   :  { %3293 = vperm.xlu1 %5619, %v3290_v40   ;;  %v3716_v40 = vld [vmem:[%s8741_s7 + $0x58] sm:$0xff] }
 0xef9   :  { %5178 = vmatpush1.bf16.msra.mxu1 %v5177_v27  ;;  %v3740_v27 = vld [vmem:[%s8741_s7 + $0x118] sm:$0xff] }
 0xefc   :  { %5621 = vset.pattern.permute.xlu1 %v9033_v55  ;;  %v5179_v55 = vpack.c.bf16 %v3718_v48, %v3714_v53  ;;  %v5223_v53 = vpack.c.bf16 %v3744_v16, %v3740_v27  ;;  %v3763_v27 = vld [vmem:[%s8741_s7 + $0x1d0] sm:$0xff] }
 0xefd   :  { %3311 = vperm.xlu1 %5621, %v7843_v13  }
 0xefe   :  { %5180 = vmatprep.subr.bf16.mxu1 %v5179_v55  ;;  %v3743_v55 = vld [vmem:[%s8741_s7 + $0x130] sm:$0xff] }
 0xf01   :  { %5622 = vset.pattern.permute.xlu1 %v9034_v57  ;;  %v3720_v57 = vld [vmem:[%s8741_s7 + $0x78] sm:$0xff] }
 0xf02   :  { %3321 = vperm.xlu1 %5622, %v7843_v13  }
 0xf06   :  { %5623 = vset.pattern.permute.xlu1 %v9035_v22  ;;  %v3713_v22 = vld [vmem:[%s8741_s7 + $0x40] sm:$0xff] }
 0xf07   :  { %3331 = vperm.xlu1 %5623, %v7843_v13  }
 0xf0b   :  { %5624 = vset.pattern.permute.xlu1 %v9036_v17  ;;  %v3717_v17 = vld [vmem:[%s8741_s7 + $0x60] sm:$0xff] }
 0xf0c   :  { %3341 = vperm.xlu1 %5624, %v7843_v13  }
 0xf10   :  { %5625 = vset.pattern.permute.xlu1 %v9037_v11  ;;  %v5211_v11 = vpack.c.bf16 %v3720_v57, %v3716_v40  ;;  %v3739_v40 = vld [vmem:[%s8741_s7 + $0x110] sm:$0xff]  ;;  %v3746_v57 = vld [vmem:[%s8741_s7 + $0x148] sm:$0xff] }
 0xf11   :  { %3355 = vperm.xlu1 %5625, %v7843_v13  }
 0xf15   :  { %5626 = vset.pattern.permute.xlu1 %v9038_v14  ;;  %v5181_v14 = vpack.c.bf16 %v3717_v17, %v3713_v22  ;;  %v9063_v22 = vmov 95   ;;  %v5225_v17 = vpack.c.bf16 %v3743_v55, %v3739_v40 }
 0xf16   :  { %3365 = vperm.xlu1 %5626, %v7843_v13  }
 0xf17   :  { %5182 = vmatpush1.bf16.msra.mxu1 %v5181_v14  ;;  %v3748_v14 = vld [vmem:[%s8741_s7 + $0x158] sm:$0xff] }
 0xf1a   :  { %5628 = vset.pattern.permute.xlu1 %v9039_v30  ;;  %v3715_v30 = vld [vmem:[%s8741_s7 + $0x50] sm:$0xff] }
 0xf1b   :  { %3385 = vperm.xlu1 %5628, %v7843_v13  }
 0xf1f   :  { %5629 = vset.pattern.permute.xlu1 %v9040_v38  ;;  %v3719_v38 = vld [vmem:[%s8741_s7 + $0x70] sm:$0xff] }
 0xf20   :  { %3399 = vperm.xlu1 %5629, %v7843_v13  }
 0xf24   :  { %5631 = vset.pattern.permute.xlu1 %v9041_v15  ;;  %v5213_v15 = vpack.c.bf16 %v3719_v38, %v3715_v30  ;;  %v3752_v30 = vld [vmem:[%s8741_s7 + $0x178] sm:$0xff] }
 0xf25   :  { %3419 = vperm.xlu1 %5631, %v7843_v13  }
 0xf29   :  { %5633 = vset.pattern.permute.xlu1 %v9042_v35 }
 0xf2a   :  { %3443 = vperm.xlu1 %5633, %v7843_v13  }
 0xf2e   :  { %5634 = vset.pattern.permute.xlu1 %v9043_v24  ;;  %v3722_v24 = vld [vmem:[%s8741_s7 + $0x88] sm:$0xff] }
 0xf2f   :  { %3453 = vperm.xlu1 %5634, %v7843_v13  }
 0xf33   :  { %5635 = vset.pattern.permute.xlu1 %v9044_v41  ;;  %v3726_v41 = vld [vmem:[%s8741_s7 + $0xa8] sm:$0xff] }
 0xf34   :  { %3463 = vperm.xlu1 %5635, %v7843_v13  }
 0xf38   :  { %5637 = vset.pattern.permute.xlu1 %v9045_v8  ;;  %v3724_v8 = vld [vmem:[%s8741_s7 + $0x98] sm:$0xff] }
 0xf39   :  { %3483 = vperm.xlu1 %5637, %v7843_v13  }
 0xf3d   :  { %5638 = vset.pattern.permute.xlu1 %v9046_v36  ;;  %v9061_v36 = vmov 93  }
 0xf77   :  { %v3294_v49 = vpop.permute.xlu1 %3293 }
 0xf78   :  { %v3296_v50 = vmul.f32 %v3294_v49, %v3282_v52  ;;  %v3708_v52 = vld [vmem:[%s8741_s7 + $0x18] sm:$0xff]  ;;  %v5183_v49 = vpack.c.bf16 %v3726_v41, %v3722_v24  ;;  %v5227_v24 = vpack.c.bf16 %v3752_v30, %v3748_v14  ;;  %v3745_v41 = vld [vmem:[%s8741_s7 + $0x140] sm:$0xff] }
 0xf79   :  { %v5207_v39 = vpack.c.bf16 %v3712_v47, %v3708_v52  ;;  %v3735_v47 = vld [vmem:[%s8741_s7 + $0xf0] sm:$0xff] }
 0xf7a   :  { %v3301_v23 = vadd.f32 %v3299_v19, %v3296_v50  ;;  %v3728_v50 = vld [vmem:[%s8741_s7 + $0xb8] sm:$0xff]  ;;  %v3721_v19 = vld [vmem:[%s8741_s7 + $0x80] sm:$0xff]  ;;  %5184 = vmatprep.subr.bf16.mxu1 %v5183_v49  ;;  %v5221_v42 = vpack.c.bf16 %v3735_v47, %v3731_v31 }
 0xf7b   :  { %5208 = vmatprep.subr.bf16.mxu0 %v5207_v39  ;;  %v3742_v39 = vld [vmem:[%s8741_s7 + $0x128] sm:$0xff]  ;;  %v8094_v49 = vld [vmem:[%s8743_s9] sm:$0x7] }
 0xf7c   :  { %v7883_v60 = vmax.f32 %v3301_v23, 0.0  ;;  %v7919_v32 = vpop.permute.xlu1 %3311  ;;  %5210 = vmatpush1.bf16.msra.mxu0 %v5209_v56  ;;  %v3725_v23 = vld [vmem:[%s8741_s7 + $0xa0] sm:$0xff]  ;;  %v5191_v46 = vpack.c.bf16 %v3742_v39, %v3738_v62 }
 0xf7d   :  { %5212 = vmatprep.subr.bf16.mxu0 %v5211_v11  ;;  %v3737_v56 = vld [vmem:[%s8741_s7 + $0x100] sm:$0xff]  ;;  %v3750_v11 = vld [vmem:[%s8741_s7 + $0x168] sm:$0xff] }
 0xf7e   :  { %3438 = vrot.lane.b32.xlu0 %v7883_v60, %s5780_s29  ;;  %3305 = vrot.lane.b32.xlu1 %v7883_v60, %s5807_s3  ;;  %v3765_v62 = vld [vmem:[%s8741_s7 + $0x1e0] sm:$0xff] }
 0xf80   :  { %5214 = vmatpush1.bf16.msra.mxu0 %v5213_v15  ;;  %v5195_v15 = vpack.c.bf16 %v3750_v11, %v3746_v57  ;;  %v3376_v57 = vpop.permute.xlu0 %3375 }
 0xf81   :  { %v7925_v29 = vpop.permute.xlu1 %3321 }
 0xf82   :  { %3537 = vperm.xlu0 %5642, %v7843_v13   ;;  %3350 = vrot.lane.b32.xlu1 %v7883_v60, %s5770_s28 }
 0xf86   :  { %5644 = vset.pattern.permute.xlu0 %v9047_v43  ;;  %3493 = vperm.xlu1 %5638, %v7843_v13   ;;  %v7930_v1 = vpop.permute.xlu1 %3331  ;;  %v5215_v43 = vpack.c.bf16 %v3728_v50, %v3724_v8  ;;  %v3749_v8 = vld [vmem:[%s8741_s7 + $0x160] sm:$0xff] }
 0xf87   :  { %3557 = vperm.xlu0 %5644, %v7843_v13   ;;  %v5197_v50 = vpack.c.bf16 %v3749_v8, %v3745_v41 }
 0xf88   :  { %5216 = vmatprep.subr.bf16.mxu0 %v5215_v43  ;;  %v3754_v43 = vld [vmem:[%s8741_s7 + $0x188] sm:$0xff] }
 0xf8a   :  { %3394 = vrot.lane.b32.xlu1 %v7883_v60, %s5808_s23 }
 0xf8b   :  { %5648 = vset.pattern.permute.xlu0 %v9048_v28  ;;  %5640 = vset.pattern.permute.xlu1 %v9049_v20  ;;  %v7952_v25 = vpop.permute.xlu1 %3341  ;;  %v5185_v28 = vpack.c.bf16 %v3725_v23, %v3721_v19  ;;  %v3723_v20 = vld [vmem:[%s8741_s7 + $0x90] sm:$0xff] }
 0xf8c   :  { %3601 = vperm.xlu0 %5648, %v7843_v13   ;;  %v3751_v19 = vld [vmem:[%s8741_s7 + $0x170] sm:$0xff] }
 0xf8d   :  { %5186 = vmatpush1.bf16.msra.mxu1 %v5185_v28  ;;  %v3758_v28 = vld [vmem:[%s8741_s7 + $0x1a8] sm:$0xff] }
 0xf8e   :  { %3513 = vperm.xlu1 %5640, %v7843_v13  }
 0xf90   :  { %3566 = vrot.lane.b32.xlu0 %v7883_v60, %s5818_s24  ;;  %v7986_v35 = vpop.permute.xlu1 %3355 }
 0xf91   :  { %5652 = vset.pattern.permute.xlu0 %v9050_v7  ;;  %v3727_v7 = vld [vmem:[%s8741_s7 + $0xb0] sm:$0xff] }
 0xf92   :  { %5641 = vset.pattern.permute.xlu1 %v9051_v59  ;;  %v5217_v59 = vpack.c.bf16 %v3727_v7, %v3723_v20  ;;  %v3756_v20 = vld [vmem:[%s8741_s7 + $0x198] sm:$0xff]  ;;  %v5199_v7 = vpack.c.bf16 %v3758_v28, %v3754_v43 }
 0xf93   :  { %3527 = vperm.xlu1 %5641, %v7843_v13  }
 0xf94   :  { %3610 = vrot.lane.b32.xlu0 %v7883_v60, %s5820_s25  ;;  %5218 = vmatpush1.bf16.msra.mxu0 %v5217_v59  ;;  %v3760_v59 = vld [vmem:[%s8741_s7 + $0x1b8] sm:$0xff] }
 0xf97   :  { %5643 = vset.pattern.permute.xlu1 %v9052_v45  ;;  %v3730_v45 = vld [vmem:[%s8741_s7 + $0xc8] sm:$0xff] }
 0xf98   :  { %3645 = vperm.xlu0 %5652, %v7843_v13   ;;  %3547 = vperm.xlu1 %5643, %v7843_v13  }
 0xf9c   :  { %3654 = vrot.lane.b32.xlu0 %v7883_v60, %s5822_s15  ;;  %5645 = vset.pattern.permute.xlu1 %v9053_v18  ;;  %v3734_v18 = vld [vmem:[%s8741_s7 + $0xe8] sm:$0xff] }
 0xf9d   :  { %3571 = vperm.xlu1 %5645, %v7843_v13   ;;  %5656 = vset.pattern.permute.xlu0 %v9054_v21  ;;  %v3732_v21 = vld [vmem:[%s8741_s7 + $0xd8] sm:$0xff] }
 0xfa0   :  { %3689 = vperm.xlu0 %5656, %v7843_v13  }
 0xfa1   :  { %5646 = vset.pattern.permute.xlu1 %v9055_v3  ;;  %v5187_v3 = vpack.c.bf16 %v3734_v18, %v3730_v45  ;;  %v3753_v45 = vld [vmem:[%s8741_s7 + $0x180] sm:$0xff] }
 0xfa2   :  { %3581 = vperm.xlu1 %5646, %v7843_v13   ;;  %v3757_v18 = vld [vmem:[%s8741_s7 + $0x1a0] sm:$0xff] }
 0xfa3   :  { %5188 = vmatprep.subr.bf16.mxu1 %v5187_v3  ;;  %v3755_v3 = vld [vmem:[%s8741_s7 + $0x190] sm:$0xff] }
 0xfa4   :  { %5661 = vset.pattern.permute.xlu0 %v9056_v2  ;;  %v3736_v2 = vld [vmem:[%s8741_s7 + $0xf8] sm:$0xff] }
 0xfa5   :  { %v5219_v12 = vpack.c.bf16 %v3736_v2, %v3732_v21  ;;  %v5231_v21 = vpack.c.bf16 %v3760_v59, %v3756_v20  ;;  %v3759_v2 = vld [vmem:[%s8741_s7 + $0x1b0] sm:$0xff] }
 0xfa6   :  { %3522 = vrot.lane.b32.xlu1 %v7883_v60, %s5782_s30  ;;  %v5233_v31 = vpack.c.bf16 %v3759_v2, %v3755_v3 }
 0xfa7   :  { %5647 = vset.pattern.permute.xlu1 %v9057_v34  ;;  %v3729_v34 = vld [vmem:[%s8741_s7 + $0xc0] sm:$0xff]  ;;  %5220 = vmatprep.subr.bf16.mxu0 %v5219_v12  ;;  %v3768_v12 = vld [vmem:[%s8741_s7 + $0x1f8] sm:$0xff] }
 0xfa8   :  { %5222 = vmatpush1.bf16.msra.mxu0 %v5221_v42  ;;  %v3761_v42 = vld [vmem:[%s8741_s7 + $0x1c0] sm:$0xff] }
 0xfa9   :  { %5224 = vmatprep.subr.bf16.mxu0 %v5223_v53  ;;  %v5205_v16 = vpack.c.bf16 %v3765_v62, %v3761_v42 }
 0xfaa   :  { %3591 = vperm.xlu1 %5647, %v7843_v13  }
 0xfac   :  { %5226 = vmatpush1.bf16.msra.mxu0 %v5225_v17  ;;  %v5711_v17 = vld [vmem:[#allocation2] ss:$0 sm:$0xff] }
 0xfad   :  { %5228 = vmatprep.subr.bf16.mxu0 %v5227_v24 }
 0xfae   :  { %5649 = vset.pattern.permute.xlu1 %v9058_v61  ;;  %v3733_v61 = vld [vmem:[%s8741_s7 + $0xe0] sm:$0xff] }
 0xfaf   :  { %3615 = vperm.xlu1 %5649, %v7843_v13   ;;  %v5189_v52 = vpack.c.bf16 %v3733_v61, %v3729_v34  ;;  %v3762_v34 = vld [vmem:[%s8741_s7 + $0x1c8] sm:$0xff]  ;;  %v5201_v61 = vpack.c.bf16 %v3757_v18, %v3753_v45 }
 0xfb1   :  { %5190 = vmatpush1.bf16.msra.mxu1 %v5189_v52 }
 0xfb2   :  { %5192 = vmatprep.subr.bf16.mxu1 %v5191_v46  ;;  %v3767_v46 = vld [vmem:[%s8741_s7 + $0x1f0] sm:$0xff] }
 0xfb3   :  { %5650 = vset.pattern.permute.xlu1 %v9059_v54  ;;  %v8032_v54 = vpop.permute.xlu1 %3365 }
 0xfb4   :  { %3625 = vperm.xlu1 %5650, %v7843_v13  }
 0xfb7   :  { %v8079_v38 = vpop.permute.xlu1 %3385 }
 0xfb8   :  { %5651 = vset.pattern.permute.xlu1 %v9060_v26  ;;  %v3741_v26 = vld [vmem:[%s8741_s7 + $0x120] sm:$0xff] }
 0xfb9   :  { %3635 = vperm.xlu1 %5651, %v7843_v13   ;;  %v5193_v48 = vpack.c.bf16 %v3741_v26, %v3737_v56  ;;  %v5237_v56 = vpack.c.bf16 %v3767_v46, %v3763_v27  ;;  %v5714_v27 = vld [vmem:[#allocation2 + $0x3] ss:$0 sm:$0xff] }
 0xfbb   :  { %5194 = vmatpush1.bf16.msra.mxu1 %v5193_v48  ;;  %v8137_v52 = vpop.permute.xlu1 %3399 }
 0xfbc   :  { %5196 = vmatprep.subr.bf16.mxu1 %v5195_v15  ;;  %v3410_v15 = vpop.permute.xlu0 %3409 }
 0xfbd   :  { %5653 = vset.pattern.permute.xlu1 %v9061_v36  ;;  %v3747_v36 = vld [vmem:[%s8741_s7 + $0x150] sm:$0xff] }
 0xfbe   :  { %3659 = vperm.xlu1 %5653, %v7843_v13   ;;  %v5229_v23 = vpack.c.bf16 %v3751_v19, %v3747_v36 }
 0xfbf   :  { %5198 = vmatpush1.bf16.msra.mxu1 %v5197_v50  ;;  %v3420_v26 = vpop.permute.xlu1 %3419 }
 0xfc0   :  { %5230 = vmatpush1.bf16.msra.mxu0 %v5229_v23  ;;  %5200 = vmatprep.subr.bf16.mxu1 %v5199_v7  ;;  %v5712_v23 = vld [vmem:[#allocation2 + $0x1] ss:$0 sm:$0xff]  ;;  %v3430_v20 = vpop.permute.xlu0 %3429 }
 0xfc1   :  { %5232 = vmatprep.subr.bf16.mxu0 %v5231_v21 }
 0xfc2   :  { %5654 = vset.pattern.permute.xlu1 %v9062_v44  ;;  %v3764_v44 = vld [vmem:[%s8741_s7 + $0x1d8] sm:$0xff] }
 0xfc3   :  { %3669 = vperm.xlu1 %5654, %v7843_v13   ;;  %v5235_v39 = vpack.c.bf16 %v3768_v12, %v3764_v44  ;;  %5202 = vmatpush1.bf16.msra.mxu1 %v5201_v61  ;;  %v3444_v53 = vpop.permute.xlu1 %3443 }
 0xfc4   :  { %5234 = vmatpush1.bf16.msra.mxu0 %v5233_v31  ;;  %v5713_v31 = vld [vmem:[#allocation2 + $0x2] ss:$0 sm:$0xff] }
 0xfc5   :  { %5236 = vmatprep.subr.bf16.mxu0 %v5235_v39 }
 0xfc7   :  { %5655 = vset.pattern.permute.xlu1 %v9063_v22  ;;  %v8152_v48 = vpop.permute.xlu1 %3453 }
 0xfc8   :  { %3679 = vperm.xlu1 %5655, %v7843_v13   ;;  %5238 = vmatpush1.bf16.msra.mxu0 %v5237_v56 }
 0xfcb   :  { %v8154_v40 = vpop.permute.xlu1 %3463 }
 0xfcc   :  { %5657 = vset.pattern.permute.xlu1 %v8968_v51  ;;  %v3766_v51 = vld [vmem:[%s8741_s7 + $0x1e8] sm:$0xff] }
 0xfcd   :  { %3701 = vperm.xlu1 %5657, %v8094_v49   ;;  %v5203_v47 = vpack.c.bf16 %v3766_v51, %v3762_v34 }
 0xfcf   :  { %5204 = vmatprep.subr.bf16.mxu1 %v5203_v47  ;;  %v8156_v55 = vpop.permute.xlu1 %3483 }
 0xfd0   :  { %5206 = vmatpush1.bf16.msra.mxu1 %v5205_v16 }
 0xfd1   :  { %5658 = vset.pattern.permute.xlu1 %v8980_v58 }
 0xff0   :  { %v3306_v22 = vpop.permute.xlu1 %3305 }
 0xff1   :  { %v3308_v11 = vmul.f32 %v5711_v17, %v3306_v22 }
 0xff3   :  { %v3317_v58 = vrot.slane %v3308_v11, %v6024_v5  ;;  %v3327_v14 = vrot.slane %v3308_v11, %v6039_v10  ;;  %v3337_v30 = vrot.slane %v3308_v11, %v6036_v9  ;;  %v3347_v19 = vrot.slane %v3308_v11, %v6021_v4 }
 0xff4   :  { %v3351_v8 = vpop.permute.xlu1 %3350 }
 0xff5   :  { %v3318_v24 = vmul.f32 %v3317_v58, %v7919_v32  ;;  %v3328_v41 = vmul.f32 %v3327_v14, %v7925_v29  ;;  %v3338_v50 = vmul.f32 %v3337_v30, %v7930_v1  ;;  %v3353_v43 = vmul.f32 %v5712_v23, %v3351_v8  ;;  %v3474_v29 = vpop.permute.xlu0 %3473 }
 0xff6   :  { %v3348_v7 = vmul.f32 %v3347_v19, %v7952_v25 }
 0xff7   :  { %v3329_v36 = vadd.f32 %v3328_v41, %v3318_v24  ;;  %v3361_v59 = vrot.slane %v3353_v43, %v6024_v5  ;;  %v3371_v32 = vrot.slane %v3353_v43, %v6039_v10  ;;  %v3381_v1 = vrot.slane %v3353_v43, %v6036_v9 }
 0xff8   :  { %v3391_v44 = vrot.slane %v3353_v43, %v6021_v4 }
 0xff9   :  { %v3339_v28 = vadd.f32 %v3338_v50, %v3329_v36  ;;  %v3362_v18 = vmul.f32 %v3361_v59, %v7986_v35  ;;  %v3372_v3 = vmul.f32 %v3371_v32, %v8032_v54  ;;  %v3504_v61 = vpop.permute.xlu0 %3503  ;;  %v3382_v51 = vmul.f32 %v3381_v1, %v3376_v57 }
 0xffa   :  { %v3392_v35 = vmul.f32 %v3391_v44, %v8079_v38 }
 0xffb   :  { %v3349_v45 = vadd.f32 %v3348_v7, %v3339_v28 }
 0xffd   :  { %v3363_v21 = vadd.f32 %v3362_v18, %v3349_v45  ;;  %v3439_v42 = vpop.permute.xlu0 %3438  ;;  %v3489_v45 = vrot.slane %v7883_v60, %v6024_v5 }
 0xffe   :  { %v3441_v46 = vmul.f32 %v5714_v27, %v3439_v42 }
 0xfff   :  { %v3373_v34 = vadd.f32 %v3372_v3, %v3363_v21  ;;  %v3499_v21 = vrot.slane %v7883_v60, %v6039_v10 }
0x1000   :  { %v3449_v58 = vrot.slane %v3441_v46, %v6024_v5  ;;  %v3459_v24 = vrot.slane %v3441_v46, %v6039_v10  ;;  %v3469_v19 = vrot.slane %v3441_v46, %v6036_v9 }
0x1001   :  { %v3383_v12 = vadd.f32 %v3382_v51, %v3373_v34  ;;  %v3538_v36 = vpop.permute.xlu0 %3537 }
0x1002   :  { %v3450_v50 = vmul.f32 %v3449_v58, %v3444_v53  ;;  %v3460_v43 = vmul.f32 %v3459_v24, %v8152_v48  ;;  %v3470_v7 = vmul.f32 %v3469_v19, %v8154_v40  ;;  %v3490_v53 = vmul.f32 %v3489_v45, %v8156_v55 }
0x1003   :  { %v3393_v16 = vadd.f32 %v3392_v35, %v3383_v12  ;;  %v3509_v48 = vrot.slane %v7883_v60, %v6036_v9 }
0x1005   :  { %v3494_v2 = vpop.permute.xlu1 %3493 }
0x1006   :  { %v3500_v1 = vmul.f32 %v3499_v21, %v3494_v2 }
0x1009   :  { %v3395_v25 = vpop.permute.xlu1 %3394 }
0x100a   :  { %v3397_v47 = vmul.f32 %v5713_v31, %v3395_v25  ;;  %v3510_v25 = vmul.f32 %v3509_v48, %v3504_v61 }
0x100c   :  { %v3405_v62 = vrot.slane %v3397_v47, %v6024_v5  ;;  %v3415_v39 = vrot.slane %v3397_v47, %v6039_v10  ;;  %v3425_v57 = vrot.slane %v3397_v47, %v6036_v9  ;;  %v3435_v11 = vrot.slane %v3397_v47, %v6021_v4  ;;  %v5715_v47 = vld [vmem:[#allocation2 + $0x5] ss:$0 sm:$0xff] }
0x100d   :  { %v3514_v54 = vpop.permute.xlu1 %3513 }
0x100e   :  { %v3406_v56 = vmul.f32 %v3405_v62, %v8137_v52  ;;  %v3416_v17 = vmul.f32 %v3415_v39, %v3410_v15  ;;  %v3426_v38 = vmul.f32 %v3425_v57, %v3420_v26  ;;  %v3436_v8 = vmul.f32 %v3435_v11, %v3430_v20  ;;  %v3558_v26 = vpop.permute.xlu0 %3557 }
0x100f   :  { %v3479_v15 = vrot.slane %v3441_v46, %v6021_v4 }
0x1010   :  { %v3407_v22 = vadd.f32 %v3406_v56, %v3393_v16  ;;  %v5716_v56 = vld [vmem:[#allocation2 + $0x6] ss:$0 sm:$0xff] }
0x1011   :  { %v3480_v18 = vmul.f32 %v3479_v15, %v3474_v29  ;;  %v3519_v29 = vrot.slane %v7883_v60, %v6021_v4 }
0x1012   :  { %v3417_v14 = vadd.f32 %v3416_v17, %v3407_v22  ;;  %v3528_v30 = vpop.permute.xlu1 %3527  ;;  %v3602_v40 = vpop.permute.xlu0 %3601 }
0x1013   :  { %v3520_v35 = vmul.f32 %v3519_v29, %v3514_v54 }
0x1014   :  { %v3427_v41 = vadd.f32 %v3426_v38, %v3417_v14 }
0x1016   :  { %v3437_v52 = vadd.f32 %v3436_v8, %v3427_v41  ;;  %v3567_v42 = vpop.permute.xlu0 %3566 }
0x1017   :  { %v3548_v23 = vpop.permute.xlu1 %3547  ;;  %v3569_v61 = vmul.f32 %v5716_v56, %v3567_v42 }
0x1018   :  { %v3451_v28 = vadd.f32 %v3450_v50, %v3437_v52 }
0x1019   :  { %v3577_v54 = vrot.slane %v3569_v61, %v6024_v5  ;;  %v3587_v8 = vrot.slane %v3569_v61, %v6039_v10  ;;  %v3597_v19 = vrot.slane %v3569_v61, %v6036_v9 }
0x101a   :  { %v3461_v59 = vadd.f32 %v3460_v43, %v3451_v28  ;;  %v3611_v60 = vpop.permute.xlu0 %3610  ;;  %v5717_v43 = vld [vmem:[#allocation2 + $0x7] ss:$0 sm:$0xff] }
0x101c   :  { %v3471_v20 = vadd.f32 %v3470_v7, %v3461_v59  ;;  %v3572_v32 = vpop.permute.xlu1 %3571 }
0x101d   :  { %v3578_v41 = vmul.f32 %v3577_v54, %v3572_v32 }
0x101e   :  { %v3481_v3 = vadd.f32 %v3480_v18, %v3471_v20  ;;  %v3646_v50 = vpop.permute.xlu0 %3645 }
0x1020   :  { %v3491_v34 = vadd.f32 %v3490_v53, %v3481_v3 }
0x1021   :  { %v3582_v51 = vpop.permute.xlu1 %3581 }
0x1022   :  { %v3501_v44 = vadd.f32 %v3500_v1, %v3491_v34  ;;  %v3588_v15 = vmul.f32 %v3587_v8, %v3582_v51  ;;  %v3655_v32 = vpop.permute.xlu0 %3654  ;;  %v5718_v1 = vld [vmem:[#allocation2 + $0x8] ss:$0 sm:$0xff] }
0x1023   :  { %v3657_v34 = vmul.f32 %v5718_v1, %v3655_v32  ;;  %v9073_v32 = vmov 111   ;;  %v9078_v1 = vmov 120  }
0x1024   :  { %v3511_v31 = vadd.f32 %v3510_v25, %v3501_v44 }
0x1025   :  { %v3523_v12 = vpop.permute.xlu1 %3522 }
0x1026   :  { %v3525_v55 = vmul.f32 %v5715_v47, %v3523_v12  ;;  %v3521_v2 = vadd.f32 %v3520_v35, %v3511_v31  ;;  %v3690_v56 = vpop.permute.xlu0 %3689 }
0x1028   :  { %v3533_v62 = vrot.slane %v3525_v55, %v6024_v5  ;;  %v3543_v39 = vrot.slane %v3525_v55, %v6039_v10  ;;  %v3553_v16 = vrot.slane %v3525_v55, %v6036_v9  ;;  %v3563_v17 = vrot.slane %v3525_v55, %v6021_v4 }
0x1029   :  { %v3592_v27 = vpop.permute.xlu1 %3591  ;;  %v3665_v55 = vrot.slane %v3657_v34, %v6024_v5 }
0x102a   :  { %v3534_v46 = vmul.f32 %v3533_v62, %v3528_v30  ;;  %v3544_v22 = vmul.f32 %v3543_v39, %v3538_v36  ;;  %v3554_v11 = vmul.f32 %v3553_v16, %v3548_v23  ;;  %v3564_v24 = vmul.f32 %v3563_v17, %v3558_v26 }
0x102b   :  { %v3613_v36 = vmul.f32 %v5717_v43, %v3611_v60  ;;  %v3607_v23 = vrot.slane %v3569_v61, %v6021_v4  ;;  %v3598_v59 = vmul.f32 %v3597_v19, %v3592_v27  ;;  %v3675_v39 = vrot.slane %v3657_v34, %v6039_v10 }
0x102c   :  { %v3535_v57 = vadd.f32 %v3534_v46, %v3521_v2  ;;  %v3695_v46 = vrot.slane %v3657_v34, %v6021_v4  ;;  %v3685_v16 = vrot.slane %v3657_v34, %v6036_v9  ;;  %v9079_v34 = vmov 121  }
0x102d   :  { %v3608_v18 = vmul.f32 %v3607_v23, %v3602_v40  ;;  %v3621_v26 = vrot.slane %v3613_v36, %v6024_v5  ;;  %v3631_v3 = vrot.slane %v3613_v36, %v6039_v10  ;;  %v3651_v48 = vrot.slane %v3613_v36, %v6021_v4 }
0x102e   :  { %v3545_v58 = vadd.f32 %v3544_v22, %v3535_v57  ;;  %v3616_v14 = vpop.permute.xlu1 %3615  ;;  %v3641_v25 = vrot.slane %v3613_v36, %v6036_v9  ;;  %v3696_v17 = vmul.f32 %v3695_v46, %v3690_v56  ;;  %v3911_v36 = vld [vmem:[%s8744_s10] sm:$0x7]  ;;  %v9066_v23 = vmov 101   ;;  %s9090_s10 = smov 16  }
0x102f   :  { %v3622_v21 = vmul.f32 %v3621_v26, %v3616_v14  ;;  %v3652_v40 = vmul.f32 %v3651_v48, %v3646_v50  ;;  %v9071_v26 = vmov 108   ;;  %v9077_v48 = vmov 118  }
0x1030   :  { %v3555_v38 = vadd.f32 %v3554_v11, %v3545_v58 }
0x1032   :  { %v3565_v30 = vadd.f32 %v3564_v24, %v3555_v38 }
0x1033   :  { %v3626_v52 = vpop.permute.xlu1 %3625 }
0x1034   :  { %v3579_v28 = vadd.f32 %v3578_v41, %v3565_v30  ;;  %v3632_v44 = vmul.f32 %v3631_v3, %v3626_v52  ;;  %v9076_v3 = vmov 117  }
0x1036   :  { %v3589_v7 = vadd.f32 %v3588_v15, %v3579_v28  ;;  %v9064_v15 = vmov 97   ;;  %v9065_v28 = vmov 98  }
0x1038   :  { %v3599_v45 = vadd.f32 %v3598_v59, %v3589_v7  ;;  %v3636_v20 = vpop.permute.xlu1 %3635  ;;  %v9067_v7 = vmov 102   ;;  %v9068_v59 = vmov 104  }
0x1039   :  { %v3642_v29 = vmul.f32 %v3641_v25, %v3636_v20  ;;  %v9072_v20 = vmov 110  }
0x103a   :  { %v3609_v53 = vadd.f32 %v3608_v18, %v3599_v45  ;;  %v9069_v45 = vmov 105   ;;  %v9070_v18 = vmov 107  }
0x103c   :  { %v3623_v51 = vadd.f32 %v3622_v21, %v3609_v53  ;;  %v9074_v53 = vmov 114   ;;  %v9075_v21 = vmov 115  }
0x103d   :  { %v3660_v12 = vpop.permute.xlu1 %3659 }
0x103e   :  { %v3633_v31 = vadd.f32 %v3632_v44, %v3623_v51  ;;  %v3666_v35 = vmul.f32 %v3665_v55, %v3660_v12  ;;  %v9080_v51 = vmov 123  }
0x1040   :  { %v3643_v47 = vadd.f32 %v3642_v29, %v3633_v31 }
0x1042   :  { %v3653_v42 = vadd.f32 %v3652_v40, %v3643_v47  ;;  %v3670_v62 = vpop.permute.xlu1 %3669 }
0x1043   :  { %v3676_v2 = vmul.f32 %v3675_v39, %v3670_v62 }
0x1044   :  { %v3667_v27 = vadd.f32 %v3666_v35, %v3653_v42 }
0x1046   :  { %v3677_v57 = vadd.f32 %v3676_v2, %v3667_v27 }
0x1047   :  { %v3680_v61 = vpop.permute.xlu1 %3679 }
0x1048   :  { %v3686_v22 = vmul.f32 %v3685_v16, %v3680_v61 }
0x104a   :  { %v3687_v60 = vadd.f32 %v3686_v22, %v3677_v57 }
0x104c   :  { %v3702_v11 = vpop.permute.xlu1 %3701  ;;  %v3697_v58 = vadd.f32 %v3696_v17, %v3687_v60 }
0x104e   :  { %v3704_v14 = vadd.f32 %v3702_v11, %v3697_v58  ;;  %v9081_v11 = vmov 100   ;;  %v9082_v58 = vmov 103  }
0x1050   :  { %3834 = vmatmul.mubr.f32.vlgmr.msra.gmra.mrb[4].mxu1 %v3704_v14  ;;  %3905 = vmatmul.mubr.f32.vlgmr.msra.gmra.mrb[4].mxu0 %v3704_v14  ;;  %v9083_v14 = vmov 106  }
0x1123   :  { %v3835_v54 = vpop.f32.mrb[4].mxu1  ;;  %v3906_v38 = vpop.f32.mrb[4].mxu0 }
0x1124   :  { %v3913_v24 = vsel %vm3912_vm7, %v3835_v54, 0.0  ;;  %v3837_v41 = vpop.f32.mrb[5].mxu1  ;;  %v3908_v4 = vpop.f32.mrb[5].mxu0  ;;  %v3916_v50 = vsel %vm3912_vm7, %v3906_v38, 0.0 }
0x1125   :  { %v3914_v8 = vsel %vm3912_vm7, %v3837_v41, 0.0  ;;  %v3918_v52 = vsel %vm3912_vm7, %v3908_v4, 0.0 }
0x1126   :  { %v3915_v30 = vadd.f32 %v3914_v8, %v3913_v24  ;;  %v9087_v24 = vmov 116  }
0x1128   :  { %v3917_v19 = vadd.f32 %v3916_v50, %v3915_v30 }
0x112a   :  { %v3919_v43 = vadd.f32 %v3918_v52, %v3917_v19 }
0x112c   :  { %3920 = vadd.xlane.f32.xlu1 %v3919_v43 }
0x113d   :  { %3956 = vperm.xlu1 %5658, %v3911_v36  }
0x1141   :  { %5659 = vset.pattern.permute.xlu1 %v9064_v15 }
0x1142   :  { %3993 = vperm.xlu1 %5659, %v7843_v13  }
0x1146   :  { %5660 = vset.pattern.permute.xlu1 %v9065_v28 }
0x1147   :  { %4021 = vperm.xlu1 %5660, %v7843_v13  }
0x114b   :  { %5664 = vset.pattern.permute.xlu1 %v9066_v23 }
0x114c   :  { %4126 = vperm.xlu1 %5664, %v7843_v13  }
0x1150   :  { %5665 = vset.pattern.permute.xlu1 %v9067_v7 }
0x1151   :  { %4154 = vperm.xlu1 %5665, %v7843_v13  }
0x1155   :  { %5667 = vset.pattern.permute.xlu1 %v9068_v59 }
0x1156   :  { %4231 = vperm.xlu1 %5667, %v7843_v13  }
0x115a   :  { %5668 = vset.pattern.permute.xlu1 %v9069_v45 }
0x115b   :  { %4259 = vperm.xlu1 %5668, %v7843_v13  }
0x115f   :  { %5670 = vset.pattern.permute.xlu1 %v9070_v18 }
0x1160   :  { %4336 = vperm.xlu1 %5670, %v7843_v13  }
0x1164   :  { %5671 = vset.pattern.permute.xlu1 %v9071_v26 }
0x1165   :  { %4364 = vperm.xlu1 %5671, %v7843_v13  }
0x1169   :  { %5673 = vset.pattern.permute.xlu1 %v9072_v20 }
0x116a   :  { %4420 = vperm.xlu1 %5673, %v7843_v13  }
0x116e   :  { %5674 = vset.pattern.permute.xlu1 %v9073_v32 }
0x116f   :  { %4448 = vperm.xlu1 %5674, %v7843_v13  }
0x1173   :  { %5677 = vset.pattern.permute.xlu1 %v9074_v53 }
0x1174   :  { %4553 = vperm.xlu1 %5677, %v7843_v13  }
0x1178   :  { %5678 = vset.pattern.permute.xlu1 %v9075_v21 }
0x1179   :  { %4602 = vperm.xlu1 %5678, %v7843_v13  }
0x117d   :  { %5680 = vset.pattern.permute.xlu1 %v9076_v3 }
0x117e   :  { %4658 = vperm.xlu1 %5680, %v7843_v13  }
0x1182   :  { %5681 = vset.pattern.permute.xlu1 %v9077_v48 }
0x1183   :  { %4707 = vperm.xlu1 %5681, %v7843_v13  }
0x1187   :  { %5683 = vset.pattern.permute.xlu1 %v9078_v1 }
0x1188   :  { %4763 = vperm.xlu1 %5683, %v7843_v13  }
0x118c   :  { %5684 = vset.pattern.permute.xlu1 %v9079_v34 }
0x118d   :  { %4812 = vperm.xlu1 %5684, %v7843_v13  }
0x1191   :  { %5686 = vset.pattern.permute.xlu1 %v9080_v51 }
0x11b9   :  { %v3921_v44 = vpop.xlane.xlu1 %3920 }
0x11ba   :  { %v3923_v25 = vmul.f32 0.001953125, %v3921_v44 }
0x11bc   :  { %v3924_v12 = vsub.f32 %v3835_v54, %v3923_v25  ;;  %v3925_v31 = vsub.f32 %v3837_v41, %v3923_v25  ;;  %v3926_v29 = vsub.f32 %v3906_v38, %v3923_v25  ;;  %v3927_v40 = vsub.f32 %v3908_v4, %v3923_v25 }
0x11bd   :  { %v9085_v54 = vmov 112   ;;  %v9086_v38 = vmov 113   ;;  %v9088_v41 = vmov 119   ;;  %v9089_v4 = vmov 122   ;;  %v3957_v8 = vpop.permute.xlu1 %3956 }
0x11be   :  { %v3928_v47 = vmul.f32 %v3924_v12, %v3924_v12  ;;  %v3929_v55 = vmul.f32 %v3925_v31, %v3925_v31  ;;  %v3930_v42 = vmul.f32 %v3926_v29, %v3926_v29  ;;  %v3931_v35 = vmul.f32 %v3927_v40, %v3927_v40 }
0x11c0   :  { %v3932_v62 = vsel %vm3912_vm7, %v3928_v47, 0.0  ;;  %v3933_v39 = vsel %vm3912_vm7, %v3929_v55, 0.0  ;;  %v3935_v2 = vsel %vm3912_vm7, %v3930_v42, 0.0  ;;  %v3937_v16 = vsel %vm3912_vm7, %v3931_v35, 0.0 }
0x11c1   :  { %v3934_v27 = vadd.f32 %v3933_v39, %v3932_v62  ;;  %v8272_v30 = vpop.permute.xlu1 %3993 }
0x11c3   :  { %v3936_v46 = vadd.f32 %v3935_v2, %v3934_v27 }
0x11c5   :  { %v3938_v56 = vadd.f32 %v3937_v16, %v3936_v46 }
0x11c6   :  { %v8274_v50 = vpop.permute.xlu1 %4021 }
0x11c7   :  { %3939 = vadd.xlane.f32.xlu0 %v3938_v56 }
0x11cb   :  { %v8276_v19 = vpop.permute.xlu1 %4126 }
0x11d0   :  { %v8278_v52 = vpop.permute.xlu1 %4154 }
0x11d5   :  { %v8280_v43 = vpop.permute.xlu1 %4231 }
0x11dd   :  { %4049 = vperm.xlu0 %5661, %v7843_v13  }
0x11e1   :  { %5662 = vset.pattern.permute.xlu0 %v8979_v33  ;;  %v9084_v33 = vmov 109  }
0x1254   :  { %v3940_v61 = vpop.xlane.xlu0 %3939 }
0x1255   :  { %v3941_v57 = vmul.f32 0.001953125, %v3940_v61 }
0x1257   :  { %v3942_v22 = vadd.f32 1e-05, %v3941_v57 }
0x1259   :  { %5697 = vrsqrt.f32 %v3942_v22  ;;  %v9098_v22 = vld [vmem:[#allocation9_spill] sm:$0xff] }
0x125c   :  { %v8286_v28 = vpop.permute.xlu0 %4049 }
0x1263   :  { %v5698_v17 = vpop.eup %5697 }
0x1264   :  { %v3944_v60 = vmul.f32 %v5698_v17, %v3911_v36  ;;  %v8282_v36 = vpop.permute.xlu1 %4259 }
0x1266   :  { %3947 = vperm.xlu0 %5662, %v3944_v60  }
0x1268   :  { %v8284_v15 = vpop.permute.xlu1 %4336 }
0x126a   :  { %5663 = vset.pattern.permute.xlu0 %v9081_v11 }
0x126b   :  { %4098 = vperm.xlu0 %5663, %v7843_v13  }
0x126f   :  { %5666 = vset.pattern.permute.xlu0 %v9082_v58 }
0x1270   :  { %4203 = vperm.xlu0 %5666, %v7843_v13  }
0x1274   :  { %5669 = vset.pattern.permute.xlu0 %v9083_v14 }
0x1275   :  { %4308 = vperm.xlu0 %5669, %v7843_v13  }
0x1279   :  { %5672 = vset.pattern.permute.xlu0 %v9084_v33 }
0x127a   :  { %4392 = vperm.xlu0 %5672, %v7843_v13  }
0x127e   :  { %5675 = vset.pattern.permute.xlu0 %v9085_v54 }
0x127f   :  { %4497 = vperm.xlu0 %5675, %v7843_v13  }
0x1283   :  { %5676 = vset.pattern.permute.xlu0 %v9086_v38 }
0x1284   :  { %4525 = vperm.xlu0 %5676, %v7843_v13  }
0x1288   :  { %5679 = vset.pattern.permute.xlu0 %v9087_v24 }
0x1289   :  { %4630 = vperm.xlu0 %5679, %v7843_v13  }
0x128d   :  { %5682 = vset.pattern.permute.xlu0 %v9088_v41  ;;  %v9099_v41 = vld [vmem:[#allocation10_spill] sm:$0xff] }
0x128e   :  { %4735 = vperm.xlu0 %5682, %v7843_v13   ;;  %v8288_v13 = vpop.permute.xlu1 %4364 }
0x1292   :  { %5685 = vset.pattern.permute.xlu0 %v9089_v4  ;;  %v8290_v26 = vpop.permute.xlu1 %4420 }
0x1296   :  { %v8302_v51 = vpop.permute.xlu1 %4448 }
0x12e5   :  { %v3948_v23 = vpop.permute.xlu0 %3947 }
0x12e6   :  { %v3950_v7 = vmul.f32 %v3948_v23, %v3924_v12  ;;  %v3951_v59 = vmul.f32 %v3948_v23, %v3925_v31  ;;  %v3952_v45 = vmul.f32 %v3948_v23, %v3926_v29  ;;  %v3953_v18 = vmul.f32 %v3948_v23, %v3927_v40  ;;  %v5719_v29 = vld [vmem:[%s8742_s8 + $0x8] sm:$0x7]  ;;  %v8380_v40 = vpop.permute.xlu1 %4553 }
0x12e8   :  { %v3959_v20 = vadd.f32 %v3957_v8, %v3950_v7  ;;  %v3960_v32 = vadd.f32 %v3957_v8, %v3951_v59  ;;  %v3961_v53 = vadd.f32 %v3957_v8, %v3952_v45  ;;  %v3962_v21 = vadd.f32 %v3957_v8, %v3953_v18 }
0x12ea   :  { %v8292_v3 = vmax.f32 %v3959_v20, 0.0  ;;  %v8294_v48 = vmax.f32 %v3960_v32, 0.0  ;;  %v8296_v1 = vmax.f32 %v3961_v53, 0.0  ;;  %v8298_v34 = vmax.f32 %v3962_v21, 0.0  ;;  %v8383_v47 = vpop.permute.xlu1 %4602  ;;  %v8385_v55 = vpop.permute.xlu0 %4098 }
0x12ec   :  { %3968 = vrot.lane.b32.xlu1 %v8298_v34, %s5774_s26  ;;  %4081 = vrot.lane.b32.xlu0 %v8294_v48, %s9090_s10  ;;  %v4454_v44 = vrot.slane %v8292_v3, %v6036_v9  ;;  %v4462_v25 = vrot.slane %v8296_v1, %v6036_v9  ;;  %v4426_v60 = vrot.slane %v8292_v3, %v6039_v10 }
0x12ed   :  { %v4430_v11 = vrot.slane %v8294_v48, %v6039_v10  ;;  %v4434_v14 = vrot.slane %v8296_v1, %v6039_v10  ;;  %v4438_v33 = vrot.slane %v8298_v34, %v6039_v10  ;;  %v4458_v8 = vrot.slane %v8294_v48, %v6036_v9 }
0x12ee   :  { %v8311_v12 = vmul.f32 %v4454_v44, %v8302_v51  ;;  %v8314_v31 = vmul.f32 %v4462_v25, %v8302_v51  ;;  %v8388_v42 = vpop.permute.xlu1 %4658  ;;  %v4466_v23 = vrot.slane %v8298_v34, %v6036_v9  ;;  %v8429_v59 = vmul.f32 %v4426_v60, %v8290_v26 }
0x12ef   :  { %v8390_v35 = vpop.permute.xlu0 %4203  ;;  %v8432_v45 = vmul.f32 %v4430_v11, %v8290_v26  ;;  %v8437_v53 = vmul.f32 %v4434_v14, %v8290_v26  ;;  %v8440_v21 = vmul.f32 %v4438_v33, %v8290_v26  ;;  %v8449_v60 = vmul.f32 %v4458_v8, %v8302_v51  ;;  %v9101_v26 = vld [vmem:[#allocation12_spill] sm:$0xff]  ;;  %v9102_v33 = vld [vmem:[#allocation13_spill] sm:$0xff] }
0x12f0   :  { %3974 = vrot.lane.b32.xlu1 %v8292_v3, %s5774_s26  ;;  %4181 = vrot.lane.b32.xlu0 %v8298_v34, %s9091_s22  ;;  %v8452_v11 = vmul.f32 %v4466_v23, %v8302_v51 }
0x12f2   :  { %v8392_v62 = vpop.permute.xlu1 %4707 }
0x12f3   :  { %9095 = vst [vmem:[#allocation11_spill] sm:$0xff] %v8392_v62 }
0x12f4   :  { %3976 = vrot.lane.b32.xlu1 %v8294_v48, %s5774_s26  ;;  %4186 = vrot.lane.b32.xlu0 %v8294_v48, %s9091_s22  ;;  %v8394_v39 = vpop.permute.xlu0 %4308 }
0x12f6   :  { %v8396_v27 = vpop.permute.xlu1 %4763 }
0x12f7   :  { %9096 = vst [vmem:[#allocation8_spill] sm:$0xff] %v8396_v27 }
0x12f8   :  { %3978 = vrot.lane.b32.xlu1 %v8296_v1, %s5774_s26  ;;  %4286 = vrot.lane.b32.xlu0 %v8298_v34, %s5780_s29  ;;  %s9093_s26 = smov 112  }
0x12f9   :  { %v8398_v2 = vpop.permute.xlu0 %4392 }
0x12fc   :  { %4076 = vrot.lane.b32.xlu1 %v8298_v34, %s9090_s10  ;;  %4291 = vrot.lane.b32.xlu0 %v8294_v48, %s5780_s29 }
0x12fe   :  { %v8400_v46 = vpop.permute.xlu0 %4497 }
0x1300   :  { %4079 = vrot.lane.b32.xlu1 %v8292_v3, %s9090_s10  ;;  %4479 = vrot.lane.b32.xlu0 %v8296_v1, %s5782_s30 }
0x1303   :  { %v8404_v16 = vpop.permute.xlu0 %4525 }
0x1304   :  { %4083 = vrot.lane.b32.xlu1 %v8296_v1, %s9090_s10  ;;  %4580 = vrot.lane.b32.xlu0 %v8292_v3, %s9092_s16 }
0x1308   :  { %4184 = vrot.lane.b32.xlu1 %v8292_v3, %s9091_s22  ;;  %4584 = vrot.lane.b32.xlu0 %v8296_v1, %s9092_s16  ;;  %v8406_v61 = vpop.permute.xlu0 %4630 }
0x130c   :  { %4188 = vrot.lane.b32.xlu1 %v8296_v1, %s9091_s22  ;;  %4685 = vrot.lane.b32.xlu0 %v8292_v3, %s9093_s26 }
0x130d   :  { %v8426_v7 = vpop.permute.xlu0 %4735 }
0x130e   :  { %9100 = vst [vmem:[#allocation9_spill] sm:$0xff] %v8426_v7 }
0x1310   :  { %4289 = vrot.lane.b32.xlu1 %v8292_v3, %s5780_s29  ;;  %4689 = vrot.lane.b32.xlu0 %v8296_v1, %s9093_s26 }
0x1314   :  { %4293 = vrot.lane.b32.xlu1 %v8296_v1, %s5780_s29  ;;  %4790 = vrot.lane.b32.xlu0 %v8292_v3, %s9094_s17 }
0x1318   :  { %4475 = vrot.lane.b32.xlu1 %v8292_v3, %s5782_s30  ;;  %4794 = vrot.lane.b32.xlu0 %v8296_v1, %s9094_s17 }
0x131c   :  { %4477 = vrot.lane.b32.xlu1 %v8294_v48, %s5782_s30  ;;  %4840 = vperm.xlu0 %5685, %v5719_v29  }
0x1320   :  { %4481 = vrot.lane.b32.xlu1 %v8298_v34, %s5782_s30  ;;  %5688 = vset.pattern.permute.xlu0 %v8966_v37 }
0x1324   :  { %4582 = vrot.lane.b32.xlu1 %v8294_v48, %s9092_s16 }
0x1328   :  { %4586 = vrot.lane.b32.xlu1 %v8298_v34, %s9092_s16 }
0x132c   :  { %4687 = vrot.lane.b32.xlu1 %v8294_v48, %s9093_s26 }
0x1330   :  { %4691 = vrot.lane.b32.xlu1 %v8298_v34, %s9093_s26 }
0x1334   :  { %4792 = vrot.lane.b32.xlu1 %v8294_v48, %s9094_s17 }
0x1338   :  { %4796 = vrot.lane.b32.xlu1 %v8298_v34, %s9094_s17 }
0x133c   :  { %4868 = vperm.xlu1 %5686, %v5719_v29  }
0x1340   :  { %5687 = vset.pattern.permute.xlu1 %v8966_v37  ;;  %v8402_v37 = vpop.permute.xlu1 %4812 }
0x1341   :  { %4896 = vperm.xlu1 %5687, %v8094_v49   ;;  %9097 = vst [vmem:[#allocation39_spill] sm:$0xff] %v8402_v37 }
0x135e   :  { %v3969_v56 = vpop.permute.xlu1 %3968  ;;  %v4082_v8 = vpop.permute.xlu0 %4081 }
0x1362   :  { %v3975_v49 = vpop.permute.xlu1 %3974 }
0x1363   :  { %v3987_v57 = vsel %vm94_vm0, %v3969_v56, %v3975_v49 }
0x1364   :  { %v3988_v17 = vmul.f32 %v3987_v57, %v9098_v22 }
0x1366   :  { %v3977_v58 = vpop.permute.xlu1 %3976  ;;  %v3999_v38 = vrot.slane %v3988_v17, %v6024_v5  ;;  %v4027_v24 = vrot.slane %v3988_v17, %v6039_v10 }
0x1367   :  { %v3980_v54 = vsel %vm94_vm0, %v3975_v49, %v3977_v58 }
0x1368   :  { %v3989_v4 = vmul.f32 %v3980_v54, %v9099_v41  ;;  %v4012_v29 = vmul.f32 %v3999_v38, %v8272_v30  ;;  %v4040_v49 = vmul.f32 %v4027_v24, %v8274_v50  ;;  %v4402_v54 = vrot.slane %v8294_v48, %v6024_v5 }
0x1369   :  { %v4055_v38 = vrot.slane %v3988_v17, %v6036_v9  ;;  %v4410_v48 = vrot.slane %v8298_v34, %v6024_v5 }
0x136a   :  { %v4003_v18 = vrot.slane %v3989_v4, %v6024_v5  ;;  %v4031_v20 = vrot.slane %v3989_v4, %v6039_v10  ;;  %v3979_v32 = vpop.permute.xlu1 %3978  ;;  %v4059_v24 = vrot.slane %v3989_v4, %v6036_v9  ;;  %v8478_v37 = vmul.f32 %v4402_v54, %v8398_v2  ;;  %v9103_v54 = vld [vmem:[#allocation14_spill] sm:$0xff] }
0x136b   :  { %v3981_v44 = vsel %vm94_vm0, %v3977_v58, %v3979_v32  ;;  %v3982_v25 = vsel %vm94_vm0, %v3979_v32, %v3969_v56  ;;  %v4398_v56 = vrot.slane %v8292_v3, %v6024_v5  ;;  %v4406_v3 = vrot.slane %v8296_v1, %v6024_v5 }
0x136c   :  { %v4013_v57 = vmul.f32 %v4003_v18, %v8272_v30  ;;  %v4041_v22 = vmul.f32 %v4031_v20, %v8274_v50  ;;  %v3990_v14 = vmul.f32 %v3981_v44, %v9101_v26  ;;  %v3991_v58 = vmul.f32 %v3982_v25, %v9102_v33 }
0x136d   :  { %v4044_v32 = vadd.f32 %v4040_v49, %v4012_v29  ;;  %v8475_v33 = vmul.f32 %v4398_v56, %v8398_v2  ;;  %v4068_v1 = vmul.f32 %v4055_v38, %v8286_v28  ;;  %v4069_v34 = vmul.f32 %v4059_v24, %v8286_v28  ;;  %v9104_v38 = vld [vmem:[#allocation15_spill] sm:$0xff]  ;;  %v4182_v24 = vpop.permute.xlu0 %4181 }
0x136e   :  { %v4077_v41 = vpop.permute.xlu1 %4076  ;;  %v4007_v18 = vrot.slane %v3990_v14, %v6024_v5  ;;  %v4011_v51 = vrot.slane %v3991_v58, %v6024_v5  ;;  %v4035_v23 = vrot.slane %v3990_v14, %v6039_v10  ;;  %v4039_v20 = vrot.slane %v3991_v58, %v6039_v10 }
0x136f   :  { %v4045_v17 = vadd.f32 %v4041_v22, %v4013_v57  ;;  %v4063_v49 = vrot.slane %v3990_v14, %v6036_v9  ;;  %v4067_v57 = vrot.slane %v3991_v58, %v6036_v9  ;;  %v8490_v56 = vmul.f32 %v4410_v48, %v8398_v2 }
0x1370   :  { %v4014_v4 = vmul.f32 %v4007_v18, %v8272_v30  ;;  %v4015_v44 = vmul.f32 %v4011_v51, %v8272_v30  ;;  %v4042_v25 = vmul.f32 %v4035_v23, %v8274_v50  ;;  %v4043_v26 = vmul.f32 %v4039_v20, %v8274_v50 }
0x1371   :  { %v8487_v50 = vmul.f32 %v4406_v3, %v8398_v2  ;;  %v4072_v23 = vadd.f32 %v4068_v1, %v4044_v32  ;;  %v4073_v20 = vadd.f32 %v4069_v34, %v4045_v17  ;;  %v4070_v2 = vmul.f32 %v4063_v49, %v8286_v28  ;;  %v9105_v34 = vld [vmem:[#allocation16_spill] sm:$0xff] }
0x1372   :  { %v4080_v29 = vpop.permute.xlu1 %4079  ;;  %v4046_v14 = vadd.f32 %v4042_v25, %v4014_v4  ;;  %v4047_v27 = vadd.f32 %v4043_v26, %v4015_v44  ;;  %v4071_v48 = vmul.f32 %v4067_v57, %v8286_v28  ;;  %v4187_v57 = vpop.permute.xlu0 %4186  ;;  %vm9127_vm0 = vcmask 908288  }
0x1373   :  { %v4085_v30 = vsel %vm167_vm1, %v4080_v29, %v4082_v8  ;;  %v4092_v22 = vsel %vm167_vm1, %v4077_v41, %v4080_v29 }
0x1374   :  { %v4093_v18 = vmul.f32 %v4092_v22, %v9103_v54  ;;  %v4094_v51 = vmul.f32 %v4085_v30, %v9104_v38  ;;  %v4074_v26 = vadd.f32 %v4070_v2, %v4046_v14  ;;  %v4075_v1 = vadd.f32 %v4071_v48, %v4047_v27  ;;  %v9106_v54 = vld [vmem:[#allocation17_spill] sm:$0xff] }
0x1376   :  { %v4104_v58 = vrot.slane %v4093_v18, %v6024_v5  ;;  %v4108_v7 = vrot.slane %v4094_v51, %v6024_v5  ;;  %v4132_v29 = vrot.slane %v4093_v18, %v6039_v10  ;;  %v4136_v3 = vrot.slane %v4094_v51, %v6039_v10  ;;  %v4084_v62 = vpop.permute.xlu1 %4083 }
0x1377   :  { %v4086_v30 = vsel %vm167_vm1, %v4082_v8, %v4084_v62  ;;  %v4087_v32 = vsel %vm167_vm1, %v4084_v62, %v4077_v41  ;;  %v4160_v44 = vrot.slane %v4093_v18, %v6036_v9  ;;  %v4164_v25 = vrot.slane %v4094_v51, %v6036_v9  ;;  %vm9128_vm1 = vmmov %vm9127_vm0 }
0x1378   :  { %v4117_v17 = vmul.f32 %v4104_v58, %v8385_v55  ;;  %v4118_v4 = vmul.f32 %v4108_v7, %v8385_v55  ;;  %v4095_v22 = vmul.f32 %v4086_v30, %v9105_v34  ;;  %v4096_v49 = vmul.f32 %v4087_v32, %v9106_v54 }
0x1379   :  { %v4145_v8 = vmul.f32 %v4132_v29, %v8276_v19  ;;  %v4146_v62 = vmul.f32 %v4136_v3, %v8276_v19  ;;  %v4173_v14 = vmul.f32 %v4160_v44, %v8278_v52  ;;  %v4174_v58 = vmul.f32 %v4164_v25, %v8278_v52 }
0x137a   :  { %v4121_v38 = vadd.f32 %v4117_v17, %v4072_v23  ;;  %v4122_v28 = vadd.f32 %v4118_v4, %v4073_v20  ;;  %v4185_v41 = vpop.permute.xlu1 %4184  ;;  %v4112_v7 = vrot.slane %v4095_v22, %v6024_v5  ;;  %v4116_v18 = vrot.slane %v4096_v49, %v6024_v5 }
0x137b   :  { %v4140_v51 = vrot.slane %v4095_v22, %v6039_v10  ;;  %v4144_v27 = vrot.slane %v4096_v49, %v6039_v10  ;;  %v4168_v23 = vrot.slane %v4095_v22, %v6036_v9  ;;  %v4172_v20 = vrot.slane %v4096_v49, %v6036_v9  ;;  %v9107_v49 = vld [vmem:[#allocation18_spill] sm:$0xff] }
0x137c   :  { %v4149_v29 = vadd.f32 %v4145_v8, %v4121_v38  ;;  %v4150_v3 = vadd.f32 %v4146_v62, %v4122_v28  ;;  %v4119_v2 = vmul.f32 %v4112_v7, %v8385_v55  ;;  %v4120_v48 = vmul.f32 %v4116_v18, %v8385_v55  ;;  %v9108_v28 = vld [vmem:[#allocation19_spill] sm:$0xff] }
0x137d   :  { %v4147_v30 = vmul.f32 %v4140_v51, %v8276_v19  ;;  %v4148_v32 = vmul.f32 %v4144_v27, %v8276_v19  ;;  %v4175_v17 = vmul.f32 %v4168_v23, %v8278_v52  ;;  %v4176_v4 = vmul.f32 %v4172_v20, %v8278_v52  ;;  %v4287_v19 = vpop.permute.xlu0 %4286  ;;  %v9109_v51 = vld [vmem:[#allocation20_spill] sm:$0xff]  ;;  %v9110_v27 = vld [vmem:[#allocation21_spill] sm:$0xff] }
0x137e   :  { %v4189_v44 = vpop.permute.xlu1 %4188  ;;  %v4123_v25 = vadd.f32 %v4119_v2, %v4074_v26  ;;  %v4124_v34 = vadd.f32 %v4120_v48, %v4075_v1  ;;  %v4190_v22 = vsel %vm240_vm2, %v4185_v41, %v4187_v57  ;;  %v4197_v54 = vsel %vm240_vm2, %v4182_v24, %v4185_v41 }
0x137f   :  { %v4198_v38 = vmul.f32 %v4197_v54, %v9107_v49  ;;  %v4199_v8 = vmul.f32 %v4190_v22, %v9108_v28  ;;  %v4191_v55 = vsel %vm240_vm2, %v4187_v57, %v4189_v44  ;;  %v4192_v62 = vsel %vm240_vm2, %v4189_v44, %v4182_v24  ;;  %vm9131_vm2 = vmmov %vm9127_vm0 }
0x1380   :  { %v4151_v7 = vadd.f32 %v4147_v30, %v4123_v25  ;;  %v4152_v18 = vadd.f32 %v4148_v32, %v4124_v34  ;;  %v4200_v52 = vmul.f32 %v4191_v55, %v9109_v51  ;;  %v4201_v26 = vmul.f32 %v4192_v62, %v9110_v27 }
0x1381   :  { %v4209_v1 = vrot.slane %v4198_v38, %v6024_v5  ;;  %v4213_v23 = vrot.slane %v4199_v8, %v6024_v5  ;;  %v4237_v41 = vrot.slane %v4198_v38, %v6039_v10  ;;  %v4241_v20 = vrot.slane %v4199_v8, %v6039_v10 }
0x1382   :  { %v4290_v2 = vpop.permute.xlu1 %4289  ;;  %v4177_v48 = vadd.f32 %v4173_v14, %v4149_v29  ;;  %v4178_v57 = vadd.f32 %v4174_v58, %v4150_v3  ;;  %v4179_v22 = vadd.f32 %v4175_v17, %v4151_v7  ;;  %v4180_v24 = vadd.f32 %v4176_v4, %v4152_v18  ;;  %v4292_v4 = vpop.permute.xlu0 %4291 }
0x1383   :  { %v4222_v30 = vmul.f32 %v4209_v1, %v8390_v35  ;;  %v4223_v32 = vmul.f32 %v4213_v23, %v8390_v35  ;;  %v4265_v44 = vrot.slane %v4198_v38, %v6036_v9  ;;  %v4269_v25 = vrot.slane %v4199_v8, %v6036_v9 }
0x1384   :  { %v4250_v34 = vmul.f32 %v4237_v41, %v8280_v43  ;;  %v4251_v54 = vmul.f32 %v4241_v20, %v8280_v43  ;;  %v4217_v49 = vrot.slane %v4200_v52, %v6024_v5  ;;  %v4221_v28 = vrot.slane %v4201_v26, %v6024_v5 }
0x1385   :  { %v4226_v14 = vadd.f32 %v4222_v30, %v4177_v48  ;;  %v4227_v58 = vadd.f32 %v4223_v32, %v4178_v57  ;;  %v4245_v29 = vrot.slane %v4200_v52, %v6039_v10  ;;  %v4249_v3 = vrot.slane %v4201_v26, %v6039_v10 }
0x1386   :  { %v4294_v17 = vpop.permute.xlu1 %4293  ;;  %v4224_v38 = vmul.f32 %v4217_v49, %v8390_v35  ;;  %v4225_v8 = vmul.f32 %v4221_v28, %v8390_v35  ;;  %v4273_v55 = vrot.slane %v4200_v52, %v6036_v9  ;;  %v4277_v62 = vrot.slane %v4201_v26, %v6036_v9 }
0x1387   :  { %v4254_v7 = vadd.f32 %v4250_v34, %v4226_v14  ;;  %v4255_v18 = vadd.f32 %v4251_v54, %v4227_v58  ;;  %v4278_v51 = vmul.f32 %v4265_v44, %v8282_v36  ;;  %v4279_v27 = vmul.f32 %v4269_v25, %v8282_v36  ;;  %v4480_v54 = vpop.permute.xlu0 %4479 }
0x1388   :  { %v4228_v1 = vadd.f32 %v4224_v38, %v4179_v22  ;;  %v4229_v23 = vadd.f32 %v4225_v8, %v4180_v24  ;;  %v4252_v41 = vmul.f32 %v4245_v29, %v8280_v43  ;;  %v4253_v20 = vmul.f32 %v4249_v3, %v8280_v43 }
0x1389   :  { %v4280_v48 = vmul.f32 %v4273_v55, %v8282_v36  ;;  %v4281_v35 = vmul.f32 %v4277_v62, %v8282_v36  ;;  %v4295_v52 = vsel %vm313_vm3, %v4290_v2, %v4292_v4  ;;  %v4302_v26 = vsel %vm313_vm3, %v4287_v19, %v4290_v2 }
0x138a   :  { %v4476_v57 = vpop.permute.xlu1 %4475  ;;  %v4256_v30 = vadd.f32 %v4252_v41, %v4228_v1  ;;  %v4257_v32 = vadd.f32 %v4253_v20, %v4229_v23  ;;  %v4303_v44 = vmul.f32 %v4302_v26, %v6217_v63  ;;  %v4304_v22 = vmul.f32 %v4295_v52, %v6220_v0 }
0x138b   :  { %v4282_v24 = vadd.f32 %v4278_v51, %v4254_v7  ;;  %v4283_v25 = vadd.f32 %v4279_v27, %v4255_v18  ;;  %v4296_v34 = vsel %vm313_vm3, %v4292_v4, %v4294_v17  ;;  %v4297_v43 = vsel %vm313_vm3, %v4294_v17, %v4287_v19  ;;  %v9111_v4 = vld [vmem:[#allocation22_spill] sm:$0xff]  ;;  %vm9132_vm3 = vmmov %vm9127_vm0 }
0x138c   :  { %v4284_v49 = vadd.f32 %v4280_v48, %v4256_v30  ;;  %v4285_v36 = vadd.f32 %v4281_v35, %v4257_v32  ;;  %v4314_v28 = vrot.slane %v4303_v44, %v6024_v5  ;;  %v4318_v2 = vrot.slane %v4304_v22, %v6024_v5  ;;  %v8582_v35 = vpop.permute.xlu0 %4580 }
0x138d   :  { %v4342_v14 = vrot.slane %v4303_v44, %v6039_v10  ;;  %v4346_v58 = vrot.slane %v4304_v22, %v6039_v10  ;;  %v4370_v63 = vrot.slane %v4303_v44, %v6036_v9  ;;  %v4374_v0 = vrot.slane %v4304_v22, %v6036_v9 }
0x138e   :  { %v4478_v29 = vpop.permute.xlu1 %4477  ;;  %v4327_v3 = vmul.f32 %v4314_v28, %v8394_v39  ;;  %v4328_v19 = vmul.f32 %v4318_v2, %v8394_v39  ;;  %v4305_v17 = vmul.f32 %v4296_v34, %v6223_v6  ;;  %v4306_v38 = vmul.f32 %v4297_v43, %v9111_v4 }
0x138f   :  { %v4355_v8 = vmul.f32 %v4342_v14, %v8284_v15  ;;  %v4356_v55 = vmul.f32 %v4346_v58, %v8284_v15  ;;  %v4383_v62 = vmul.f32 %v4370_v63, %v8288_v13  ;;  %v4384_v7 = vmul.f32 %v4374_v0, %v8288_v13 }
0x1390   :  { %v4331_v18 = vadd.f32 %v4327_v3, %v4282_v24  ;;  %v4332_v51 = vadd.f32 %v4328_v19, %v4283_v25  ;;  %v4322_v27 = vrot.slane %v4305_v17, %v6024_v5  ;;  %v4326_v1 = vrot.slane %v4306_v38, %v6024_v5 }
0x1391   :  { %v4350_v23 = vrot.slane %v4305_v17, %v6039_v10  ;;  %v4354_v6 = vrot.slane %v4306_v38, %v6039_v10  ;;  %v4378_v41 = vrot.slane %v4305_v17, %v6036_v9  ;;  %v4382_v20 = vrot.slane %v4306_v38, %v6036_v9  ;;  %v9113_v38 = vld [vmem:[#allocation25_spill] sm:$0xff] }
0x1392   :  { %v4482_v48 = vpop.permute.xlu1 %4481  ;;  %v4359_v52 = vadd.f32 %v4355_v8, %v4331_v18  ;;  %v4360_v26 = vadd.f32 %v4356_v55, %v4332_v51  ;;  %v4329_v30 = vmul.f32 %v4322_v27, %v8394_v39  ;;  %v4330_v32 = vmul.f32 %v4326_v1, %v8394_v39  ;;  %v9115_v55 = vld [vmem:[#allocation24_spill] sm:$0xff] }
0x1393   :  { %v4357_v44 = vmul.f32 %v4350_v23, %v8284_v15  ;;  %v4358_v22 = vmul.f32 %v4354_v6, %v8284_v15  ;;  %v4385_v24 = vmul.f32 %v4378_v41, %v8288_v13  ;;  %v4386_v25 = vmul.f32 %v4382_v20, %v8288_v13  ;;  %v9112_v13 = vld [vmem:[#allocation23_spill] sm:$0xff] }
0x1394   :  { %v4387_v34 = vadd.f32 %v4383_v62, %v4359_v52  ;;  %v4388_v43 = vadd.f32 %v4384_v7, %v4360_v26  ;;  %v4333_v28 = vadd.f32 %v4329_v30, %v4284_v49  ;;  %v4334_v2 = vadd.f32 %v4330_v32, %v4285_v36  ;;  %v9114_v36 = vld [vmem:[#allocation26_spill] sm:$0xff] }
0x1395   :  { %v4483_v14 = vsel %vm401_vm4, %v4476_v57, %v4478_v29  ;;  %v4484_v58 = vsel %vm401_vm4, %v4478_v29, %v4480_v54  ;;  %v4485_v63 = vsel %vm401_vm4, %v4480_v54, %v4482_v48  ;;  %v4491_v39 = vsel %vm401_vm4, %v4482_v48, %v4476_v57  ;;  %v4585_v29 = vpop.permute.xlu0 %4584 }
0x1396   :  { %v4415_v0 = vadd.f32 %v8475_v33, %v4387_v34  ;;  %v4416_v15 = vadd.f32 %v8478_v37, %v4388_v43  ;;  %v4361_v3 = vadd.f32 %v4357_v44, %v4333_v28  ;;  %v4362_v19 = vadd.f32 %v4358_v22, %v4334_v2  ;;  %v4583_v17 = vpop.permute.xlu1 %4582 }
0x1397   :  { %v4492_v4 = vmul.f32 %v4483_v14, %v9112_v13  ;;  %v4493_v49 = vmul.f32 %v4484_v58, %v9113_v38  ;;  %v4494_v8 = vmul.f32 %v4485_v63, %v9114_v36  ;;  %v4495_v62 = vmul.f32 %v4491_v39, %v9115_v55 }
0x1398   :  { %v4389_v7 = vadd.f32 %v4385_v24, %v4361_v3  ;;  %v4390_v54 = vadd.f32 %v4386_v25, %v4362_v19  ;;  %v4443_v57 = vadd.f32 %v8429_v59, %v4415_v0  ;;  %v4444_v33 = vadd.f32 %v8432_v45, %v4416_v15 }
0x1399   :  { %v4503_v37 = vrot.slane %v4492_v4, %v6024_v5  ;;  %v4507_v18 = vrot.slane %v4493_v49, %v6024_v5  ;;  %v4531_v51 = vrot.slane %v4492_v4, %v6039_v10  ;;  %v4535_v27 = vrot.slane %v4493_v49, %v6039_v10  ;;  %v8620_v22 = vpop.permute.xlu0 %4685 }
0x139a   :  { %v4417_v1 = vadd.f32 %v8487_v50, %v4389_v7  ;;  %v4418_v23 = vadd.f32 %v8490_v56, %v4390_v54  ;;  %v4471_v6 = vadd.f32 %v8311_v12, %v4443_v57  ;;  %v4472_v41 = vadd.f32 %v8449_v60, %v4444_v33  ;;  %v4587_v30 = vpop.permute.xlu1 %4586  ;;  %v9116_v54 = vld [vmem:[#allocation27_spill] sm:$0xff]  ;;  %v9117_v57 = vld [vmem:[#allocation28_spill] sm:$0xff] }
0x139b   :  { %v4516_v59 = vmul.f32 %v4503_v37, %v8400_v46  ;;  %v4517_v45 = vmul.f32 %v4507_v18, %v8400_v46  ;;  %v4544_v20 = vmul.f32 %v4531_v51, %v8404_v16  ;;  %v4545_v48 = vmul.f32 %v4535_v27, %v8404_v16  ;;  %v9118_v37 = vld [vmem:[#allocation29_spill] sm:$0xff]  ;;  %v9119_v18 = vld [vmem:[#allocation30_spill] sm:$0xff] }
0x139c   :  { %v4559_v52 = vrot.slane %v4492_v4, %v6036_v9  ;;  %v4563_v26 = vrot.slane %v4493_v49, %v6036_v9  ;;  %v4445_v50 = vadd.f32 %v8437_v53, %v4417_v1  ;;  %v4446_v56 = vadd.f32 %v8440_v21, %v4418_v23 }
0x139d   :  { %v4520_v12 = vadd.f32 %v4516_v59, %v4471_v6  ;;  %v4521_v32 = vadd.f32 %v4517_v45, %v4472_v41  ;;  %v4511_v60 = vrot.slane %v4494_v8, %v6024_v5  ;;  %v4515_v44 = vrot.slane %v4495_v62, %v6024_v5  ;;  %v4690_v55 = vpop.permute.xlu0 %4689 }
0x139e   :  { %v4572_v24 = vmul.f32 %v4559_v52, %v8380_v40  ;;  %v4573_v25 = vmul.f32 %v4563_v26, %v8380_v40  ;;  %v4473_v34 = vadd.f32 %v8314_v31, %v4445_v50  ;;  %v4474_v43 = vadd.f32 %v8452_v11, %v4446_v56  ;;  %v4688_v4 = vpop.permute.xlu1 %4687 }
0x139f   :  { %v4548_v53 = vadd.f32 %v4544_v20, %v4520_v12  ;;  %v4549_v28 = vadd.f32 %v4545_v48, %v4521_v32  ;;  %v4518_v21 = vmul.f32 %v4511_v60, %v8400_v46  ;;  %v4519_v2 = vmul.f32 %v4515_v44, %v8400_v46 }
0x13a0   :  { %v4539_v14 = vrot.slane %v4494_v8, %v6039_v10  ;;  %v4543_v58 = vrot.slane %v4495_v62, %v6039_v10  ;;  %v4567_v63 = vrot.slane %v4494_v8, %v6036_v9  ;;  %v4571_v39 = vrot.slane %v4495_v62, %v6036_v9 }
0x13a1   :  { %v4576_v0 = vadd.f32 %v4572_v24, %v4548_v53  ;;  %v4577_v15 = vadd.f32 %v4573_v25, %v4549_v28  ;;  %v4522_v3 = vadd.f32 %v4518_v21, %v4473_v34  ;;  %v4523_v31 = vadd.f32 %v4519_v2, %v4474_v43 }
0x13a2   :  { %v4546_v11 = vmul.f32 %v4539_v14, %v8404_v16  ;;  %v4547_v19 = vmul.f32 %v4543_v58, %v8404_v16  ;;  %v4574_v13 = vmul.f32 %v4567_v63, %v8380_v40  ;;  %v4575_v46 = vmul.f32 %v4571_v39, %v8380_v40  ;;  %v4692_v25 = vpop.permute.xlu1 %4691  ;;  %v4791_v63 = vpop.permute.xlu0 %4790 }
0x13a3   :  { %v4588_v38 = vsel %vm474_vm5, %v8582_v35, %v4583_v17  ;;  %v4589_v49 = vsel %vm474_vm5, %v4583_v17, %v4585_v29  ;;  %v4590_v36 = vsel %vm474_vm5, %v4585_v29, %v4587_v30  ;;  %v4596_v8 = vsel %vm474_vm5, %v4587_v30, %v8582_v35 }
0x13a4   :  { %v4550_v62 = vadd.f32 %v4546_v11, %v4522_v3  ;;  %v4551_v7 = vadd.f32 %v4547_v19, %v4523_v31  ;;  %v4597_v16 = vmul.f32 %v4588_v38, %v9116_v54  ;;  %v4598_v33 = vmul.f32 %v4589_v49, %v9117_v57  ;;  %v9120_v11 = vld [vmem:[#allocation31_spill] sm:$0xff] }
0x13a5   :  { %v4599_v40 = vmul.f32 %v4590_v36, %v9118_v37  ;;  %v4600_v51 = vmul.f32 %v4596_v8, %v9119_v18  ;;  %v4693_v27 = vsel %vm547_vm6, %v8620_v22, %v4688_v4  ;;  %v4694_v17 = vsel %vm547_vm6, %v4688_v4, %v4690_v55  ;;  %v9122_v37 = vld [vmem:[#allocation11_spill] sm:$0xff] }
0x13a6   :  { %v4578_v29 = vadd.f32 %v4574_v13, %v4550_v62  ;;  %v4579_v1 = vadd.f32 %v4575_v46, %v4551_v7  ;;  %v4608_v35 = vrot.slane %v4597_v16, %v6024_v5  ;;  %v4612_v23 = vrot.slane %v4598_v33, %v6024_v5  ;;  %v9121_v13 = vld [vmem:[#allocation32_spill] sm:$0xff]  ;;  %v4793_v7 = vpop.permute.xlu1 %4792 }
0x13a7   :  { %v4636_v6 = vrot.slane %v4597_v16, %v6039_v10  ;;  %v4640_v41 = vrot.slane %v4598_v33, %v6039_v10  ;;  %v4664_v59 = vrot.slane %v4597_v16, %v6036_v9  ;;  %v4668_v45 = vrot.slane %v4598_v33, %v6036_v9 }
0x13a8   :  { %v4621_v20 = vmul.f32 %v4608_v35, %v8383_v47  ;;  %v4622_v48 = vmul.f32 %v4612_v23, %v8383_v47  ;;  %v4616_v52 = vrot.slane %v4599_v40, %v6024_v5  ;;  %v4620_v26 = vrot.slane %v4600_v51, %v6024_v5  ;;  %v9125_v35 = vld [vmem:[#allocation33_spill] sm:$0xff] }
0x13a9   :  { %v4649_v50 = vmul.f32 %v4636_v6, %v8406_v61  ;;  %v4650_v56 = vmul.f32 %v4640_v41, %v8406_v61  ;;  %v4677_v30 = vmul.f32 %v4664_v59, %v8388_v42  ;;  %v4678_v12 = vmul.f32 %v4668_v45, %v8388_v42  ;;  %v9126_v6 = vld [vmem:[#allocation34_spill] sm:$0xff] }
0x13aa   :  { %v4625_v32 = vadd.f32 %v4621_v20, %v4576_v0  ;;  %v4626_v60 = vadd.f32 %v4622_v48, %v4577_v15  ;;  %v4623_v44 = vmul.f32 %v4616_v52, %v8383_v47  ;;  %v4624_v24 = vmul.f32 %v4620_v26, %v8383_v47 }
0x13ab   :  { %v4644_v34 = vrot.slane %v4599_v40, %v6039_v10  ;;  %v4648_v43 = vrot.slane %v4600_v51, %v6039_v10  ;;  %v4672_v53 = vrot.slane %v4599_v40, %v6036_v9  ;;  %v4676_v28 = vrot.slane %v4600_v51, %v6036_v9 }
0x13ac   :  { %v4653_v21 = vadd.f32 %v4649_v50, %v4625_v32  ;;  %v4654_v2 = vadd.f32 %v4650_v56, %v4626_v60  ;;  %v4627_v14 = vadd.f32 %v4623_v44, %v4578_v29  ;;  %v4628_v58 = vadd.f32 %v4624_v24, %v4579_v1  ;;  %v4797_v44 = vpop.permute.xlu1 %4796 }
0x13ad   :  { %v4651_v39 = vmul.f32 %v4644_v34, %v8406_v61  ;;  %v4652_v0 = vmul.f32 %v4648_v43, %v8406_v61  ;;  %v4679_v47 = vmul.f32 %v4672_v53, %v8388_v42  ;;  %v4680_v15 = vmul.f32 %v4676_v28, %v8388_v42 }
0x13ae   :  { %v4681_v3 = vadd.f32 %v4677_v30, %v4653_v21  ;;  %v4682_v31 = vadd.f32 %v4678_v12, %v4654_v2  ;;  %v4702_v19 = vmul.f32 %v4693_v27, %v9120_v11  ;;  %v4703_v46 = vmul.f32 %v4694_v17, %v9121_v13  ;;  %v4795_v27 = vpop.permute.xlu0 %4794  ;;  %v9124_v17 = vld [vmem:[#allocation8_spill] sm:$0xff]  ;;  %v9129_v21 = vld [vmem:[#allocation35_spill] sm:$0xff] }
0x13af   :  { %v4655_v4 = vadd.f32 %v4651_v39, %v4627_v14  ;;  %v4656_v38 = vadd.f32 %v4652_v0, %v4628_v58  ;;  %v4695_v49 = vsel %vm547_vm6, %v4690_v55, %v4692_v25  ;;  %v4701_v36 = vsel %vm547_vm6, %v4692_v25, %v8620_v22  ;;  %v9123_v22 = vld [vmem:[#allocation9_spill] sm:$0xff]  ;;  %v9130_v14 = vld [vmem:[#allocation36_spill] sm:$0xff] }
0x13b0   :  { %v4713_v8 = vrot.slane %v4702_v19, %v6024_v5  ;;  %v4717_v61 = vrot.slane %v4703_v46, %v6024_v5  ;;  %v4741_v62 = vrot.slane %v4702_v19, %v6039_v10  ;;  %v4745_v42 = vrot.slane %v4703_v46, %v6039_v10 }
0x13b1   :  { %v4683_v54 = vadd.f32 %v4679_v47, %v4655_v4  ;;  %v4684_v16 = vadd.f32 %v4680_v15, %v4656_v38  ;;  %v4769_v57 = vrot.slane %v4702_v19, %v6036_v9  ;;  %v4773_v33 = vrot.slane %v4703_v46, %v6036_v9  ;;  %v9133_v4 = vld [vmem:[#allocation37_spill] sm:$0xff] }
0x13b2   :  { %v4726_v55 = vmul.f32 %v4713_v8, %v9122_v37  ;;  %v4727_v40 = vmul.f32 %v4717_v61, %v9122_v37  ;;  %v4754_v18 = vmul.f32 %v4741_v62, %v9123_v22  ;;  %v4755_v51 = vmul.f32 %v4745_v42, %v9123_v22  ;;  %v9135_v8 = vld [vmem:[#allocation39_spill] sm:$0xff] }
0x13b3   :  { %v4782_v29 = vmul.f32 %v4769_v57, %v9124_v17  ;;  %v4783_v1 = vmul.f32 %v4773_v33, %v9124_v17  ;;  %v4704_v23 = vmul.f32 %v4695_v49, %v9125_v35  ;;  %v4705_v41 = vmul.f32 %v4701_v36, %v9126_v6  ;;  %v9134_v49 = vld [vmem:[#allocation38_spill] sm:$0xff] }
0x13b4   :  { %v4730_v59 = vadd.f32 %v4726_v55, %v4681_v3  ;;  %v4731_v45 = vadd.f32 %v4727_v40, %v4682_v31  ;;  %v4798_v20 = vsel %vm9127_vm0, %v4791_v63, %v4793_v7  ;;  %v4799_v48 = vsel %vm9128_vm1, %v4793_v7, %v4795_v27 }
0x13b5   :  { %v4721_v52 = vrot.slane %v4704_v23, %v6024_v5  ;;  %v4725_v26 = vrot.slane %v4705_v41, %v6024_v5  ;;  %v4749_v50 = vrot.slane %v4704_v23, %v6039_v10  ;;  %v4753_v56 = vrot.slane %v4705_v41, %v6039_v10 }
0x13b6   :  { %v4758_v30 = vadd.f32 %v4754_v18, %v4730_v59  ;;  %v4759_v12 = vadd.f32 %v4755_v51, %v4731_v45  ;;  %v4777_v32 = vrot.slane %v4704_v23, %v6036_v9  ;;  %v4781_v60 = vrot.slane %v4705_v41, %v6036_v9 }
0x13b7   :  { %v4728_v24 = vmul.f32 %v4721_v52, %v9122_v37  ;;  %v4729_v25 = vmul.f32 %v4725_v26, %v9122_v37  ;;  %v4756_v34 = vmul.f32 %v4749_v50, %v9123_v22  ;;  %v4757_v43 = vmul.f32 %v4753_v56, %v9123_v22  ;;  %v4841_v37 = vpop.permute.xlu0 %4840 }
0x13b8   :  { %v4784_v53 = vmul.f32 %v4777_v32, %v9124_v17  ;;  %v4785_v28 = vmul.f32 %v4781_v60, %v9124_v17  ;;  %v4807_v2 = vmul.f32 %v4798_v20, %v9129_v21  ;;  %v4808_v58 = vmul.f32 %v4799_v48, %v9130_v14 }
0x13b9   :  { %v4732_v39 = vadd.f32 %v4728_v24, %v4683_v54  ;;  %v4733_v0 = vadd.f32 %v4729_v25, %v4684_v16  ;;  %v4800_v47 = vsel %vm9131_vm2, %v4795_v27, %v4797_v44  ;;  %v4806_v15 = vsel %vm9132_vm3, %v4797_v44, %v4791_v63 }
0x13ba   :  { %v4818_v3 = vrot.slane %v4807_v2, %v6024_v5  ;;  %v4822_v31 = vrot.slane %v4808_v58, %v6024_v5  ;;  %v4874_v11 = vrot.slane %v4807_v2, %v6036_v9  ;;  %v4878_v19 = vrot.slane %v4808_v58, %v6036_v9 }
0x13bb   :  { %v4760_v13 = vadd.f32 %v4756_v34, %v4732_v39  ;;  %v4761_v46 = vadd.f32 %v4757_v43, %v4733_v0  ;;  %v4809_v38 = vmul.f32 %v4800_v47, %v9133_v4  ;;  %v4810_v36 = vmul.f32 %v4806_v15, %v9134_v49  ;;  %v4869_v33 = vpop.permute.xlu1 %4868 }
0x13bc   :  { %v4831_v61 = vmul.f32 %v4818_v3, %v9135_v8  ;;  %v4832_v62 = vmul.f32 %v4822_v31, %v9135_v8  ;;  %v4786_v42 = vadd.f32 %v4782_v29, %v4758_v30  ;;  %v4787_v63 = vadd.f32 %v4783_v1, %v4759_v12 }
0x13bd   :  { %v4826_v7 = vrot.slane %v4809_v38, %v6024_v5  ;;  %v4830_v54 = vrot.slane %v4810_v36, %v6024_v5  ;;  %v4882_v16 = vrot.slane %v4809_v38, %v6036_v9  ;;  %v4886_v57 = vrot.slane %v4810_v36, %v6036_v9 }
0x13be   :  { %v4788_v55 = vadd.f32 %v4784_v53, %v4760_v13  ;;  %v4789_v40 = vadd.f32 %v4785_v28, %v4761_v46  ;;  %v4835_v22 = vadd.f32 %v4831_v61, %v4786_v42  ;;  %v4836_v18 = vadd.f32 %v4832_v62, %v4787_v63 }
0x13bf   :  { %v4833_v51 = vmul.f32 %v4826_v7, %v9135_v8  ;;  %v4834_v27 = vmul.f32 %v4830_v54, %v9135_v8  ;;  %v4846_v17 = vrot.slane %v4807_v2, %v6039_v10  ;;  %v4850_v29 = vrot.slane %v4808_v58, %v6039_v10 }
0x13c0   :  { %v4854_v5 = vrot.slane %v4809_v38, %v6039_v10  ;;  %v4858_v1 = vrot.slane %v4810_v36, %v6039_v10  ;;  %v4887_v35 = vmul.f32 %v4874_v11, %v4869_v33  ;;  %v4888_v9 = vmul.f32 %v4878_v19, %v4869_v33  ;;  %v4897_v12 = vpop.permute.xlu1 %4896 }
0x13c1   :  { %v4837_v23 = vadd.f32 %v4833_v51, %v4788_v55  ;;  %v4838_v6 = vadd.f32 %v4834_v27, %v4789_v40  ;;  %v4859_v41 = vmul.f32 %v4846_v17, %v4841_v37  ;;  %v4860_v59 = vmul.f32 %v4850_v29, %v4841_v37 }
0x13c2   :  { %v4861_v45 = vmul.f32 %v4854_v5, %v4841_v37  ;;  %v4862_v20 = vmul.f32 %v4858_v1, %v4841_v37  ;;  %v4889_v48 = vmul.f32 %v4882_v16, %v4869_v33  ;;  %v4890_v52 = vmul.f32 %v4886_v57, %v4869_v33 }
0x13c3   :  { %v4863_v26 = vadd.f32 %v4859_v41, %v4835_v22  ;;  %v4864_v50 = vadd.f32 %v4860_v59, %v4836_v18 }
0x13c4   :  { %v4865_v56 = vadd.f32 %v4861_v45, %v4837_v23  ;;  %v4866_v30 = vadd.f32 %v4862_v20, %v4838_v6 }
0x13c5   :  { %v4891_v32 = vadd.f32 %v4887_v35, %v4863_v26  ;;  %v4892_v60 = vadd.f32 %v4888_v9, %v4864_v50 }
0x13c6   :  { %v4893_v44 = vadd.f32 %v4889_v48, %v4865_v56  ;;  %v4894_v24 = vadd.f32 %v4890_v52, %v4866_v30 }
0x13c7   :  { %v4899_v10 = vadd.f32 %v4897_v12, %v4891_v32  ;;  %v4900_v25 = vadd.f32 %v4897_v12, %v4892_v60 }
0x13c8   :  { %v4901_v34 = vadd.f32 %v4897_v12, %v4893_v44  ;;  %v4902_v43 = vadd.f32 %v4897_v12, %v4894_v24 }
0x13c9   :  { %v4907_v53 = vcombine.low %v4899_v10, %v4900_v25 }
0x13ca   :  { %v4908_v28 = vcombine.low %v4901_v34, %v4902_v43 }
0x13cb   :  { %4911 = vst [vmem:[%s8745_s11] sm:$0x77] %v4907_v53 }
0x13cc   :  { %4912 = vst [vmem:[%s8745_s11 + $0x8] sm:$0x77] %v4908_v28 }
0x13cd   :  { %4917 = vsyncpa [#allocation3], 1 }
0x13ce   :  { %4918 = vsyncpa [#allocation5], 1 }

</bundles_post_ra>
